<compile_context>
chip_gen: v7x
topology: tpu7x:2x2x1
jax: 0.10.0
libtpu: 0.0.40
codegen_flags: <defaults>
</compile_context>

<pallas_src>
import functools

import jax
import jax.numpy as jnp
from jax.experimental import pallas as pl
from jax.experimental.pallas import tpu as pltpu


CP = 128  # lane-padded channel width (TPU lane count)


# ----------------------------------------------------------------------------
# In-kernel helpers (operate on VALUES only — never on refs)
# ----------------------------------------------------------------------------
def _conv_bias_relu(a, w, b, *, k, stride, out_dtype):
    """a: (H, W, C) bf16, w: (k, k, C, Cout) bf16, b: (1, Cout) f32."""
    H, W, C = a.shape
    cout = w.shape[-1]

    if k == 3:
        # Spatial zero-pad (pad=1) built with concatenates on values.
        zr = jnp.zeros((1, W, C), a.dtype)
        ap = jnp.concatenate([zr, a, zr], axis=0)              # (H+2, W, C)
        zc = jnp.zeros((H + 2, 1, C), a.dtype)
        ap = jnp.concatenate([zc, ap, zc], axis=1)             # (H+2, W+2, C)
        # im2col: gather the 9 shifted windows once, single big-K matmul.
        taps = [
            jax.lax.slice(ap, (kh, kw, 0), (kh + H, kw + W, C))
            for kh in range(3)
            for kw in range(3)
        ]
        patches = jnp.concatenate(taps, axis=-1)               # (H, W, 9*C)
    else:
        patches = a                                            # (H, W, C)

    lhs = patches.reshape(H * W, k * k * C)                    # bf16
    rhs = w.reshape(k * k * C, cout)                           # bf16
    acc = jnp.dot(lhs, rhs, preferred_element_type=jnp.float32)  # f32 accum
    acc = jnp.maximum(acc + b, 0.0)                            # bias + ReLU (f32)
    y = acc.reshape(H, W, cout)

    if stride == 2:
        # Dense output computed above; subsample once (rows then cols) using
        # reshape + unit static slices (no strided sublane loads).
        y = y.reshape(H // 2, 2, W, cout)
        y = jax.lax.slice(y, (0, 0, 0, 0), (H // 2, 1, W, cout))
        y = y.reshape(H // 2, W, cout)
        y = y.reshape(H // 2, W // 2, 2, cout)
        y = jax.lax.slice(y, (0, 0, 0, 0), (H // 2, W // 2, 1, cout))
        y = y.reshape(H // 2, W // 2, cout)

    return y.astype(out_dtype)


def _fused_kernel(x_ref, *refs, configs, num_classes, cp):
    """One batch element per grid step.  refs = [w1,b1, ..., w9,b9, out]."""
    o_ref = refs[-1]
    wb = refs[:-1]

    xb = x_ref[...]                                   # (1, H, W, Cin) f32
    _, H, W, Cin = xb.shape
    a = xb.reshape(H, W, Cin).astype(jnp.bfloat16)
    if Cin < cp:                                      # pad channels to lane width
        a = jnp.concatenate(
            [a, jnp.zeros((H, W, cp - Cin), jnp.bfloat16)], axis=-1)

    n_layers = len(configs)
    for li, (_cin, _cout, k, stride) in enumerate(configs):
        w = wb[2 * li][...]                           # (k, k, cp, cp) bf16
        b = wb[2 * li + 1][...]                       # (1, cp) f32
        out_dtype = jnp.float32 if li == n_layers - 1 else jnp.bfloat16
        a = _conv_bias_relu(a, w, b, k=k, stride=stride, out_dtype=out_dtype)

    # Global average pool over spatial + masked log_softmax over valid classes.
    Hf, Wf, _ = a.shape
    pooled = jnp.sum(a.reshape(Hf * Wf, cp), axis=0, keepdims=True) * (
        1.0 / float(Hf * Wf))                         # (1, cp) f32
    lane = jax.lax.broadcasted_iota(jnp.int32, (1, cp), 1)
    valid = lane < num_classes
    zmax = jnp.max(jnp.where(valid, pooled, -jnp.inf), axis=1, keepdims=True)
    shifted = pooled - zmax
    expz = jnp.where(valid, jnp.exp(shifted), 0.0)
    lse = jnp.log(jnp.sum(expz, axis=1, keepdims=True))
    logp = shifted - lse                              # (1, cp); only [:num_classes] valid

    o_ref[...] = logp[:, :num_classes].reshape(1, 1, num_classes).astype(o_ref.dtype)


# ----------------------------------------------------------------------------
# Wrapper: pads params to lane width, launches the single fused pallas_call
# ----------------------------------------------------------------------------
@functools.partial(jax.jit, static_argnames=("configs", "num_classes"))
def forward_pallas(x_nchw, params, *, configs, num_classes):
    x = jnp.transpose(x_nchw, (0, 2, 3, 1))           # NCHW -> NHWC
    N, H, W, C = x.shape

    args = [x]
    in_specs = [pl.BlockSpec((1, H, W, C), lambda n: (n, 0, 0, 0))]
    for (w, b), (cin, cout, k, _stride) in zip(params, configs):
        wp = (jnp.zeros((k, k, CP, CP), jnp.float32)
              .at[:, :, :cin, :cout].set(w)).astype(jnp.bfloat16)
        bp = jnp.zeros((1, CP), jnp.float32).at[0, :cout].set(b)
        args += [wp, bp]
        in_specs.append(pl.BlockSpec((k, k, CP, CP), lambda n: (0, 0, 0, 0)))
        in_specs.append(pl.BlockSpec((1, CP), lambda n: (0, 0)))

    kernel = functools.partial(
        _fused_kernel, configs=configs, num_classes=num_classes, cp=CP)

    out = pl.pallas_call(
        kernel,
        out_shape=jax.ShapeDtypeStruct((N, 1, num_classes), jnp.float32),
        grid=(N,),
        in_specs=in_specs,
        out_specs=pl.BlockSpec((1, 1, num_classes), lambda n: (n, 0, 0)),
        compiler_params=pltpu.CompilerParams(
            dimension_semantics=("parallel",)),
    )(*args)
    return out.reshape(N, num_classes)


# ----------------------------------------------------------------------------
# Model config / params / pure-JAX reference
# ----------------------------------------------------------------------------
def make_layer_configs(c, filters, num_classes):
    f, f2 = filters, filters * 2
    # (cin, cout, kernel, stride) for conv1..conv8, class_conv
    return (
        (c, f, 3, 1),
        (f, f, 3, 1),
        (f, f, 3, 2),
        (f, f2, 3, 1),
        (f2, f2, 3, 1),
        (f2, f2, 3, 2),
        (f2, f2, 3, 1),
        (f2, f2, 1, 1),
        (f2, num_classes, 1, 1),
    )


def init_params(key, configs):
    params = []
    for (cin, cout, k, _stride) in configs:
        key, kw_, kb_ = jax.random.split(key, 3)
        fan_in = cin * k * k
        bound = 1.0 / jnp.sqrt(jnp.float32(fan_in))
        w = jax.random.uniform(kw_, (k, k, cin, cout), jnp.float32, -bound, bound)
        b = jax.random.uniform(kb_, (cout,), jnp.float32, -bound, bound)
        params.append((w, b))
    return tuple(params)


def forward_reference(x_nchw, params, configs):
    x = jnp.transpose(x_nchw, (0, 2, 3, 1)).astype(jnp.float32)
    for (w, b), (_cin, _cout, k, stride) in zip(params, configs):
        pad = 1 if k == 3 else 0
        x = jax.lax.conv_general_dilated(
            x, w, window_strides=(stride, stride),
            padding=[(pad, pad), (pad, pad)],
            dimension_numbers=("NHWC", "HWIO", "NHWC"),
            precision=jax.lax.Precision.HIGHEST,
        )
        x = jnp.maximum(x + b, 0.0)
    pool = jnp.mean(x, axis=(1, 2))
    return jax.nn.log_softmax(pool, axis=1)


if __name__ == "__main__":
    # Small config consistent with the module: input_shape=(h,w,c)=(16,16,4),
    # filters=16 (-> filters2=32), num_classes=10, batch=2.
    H, W, C = 16, 16, 4
    filters = 16
    num_classes = 10
    N = 2

    key = jax.random.PRNGKey(0)
    kx, kp = jax.random.split(key)
    x = jax.random.normal(kx, (N, C, H, W), jnp.float32)   # PyTorch-style NCHW input

    configs = make_layer_configs(C, filters, num_classes)
    params = init_params(kp, configs)

    out = forward_pallas(x, params, configs=configs, num_classes=num_classes)
    out = jax.block_until_ready(out)

    ref = forward_reference(x, params, configs)
    assert out.shape == (N, num_classes), out.shape
    max_err = float(jnp.max(jnp.abs(out - ref)))
    # Kernel uses bf16 MXU operands with f32 accumulation; reference is full f32
    # HIGHEST, so allow a modest tolerance (observed error is far smaller).
    assert jnp.allclose(out, ref, atol=1e-2, rtol=1e-2), ("mismatch vs reference", max_err)

    print("KERNEL_OK")
</pallas_src>

<mosaic_0001>
module attributes {stable_mosaic.version = 11 : i64} {
  func.func @_fused_kernel(%arg0: i32, %arg1: memref<1x16x16x4xf32, #tpu.memory_space<vmem>>, %arg2: memref<3x3x128x128xbf16, #tpu.memory_space<vmem>>, %arg3: memref<1x128xf32, #tpu.memory_space<vmem>>, %arg4: memref<3x3x128x128xbf16, #tpu.memory_space<vmem>>, %arg5: memref<1x128xf32, #tpu.memory_space<vmem>>, %arg6: memref<3x3x128x128xbf16, #tpu.memory_space<vmem>>, %arg7: memref<1x128xf32, #tpu.memory_space<vmem>>, %arg8: memref<3x3x128x128xbf16, #tpu.memory_space<vmem>>, %arg9: memref<1x128xf32, #tpu.memory_space<vmem>>, %arg10: memref<3x3x128x128xbf16, #tpu.memory_space<vmem>>, %arg11: memref<1x128xf32, #tpu.memory_space<vmem>>, %arg12: memref<3x3x128x128xbf16, #tpu.memory_space<vmem>>, %arg13: memref<1x128xf32, #tpu.memory_space<vmem>>, %arg14: memref<3x3x128x128xbf16, #tpu.memory_space<vmem>>, %arg15: memref<1x128xf32, #tpu.memory_space<vmem>>, %arg16: memref<1x1x128x128xbf16, #tpu.memory_space<vmem>>, %arg17: memref<1x128xf32, #tpu.memory_space<vmem>>, %arg18: memref<1x1x128x128xbf16, #tpu.memory_space<vmem>>, %arg19: memref<1x128xf32, #tpu.memory_space<vmem>>, %arg20: memref<1x1x10xf32, #tpu.memory_space<vmem>>) attributes {dimension_semantics = [#tpu.dimension_semantics<parallel>], iteration_bounds = array<i64: 2>, scalar_prefetch = 0 : i64, scratch_operands = 0 : i64, tpu.core_type = #tpu.core_type<tc>, window_params = [{transform_indices = @transform_0, window_bounds = array<i64: 1, 16, 16, 4>}, {pipeline_mode = #tpu.pipeline_mode<synchronous>, transform_indices = @transform_1, window_bounds = array<i64: 3, 3, 128, 128>}, {pipeline_mode = #tpu.pipeline_mode<synchronous>, transform_indices = @transform_2, window_bounds = array<i64: 1, 128>}, {pipeline_mode = #tpu.pipeline_mode<synchronous>, transform_indices = @transform_3, window_bounds = array<i64: 3, 3, 128, 128>}, {pipeline_mode = #tpu.pipeline_mode<synchronous>, transform_indices = @transform_4, window_bounds = array<i64: 1, 128>}, {pipeline_mode = #tpu.pipeline_mode<synchronous>, transform_indices = @transform_5, window_bounds = array<i64: 3, 3, 128, 128>}, {pipeline_mode = #tpu.pipeline_mode<synchronous>, transform_indices = @transform_6, window_bounds = array<i64: 1, 128>}, {pipeline_mode = #tpu.pipeline_mode<synchronous>, transform_indices = @transform_7, window_bounds = array<i64: 3, 3, 128, 128>}, {pipeline_mode = #tpu.pipeline_mode<synchronous>, transform_indices = @transform_8, window_bounds = array<i64: 1, 128>}, {pipeline_mode = #tpu.pipeline_mode<synchronous>, transform_indices = @transform_9, window_bounds = array<i64: 3, 3, 128, 128>}, {pipeline_mode = #tpu.pipeline_mode<synchronous>, transform_indices = @transform_10, window_bounds = array<i64: 1, 128>}, {pipeline_mode = #tpu.pipeline_mode<synchronous>, transform_indices = @transform_11, window_bounds = array<i64: 3, 3, 128, 128>}, {pipeline_mode = #tpu.pipeline_mode<synchronous>, transform_indices = @transform_12, window_bounds = array<i64: 1, 128>}, {pipeline_mode = #tpu.pipeline_mode<synchronous>, transform_indices = @transform_13, window_bounds = array<i64: 3, 3, 128, 128>}, {pipeline_mode = #tpu.pipeline_mode<synchronous>, transform_indices = @transform_14, window_bounds = array<i64: 1, 128>}, {pipeline_mode = #tpu.pipeline_mode<synchronous>, transform_indices = @transform_15, window_bounds = array<i64: 1, 1, 128, 128>}, {pipeline_mode = #tpu.pipeline_mode<synchronous>, transform_indices = @transform_16, window_bounds = array<i64: 1, 128>}, {pipeline_mode = #tpu.pipeline_mode<synchronous>, transform_indices = @transform_17, window_bounds = array<i64: 1, 1, 128, 128>}, {pipeline_mode = #tpu.pipeline_mode<synchronous>, transform_indices = @transform_18, window_bounds = array<i64: 1, 128>}, {transform_indices = @transform_19, window_bounds = array<i64: 1, 1, 10>}]} {
    %c0 = arith.constant 0 : index
    %c0_0 = arith.constant 0 : index
    %c0_1 = arith.constant 0 : index
    %c0_2 = arith.constant 0 : index
    %0 = vector.load %arg1[%c0, %c0_0, %c0_1, %c0_2] : memref<1x16x16x4xf32, #tpu.memory_space<vmem>>, vector<1x16x16x4xf32>
    %1 = vector.shape_cast %0 : vector<1x16x16x4xf32> to vector<16x16x4xf32>
    %2 = arith.truncf %1 : vector<16x16x4xf32> to vector<16x16x4xbf16>
    %cst = arith.constant 0.000000e+00 : bf16
    %3 = vector.broadcast %cst : bf16 to vector<16x16x124xbf16>
    %4 = tpu.concatenate %2, %3 in 2 : vector<16x16x4xbf16>, vector<16x16x124xbf16> -> vector<16x16x128xbf16>
    %c0_3 = arith.constant 0 : index
    %c0_4 = arith.constant 0 : index
    %c0_5 = arith.constant 0 : index
    %c0_6 = arith.constant 0 : index
    %5 = vector.load %arg2[%c0_3, %c0_4, %c0_5, %c0_6] : memref<3x3x128x128xbf16, #tpu.memory_space<vmem>>, vector<3x3x128x128xbf16>
    %c0_7 = arith.constant 0 : index
    %c0_8 = arith.constant 0 : index
    %6 = vector.load %arg3[%c0_7, %c0_8] : memref<1x128xf32, #tpu.memory_space<vmem>>, vector<1x128xf32>
    %cst_9 = arith.constant 0.000000e+00 : bf16
    %7 = vector.broadcast %cst_9 : bf16 to vector<1x16x128xbf16>
    %8 = tpu.concatenate %7, %4, %7 in 0 : vector<1x16x128xbf16>, vector<16x16x128xbf16>, vector<1x16x128xbf16> -> vector<18x16x128xbf16>
    %cst_10 = arith.constant 0.000000e+00 : bf16
    %9 = vector.broadcast %cst_10 : bf16 to vector<18x1x128xbf16>
    %10 = tpu.concatenate %9, %8, %9 in 1 : vector<18x1x128xbf16>, vector<18x16x128xbf16>, vector<18x1x128xbf16> -> vector<18x18x128xbf16>
    %11 = vector.extract_strided_slice %10 {offsets = [0, 0, 0], sizes = [16, 16, 128], strides = [1, 1, 1]} : vector<18x18x128xbf16> to vector<16x16x128xbf16>
    %12 = vector.extract_strided_slice %10 {offsets = [0, 1, 0], sizes = [16, 16, 128], strides = [1, 1, 1]} : vector<18x18x128xbf16> to vector<16x16x128xbf16>
    %13 = vector.extract_strided_slice %10 {offsets = [0, 2, 0], sizes = [16, 16, 128], strides = [1, 1, 1]} : vector<18x18x128xbf16> to vector<16x16x128xbf16>
    %14 = vector.extract_strided_slice %10 {offsets = [1, 0, 0], sizes = [16, 16, 128], strides = [1, 1, 1]} : vector<18x18x128xbf16> to vector<16x16x128xbf16>
    %15 = vector.extract_strided_slice %10 {offsets = [1, 1, 0], sizes = [16, 16, 128], strides = [1, 1, 1]} : vector<18x18x128xbf16> to vector<16x16x128xbf16>
    %16 = vector.extract_strided_slice %10 {offsets = [1, 2, 0], sizes = [16, 16, 128], strides = [1, 1, 1]} : vector<18x18x128xbf16> to vector<16x16x128xbf16>
    %17 = vector.extract_strided_slice %10 {offsets = [2, 0, 0], sizes = [16, 16, 128], strides = [1, 1, 1]} : vector<18x18x128xbf16> to vector<16x16x128xbf16>
    %18 = vector.extract_strided_slice %10 {offsets = [2, 1, 0], sizes = [16, 16, 128], strides = [1, 1, 1]} : vector<18x18x128xbf16> to vector<16x16x128xbf16>
    %19 = vector.extract_strided_slice %10 {offsets = [2, 2, 0], sizes = [16, 16, 128], strides = [1, 1, 1]} : vector<18x18x128xbf16> to vector<16x16x128xbf16>
    %20 = tpu.concatenate %11, %12, %13, %14, %15, %16, %17, %18, %19 in 2 : vector<16x16x128xbf16>, vector<16x16x128xbf16>, vector<16x16x128xbf16>, vector<16x16x128xbf16>, vector<16x16x128xbf16>, vector<16x16x128xbf16>, vector<16x16x128xbf16>, vector<16x16x128xbf16>, vector<16x16x128xbf16> -> vector<16x16x1152xbf16>
    %21 = vector.shape_cast %20 : vector<16x16x1152xbf16> to vector<256x1152xbf16>
    %22 = vector.shape_cast %5 : vector<3x3x128x128xbf16> to vector<1152x128xbf16>
    %cst_11 = arith.constant dense<0.000000e+00> : vector<256x128xf32>
    %23 = tpu.matmul %21, %22, %cst_11 {dimension_numbers = #tpu.dot_dimension_numbers<[1], [0], [0], [1], [0, 0, 1, 1], [], []>} : vector<256x1152xbf16>, vector<1152x128xbf16>, vector<256x128xf32> -> vector<256x128xf32>
    %24 = vector.broadcast %6 : vector<1x128xf32> to vector<256x128xf32>
    %25 = arith.addf %23, %24 : vector<256x128xf32>
    %cst_12 = arith.constant 0.000000e+00 : f32
    %26 = vector.broadcast %cst_12 : f32 to vector<256x128xf32>
    %27 = arith.maximumf %25, %26 : vector<256x128xf32>
    %28 = vector.shape_cast %27 : vector<256x128xf32> to vector<16x16x128xf32>
    %29 = arith.truncf %28 : vector<16x16x128xf32> to vector<16x16x128xbf16>
    %c0_13 = arith.constant 0 : index
    %c0_14 = arith.constant 0 : index
    %c0_15 = arith.constant 0 : index
    %c0_16 = arith.constant 0 : index
    %30 = vector.load %arg4[%c0_13, %c0_14, %c0_15, %c0_16] : memref<3x3x128x128xbf16, #tpu.memory_space<vmem>>, vector<3x3x128x128xbf16>
    %c0_17 = arith.constant 0 : index
    %c0_18 = arith.constant 0 : index
    %31 = vector.load %arg5[%c0_17, %c0_18] : memref<1x128xf32, #tpu.memory_space<vmem>>, vector<1x128xf32>
    %cst_19 = arith.constant 0.000000e+00 : bf16
    %32 = vector.broadcast %cst_19 : bf16 to vector<1x16x128xbf16>
    %33 = tpu.concatenate %32, %29, %32 in 0 : vector<1x16x128xbf16>, vector<16x16x128xbf16>, vector<1x16x128xbf16> -> vector<18x16x128xbf16>
    %cst_20 = arith.constant 0.000000e+00 : bf16
    %34 = vector.broadcast %cst_20 : bf16 to vector<18x1x128xbf16>
    %35 = tpu.concatenate %34, %33, %34 in 1 : vector<18x1x128xbf16>, vector<18x16x128xbf16>, vector<18x1x128xbf16> -> vector<18x18x128xbf16>
    %36 = vector.extract_strided_slice %35 {offsets = [0, 0, 0], sizes = [16, 16, 128], strides = [1, 1, 1]} : vector<18x18x128xbf16> to vector<16x16x128xbf16>
    %37 = vector.extract_strided_slice %35 {offsets = [0, 1, 0], sizes = [16, 16, 128], strides = [1, 1, 1]} : vector<18x18x128xbf16> to vector<16x16x128xbf16>
    %38 = vector.extract_strided_slice %35 {offsets = [0, 2, 0], sizes = [16, 16, 128], strides = [1, 1, 1]} : vector<18x18x128xbf16> to vector<16x16x128xbf16>
    %39 = vector.extract_strided_slice %35 {offsets = [1, 0, 0], sizes = [16, 16, 128], strides = [1, 1, 1]} : vector<18x18x128xbf16> to vector<16x16x128xbf16>
    %40 = vector.extract_strided_slice %35 {offsets = [1, 1, 0], sizes = [16, 16, 128], strides = [1, 1, 1]} : vector<18x18x128xbf16> to vector<16x16x128xbf16>
    %41 = vector.extract_strided_slice %35 {offsets = [1, 2, 0], sizes = [16, 16, 128], strides = [1, 1, 1]} : vector<18x18x128xbf16> to vector<16x16x128xbf16>
    %42 = vector.extract_strided_slice %35 {offsets = [2, 0, 0], sizes = [16, 16, 128], strides = [1, 1, 1]} : vector<18x18x128xbf16> to vector<16x16x128xbf16>
    %43 = vector.extract_strided_slice %35 {offsets = [2, 1, 0], sizes = [16, 16, 128], strides = [1, 1, 1]} : vector<18x18x128xbf16> to vector<16x16x128xbf16>
    %44 = vector.extract_strided_slice %35 {offsets = [2, 2, 0], sizes = [16, 16, 128], strides = [1, 1, 1]} : vector<18x18x128xbf16> to vector<16x16x128xbf16>
    %45 = tpu.concatenate %36, %37, %38, %39, %40, %41, %42, %43, %44 in 2 : vector<16x16x128xbf16>, vector<16x16x128xbf16>, vector<16x16x128xbf16>, vector<16x16x128xbf16>, vector<16x16x128xbf16>, vector<16x16x128xbf16>, vector<16x16x128xbf16>, vector<16x16x128xbf16>, vector<16x16x128xbf16> -> vector<16x16x1152xbf16>
    %46 = vector.shape_cast %45 : vector<16x16x1152xbf16> to vector<256x1152xbf16>
    %47 = vector.shape_cast %30 : vector<3x3x128x128xbf16> to vector<1152x128xbf16>
    %cst_21 = arith.constant dense<0.000000e+00> : vector<256x128xf32>
    %48 = tpu.matmul %46, %47, %cst_21 {dimension_numbers = #tpu.dot_dimension_numbers<[1], [0], [0], [1], [0, 0, 1, 1], [], []>} : vector<256x1152xbf16>, vector<1152x128xbf16>, vector<256x128xf32> -> vector<256x128xf32>
    %49 = vector.broadcast %31 : vector<1x128xf32> to vector<256x128xf32>
    %50 = arith.addf %48, %49 : vector<256x128xf32>
    %cst_22 = arith.constant 0.000000e+00 : f32
    %51 = vector.broadcast %cst_22 : f32 to vector<256x128xf32>
    %52 = arith.maximumf %50, %51 : vector<256x128xf32>
    %53 = vector.shape_cast %52 : vector<256x128xf32> to vector<16x16x128xf32>
    %54 = arith.truncf %53 : vector<16x16x128xf32> to vector<16x16x128xbf16>
    %c0_23 = arith.constant 0 : index
    %c0_24 = arith.constant 0 : index
    %c0_25 = arith.constant 0 : index
    %c0_26 = arith.constant 0 : index
    %55 = vector.load %arg6[%c0_23, %c0_24, %c0_25, %c0_26] : memref<3x3x128x128xbf16, #tpu.memory_space<vmem>>, vector<3x3x128x128xbf16>
    %c0_27 = arith.constant 0 : index
    %c0_28 = arith.constant 0 : index
    %56 = vector.load %arg7[%c0_27, %c0_28] : memref<1x128xf32, #tpu.memory_space<vmem>>, vector<1x128xf32>
    %cst_29 = arith.constant 0.000000e+00 : bf16
    %57 = vector.broadcast %cst_29 : bf16 to vector<1x16x128xbf16>
    %58 = tpu.concatenate %57, %54, %57 in 0 : vector<1x16x128xbf16>, vector<16x16x128xbf16>, vector<1x16x128xbf16> -> vector<18x16x128xbf16>
    %cst_30 = arith.constant 0.000000e+00 : bf16
    %59 = vector.broadcast %cst_30 : bf16 to vector<18x1x128xbf16>
    %60 = tpu.concatenate %59, %58, %59 in 1 : vector<18x1x128xbf16>, vector<18x16x128xbf16>, vector<18x1x128xbf16> -> vector<18x18x128xbf16>
    %61 = vector.extract_strided_slice %60 {offsets = [0, 0, 0], sizes = [16, 16, 128], strides = [1, 1, 1]} : vector<18x18x128xbf16> to vector<16x16x128xbf16>
    %62 = vector.extract_strided_slice %60 {offsets = [0, 1, 0], sizes = [16, 16, 128], strides = [1, 1, 1]} : vector<18x18x128xbf16> to vector<16x16x128xbf16>
    %63 = vector.extract_strided_slice %60 {offsets = [0, 2, 0], sizes = [16, 16, 128], strides = [1, 1, 1]} : vector<18x18x128xbf16> to vector<16x16x128xbf16>
    %64 = vector.extract_strided_slice %60 {offsets = [1, 0, 0], sizes = [16, 16, 128], strides = [1, 1, 1]} : vector<18x18x128xbf16> to vector<16x16x128xbf16>
    %65 = vector.extract_strided_slice %60 {offsets = [1, 1, 0], sizes = [16, 16, 128], strides = [1, 1, 1]} : vector<18x18x128xbf16> to vector<16x16x128xbf16>
    %66 = vector.extract_strided_slice %60 {offsets = [1, 2, 0], sizes = [16, 16, 128], strides = [1, 1, 1]} : vector<18x18x128xbf16> to vector<16x16x128xbf16>
    %67 = vector.extract_strided_slice %60 {offsets = [2, 0, 0], sizes = [16, 16, 128], strides = [1, 1, 1]} : vector<18x18x128xbf16> to vector<16x16x128xbf16>
    %68 = vector.extract_strided_slice %60 {offsets = [2, 1, 0], sizes = [16, 16, 128], strides = [1, 1, 1]} : vector<18x18x128xbf16> to vector<16x16x128xbf16>
    %69 = vector.extract_strided_slice %60 {offsets = [2, 2, 0], sizes = [16, 16, 128], strides = [1, 1, 1]} : vector<18x18x128xbf16> to vector<16x16x128xbf16>
    %70 = tpu.concatenate %61, %62, %63, %64, %65, %66, %67, %68, %69 in 2 : vector<16x16x128xbf16>, vector<16x16x128xbf16>, vector<16x16x128xbf16>, vector<16x16x128xbf16>, vector<16x16x128xbf16>, vector<16x16x128xbf16>, vector<16x16x128xbf16>, vector<16x16x128xbf16>, vector<16x16x128xbf16> -> vector<16x16x1152xbf16>
    %71 = vector.shape_cast %70 : vector<16x16x1152xbf16> to vector<256x1152xbf16>
    %72 = vector.shape_cast %55 : vector<3x3x128x128xbf16> to vector<1152x128xbf16>
    %cst_31 = arith.constant dense<0.000000e+00> : vector<256x128xf32>
    %73 = tpu.matmul %71, %72, %cst_31 {dimension_numbers = #tpu.dot_dimension_numbers<[1], [0], [0], [1], [0, 0, 1, 1], [], []>} : vector<256x1152xbf16>, vector<1152x128xbf16>, vector<256x128xf32> -> vector<256x128xf32>
    %74 = vector.broadcast %56 : vector<1x128xf32> to vector<256x128xf32>
    %75 = arith.addf %73, %74 : vector<256x128xf32>
    %cst_32 = arith.constant 0.000000e+00 : f32
    %76 = vector.broadcast %cst_32 : f32 to vector<256x128xf32>
    %77 = arith.maximumf %75, %76 : vector<256x128xf32>
    %78 = vector.shape_cast %77 : vector<256x128xf32> to vector<16x16x128xf32>
    %79 = vector.shape_cast %78 : vector<16x16x128xf32> to vector<8x2x16x128xf32>
    %80 = vector.extract_strided_slice %79 {offsets = [0, 0, 0, 0], sizes = [8, 1, 16, 128], strides = [1, 1, 1, 1]} : vector<8x2x16x128xf32> to vector<8x1x16x128xf32>
    %81 = vector.shape_cast %80 : vector<8x1x16x128xf32> to vector<8x16x128xf32>
    %82 = vector.shape_cast %81 : vector<8x16x128xf32> to vector<8x8x2x128xf32>
    %83 = vector.extract_strided_slice %82 {offsets = [0, 0, 0, 0], sizes = [8, 8, 1, 128], strides = [1, 1, 1, 1]} : vector<8x8x2x128xf32> to vector<8x8x1x128xf32>
    %84 = vector.shape_cast %83 : vector<8x8x1x128xf32> to vector<8x8x128xf32>
    %85 = arith.truncf %84 : vector<8x8x128xf32> to vector<8x8x128xbf16>
    %c0_33 = arith.constant 0 : index
    %c0_34 = arith.constant 0 : index
    %c0_35 = arith.constant 0 : index
    %c0_36 = arith.constant 0 : index
    %86 = vector.load %arg8[%c0_33, %c0_34, %c0_35, %c0_36] : memref<3x3x128x128xbf16, #tpu.memory_space<vmem>>, vector<3x3x128x128xbf16>
    %c0_37 = arith.constant 0 : index
    %c0_38 = arith.constant 0 : index
    %87 = vector.load %arg9[%c0_37, %c0_38] : memref<1x128xf32, #tpu.memory_space<vmem>>, vector<1x128xf32>
    %cst_39 = arith.constant 0.000000e+00 : bf16
    %88 = vector.broadcast %cst_39 : bf16 to vector<1x8x128xbf16>
    %89 = tpu.concatenate %88, %85, %88 in 0 : vector<1x8x128xbf16>, vector<8x8x128xbf16>, vector<1x8x128xbf16> -> vector<10x8x128xbf16>
    %cst_40 = arith.constant 0.000000e+00 : bf16
    %90 = vector.broadcast %cst_40 : bf16 to vector<10x1x128xbf16>
    %91 = tpu.concatenate %90, %89, %90 in 1 : vector<10x1x128xbf16>, vector<10x8x128xbf16>, vector<10x1x128xbf16> -> vector<10x10x128xbf16>
    %92 = vector.extract_strided_slice %91 {offsets = [0, 0, 0], sizes = [8, 8, 128], strides = [1, 1, 1]} : vector<10x10x128xbf16> to vector<8x8x128xbf16>
    %93 = vector.extract_strided_slice %91 {offsets = [0, 1, 0], sizes = [8, 8, 128], strides = [1, 1, 1]} : vector<10x10x128xbf16> to vector<8x8x128xbf16>
    %94 = vector.extract_strided_slice %91 {offsets = [0, 2, 0], sizes = [8, 8, 128], strides = [1, 1, 1]} : vector<10x10x128xbf16> to vector<8x8x128xbf16>
    %95 = vector.extract_strided_slice %91 {offsets = [1, 0, 0], sizes = [8, 8, 128], strides = [1, 1, 1]} : vector<10x10x128xbf16> to vector<8x8x128xbf16>
    %96 = vector.extract_strided_slice %91 {offsets = [1, 1, 0], sizes = [8, 8, 128], strides = [1, 1, 1]} : vector<10x10x128xbf16> to vector<8x8x128xbf16>
    %97 = vector.extract_strided_slice %91 {offsets = [1, 2, 0], sizes = [8, 8, 128], strides = [1, 1, 1]} : vector<10x10x128xbf16> to vector<8x8x128xbf16>
    %98 = vector.extract_strided_slice %91 {offsets = [2, 0, 0], sizes = [8, 8, 128], strides = [1, 1, 1]} : vector<10x10x128xbf16> to vector<8x8x128xbf16>
    %99 = vector.extract_strided_slice %91 {offsets = [2, 1, 0], sizes = [8, 8, 128], strides = [1, 1, 1]} : vector<10x10x128xbf16> to vector<8x8x128xbf16>
    %100 = vector.extract_strided_slice %91 {offsets = [2, 2, 0], sizes = [8, 8, 128], strides = [1, 1, 1]} : vector<10x10x128xbf16> to vector<8x8x128xbf16>
    %101 = tpu.concatenate %92, %93, %94, %95, %96, %97, %98, %99, %100 in 2 : vector<8x8x128xbf16>, vector<8x8x128xbf16>, vector<8x8x128xbf16>, vector<8x8x128xbf16>, vector<8x8x128xbf16>, vector<8x8x128xbf16>, vector<8x8x128xbf16>, vector<8x8x128xbf16>, vector<8x8x128xbf16> -> vector<8x8x1152xbf16>
    %102 = vector.shape_cast %101 : vector<8x8x1152xbf16> to vector<64x1152xbf16>
    %103 = vector.shape_cast %86 : vector<3x3x128x128xbf16> to vector<1152x128xbf16>
    %cst_41 = arith.constant dense<0.000000e+00> : vector<64x128xf32>
    %104 = tpu.matmul %102, %103, %cst_41 {dimension_numbers = #tpu.dot_dimension_numbers<[1], [0], [0], [1], [0, 0, 1, 1], [], []>} : vector<64x1152xbf16>, vector<1152x128xbf16>, vector<64x128xf32> -> vector<64x128xf32>
    %105 = vector.broadcast %87 : vector<1x128xf32> to vector<64x128xf32>
    %106 = arith.addf %104, %105 : vector<64x128xf32>
    %cst_42 = arith.constant 0.000000e+00 : f32
    %107 = vector.broadcast %cst_42 : f32 to vector<64x128xf32>
    %108 = arith.maximumf %106, %107 : vector<64x128xf32>
    %109 = vector.shape_cast %108 : vector<64x128xf32> to vector<8x8x128xf32>
    %110 = arith.truncf %109 : vector<8x8x128xf32> to vector<8x8x128xbf16>
    %c0_43 = arith.constant 0 : index
    %c0_44 = arith.constant 0 : index
    %c0_45 = arith.constant 0 : index
    %c0_46 = arith.constant 0 : index
    %111 = vector.load %arg10[%c0_43, %c0_44, %c0_45, %c0_46] : memref<3x3x128x128xbf16, #tpu.memory_space<vmem>>, vector<3x3x128x128xbf16>
    %c0_47 = arith.constant 0 : index
    %c0_48 = arith.constant 0 : index
    %112 = vector.load %arg11[%c0_47, %c0_48] : memref<1x128xf32, #tpu.memory_space<vmem>>, vector<1x128xf32>
    %cst_49 = arith.constant 0.000000e+00 : bf16
    %113 = vector.broadcast %cst_49 : bf16 to vector<1x8x128xbf16>
    %114 = tpu.concatenate %113, %110, %113 in 0 : vector<1x8x128xbf16>, vector<8x8x128xbf16>, vector<1x8x128xbf16> -> vector<10x8x128xbf16>
    %cst_50 = arith.constant 0.000000e+00 : bf16
    %115 = vector.broadcast %cst_50 : bf16 to vector<10x1x128xbf16>
    %116 = tpu.concatenate %115, %114, %115 in 1 : vector<10x1x128xbf16>, vector<10x8x128xbf16>, vector<10x1x128xbf16> -> vector<10x10x128xbf16>
    %117 = vector.extract_strided_slice %116 {offsets = [0, 0, 0], sizes = [8, 8, 128], strides = [1, 1, 1]} : vector<10x10x128xbf16> to vector<8x8x128xbf16>
    %118 = vector.extract_strided_slice %116 {offsets = [0, 1, 0], sizes = [8, 8, 128], strides = [1, 1, 1]} : vector<10x10x128xbf16> to vector<8x8x128xbf16>
    %119 = vector.extract_strided_slice %116 {offsets = [0, 2, 0], sizes = [8, 8, 128], strides = [1, 1, 1]} : vector<10x10x128xbf16> to vector<8x8x128xbf16>
    %120 = vector.extract_strided_slice %116 {offsets = [1, 0, 0], sizes = [8, 8, 128], strides = [1, 1, 1]} : vector<10x10x128xbf16> to vector<8x8x128xbf16>
    %121 = vector.extract_strided_slice %116 {offsets = [1, 1, 0], sizes = [8, 8, 128], strides = [1, 1, 1]} : vector<10x10x128xbf16> to vector<8x8x128xbf16>
    %122 = vector.extract_strided_slice %116 {offsets = [1, 2, 0], sizes = [8, 8, 128], strides = [1, 1, 1]} : vector<10x10x128xbf16> to vector<8x8x128xbf16>
    %123 = vector.extract_strided_slice %116 {offsets = [2, 0, 0], sizes = [8, 8, 128], strides = [1, 1, 1]} : vector<10x10x128xbf16> to vector<8x8x128xbf16>
    %124 = vector.extract_strided_slice %116 {offsets = [2, 1, 0], sizes = [8, 8, 128], strides = [1, 1, 1]} : vector<10x10x128xbf16> to vector<8x8x128xbf16>
    %125 = vector.extract_strided_slice %116 {offsets = [2, 2, 0], sizes = [8, 8, 128], strides = [1, 1, 1]} : vector<10x10x128xbf16> to vector<8x8x128xbf16>
    %126 = tpu.concatenate %117, %118, %119, %120, %121, %122, %123, %124, %125 in 2 : vector<8x8x128xbf16>, vector<8x8x128xbf16>, vector<8x8x128xbf16>, vector<8x8x128xbf16>, vector<8x8x128xbf16>, vector<8x8x128xbf16>, vector<8x8x128xbf16>, vector<8x8x128xbf16>, vector<8x8x128xbf16> -> vector<8x8x1152xbf16>
    %127 = vector.shape_cast %126 : vector<8x8x1152xbf16> to vector<64x1152xbf16>
    %128 = vector.shape_cast %111 : vector<3x3x128x128xbf16> to vector<1152x128xbf16>
    %cst_51 = arith.constant dense<0.000000e+00> : vector<64x128xf32>
    %129 = tpu.matmul %127, %128, %cst_51 {dimension_numbers = #tpu.dot_dimension_numbers<[1], [0], [0], [1], [0, 0, 1, 1], [], []>} : vector<64x1152xbf16>, vector<1152x128xbf16>, vector<64x128xf32> -> vector<64x128xf32>
    %130 = vector.broadcast %112 : vector<1x128xf32> to vector<64x128xf32>
    %131 = arith.addf %129, %130 : vector<64x128xf32>
    %cst_52 = arith.constant 0.000000e+00 : f32
    %132 = vector.broadcast %cst_52 : f32 to vector<64x128xf32>
    %133 = arith.maximumf %131, %132 : vector<64x128xf32>
    %134 = vector.shape_cast %133 : vector<64x128xf32> to vector<8x8x128xf32>
    %135 = arith.truncf %134 : vector<8x8x128xf32> to vector<8x8x128xbf16>
    %c0_53 = arith.constant 0 : index
    %c0_54 = arith.constant 0 : index
    %c0_55 = arith.constant 0 : index
    %c0_56 = arith.constant 0 : index
    %136 = vector.load %arg12[%c0_53, %c0_54, %c0_55, %c0_56] : memref<3x3x128x128xbf16, #tpu.memory_space<vmem>>, vector<3x3x128x128xbf16>
    %c0_57 = arith.constant 0 : index
    %c0_58 = arith.constant 0 : index
    %137 = vector.load %arg13[%c0_57, %c0_58] : memref<1x128xf32, #tpu.memory_space<vmem>>, vector<1x128xf32>
    %cst_59 = arith.constant 0.000000e+00 : bf16
    %138 = vector.broadcast %cst_59 : bf16 to vector<1x8x128xbf16>
    %139 = tpu.concatenate %138, %135, %138 in 0 : vector<1x8x128xbf16>, vector<8x8x128xbf16>, vector<1x8x128xbf16> -> vector<10x8x128xbf16>
    %cst_60 = arith.constant 0.000000e+00 : bf16
    %140 = vector.broadcast %cst_60 : bf16 to vector<10x1x128xbf16>
    %141 = tpu.concatenate %140, %139, %140 in 1 : vector<10x1x128xbf16>, vector<10x8x128xbf16>, vector<10x1x128xbf16> -> vector<10x10x128xbf16>
    %142 = vector.extract_strided_slice %141 {offsets = [0, 0, 0], sizes = [8, 8, 128], strides = [1, 1, 1]} : vector<10x10x128xbf16> to vector<8x8x128xbf16>
    %143 = vector.extract_strided_slice %141 {offsets = [0, 1, 0], sizes = [8, 8, 128], strides = [1, 1, 1]} : vector<10x10x128xbf16> to vector<8x8x128xbf16>
    %144 = vector.extract_strided_slice %141 {offsets = [0, 2, 0], sizes = [8, 8, 128], strides = [1, 1, 1]} : vector<10x10x128xbf16> to vector<8x8x128xbf16>
    %145 = vector.extract_strided_slice %141 {offsets = [1, 0, 0], sizes = [8, 8, 128], strides = [1, 1, 1]} : vector<10x10x128xbf16> to vector<8x8x128xbf16>
    %146 = vector.extract_strided_slice %141 {offsets = [1, 1, 0], sizes = [8, 8, 128], strides = [1, 1, 1]} : vector<10x10x128xbf16> to vector<8x8x128xbf16>
    %147 = vector.extract_strided_slice %141 {offsets = [1, 2, 0], sizes = [8, 8, 128], strides = [1, 1, 1]} : vector<10x10x128xbf16> to vector<8x8x128xbf16>
    %148 = vector.extract_strided_slice %141 {offsets = [2, 0, 0], sizes = [8, 8, 128], strides = [1, 1, 1]} : vector<10x10x128xbf16> to vector<8x8x128xbf16>
    %149 = vector.extract_strided_slice %141 {offsets = [2, 1, 0], sizes = [8, 8, 128], strides = [1, 1, 1]} : vector<10x10x128xbf16> to vector<8x8x128xbf16>
    %150 = vector.extract_strided_slice %141 {offsets = [2, 2, 0], sizes = [8, 8, 128], strides = [1, 1, 1]} : vector<10x10x128xbf16> to vector<8x8x128xbf16>
    %151 = tpu.concatenate %142, %143, %144, %145, %146, %147, %148, %149, %150 in 2 : vector<8x8x128xbf16>, vector<8x8x128xbf16>, vector<8x8x128xbf16>, vector<8x8x128xbf16>, vector<8x8x128xbf16>, vector<8x8x128xbf16>, vector<8x8x128xbf16>, vector<8x8x128xbf16>, vector<8x8x128xbf16> -> vector<8x8x1152xbf16>
    %152 = vector.shape_cast %151 : vector<8x8x1152xbf16> to vector<64x1152xbf16>
    %153 = vector.shape_cast %136 : vector<3x3x128x128xbf16> to vector<1152x128xbf16>
    %cst_61 = arith.constant dense<0.000000e+00> : vector<64x128xf32>
    %154 = tpu.matmul %152, %153, %cst_61 {dimension_numbers = #tpu.dot_dimension_numbers<[1], [0], [0], [1], [0, 0, 1, 1], [], []>} : vector<64x1152xbf16>, vector<1152x128xbf16>, vector<64x128xf32> -> vector<64x128xf32>
    %155 = vector.broadcast %137 : vector<1x128xf32> to vector<64x128xf32>
    %156 = arith.addf %154, %155 : vector<64x128xf32>
    %cst_62 = arith.constant 0.000000e+00 : f32
    %157 = vector.broadcast %cst_62 : f32 to vector<64x128xf32>
    %158 = arith.maximumf %156, %157 : vector<64x128xf32>
    %159 = vector.shape_cast %158 : vector<64x128xf32> to vector<8x8x128xf32>
    %160 = vector.shape_cast %159 : vector<8x8x128xf32> to vector<4x2x8x128xf32>
    %161 = vector.extract_strided_slice %160 {offsets = [0, 0, 0, 0], sizes = [4, 1, 8, 128], strides = [1, 1, 1, 1]} : vector<4x2x8x128xf32> to vector<4x1x8x128xf32>
    %162 = vector.shape_cast %161 : vector<4x1x8x128xf32> to vector<4x8x128xf32>
    %163 = vector.shape_cast %162 : vector<4x8x128xf32> to vector<4x4x2x128xf32>
    %164 = vector.extract_strided_slice %163 {offsets = [0, 0, 0, 0], sizes = [4, 4, 1, 128], strides = [1, 1, 1, 1]} : vector<4x4x2x128xf32> to vector<4x4x1x128xf32>
    %165 = vector.shape_cast %164 : vector<4x4x1x128xf32> to vector<4x4x128xf32>
    %166 = arith.truncf %165 : vector<4x4x128xf32> to vector<4x4x128xbf16>
    %c0_63 = arith.constant 0 : index
    %c0_64 = arith.constant 0 : index
    %c0_65 = arith.constant 0 : index
    %c0_66 = arith.constant 0 : index
    %167 = vector.load %arg14[%c0_63, %c0_64, %c0_65, %c0_66] : memref<3x3x128x128xbf16, #tpu.memory_space<vmem>>, vector<3x3x128x128xbf16>
    %c0_67 = arith.constant 0 : index
    %c0_68 = arith.constant 0 : index
    %168 = vector.load %arg15[%c0_67, %c0_68] : memref<1x128xf32, #tpu.memory_space<vmem>>, vector<1x128xf32>
    %cst_69 = arith.constant 0.000000e+00 : bf16
    %169 = vector.broadcast %cst_69 : bf16 to vector<1x4x128xbf16>
    %170 = tpu.concatenate %169, %166, %169 in 0 : vector<1x4x128xbf16>, vector<4x4x128xbf16>, vector<1x4x128xbf16> -> vector<6x4x128xbf16>
    %cst_70 = arith.constant 0.000000e+00 : bf16
    %171 = vector.broadcast %cst_70 : bf16 to vector<6x1x128xbf16>
    %172 = tpu.concatenate %171, %170, %171 in 1 : vector<6x1x128xbf16>, vector<6x4x128xbf16>, vector<6x1x128xbf16> -> vector<6x6x128xbf16>
    %173 = vector.extract_strided_slice %172 {offsets = [0, 0, 0], sizes = [4, 4, 128], strides = [1, 1, 1]} : vector<6x6x128xbf16> to vector<4x4x128xbf16>
    %174 = vector.extract_strided_slice %172 {offsets = [0, 1, 0], sizes = [4, 4, 128], strides = [1, 1, 1]} : vector<6x6x128xbf16> to vector<4x4x128xbf16>
    %175 = vector.extract_strided_slice %172 {offsets = [0, 2, 0], sizes = [4, 4, 128], strides = [1, 1, 1]} : vector<6x6x128xbf16> to vector<4x4x128xbf16>
    %176 = vector.extract_strided_slice %172 {offsets = [1, 0, 0], sizes = [4, 4, 128], strides = [1, 1, 1]} : vector<6x6x128xbf16> to vector<4x4x128xbf16>
    %177 = vector.extract_strided_slice %172 {offsets = [1, 1, 0], sizes = [4, 4, 128], strides = [1, 1, 1]} : vector<6x6x128xbf16> to vector<4x4x128xbf16>
    %178 = vector.extract_strided_slice %172 {offsets = [1, 2, 0], sizes = [4, 4, 128], strides = [1, 1, 1]} : vector<6x6x128xbf16> to vector<4x4x128xbf16>
    %179 = vector.extract_strided_slice %172 {offsets = [2, 0, 0], sizes = [4, 4, 128], strides = [1, 1, 1]} : vector<6x6x128xbf16> to vector<4x4x128xbf16>
    %180 = vector.extract_strided_slice %172 {offsets = [2, 1, 0], sizes = [4, 4, 128], strides = [1, 1, 1]} : vector<6x6x128xbf16> to vector<4x4x128xbf16>
    %181 = vector.extract_strided_slice %172 {offsets = [2, 2, 0], sizes = [4, 4, 128], strides = [1, 1, 1]} : vector<6x6x128xbf16> to vector<4x4x128xbf16>
    %182 = tpu.concatenate %173, %174, %175, %176, %177, %178, %179, %180, %181 in 2 : vector<4x4x128xbf16>, vector<4x4x128xbf16>, vector<4x4x128xbf16>, vector<4x4x128xbf16>, vector<4x4x128xbf16>, vector<4x4x128xbf16>, vector<4x4x128xbf16>, vector<4x4x128xbf16>, vector<4x4x128xbf16> -> vector<4x4x1152xbf16>
    %183 = vector.shape_cast %182 : vector<4x4x1152xbf16> to vector<16x1152xbf16>
    %184 = vector.shape_cast %167 : vector<3x3x128x128xbf16> to vector<1152x128xbf16>
    %cst_71 = arith.constant dense<0.000000e+00> : vector<16x128xf32>
    %185 = tpu.matmul %183, %184, %cst_71 {dimension_numbers = #tpu.dot_dimension_numbers<[1], [0], [0], [1], [0, 0, 1, 1], [], []>} : vector<16x1152xbf16>, vector<1152x128xbf16>, vector<16x128xf32> -> vector<16x128xf32>
    %186 = vector.broadcast %168 : vector<1x128xf32> to vector<16x128xf32>
    %187 = arith.addf %185, %186 : vector<16x128xf32>
    %cst_72 = arith.constant 0.000000e+00 : f32
    %188 = vector.broadcast %cst_72 : f32 to vector<16x128xf32>
    %189 = arith.maximumf %187, %188 : vector<16x128xf32>
    %190 = vector.shape_cast %189 : vector<16x128xf32> to vector<4x4x128xf32>
    %191 = arith.truncf %190 : vector<4x4x128xf32> to vector<4x4x128xbf16>
    %c0_73 = arith.constant 0 : index
    %c0_74 = arith.constant 0 : index
    %c0_75 = arith.constant 0 : index
    %c0_76 = arith.constant 0 : index
    %192 = vector.load %arg16[%c0_73, %c0_74, %c0_75, %c0_76] : memref<1x1x128x128xbf16, #tpu.memory_space<vmem>>, vector<1x1x128x128xbf16>
    %c0_77 = arith.constant 0 : index
    %c0_78 = arith.constant 0 : index
    %193 = vector.load %arg17[%c0_77, %c0_78] : memref<1x128xf32, #tpu.memory_space<vmem>>, vector<1x128xf32>
    %194 = vector.shape_cast %191 : vector<4x4x128xbf16> to vector<16x128xbf16>
    %195 = vector.shape_cast %192 : vector<1x1x128x128xbf16> to vector<128x128xbf16>
    %cst_79 = arith.constant dense<0.000000e+00> : vector<16x128xf32>
    %196 = tpu.matmul %194, %195, %cst_79 {dimension_numbers = #tpu.dot_dimension_numbers<[1], [0], [0], [1], [0, 0, 1, 1], [], []>} : vector<16x128xbf16>, vector<128x128xbf16>, vector<16x128xf32> -> vector<16x128xf32>
    %197 = vector.broadcast %193 : vector<1x128xf32> to vector<16x128xf32>
    %198 = arith.addf %196, %197 : vector<16x128xf32>
    %cst_80 = arith.constant 0.000000e+00 : f32
    %199 = vector.broadcast %cst_80 : f32 to vector<16x128xf32>
    %200 = arith.maximumf %198, %199 : vector<16x128xf32>
    %201 = vector.shape_cast %200 : vector<16x128xf32> to vector<4x4x128xf32>
    %202 = arith.truncf %201 : vector<4x4x128xf32> to vector<4x4x128xbf16>
    %c0_81 = arith.constant 0 : index
    %c0_82 = arith.constant 0 : index
    %c0_83 = arith.constant 0 : index
    %c0_84 = arith.constant 0 : index
    %203 = vector.load %arg18[%c0_81, %c0_82, %c0_83, %c0_84] : memref<1x1x128x128xbf16, #tpu.memory_space<vmem>>, vector<1x1x128x128xbf16>
    %c0_85 = arith.constant 0 : index
    %c0_86 = arith.constant 0 : index
    %204 = vector.load %arg19[%c0_85, %c0_86] : memref<1x128xf32, #tpu.memory_space<vmem>>, vector<1x128xf32>
    %205 = vector.shape_cast %202 : vector<4x4x128xbf16> to vector<16x128xbf16>
    %206 = vector.shape_cast %203 : vector<1x1x128x128xbf16> to vector<128x128xbf16>
    %cst_87 = arith.constant dense<0.000000e+00> : vector<16x128xf32>
    %207 = tpu.matmul %205, %206, %cst_87 {dimension_numbers = #tpu.dot_dimension_numbers<[1], [0], [0], [1], [0, 0, 1, 1], [], []>} : vector<16x128xbf16>, vector<128x128xbf16>, vector<16x128xf32> -> vector<16x128xf32>
    %208 = vector.broadcast %204 : vector<1x128xf32> to vector<16x128xf32>
    %209 = arith.addf %207, %208 : vector<16x128xf32>
    %cst_88 = arith.constant 0.000000e+00 : f32
    %210 = vector.broadcast %cst_88 : f32 to vector<16x128xf32>
    %211 = arith.maximumf %209, %210 : vector<16x128xf32>
    %212 = vector.shape_cast %211 : vector<16x128xf32> to vector<4x4x128xf32>
    %213 = vector.shape_cast %212 : vector<4x4x128xf32> to vector<16x128xf32>
    %cst_89 = arith.constant dense<0.000000e+00> : vector<128xf32>
    %214 = vector.multi_reduction <add>, %213, %cst_89 [0] : vector<16x128xf32> to vector<128xf32>
    %215 = vector.shape_cast %214 : vector<128xf32> to vector<1x128xf32>
    %cst_90 = arith.constant 6.250000e-02 : f32
    %216 = vector.broadcast %cst_90 : f32 to vector<1x128xf32>
    %217 = arith.mulf %215, %216 : vector<1x128xf32>
    %218 = tpu.iota {dimensions = array<i32: 1>} : vector<1x128xi32>
    %c10_i32 = arith.constant 10 : i32
    %219 = vector.broadcast %c10_i32 : i32 to vector<1x128xi32>
    %220 = arith.cmpi slt, %218, %219 : vector<1x128xi32>
    %cst_91 = arith.constant 0xFF800000 : f32
    %221 = vector.broadcast %cst_91 : f32 to vector<1x128xf32>
    %222 = arith.select %220, %217, %221 : vector<1x128xi1>, vector<1x128xf32>
    %cst_92 = arith.constant dense<0xFF800000> : vector<1xf32>
    %223 = vector.multi_reduction <maximumf>, %222, %cst_92 [1] : vector<1x128xf32> to vector<1xf32>
    %224 = vector.shape_cast %223 : vector<1xf32> to vector<1x1xf32>
    %225 = vector.broadcast %224 : vector<1x1xf32> to vector<1x128xf32>
    %226 = arith.subf %217, %225 : vector<1x128xf32>
    %227 = math.exp %226 : vector<1x128xf32>
    %cst_93 = arith.constant 0.000000e+00 : f32
    %228 = vector.broadcast %cst_93 : f32 to vector<1x128xf32>
    %229 = arith.select %220, %227, %228 : vector<1x128xi1>, vector<1x128xf32>
    %cst_94 = arith.constant dense<0.000000e+00> : vector<1xf32>
    %230 = vector.multi_reduction <add>, %229, %cst_94 [1] : vector<1x128xf32> to vector<1xf32>
    %231 = vector.shape_cast %230 : vector<1xf32> to vector<1x1xf32>
    %232 = math.log %231 : vector<1x1xf32>
    %233 = vector.broadcast %232 : vector<1x1xf32> to vector<1x128xf32>
    %234 = arith.subf %226, %233 : vector<1x128xf32>
    %235 = vector.extract_strided_slice %234 {offsets = [0, 0], sizes = [1, 10], strides = [1, 1]} : vector<1x128xf32> to vector<1x10xf32>
    %236 = vector.shape_cast %235 : vector<1x10xf32> to vector<1x1x10xf32>
    %c0_95 = arith.constant 0 : index
    %c0_96 = arith.constant 0 : index
    %c0_97 = arith.constant 0 : index
    %237 = vector.load %arg20[%c0_95, %c0_96, %c0_97] : memref<1x1x10xf32, #tpu.memory_space<vmem>>, vector<1x1x10xf32>
    tpu.vector_store %arg20[%c0_95, %c0_96, %c0_97], %236 {strides = array<i32>} : memref<1x1x10xf32, #tpu.memory_space<vmem>>, vector<1x1x10xf32>,
    return
  }
  func.func @transform_0(%arg0: i32) -> (i32, i32, i32, i32) {
    %c0_i32 = arith.constant 0 : i32
    %c0_i32_0 = arith.constant 0 : i32
    %c0_i32_1 = arith.constant 0 : i32
    %c0_i32_2 = arith.constant 0 : i32
    return %arg0, %c0_i32, %c0_i32_0, %c0_i32_1 : i32, i32, i32, i32
  }
  func.func @transform_1(%arg0: i32) -> (i32, i32, i32, i32) {
    %c0_i32 = arith.constant 0 : i32
    %c0_i32_0 = arith.constant 0 : i32
    %c0_i32_1 = arith.constant 0 : i32
    %c0_i32_2 = arith.constant 0 : i32
    %c0_i32_3 = arith.constant 0 : i32
    return %c0_i32, %c0_i32_0, %c0_i32_1, %c0_i32_2 : i32, i32, i32, i32
  }
  func.func @transform_2(%arg0: i32) -> (i32, i32) {
    %c0_i32 = arith.constant 0 : i32
    %c0_i32_0 = arith.constant 0 : i32
    %c0_i32_1 = arith.constant 0 : i32
    return %c0_i32, %c0_i32_0 : i32, i32
  }
  func.func @transform_3(%arg0: i32) -> (i32, i32, i32, i32) {
    %c0_i32 = arith.constant 0 : i32
    %c0_i32_0 = arith.constant 0 : i32
    %c0_i32_1 = arith.constant 0 : i32
    %c0_i32_2 = arith.constant 0 : i32
    %c0_i32_3 = arith.constant 0 : i32
    return %c0_i32, %c0_i32_0, %c0_i32_1, %c0_i32_2 : i32, i32, i32, i32
  }
  func.func @transform_4(%arg0: i32) -> (i32, i32) {
    %c0_i32 = arith.constant 0 : i32
    %c0_i32_0 = arith.constant 0 : i32
    %c0_i32_1 = arith.constant 0 : i32
    return %c0_i32, %c0_i32_0 : i32, i32
  }
  func.func @transform_5(%arg0: i32) -> (i32, i32, i32, i32) {
    %c0_i32 = arith.constant 0 : i32
    %c0_i32_0 = arith.constant 0 : i32
    %c0_i32_1 = arith.constant 0 : i32
    %c0_i32_2 = arith.constant 0 : i32
    %c0_i32_3 = arith.constant 0 : i32
    return %c0_i32, %c0_i32_0, %c0_i32_1, %c0_i32_2 : i32, i32, i32, i32
  }
  func.func @transform_6(%arg0: i32) -> (i32, i32) {
    %c0_i32 = arith.constant 0 : i32
    %c0_i32_0 = arith.constant 0 : i32
    %c0_i32_1 = arith.constant 0 : i32
    return %c0_i32, %c0_i32_0 : i32, i32
  }
  func.func @transform_7(%arg0: i32) -> (i32, i32, i32, i32) {
    %c0_i32 = arith.constant 0 : i32
    %c0_i32_0 = arith.constant 0 : i32
    %c0_i32_1 = arith.constant 0 : i32
    %c0_i32_2 = arith.constant 0 : i32
    %c0_i32_3 = arith.constant 0 : i32
    return %c0_i32, %c0_i32_0, %c0_i32_1, %c0_i32_2 : i32, i32, i32, i32
  }
  func.func @transform_8(%arg0: i32) -> (i32, i32) {
    %c0_i32 = arith.constant 0 : i32
    %c0_i32_0 = arith.constant 0 : i32
    %c0_i32_1 = arith.constant 0 : i32
    return %c0_i32, %c0_i32_0 : i32, i32
  }
  func.func @transform_9(%arg0: i32) -> (i32, i32, i32, i32) {
    %c0_i32 = arith.constant 0 : i32
    %c0_i32_0 = arith.constant 0 : i32
    %c0_i32_1 = arith.constant 0 : i32
    %c0_i32_2 = arith.constant 0 : i32
    %c0_i32_3 = arith.constant 0 : i32
    return %c0_i32, %c0_i32_0, %c0_i32_1, %c0_i32_2 : i32, i32, i32, i32
  }
  func.func @transform_10(%arg0: i32) -> (i32, i32) {
    %c0_i32 = arith.constant 0 : i32
    %c0_i32_0 = arith.constant 0 : i32
    %c0_i32_1 = arith.constant 0 : i32
    return %c0_i32, %c0_i32_0 : i32, i32
  }
  func.func @transform_11(%arg0: i32) -> (i32, i32, i32, i32) {
    %c0_i32 = arith.constant 0 : i32
    %c0_i32_0 = arith.constant 0 : i32
    %c0_i32_1 = arith.constant 0 : i32
    %c0_i32_2 = arith.constant 0 : i32
    %c0_i32_3 = arith.constant 0 : i32
    return %c0_i32, %c0_i32_0, %c0_i32_1, %c0_i32_2 : i32, i32, i32, i32
  }
  func.func @transform_12(%arg0: i32) -> (i32, i32) {
    %c0_i32 = arith.constant 0 : i32
    %c0_i32_0 = arith.constant 0 : i32
    %c0_i32_1 = arith.constant 0 : i32
    return %c0_i32, %c0_i32_0 : i32, i32
  }
  func.func @transform_13(%arg0: i32) -> (i32, i32, i32, i32) {
    %c0_i32 = arith.constant 0 : i32
    %c0_i32_0 = arith.constant 0 : i32
    %c0_i32_1 = arith.constant 0 : i32
    %c0_i32_2 = arith.constant 0 : i32
    %c0_i32_3 = arith.constant 0 : i32
    return %c0_i32, %c0_i32_0, %c0_i32_1, %c0_i32_2 : i32, i32, i32, i32
  }
  func.func @transform_14(%arg0: i32) -> (i32, i32) {
    %c0_i32 = arith.constant 0 : i32
    %c0_i32_0 = arith.constant 0 : i32
    %c0_i32_1 = arith.constant 0 : i32
    return %c0_i32, %c0_i32_0 : i32, i32
  }
  func.func @transform_15(%arg0: i32) -> (i32, i32, i32, i32) {
    %c0_i32 = arith.constant 0 : i32
    %c0_i32_0 = arith.constant 0 : i32
    %c0_i32_1 = arith.constant 0 : i32
    %c0_i32_2 = arith.constant 0 : i32
    %c0_i32_3 = arith.constant 0 : i32
    return %c0_i32, %c0_i32_0, %c0_i32_1, %c0_i32_2 : i32, i32, i32, i32
  }
  func.func @transform_16(%arg0: i32) -> (i32, i32) {
    %c0_i32 = arith.constant 0 : i32
    %c0_i32_0 = arith.constant 0 : i32
    %c0_i32_1 = arith.constant 0 : i32
    return %c0_i32, %c0_i32_0 : i32, i32
  }
  func.func @transform_17(%arg0: i32) -> (i32, i32, i32, i32) {
    %c0_i32 = arith.constant 0 : i32
    %c0_i32_0 = arith.constant 0 : i32
    %c0_i32_1 = arith.constant 0 : i32
    %c0_i32_2 = arith.constant 0 : i32
    %c0_i32_3 = arith.constant 0 : i32
    return %c0_i32, %c0_i32_0, %c0_i32_1, %c0_i32_2 : i32, i32, i32, i32
  }
  func.func @transform_18(%arg0: i32) -> (i32, i32) {
    %c0_i32 = arith.constant 0 : i32
    %c0_i32_0 = arith.constant 0 : i32
    %c0_i32_1 = arith.constant 0 : i32
    return %c0_i32, %c0_i32_0 : i32, i32
  }
  func.func @transform_19(%arg0: i32) -> (i32, i32, i32) {
    %c0_i32 = arith.constant 0 : i32
    %c0_i32_0 = arith.constant 0 : i32
    %c0_i32_1 = arith.constant 0 : i32
    return %arg0, %c0_i32, %c0_i32_0 : i32, i32, i32
  }
}

</mosaic_0001>

<bundles_post_ra>
// kernel: forward_pallas.1
= control target key start
LH: loop header
LB: loop body
LE: loop exit
PB: predicated region body
PF: predicated region fallthrough
CT: control target
= control target key end

     0   :  { %s20437_s0 = inlined_call_operand.vmem [shape: f32[2,16,16,4], index: 0, kind: input, shape index: {}]   ;;  %s20438_s1 = inlined_call_operand.vmem [shape: bf16[3,3,128,128], index: 1, kind: input, shape index: {}]   ;;  %s20439_s2 = inlined_call_operand.vmem [shape: f32[1,128], index: 2, kind: input, shape index: {}]   ;;  %s20440_s3 = inlined_call_operand.vmem [shape: bf16[3,3,128,128], index: 3, kind: input, shape index: {}]   ;;  %s20441_s4 = inlined_call_operand.vmem [shape: f32[1,128], index: 4, kind: input, shape index: {}]   ;;  %s20442_s5 = inlined_call_operand.vmem [shape: bf16[3,3,128,128], index: 5, kind: input, shape index: {}]   ;;  %s20443_s6 = inlined_call_operand.vmem [shape: f32[1,128], index: 6, kind: input, shape index: {}]   ;;  %s20444_s7 = inlined_call_operand.vmem [shape: bf16[3,3,128,128], index: 7, kind: input, shape index: {}]   ;;  %s20445_s8 = inlined_call_operand.vmem [shape: f32[1,128], index: 8, kind: input, shape index: {}]   ;;  %s20446_s9 = inlined_call_operand.vmem [shape: bf16[3,3,128,128], index: 9, kind: input, shape index: {}]   ;;  %s20447_s10 = inlined_call_operand.vmem [shape: f32[1,128], index: 10, kind: input, shape index: {}]   ;;  %s20448_s11 = inlined_call_operand.vmem [shape: bf16[3,3,128,128], index: 11, kind: input, shape index: {}]   ;;  %s20449_s12 = inlined_call_operand.vmem [shape: f32[1,128], index: 12, kind: input, shape index: {}]   ;;  %s20450_s13 = inlined_call_operand.vmem [shape: bf16[3,3,128,128], index: 13, kind: input, shape index: {}]   ;;  %s20451_s14 = inlined_call_operand.vmem [shape: f32[1,128], index: 14, kind: input, shape index: {}]   ;;  %s20452_s15 = inlined_call_operand.vmem [shape: bf16[1,1,128,128], index: 15, kind: input, shape index: {}]   ;;  %s20453_s16 = inlined_call_operand.vmem [shape: f32[1,128], index: 16, kind: input, shape index: {}]   ;;  %s20454_s17 = inlined_call_operand.vmem [shape: bf16[1,1,128,128], index: 17, kind: input, shape index: {}]   ;;  %s20455_s18 = inlined_call_operand.vmem [shape: f32[1,128], index: 18, kind: input, shape index: {}]   ;;  %s20456_s19 = inlined_call_operand.hbm [shape: f32[2,1,10], index: 19, kind: output, shape index: {}]  }
   0x1   :  { %20480 = sst [smem:[#allocation18_spill]] %s20437_s0 }
   0x2   :  { %20481 = sst [smem:[#allocation19_spill]] %s20438_s1 }
   0x3   :  { %20482 = sst [smem:[#allocation20_spill]] %s20439_s2 }
   0x4   :  { %20483 = sst [smem:[#allocation21_spill]] %s20440_s3 }
   0x5   :  { %20484 = sst [smem:[#allocation22_spill]] %s20441_s4 }
   0x6   :  { %20485 = sst [smem:[#allocation23_spill]] %s20442_s5 }
   0x7   :  { %20486 = sst [smem:[#allocation24_spill]] %s20456_s19 }
   0x8   :  { %24 = vsyncpa [#allocation3], 0 }
   0x9   :  { %26 = vsyncpa [#allocation3 + $0x1], 0  ;;  %s15812_s0 = smov 0   ;;  %s15814_s30 = smov 0  }
   0xa   :  { %s15816_s20 = smov 0   ;;  %s15818_s21 = smov 0  }
   0xb LB: > { %20487 = sst [smem:[#allocation5_spill]] %s15693_s0  ;;  %s15833_s1 = sadd.s32 4294967295, %s15705_s21   ;;  %s15705_s21 = sphi %s15818_s21, %s20533_s21   ;;  %s15701_s20 = sphi %s15816_s20, %s20535_s20   ;;  %s15697_s30 = sphi %s15814_s30, %s20537_s30   ;;  %s15693_s0 = sphi %s15812_s0, %s20536_s0  }
   0xc   : > { %20488 = sst [smem:[#allocation6_spill]] %s15701_s20  ;;  %s12120_s22 = sadd.s32 4294967294, %s15705_s21  }
   0xd   : > { %20489 = sst [smem:[#allocation7_spill]] %s15705_s21  ;;  %s15837_s2 = sadd.s32 1, %s15705_s21  }
   0xe   : > { %20490 = sst [smem:[#allocation8_spill]] %s15837_s2  ;;  %s443_s23 = sadd.s32 1, %s15701_s20 }
   0xf   : > { %s440_s24 = ssub.s32 %s15705_s21, %s15837_s2  ;;  %p453_p0 = scmp.ne.s32.totalorder %s15701_s20, %s15697_s30 }
  0x10   : > { %p441_p1 = scmp.eq.s32.totalorder %s440_s24, 0  ;;  %p454_p2 = scmp.eq.s32.totalorder %s15833_s1, 1 }
  0x11   : > { %p459_p3 = scmp.ne.s32.totalorder %s15697_s30, %s15693_s0  ;;  %p460_p4 = scmp.eq.s32.totalorder %s12120_s22, 1 }
  0x12   : > { %s15848_s25 = scalar_select %p441_p1, %s15701_s20, %s443_s23  }
  0x13   : > { %p15850_p5 = por %p454_p2, %p453_p0  ;;  %p15854_p6 = por %p460_p4, %p459_p3 }
  0x14   : > { %20491 = sst [smem:[#allocation9_spill]] %s15848_s25  ;;  %p12123_p7 = scmp.ge.s32.totalorder %s15705_s21, 1 }
  0x15   : > { %s20493_s26 = scalar_select %p15854_p6, 1, 0 }
  0x16   : > { %p540_p8 = scmp.lt.s32.totalorder %s15705_s21, 3 }
  0x17   : > { %20494 = sst [smem:[#allocation10_spill]] %s20493_s26 }
  0x18   : > { %p541_p9 = pnand %p12123_p7, %p540_p8 }
  0x1a   : > { %544 = sbr.rel (%p541_p9) target bundleno = 3642 (0xe3a), region = 96 }
  0x21   : > { %s20495_s29 = sld [smem:[#allocation19_spill]]  ;;  %p595_p10 = scmp.lt.s32.totalorder %s15833_s1, 1  ;;  %v15707_v28 = vmov 0   ;;  %vm964_vm0 = vcmask 1040384   ;;  %vm965_vm1 = vsmask.f32 256 }
  0x22   : > { %v830_v29 = vrot.slane %v15707_v28, 7  ;;  %s20496_s21 = sld [smem:[#allocation18_spill]]  ;;  %vm15960_vm2 = vmand %vm964_vm0, %vm965_vm1  ;;  %vm649_vm3 = vcmask 31744   ;;  %vm1242_vm4 = vcmask 1046528   ;;  %vm1001_vm5 = vsmask.f32 7424 }
  0x23   : > { %s596_s27 = scalar_select %p595_p10, %s15833_s1, 1  ;;  %vm7225_vm6 = vcmask 1044480   ;;  %vm7226_vm7 = vsmask.f32 4352  ;;  %vm7027_vm9 = vcmask 1041409   ;;  %vm7030_vm10 = vcmask 1042434  }
  0x24   : > { %v15969_v35 = vsel %vm15960_vm2, 0, %v830_v29  ;;  %v984_v36 = vsel %vm15960_vm2, %v830_v29, 0  ;;  %s20518_s28 = sld [smem:[#allocation20_spill]]  ;;  %s20519_s25 = sld [smem:[#allocation21_spill]]  ;;  %vm18661_vm8 = vmand %vm7225_vm6, %vm7226_vm7  ;;  %vm7033_vm11 = vcmask 1043459   ;;  %vm7036_vm12 = vcmask 1044484  }
  0x25   : > { %s12751_s26 = sshll.u32 %s596_s27, 8  ;;  %20499 = vst [vmem:[#allocation11_spill] sm:$0xff] %v15969_v35  ;;  %v1003_v37 = vshrl.u32 %v15969_v35, 16  ;;  %v1005_v38 = vshll.u32 %v15969_v35, 16  ;;  %v1010_v39 = vshll.u32 %v984_v36, 16  ;;  %v1243_v55 = vrot.slane %v15969_v35, 1 }
  0x26   : > { %v1244_v57 = vrot.slane %v984_v36, 1  ;;  %s20523_s4 = sld [smem:[#allocation22_spill]]  ;;  %s20524_s5 = sld [smem:[#allocation23_spill]]  ;;  %vm7039_vm13 = vcmask 1045509   ;;  %vm7042_vm14 = vcmask 1046534   ;;  %vm7045_vm15 = vcmask 1047559  }
  0x27   : > { %v15118_v0 = vld [vmem:[%s20495_s29 + $0x40] sm:$0xff]   ;;  %v15122_v4 = vld [vmem:[%s20495_s29 + $0x48] sm:$0xff]   ;;  %v15126_v8 = vld [vmem:[%s20495_s29 + $0x50] sm:$0xff]   ;;  %v1007_v44 = vrot.slane %v1005_v38, 1  ;;  %v1012_v45 = vrot.slane %v1010_v39, 1  ;;  %vm10799_vm0 = vcmask 1042432  }
  0x28   : > { %v15119_v1 = vld [vmem:[%s20495_s29] sm:$0xff]   ;;  %12752 = vmatprep.subr.bf16.mxu0 %v15118_v0  ;;  %v15123_v5 = vld [vmem:[%s20495_s29 + $0x8] sm:$0xff]   ;;  %v15127_v9 = vld [vmem:[%s20495_s29 + $0x10] sm:$0xff]   ;;  %s15958_s19 = scalar_lea.vmem %s20496_s21, %s12751_s26  ;;  %vm10800_vm1 = vsmask.f32 2304  ;;  %s12748_s21 = sshll.u32 %s15833_s1, 4 }
  0x29   : > { %v15120_v2 = vld [vmem:[%s20495_s29 + $0xc0] sm:$0xff]   ;;  %12753 = vmatpush3.bf16.msra.mxu0 %v15119_v1  ;;  %v15124_v6 = vld [vmem:[%s20495_s29 + $0xc8] sm:$0xff]   ;;  %v15128_v10 = vld [vmem:[%s20495_s29 + $0xd0] sm:$0xff]   ;;  %v1008_v52 = vor.u32 %v1007_v44, %v1003_v37  ;;  %s20529_s23 = sld [smem:[#allocation24_spill]]  ;;  %s15711_s1 = smov [#allocation2]  }
  0x2a   : > { %v15121_v3 = vld [vmem:[%s20495_s29 + $0x80] sm:$0xff]   ;;  %12864 = vmatprep.subr.bf16.mxu1 %v15120_v2  ;;  %12754 = vmatprep.subr.bf16.mxu0 %v15122_v4  ;;  %v15125_v7 = vld [vmem:[%s20495_s29 + $0x88] sm:$0xff]   ;;  %v15129_v11 = vld [vmem:[%s20495_s29 + $0x90] sm:$0xff]   ;;  %s15647_s27 = sshll.u32 %s15711_s1, 4  ;;  %s15648_s27 = int_to_ptr.vmem [resolvable:$false] %s15647_s27 }
  0x2b   : > { %12865 = vmatpush3.bf16.msra.mxu1 %v15121_v3  ;;  %v15130_v12 = vld [vmem:[%s20495_s29 + $0x58] sm:$0xff]   ;;  %v15134_v16 = vld [vmem:[%s20495_s29 + $0x60] sm:$0xff]   ;;  %v15138_v20 = vld [vmem:[%s20495_s29 + $0x68] sm:$0xff]   ;;  %v15993_v62 = vsel %vm1001_vm5, %v1008_v52, %v1012_v45  ;;  %s15649_s2 = scalar_lea.vmem %s15648_s27, 32 }
  0x2c   : > { %12866 = vmatprep.subr.bf16.mxu1 %v15124_v6  ;;  %v15131_v13 = vld [vmem:[%s20495_s29 + $0x18] sm:$0xff]   ;;  %v15135_v17 = vld [vmem:[%s20495_s29 + $0x20] sm:$0xff]   ;;  %v15139_v21 = vld [vmem:[%s20495_s29 + $0x28] sm:$0xff]   ;;  %20500 = vst [vmem:[#allocation12_spill] sm:$0xff] %v15993_v62  ;;  %1796 = vmatprep.mubr.bf16.mxu0 %v15993_v62 }
  0x2d   : > { %12755 = vmatpush3.bf16.msra.mxu0 %v15123_v5  ;;  %v15132_v14 = vld [vmem:[%s20495_s29 + $0xd8] sm:$0xff]   ;;  %v15136_v18 = vld [vmem:[%s20495_s29 + $0xe0] sm:$0xff]   ;;  %v15140_v22 = vld [vmem:[%s20495_s29 + $0xe8] sm:$0xff]  }
  0x2e   : > { %12756 = vmatprep.subr.bf16.mxu0 %v15126_v8  ;;  %v15133_v15 = vld [vmem:[%s20495_s29 + $0x98] sm:$0xff]   ;;  %v15137_v19 = vld [vmem:[%s20495_s29 + $0xa0] sm:$0xff]   ;;  %v15141_v23 = vld [vmem:[%s20495_s29 + $0xa8] sm:$0xff]  }
  0x2f   : > { %12867 = vmatpush3.bf16.msra.mxu1 %v15125_v7  ;;  %v15142_v24 = vld [vmem:[%s20495_s29 + $0x70] sm:$0xff]   ;;  %v15146_v30 = vld [vmem:[%s20495_s29 + $0x78] sm:$0xff]   ;;  %v15150_v40 = vld [vmem:[%s20495_s29 + $0x140] sm:$0xff]   ;;  %s20395_s20 = scalar_lea.hbm %s20529_s23, %s12748_s21 }
  0x30   : > { %12868 = vmatprep.subr.bf16.mxu1 %v15128_v10  ;;  %v15143_v25 = vld [vmem:[%s20495_s29 + $0x30] sm:$0xff]   ;;  %v15147_v31 = vld [vmem:[%s20495_s29 + $0x38] sm:$0xff]   ;;  %v601_v41 = vld [vmem:[%s15958_s19] sm:$0xff] }
  0x31   : > { %12757 = vmatpush3.bf16.msra.mxu0 %v15127_v9  ;;  %v15144_v26 = vld [vmem:[%s20495_s29 + $0xf0] sm:$0xff]   ;;  %v15148_v32 = vld [vmem:[%s20495_s29 + $0xf8] sm:$0xff]   ;;  %v602_v42 = vld [vmem:[%s15958_s19 + $0x8] sm:$0xff]  ;;  %v16004_v9 = vsel %vm1242_vm4, %v1243_v55, %v1244_v57 }
  0x32   : > { %12758 = vmatprep.subr.bf16.mxu0 %v15130_v12  ;;  %v15145_v27 = vld [vmem:[%s20495_s29 + $0xb0] sm:$0xff]   ;;  %v15149_v34 = vld [vmem:[%s20495_s29 + $0xb8] sm:$0xff]   ;;  %v633_v43 = vpack.c.bf16 %v602_v42, %v601_v41  ;;  %v15151_v49 = vld [vmem:[%s20495_s29 + $0x100] sm:$0xff]   ;;  %20501 = vst [vmem:[#allocation13_spill] sm:$0xff] %v16004_v9 }
  0x33   : > { %12869 = vmatpush3.bf16.msra.mxu1 %v15129_v11  ;;  %v603_v46 = vld [vmem:[%s15958_s19 + $0x10] sm:$0xff]  ;;  %v604_v47 = vld [vmem:[%s15958_s19 + $0x18] sm:$0xff]  ;;  %v605_v51 = vld [vmem:[%s15958_s19 + $0x20] sm:$0xff] }
  0x34   : > { %12870 = vmatprep.subr.bf16.mxu1 %v15132_v14  ;;  %v652_v48 = vsel %vm649_vm3, %v633_v43, 0  ;;  %v634_v50 = vpack.c.bf16 %v604_v47, %v603_v46  ;;  %v606_v56 = vld [vmem:[%s15958_s19 + $0x28] sm:$0xff]  ;;  %v607_v60 = vld [vmem:[%s15958_s19 + $0x30] sm:$0xff]  ;;  %v608_v61 = vld [vmem:[%s15958_s19 + $0x38] sm:$0xff] }
  0x35   : > { %12759 = vmatpush3.bf16.msra.mxu0 %v15131_v13  ;;  %v834_v53 = vshrl.u32 %v652_v48, 16  ;;  %v837_v54 = vshll.u32 %v652_v48, 16  ;;  %v635_v59 = vpack.c.bf16 %v606_v56, %v605_v51  ;;  %v15152_v2 = vld [vmem:[%s20495_s29 + $0x148] sm:$0xff]   ;;  %v636_v4 = vpack.c.bf16 %v608_v61, %v607_v60  ;;  %v611_v37 = vld [vmem:[%s15958_s19 + $0x50] sm:$0xff]  ;;  %v15156_v38 = vld [vmem:[%s20495_s29 + $0x158] sm:$0xff]  }
  0x36   : > { %12760 = vmatprep.subr.bf16.mxu0 %v15134_v16  ;;  %v654_v58 = vsel %vm649_vm3, %v634_v50, 0  ;;  %v15153_v12 = vld [vmem:[%s20495_s29 + $0x108] sm:$0xff]   ;;  %v612_v43 = vld [vmem:[%s15958_s19 + $0x58] sm:$0xff]  ;;  %v613_v44 = vld [vmem:[%s15958_s19 + $0x60] sm:$0xff] }
  0x37   : > { %12871 = vmatpush3.bf16.msra.mxu1 %v15133_v15  ;;  %v836_v63 = vrot.slane %v834_v53, 7  ;;  %v840_v0 = vshrl.u32 %v654_v58, 16  ;;  %v843_v1 = vshll.u32 %v654_v58, 16  ;;  %v656_v3 = vsel %vm649_vm3, %v635_v59, 0  ;;  %v614_v45 = vld [vmem:[%s15958_s19 + $0x68] sm:$0xff]  ;;  %v15158_v58 = vld [vmem:[%s20495_s29 + $0x160] sm:$0xff]  }
  0x38   : > { %12872 = vmatprep.subr.bf16.mxu1 %v15136_v18  ;;  %v846_v8 = vshrl.u32 %v656_v3, 16  ;;  %v849_v11 = vshll.u32 %v656_v3, 16  ;;  %v638_v61 = vpack.c.bf16 %v612_v43, %v611_v37 }
  0x39   : > { %12761 = vmatpush3.bf16.msra.mxu0 %v15135_v17  ;;  %v839_v5 = vor.u32 %v837_v54, %v836_v63  ;;  %v985_v6 = vsel %vm15960_vm2, %v836_v63, 0  ;;  %v842_v7 = vrot.slane %v840_v0, 7  ;;  %v15154_v17 = vld [vmem:[%s20495_s29 + $0x150] sm:$0xff]   ;;  %v15157_v54 = vld [vmem:[%s20495_s29 + $0x118] sm:$0xff]   ;;  %v639_v63 = vpack.c.bf16 %v614_v45, %v613_v44  ;;  %v15164_v45 = vld [vmem:[%s20495_s29 + $0x1c0] sm:$0xff]  }
  0x3a   : > { %12762 = vmatprep.subr.bf16.mxu0 %v15138_v20  ;;  %v1022_v10 = vshll.u32 %v985_v6, 16  ;;  %v848_v16 = vrot.slane %v846_v8, 7  ;;  %v1247_v20 = vrot.slane %v985_v6, 1 }
  0x3b   : > { %12873 = vmatpush3.bf16.msra.mxu1 %v15137_v19  ;;  %v968_v13 = vsel %vm15960_vm2, 0, %v839_v5  ;;  %v845_v14 = vor.u32 %v843_v1, %v842_v7  ;;  %v16013_v15 = vsel %vm15960_vm2, %v842_v7, 0  ;;  %v15159_v7 = vld [vmem:[%s20495_s29 + $0x120] sm:$0xff]  }
  0x3c   : > { %12874 = vmatprep.subr.bf16.mxu1 %v15140_v22  ;;  %1957 = vmatprep.mubr.bf16.mxu1 %v968_v13  ;;  %v1015_v18 = vshrl.u32 %v968_v13, 16  ;;  %v1017_v19 = vshll.u32 %v968_v13, 16  ;;  %v1024_v22 = vrot.slane %v1022_v10, 1  ;;  %v1246_v28 = vrot.slane %v968_v13, 1 }
  0x3d   : > { %12763 = vmatpush3.bf16.msra.mxu0 %v15139_v21  ;;  %v658_v21 = vsel %vm649_vm3, %v636_v4, 0  ;;  %v16039_v36 = vsel %vm15960_vm2, %v848_v16, 0  ;;  %v1250_v55 = vrot.slane %v16013_v15, 1  ;;  %v662_v10 = vsel %vm649_vm3, %v638_v61, 0  ;;  %v15167_v61 = vld [vmem:[%s20495_s29 + $0x188] sm:$0xff]  }
  0x3e   : > { %12764 = vmatprep.subr.bf16.mxu0 %v15142_v24  ;;  %v1034_v24 = vshll.u32 %v16013_v15, 16  ;;  %v1046_v47 = vshll.u32 %v16039_v36, 16  ;;  %v852_v48 = vshrl.u32 %v658_v21, 16  ;;  %v16055_v51 = vsel %vm1242_vm4, %v1246_v28, %v1247_v20 }
  0x3f   : > { %12875 = vmatpush3.bf16.msra.mxu1 %v15141_v23  ;;  %v16022_v23 = vsel %vm15960_vm2, 0, %v845_v14  ;;  %v664_v14 = vsel %vm649_vm3, %v639_v63, 0 }
  0x40   : > { %12876 = vmatprep.subr.bf16.mxu1 %v15144_v26  ;;  %v15155_v26 = vld [vmem:[%s20495_s29 + $0x110] sm:$0xff]   ;;  %v1027_v29 = vshrl.u32 %v16022_v23, 16  ;;  %v1036_v41 = vrot.slane %v1034_v24, 1  ;;  %v854_v56 = vrot.slane %v852_v48, 7  ;;  %v1249_v60 = vrot.slane %v16022_v23, 1  ;;  %v15161_v24 = vld [vmem:[%s20495_s29 + $0x128] sm:$0xff]  }
  0x41   : > { %12765 = vmatpush3.bf16.msra.mxu0 %v15143_v25  ;;  %v851_v25 = vor.u32 %v849_v11, %v848_v16  ;;  %v1048_v1 = vrot.slane %v1046_v47, 1  ;;  %v15160_v11 = vld [vmem:[%s20495_s29 + $0x168] sm:$0xff]   ;;  %v873_v43 = vshll.u32 %v664_v14, 16  ;;  %v617_v48 = vld [vmem:[%s15958_s19 + $0x80] sm:$0xff] }
  0x42   : > { %12766 = vmatprep.subr.bf16.mxu0 %v15146_v30  ;;  %v1029_v30 = vshll.u32 %v16022_v23, 16  ;;  %v16075_v4 = vsel %vm15960_vm2, %v854_v56, 0  ;;  %v16091_v15 = vsel %vm1242_vm4, %v1249_v60, %v1250_v55  ;;  %v620_v55 = vld [vmem:[%s15958_s19 + $0x98] sm:$0xff] }
  0x43   : > { %12877 = vmatpush3.bf16.msra.mxu1 %v15145_v27  ;;  %v1019_v27 = vrot.slane %v1017_v19, 1  ;;  %v1256_v63 = vrot.slane %v16075_v4, 1 }
  0x44   : > { %12878 = vmatprep.subr.bf16.mxu1 %v15148_v32  ;;  %v610_v32 = vld [vmem:[%s15958_s19 + $0x48] sm:$0xff] }
  0x45   : > { %12767 = vmatpush3.bf16.msra.mxu0 %v15147_v31  ;;  %v609_v31 = vld [vmem:[%s15958_s19 + $0x40] sm:$0xff]  ;;  %v1020_v39 = vor.u32 %v1019_v27, %v1015_v18  ;;  %v864_v18 = vshrl.u32 %v662_v10, 16  ;;  %v15162_v27 = vld [vmem:[%s20495_s29 + $0x170] sm:$0xff]  }
  0x46   : > { %12976 = vmatprep.subr.bf16.mxu0 %v15150_v40  ;;  %v1031_v40 = vrot.slane %v1029_v30, 1  ;;  %v637_v57 = vpack.c.bf16 %v610_v32, %v609_v31  ;;  %v616_v30 = vld [vmem:[%s15958_s19 + $0x78] sm:$0xff]  ;;  %v1253_v32 = vrot.slane %v16039_v36, 1  ;;  %v15163_v36 = vld [vmem:[%s20495_s29 + $0x130] sm:$0xff]  }
  0x47   : > { %12879 = vmatpush3.bf16.msra.mxu1 %v15149_v34  ;;  %v16035_v34 = vsel %vm15960_vm2, 0, %v851_v25  ;;  %v16052_v50 = vsel %vm1001_vm5, %v1020_v39, %v1024_v22  ;;  %v867_v22 = vshll.u32 %v662_v10, 16  ;;  %v866_v25 = vrot.slane %v864_v18, 7 }
  0x48   : > { %1797 = vmatmul.mubr.bf16.vlgmr.msra.gmra.mrb[0].mxu0 %v15969_v35  ;;  %v1041_v42 = vshll.u32 %v16035_v34, 16  ;;  %v1039_v46 = vshrl.u32 %v16035_v34, 16  ;;  %v1032_v52 = vor.u32 %v1031_v40, %v1027_v29  ;;  %v660_v3 = vsel %vm649_vm3, %v637_v57, 0  ;;  %v615_v29 = vld [vmem:[%s15958_s19 + $0x70] sm:$0xff]  ;;  %13088 = vmatprep.subr.bf16.mxu1 %v15164_v45 }
  0x49   : > { %12977 = vmatpush3.bf16.msra.mxu0 %v15151_v49  ;;  %v855_v49 = vshll.u32 %v658_v21, 16  ;;  %1804 = vmatprep.mubr.bf16.mxu0 %v16052_v50  ;;  %v858_v5 = vshrl.u32 %v660_v3, 16  ;;  %v861_v6 = vshll.u32 %v660_v3, 16  ;;  %v1252_v31 = vrot.slane %v16035_v34, 1  ;;  %v623_v45 = vld [vmem:[%s15958_s19 + $0xb0] sm:$0xff] }
  0x4a   : > { %12978 = vmatprep.subr.bf16.mxu0 %v15152_v2  ;;  %1958 = vmatmul.mubr.bf16.vlgmr.msra.gmra.mrb[0].mxu1 %v16004_v9  ;;  %v1043_v53 = vrot.slane %v1041_v42, 1  ;;  %v16066_v59 = vsel %vm1001_vm5, %v1032_v52, %v1036_v41  ;;  %v869_v41 = vor.u32 %v867_v22, %v866_v25  ;;  %v640_v44 = vpack.c.bf16 %v616_v30, %v615_v29  ;;  %v15166_v52 = vld [vmem:[%s20495_s29 + $0x1c8] sm:$0xff]  }
  0x4b   : > { %1965 = vmatprep.mubr.bf16.mxu1 %v16022_v23  ;;  %v857_v2 = vor.u32 %v855_v49, %v854_v56  ;;  %v618_v49 = vld [vmem:[%s15958_s19 + $0x88] sm:$0xff] }
  0x4c   : > { %v1044_v0 = vor.u32 %v1043_v53, %v1039_v46  ;;  %v15165_v46 = vld [vmem:[%s20495_s29 + $0x180] sm:$0xff]   ;;  %v16137_v53 = vsel %vm1242_vm4, %v1252_v31, %v1253_v32  ;;  %v16147_v60 = vsel %vm15960_vm2, 0, %v869_v41  ;;  %v641_v10 = vpack.c.bf16 %v618_v49, %v617_v48  ;;  %v15172_v49 = vld [vmem:[%s20495_s29 + $0x178] sm:$0xff]  }
  0x4d   : > { %12979 = vmatpush3.bf16.msra.mxu0 %v15153_v12  ;;  %v16082_v8 = vsel %vm15960_vm2, 0, %v857_v2  ;;  %13089 = vmatpush3.bf16.msra.mxu1 %v15165_v46 }
  0x4e   : > { %12980 = vmatprep.subr.bf16.mxu0 %v15154_v17  ;;  %v1053_v12 = vshll.u32 %v16082_v8, 16  ;;  %v16094_v16 = vsel %vm1001_vm5, %v1044_v0, %v1048_v1  ;;  %v1058_v17 = vshll.u32 %v16075_v4, 16  ;;  %v1051_v19 = vshrl.u32 %v16082_v8, 16  ;;  %13090 = vmatprep.subr.bf16.mxu1 %v15166_v52 }
  0x4f   : > { %v666_v1 = vsel %vm649_vm3, %v640_v44, 0  ;;  %v1255_v2 = vrot.slane %v16082_v8, 1  ;;  %v1077_v4 = vshll.u32 %v16147_v60, 16 }
  0x50   : > { %1805 = vmatmul.mubr.bf16.gmra.mrb[4].mxu0 %v968_v13  ;;  %v860_v13 = vrot.slane %v858_v5, 7  ;;  %v1055_v20 = vrot.slane %v1053_v12, 1  ;;  %v1060_v37 = vrot.slane %v1058_v17, 1  ;;  %v16158_v5 = vsel %vm15960_vm2, %v866_v25, 0  ;;  %v621_v12 = vld [vmem:[%s15958_s19 + $0xa0] sm:$0xff] }
  0x51   : > { %12981 = vmatpush3.bf16.msra.mxu0 %v15155_v26  ;;  %1812 = vmatprep.mubr.bf16.mxu0 %v16066_v59  ;;  %v870_v26 = vshrl.u32 %v664_v14, 16  ;;  %v15168_v14 = vld [vmem:[%s20495_s29 + $0x1d0] sm:$0xff]   ;;  %v16188_v29 = vsel %vm1242_vm4, %v1255_v2, %v1256_v63  ;;  %v1082_v32 = vshll.u32 %v16158_v5, 16 }
  0x52   : > { %12982 = vmatprep.subr.bf16.mxu0 %v15156_v38  ;;  %1966 = vmatmul.mubr.bf16.gmra.mrb[4].mxu1 %v16055_v51  ;;  %v863_v21 = vor.u32 %v861_v6, %v860_v13  ;;  %v16117_v38 = vsel %vm15960_vm2, %v860_v13, 0  ;;  %v1056_v39 = vor.u32 %v1055_v20, %v1051_v19  ;;  %v876_v6 = vshrl.u32 %v666_v1, 16  ;;  %v622_v13 = vld [vmem:[%s15958_s19 + $0xa8] sm:$0xff]  ;;  %v15169_v19 = vld [vmem:[%s20495_s29 + $0x190] sm:$0xff]  }
  0x53   : > { %1973 = vmatprep.mubr.bf16.mxu1 %v16035_v34  ;;  %v872_v42 = vrot.slane %v870_v26, 7  ;;  %v1070_v47 = vshll.u32 %v16117_v38, 16  ;;  %13091 = vmatpush3.bf16.msra.mxu1 %v15167_v61  ;;  %v1259_v31 = vrot.slane %v16117_v38, 1  ;;  %v643_v41 = vpack.c.bf16 %v622_v13, %v621_v12  ;;  %v15173_v61 = vld [vmem:[%s20495_s29 + $0x138] sm:$0xff]  }
  0x54   : > { %v16107_v28 = vsel %vm15960_vm2, 0, %v863_v21  ;;  %v16142_v56 = vsel %vm1001_vm5, %v1056_v39, %v1060_v37  ;;  %v878_v18 = vrot.slane %v876_v6, 7  ;;  %v668_v21 = vsel %vm649_vm3, %v641_v10, 0  ;;  %13092 = vmatprep.subr.bf16.mxu1 %v15168_v14  ;;  %v15175_v10 = vld [vmem:[%s20495_s29 + $0x1a0] sm:$0xff]  }
  0x55   : > { %12983 = vmatpush3.bf16.msra.mxu0 %v15157_v54  ;;  %v1065_v40 = vshll.u32 %v16107_v28, 16  ;;  %v619_v54 = vld [vmem:[%s15958_s19 + $0x90] sm:$0xff]  ;;  %v1063_v57 = vshrl.u32 %v16107_v28, 16  ;;  %v875_v0 = vor.u32 %v873_v43, %v872_v42  ;;  %v1072_v3 = vrot.slane %v1070_v47, 1 }
  0x56   : > { %12984 = vmatprep.subr.bf16.mxu0 %v15158_v58  ;;  %v16179_v22 = vsel %vm15960_vm2, %v872_v42, 0  ;;  %v882_v25 = vshrl.u32 %v668_v21, 16  ;;  %v1258_v30 = vrot.slane %v16107_v28, 1  ;;  %v1075_v39 = vshrl.u32 %v16147_v60, 16 }
  0x57   : > { %v1067_v58 = vrot.slane %v1065_v40, 1  ;;  %v16174_v20 = vsel %vm15960_vm2, 0, %v875_v0  ;;  %v1079_v40 = vrot.slane %v1077_v4, 1  ;;  %13093 = vmatpush3.bf16.msra.mxu1 %v15169_v19  ;;  %v1094_v43 = vshll.u32 %v16179_v22, 16 }
  0x58   : > { %1813 = vmatmul.mubr.bf16.gmra.mrb[8].mxu0 %v16022_v23  ;;  %20502 = vst [vmem:[#allocation14_spill] sm:$0xff] %v16174_v20  ;;  %v1089_v42 = vshll.u32 %v16174_v20, 16  ;;  %v16204_v38 = vsel %vm15960_vm2, %v878_v18, 0  ;;  %v884_v47 = vrot.slane %v882_v25, 7  ;;  %v885_v48 = vshll.u32 %v668_v21, 16  ;;  %v15176_v21 = vld [vmem:[%s20495_s29 + $0x1e8] sm:$0xff]  }
  0x59   : > { %12985 = vmatpush3.bf16.msra.mxu0 %v15159_v7  ;;  %1820 = vmatprep.mubr.bf16.mxu0 %v16094_v16  ;;  %v879_v7 = vshll.u32 %v666_v1, 16  ;;  %v1068_v17 = vor.u32 %v1067_v58, %v1063_v57  ;;  %v1084_v52 = vrot.slane %v1082_v32, 1  ;;  %v1087_v57 = vshrl.u32 %v16174_v20, 16  ;;  %v624_v58 = vld [vmem:[%s15958_s19 + $0xb8] sm:$0xff]  ;;  %v626_v32 = vld [vmem:[%s15958_s19 + $0xc8] sm:$0xff] }
  0x5a   : > { %12986 = vmatprep.subr.bf16.mxu0 %v15160_v11  ;;  %1974 = vmatmul.mubr.bf16.gmra.mrb[8].mxu1 %v16091_v15  ;;  %v642_v11 = vpack.c.bf16 %v620_v55, %v619_v54  ;;  %v1261_v54 = vrot.slane %v16147_v60, 1  ;;  %v1262_v55 = vrot.slane %v16158_v5, 1  ;;  %v1080_v63 = vor.u32 %v1079_v40, %v1075_v39  ;;  %v627_v39 = vld [vmem:[%s15958_s19 + $0xd0] sm:$0xff]  ;;  %v628_v40 = vld [vmem:[%s15958_s19 + $0xd8] sm:$0xff] }
  0x5b   : > { %1981 = vmatprep.mubr.bf16.mxu1 %v16082_v8  ;;  %v16194_v37 = vsel %vm1001_vm5, %v1068_v17, %v1072_v3  ;;  %v1264_v0 = vrot.slane %v16174_v20, 1  ;;  %v1106_v1 = vshll.u32 %v16204_v38, 16  ;;  %v672_v2 = vsel %vm649_vm3, %v643_v41, 0  ;;  %v15174_v3 = vld [vmem:[%s20495_s29 + $0x1e0] sm:$0xff]  }
  0x5c   : > { %v16182_v26 = vsel %vm649_vm3, %v642_v11, 0  ;;  %v1091_v11 = vrot.slane %v1089_v42, 1  ;;  %v1096_v12 = vrot.slane %v1094_v43, 1  ;;  %v887_v13 = vor.u32 %v885_v48, %v884_v47 }
  0x5d   : > { %12987 = vmatpush3.bf16.msra.mxu0 %v15161_v24  ;;  %v881_v24 = vor.u32 %v879_v7, %v878_v18  ;;  %v888_v44 = vshrl.u32 %v16182_v26, 16  ;;  %v891_v7 = vshll.u32 %v16182_v26, 16  ;;  %v644_v14 = vpack.c.bf16 %v624_v58, %v623_v45 }
  0x5e   : > { %12988 = vmatprep.subr.bf16.mxu0 %v15162_v27  ;;  %v15170_v27 = vld [vmem:[%s20495_s29 + $0x1d8] sm:$0xff]   ;;  %v1265_v17 = vrot.slane %v16179_v22, 1  ;;  %v16240_v18 = vsel %vm15960_vm2, %v884_v47, 0  ;;  %v894_v19 = vshrl.u32 %v672_v2, 16  ;;  %v16249_v25 = vsel %vm1001_vm5, %v1080_v63, %v1084_v52  ;;  %v625_v22 = vld [vmem:[%s15958_s19 + $0xc0] sm:$0xff] }
  0x5f   : > { %13094 = vmatprep.subr.bf16.mxu1 %v15170_v27  ;;  %v16211_v46 = vsel %vm15960_vm2, 0, %v881_v24  ;;  %v890_v4 = vrot.slane %v888_v44, 7  ;;  %v16246_v24 = vsel %vm1242_vm4, %v1258_v30, %v1259_v31  ;;  %v15177_v30 = vld [vmem:[%s20495_s29 + $0x1a8] sm:$0xff]   ;;  %v16264_v31 = vsel %vm15960_vm2, 0, %v887_v13 }
  0x60   : > { %1821 = vmatmul.mubr.bf16.gmra.mrb[12].mxu0 %v16035_v34  ;;  %v1101_v6 = vshll.u32 %v16211_v46, 16  ;;  %v1099_v26 = vshrl.u32 %v16211_v46, 16  ;;  %v1118_v44 = vshll.u32 %v16240_v18, 16  ;;  %v674_v47 = vsel %vm649_vm3, %v644_v14, 0 }
  0x61   : > { %12989 = vmatpush3.bf16.msra.mxu0 %v15163_v36  ;;  %1828 = vmatprep.mubr.bf16.mxu0 %v16142_v56  ;;  %v15171_v36 = vld [vmem:[%s20495_s29 + $0x198] sm:$0xff]   ;;  %v893_v43 = vor.u32 %v891_v7, %v890_v4  ;;  %v1092_v48 = vor.u32 %v1091_v11, %v1087_v57  ;;  %v897_v52 = vshll.u32 %v672_v2, 16  ;;  %v1111_v58 = vshrl.u32 %v16264_v31, 16 }
  0x62   : > { %1982 = vmatmul.mubr.bf16.gmra.mrb[12].mxu1 %v16137_v53  ;;  %12990 = vmatprep.subr.bf16.mxu0 %v15172_v49  ;;  %v1103_v41 = vrot.slane %v1101_v6, 1  ;;  %v896_v49 = vrot.slane %v894_v19, 7  ;;  %v900_v63 = vshrl.u32 %v674_v47, 16  ;;  %v15178_v6 = vld [vmem:[%s20495_s29 + $0x1f0] sm:$0xff]   ;;  %v645_v2 = vpack.c.bf16 %v626_v32, %v625_v22 }
  0x63   : > { %1989 = vmatprep.mubr.bf16.mxu1 %v16107_v28  ;;  %13095 = vmatpush3.bf16.msra.mxu1 %v15171_v36  ;;  %v1108_v36 = vrot.slane %v1106_v1, 1  ;;  %v629_v1 = vld [vmem:[%s15958_s19 + $0xe0] sm:$0xff]  ;;  %v16284_v57 = vsel %vm15960_vm2, 0, %v893_v43  ;;  %v646_v7 = vpack.c.bf16 %v628_v40, %v627_v39  ;;  %v903_v13 = vshll.u32 %v674_v47, 16 }
  0x64   : > { %13096 = vmatprep.subr.bf16.mxu1 %v15174_v3  ;;  %v630_v3 = vld [vmem:[%s15958_s19 + $0xe8] sm:$0xff]  ;;  %v902_v11 = vrot.slane %v900_v63, 7  ;;  %v16297_v14 = vsel %vm1001_vm5, %v1092_v48, %v1096_v12  ;;  %v899_v19 = vor.u32 %v897_v52, %v896_v49  ;;  %v1104_v32 = vor.u32 %v1103_v41, %v1099_v26 }
  0x65   : > { %12991 = vmatpush3.bf16.msra.mxu0 %v15173_v61  ;;  %v16275_v61 = vsel %vm15960_vm2, %v890_v4, 0  ;;  %v16294_v4 = vsel %vm1242_vm4, %v1261_v54, %v1262_v55  ;;  %v678_v22 = vsel %vm649_vm3, %v646_v7, 0  ;;  %v1113_v39 = vshll.u32 %v16264_v31, 16  ;;  %v15180_v54 = vld [vmem:[%s20495_s29 + $0x1f8] sm:$0xff]  }
  0x66   : > { %v647_v40 = vpack.c.bf16 %v630_v3, %v629_v1  ;;  %v15181_v55 = vld [vmem:[%s20495_s29 + $0x1b8] sm:$0xff]   ;;  %v16308_v12 = vrot.slane %v1118_v44, 1  ;;  %v1130_v43 = vshll.u32 %v16275_v61, 16  ;;  %v912_v47 = vshrl.u32 %v678_v22, 16  ;;  %v16325_v44 = vld [vmem:[%s20495_s29 + $0x200] sm:$0xff]  }
  0x67   : > { %13097 = vmatpush3.bf16.msra.mxu1 %v15175_v10  ;;  %v15179_v10 = vld [vmem:[%s20495_s29 + $0x1b0] sm:$0xff]   ;;  %v16315_v26 = vsel %vm1242_vm4, %v1264_v0, %v1265_v17  ;;  %v1125_v41 = vshll.u32 %v16284_v57, 16  ;;  %v16320_v48 = vsel %vm15960_vm2, %v896_v49, 0  ;;  %v16332_v17 = vsel %vm15960_vm2, 0, %v899_v19  ;;  %14799 = vmatprep.subr.bf16.mxu0 %v16325_v44 }
  0x68   : > { %1829 = vmatmul.mubr.bf16.gmra.mrb[16].mxu0 %v16082_v8  ;;  %13098 = vmatprep.subr.bf16.mxu1 %v15176_v21  ;;  %v676_v21 = vsel %vm649_vm3, %v645_v2, 0  ;;  %20503 = vst [vmem:[#allocation15_spill] sm:$0xff] %v16315_v26  ;;  %v905_v63 = vor.u32 %v903_v13, %v902_v11  ;;  %v915_v49 = vshll.u32 %v678_v22, 16  ;;  %v16336_v1 = vsel %vm1001_vm5, %v1104_v32, %v1108_v36  ;;  %v632_v22 = vld [vmem:[%s15958_s19 + $0xf8] sm:$0xff] }
  0x69   : > { %1836 = vmatprep.mubr.bf16.mxu0 %v16194_v37  ;;  %v906_v5 = vshrl.u32 %v676_v21, 16  ;;  %20504 = vst [vmem:[#allocation16_spill] sm:$0xff] %v16336_v1  ;;  %v1115_v3 = vrot.slane %v1113_v39, 1  ;;  %v680_v2 = vsel %vm649_vm3, %v647_v40, 0  ;;  %v16343_v19 = vsel %vm15960_vm2, %v902_v11, 0 }
  0x6a   : > { %1990 = vmatmul.mubr.bf16.gmra.mrb[16].mxu1 %v16188_v29  ;;  %v1132_v36 = vrot.slane %v1130_v43, 1  ;;  %v1137_v32 = vshll.u32 %v16332_v17, 16  ;;  %v918_v11 = vshrl.u32 %v680_v2, 16 }
  0x6b   : > { %1997 = vmatprep.mubr.bf16.mxu1 %v16147_v60  ;;  %13099 = vmatpush3.bf16.msra.mxu1 %v15177_v30  ;;  %v909_v30 = vshll.u32 %v676_v21, 16  ;;  %v908_v52 = vrot.slane %v906_v5, 7  ;;  %v1127_v21 = vrot.slane %v1125_v41, 1  ;;  %v16351_v5 = vsel %vm15960_vm2, 0, %v905_v63 }
  0x6c   : > { %13100 = vmatprep.subr.bf16.mxu1 %v15178_v6  ;;  %v914_v6 = vrot.slane %v912_v47, 7  ;;  %v1116_v47 = vor.u32 %v1115_v3, %v1111_v58  ;;  %v1139_v39 = vrot.slane %v1137_v32, 1  ;;  %v1149_v0 = vshll.u32 %v16351_v5, 16 }
  0x6d   : > { %v911_v13 = vor.u32 %v909_v30, %v908_v52  ;;  %v1154_v30 = vshll.u32 %v16343_v19, 16  ;;  %v16358_v43 = vsel %vm15960_vm2, %v908_v52, 0  ;;  %v1147_v32 = vshrl.u32 %v16351_v5, 16 }
  0x6e   : > { %v917_v40 = vor.u32 %v915_v49, %v914_v6  ;;  %v631_v49 = vld [vmem:[%s15958_s19 + $0xf0] sm:$0xff]  ;;  %v16373_v52 = vsel %vm15960_vm2, %v914_v6, 0  ;;  %v1166_v58 = vshll.u32 %v16358_v43, 16  ;;  %v1280_v6 = vrot.slane %v16343_v19, 1  ;;  %s593_s19 = sand.u32 1, %s15697_s30  }
  0x6f   : > { %13101 = vmatpush3.bf16.msra.mxu1 %v15179_v10  ;;  %v1142_v10 = vshll.u32 %v16320_v48, 16  ;;  %v16364_v63 = vsel %vm15960_vm2, 0, %v911_v13  ;;  %v921_v13 = vshll.u32 %v680_v2, 16  ;;  %v1156_v45 = vrot.slane %v1154_v30, 1  ;;  %s594_s0 = scalar_lea.vmem [#allocation2], %s593_s19 }
  0x70   : > { %1837 = vmatmul.mubr.bf16.gmra.mrb[20].mxu0 %v16107_v28  ;;  %13102 = vmatprep.subr.bf16.mxu1 %v15180_v54  ;;  %v1135_v54 = vshrl.u32 %v16332_v17, 16  ;;  %v16380_v3 = vsel %vm15960_vm2, 0, %v917_v40  ;;  %v1161_v7 = vshll.u32 %v16364_v63, 16  ;;  %v1279_v42 = vrot.slane %v16351_v5, 1  ;;  %s12065_s26 = sshll.u32 %s594_s0, 4  ;;  %s20397_s26 = int_to_ptr.vmem [resolvable:$true] %s12065_s26 }
  0x71   : > { %1844 = vmatprep.mubr.bf16.mxu0 %v16249_v25  ;;  %v1144_v41 = vrot.slane %v1142_v10, 1  ;;  %v920_v10 = vrot.slane %v918_v11, 7  ;;  %v1178_v27 = vshll.u32 %v16373_v52, 16  ;;  %v648_v9 = vpack.c.bf16 %v632_v22, %v631_v49  ;;  %p15650_p0 = scmp.lt.s32.totalorder %s20397_s26, %s15648_s27 }
  0x72   : > { %1998 = vmatmul.mubr.bf16.gmra.mrb[20].mxu1 %v16246_v24  ;;  %v1151_v35 = vrot.slane %v1149_v0, 1  ;;  %v1159_v40 = vshrl.u32 %v16364_v63, 16  ;;  %v1283_v11 = vrot.slane %v16358_v43, 1  ;;  %v1173_v2 = vshll.u32 %v16380_v3, 16 }
  0x73   : > { %2005 = vmatprep.mubr.bf16.mxu1 %v16174_v20  ;;  %13103 = vmatpush3.bf16.msra.mxu1 %v15181_v55  ;;  %v1276_v55 = vrot.slane %v16332_v17, 1  ;;  %v1168_v62 = vrot.slane %v1166_v58, 1  ;;  %v923_v30 = vor.u32 %v921_v13, %v920_v10  ;;  %v16394_v19 = vsel %vm15960_vm2, %v920_v10, 0 }
  0x74   : > { %v16405_v22 = vsel %vm1001_vm5, %v1116_v47, %v16308_v12  ;;  %v1163_v43 = vrot.slane %v1161_v7, 1  ;;  %v1171_v49 = vshrl.u32 %v16380_v3, 16  ;;  %v1180_v58 = vrot.slane %v1178_v27, 1 }
  0x75   : > { %20507 = vst [vmem:[#allocation17_spill] sm:$0xff] %v16405_v22  ;;  %v1285_v13 = vrot.slane %v16380_v3, 1  ;;  %v1175_v10 = vrot.slane %v1173_v2, 1  ;;  %v682_v12 = vsel %vm649_vm3, %v648_v9, 0  ;;  %v20508_v27 = vshrl.u32 %v16284_v57, 16  ;;  %vm20062_vm3 = vmand %vm10799_vm0, %vm10800_vm1 }
  0x76   : > { %v20509_v7 = vrot.slane %v16240_v18, 1  ;;  %v20510_v47 = vrot.slane %v16264_v31, 1  ;;  %v1140_v9 = vor.u32 %v1139_v39, %v1135_v54  ;;  %v20512_v18 = vrot.slane %v16284_v57, 1 }
  0x77   : > { %v1152_v54 = vor.u32 %v1151_v35, %v1147_v32 }
  0x78   : > { %1845 = vmatmul.mubr.bf16.gmra.mrb[24].mxu0 %v16147_v60  ;;  %v16426_v2 = vsel %vm1242_vm4, %v20510_v47, %v20509_v7  ;;  %v20513_v7 = vrot.slane %v16320_v48, 1 }
  0x79   : > { %1852 = vmatprep.mubr.bf16.mxu0 %v16297_v14  ;;  %v16457_v47 = vsel %vm1001_vm5, %v1152_v54, %v1156_v45  ;;  %v1176_v45 = vor.u32 %v1175_v10, %v1171_v49 }
  0x7a   : > { %2006 = vmatmul.mubr.bf16.gmra.mrb[24].mxu1 %v16294_v4 }
  0x7b   : > { %2013 = vmatprep.mubr.bf16.mxu1 %v16211_v46 }
  0x80   : > { %1853 = vmatmul.mubr.bf16.gmra.mrb[28].mxu0 %v16174_v20  ;;  %v20506_v20 = vrot.slane %v16211_v46, 1 }
  0x81   : > { %1860 = vmatprep.mubr.bf16.mxu0 %v16336_v1  ;;  %v1282_v1 = vrot.slane %v16364_v63, 1 }
  0x82   : > { %2014 = vmatmul.mubr.bf16.gmra.mrb[28].mxu1 %v16315_v26  ;;  %v20505_v26 = vrot.slane %v16204_v38, 1  ;;  %v1190_v38 = vshll.u32 %v16394_v19, 16 }
  0x83   : > { %2021 = vmatprep.mubr.bf16.mxu1 %v16264_v31  ;;  %v16476_v32 = vsel %vm1242_vm4, %v1282_v1, %v1283_v11  ;;  %v1289_v1 = vrot.slane %v16394_v19, 1  ;;  %v15183_v19 = vld [vmem:[%s20495_s29 + $0x208] sm:$0xff]  }
  0x84   : > { %v16401_v0 = vsel %vm1242_vm4, %v20506_v20, %v20505_v26  ;;  %v16415_v20 = vsel %vm15960_vm2, 0, %v923_v30  ;;  %v1128_v26 = vor.u32 %v1127_v21, %v20508_v27  ;;  %v20511_v21 = vrot.slane %v16275_v61, 1 }
  0x85   : > { %v16443_v27 = vsel %vm1001_vm5, %v1140_v9, %v1144_v41  ;;  %v1183_v39 = vshrl.u32 %v16415_v20, 16  ;;  %v1185_v61 = vshll.u32 %v16415_v20, 16  ;;  %v16454_v41 = vsel %vm1242_vm4, %v1276_v55, %v20513_v7 }
  0x86   : > { %v16440_v30 = vsel %vm1242_vm4, %v20512_v18, %v20511_v21  ;;  %v16464_v9 = vsel %vm1242_vm4, %v1279_v42, %v1280_v6  ;;  %v16479_v42 = vsel %vm1001_vm5, %v1176_v45, %v1180_v58  ;;  %v1288_v10 = vrot.slane %v16415_v20, 1 }
  0x87   : > { %v1187_v48 = vrot.slane %v1185_v61, 1 }
  0x88   : > { %1861 = vmatmul.mubr.bf16.gmra.mrb[32].mxu0 %v16211_v46 }
  0x89   : > { %1868 = vmatprep.mubr.bf16.mxu0 %v16405_v22  ;;  %v16429_v22 = vsel %vm1001_vm5, %v1128_v26, %v1132_v36  ;;  %v924_v36 = vshrl.u32 %v682_v12, 16  ;;  %v927_v26 = vshll.u32 %v682_v12, 16  ;;  %v1164_v12 = vor.u32 %v1163_v43, %v1159_v40 }
  0x8a   : > { %2022 = vmatmul.mubr.bf16.gmra.mrb[32].mxu1 %v16401_v0  ;;  %v1188_v6 = vor.u32 %v1187_v48, %v1183_v39  ;;  %v1192_v40 = vrot.slane %v1190_v38, 1 }
  0x8b   : > { %2029 = vmatprep.mubr.bf16.mxu1 %v16284_v57  ;;  %v16467_v35 = vsel %vm1001_vm5, %v1164_v12, %v1168_v62  ;;  %v16473_v55 = vrot.slane %v924_v36, 7  ;;  %v1286_v62 = vrot.slane %v16373_v52, 1  ;;  %v16504_v52 = vsel %vm1242_vm4, %v1288_v10, %v1289_v1 }
  0x8c   : > { %v16492_v49 = vsel %vm1001_vm5, %v1188_v6, %v1192_v40 }
  0x8d   : > { %v929_v43 = vor.u32 %v927_v26, %v16473_v55  ;;  %v16489_v11 = vsel %vm1242_vm4, %v1285_v13, %v1286_v62  ;;  %v15184_v13 = vld [vmem:[%s20495_s29 + $0x210] sm:$0xff]   ;;  %v16586_v21 = vsel %vm15960_vm2, %v16473_v55, 0 }
  0x8e   : > { %v1315_v45 = vshll.u32 %v16586_v21, 16 }
  0x8f   : > { %v16496_v58 = vsel %vm15960_vm2, 0, %v929_v43 }
  0x90   : > { %1869 = vmatmul.mubr.bf16.gmra.mrb[36].mxu0 %v16264_v31  ;;  %v1308_v36 = vshrl.u32 %v16496_v58, 16 }
  0x91   : > { %1876 = vmatprep.mubr.bf16.mxu0 %v16429_v22 }
  0x92   : > { %2030 = vmatmul.mubr.bf16.gmra.mrb[36].mxu1 %v16426_v2 }
  0x93   : > { %2037 = vmatprep.mubr.bf16.mxu1 %v16332_v17 }
  0x98   : > { %1877 = vmatmul.mubr.bf16.gmra.mrb[40].mxu0 %v16284_v57 }
  0x99   : > { %1884 = vmatprep.mubr.bf16.mxu0 %v16443_v27 }
  0x9a   : > { %2038 = vmatmul.mubr.bf16.gmra.mrb[40].mxu1 %v16440_v30 }
  0x9b   : > { %2045 = vmatprep.mubr.bf16.mxu1 %v16351_v5 }
  0xa0   : > { %1885 = vmatmul.mubr.bf16.gmra.mrb[44].mxu0 %v16332_v17 }
  0xa1   : > { %1892 = vmatprep.mubr.bf16.mxu0 %v16457_v47 }
  0xa2   : > { %2046 = vmatmul.mubr.bf16.gmra.mrb[44].mxu1 %v16454_v41 }
  0xa3   : > { %2053 = vmatprep.mubr.bf16.mxu1 %v16364_v63 }
  0xa8   : > { %1893 = vmatmul.mubr.bf16.gmra.mrb[48].mxu0 %v16351_v5 }
  0xa9   : > { %1900 = vmatprep.mubr.bf16.mxu0 %v16467_v35 }
  0xaa   : > { %2054 = vmatmul.mubr.bf16.gmra.mrb[48].mxu1 %v16464_v9 }
  0xab   : > { %2061 = vmatprep.mubr.bf16.mxu1 %v16380_v3 }
  0xb0   : > { %1901 = vmatmul.mubr.bf16.gmra.mrb[52].mxu0 %v16364_v63 }
  0xb1   : > { %1908 = vmatprep.mubr.bf16.mxu0 %v16479_v42 }
  0xb2   : > { %2062 = vmatmul.mubr.bf16.gmra.mrb[52].mxu1 %v16476_v32 }
  0xb3   : > { %2069 = vmatprep.mubr.bf16.mxu1 %v16415_v20 }
  0xb8   : > { %1909 = vmatmul.mubr.bf16.gmra.mrb[56].mxu0 %v16380_v3 }
  0xb9   : > { %1916 = vmatprep.mubr.bf16.mxu0 %v16492_v49 }
  0xba   : > { %2070 = vmatmul.mubr.bf16.gmra.mrb[56].mxu1 %v16489_v11 }
  0xbb   : > { %2077 = vmatprep.mubr.bf16.mxu1 %v16496_v58 }
  0xc0   : > { %1917 = vmatmul.mubr.bf16.gmra.mrb[60].mxu0 %v16415_v20 }
  0xc1   : > { %2118 = vmatprep.mubr.bf16.mxu0 %v16055_v51  ;;  %v15185_v51 = vld [vmem:[%s20495_s29 + $0x218] sm:$0xff]  }
  0xc2   : > { %2078 = vmatmul.mubr.bf16.gmra.mrb[60].mxu1 %v16504_v52 }
  0xc3   : > { %2279 = vmatprep.mubr.bf16.mxu1 %v16066_v59 }
  0xc8   : > { %2119 = vmatmul.mubr.bf16.vlgmr.msra.gmra.mrb[64].mxu0 %v16052_v50  ;;  %v15187_v50 = vld [vmem:[%s20495_s29 + $0x228] sm:$0xff]  }
  0xc9   : > { %14800 = vmatpush3.bf16.msra.mxu0 %v16325_v44  ;;  %2126 = vmatprep.mubr.bf16.mxu0 %v16091_v15 }
  0xca   : > { %2280 = vmatmul.mubr.bf16.vlgmr.msra.gmra.mrb[64].mxu1 %v16022_v23  ;;  %14801 = vmatprep.subr.bf16.mxu0 %v15183_v19  ;;  %v15186_v23 = vld [vmem:[%s20495_s29 + $0x220] sm:$0xff]  }
  0xcb   : > { %2287 = vmatprep.mubr.bf16.mxu1 %v16094_v16 }
  0xcd   : > { %14802 = vmatpush3.bf16.msra.mxu0 %v15183_v19 }
  0xce   : > { %14803 = vmatprep.subr.bf16.mxu0 %v15184_v13 }
  0xd0   : > { %2127 = vmatmul.mubr.bf16.gmra.mrb[68].mxu0 %v16066_v59  ;;  %v15189_v59 = vld [vmem:[%s20495_s29 + $0x238] sm:$0xff]  }
  0xd1   : > { %2134 = vmatprep.mubr.bf16.mxu0 %v16137_v53  ;;  %14804 = vmatpush3.bf16.msra.mxu0 %v15184_v13  ;;  %v1317_v13 = vrot.slane %v1315_v45, 1 }
  0xd2   : > { %2288 = vmatmul.mubr.bf16.gmra.mrb[68].mxu1 %v16035_v34  ;;  %14805 = vmatprep.subr.bf16.mxu0 %v15185_v51  ;;  %v15188_v34 = vld [vmem:[%s20495_s29 + $0x230] sm:$0xff]  }
  0xd3   : > { %2295 = vmatprep.mubr.bf16.mxu1 %v16142_v56 }
  0xd5   : > { %14806 = vmatpush3.bf16.msra.mxu0 %v15185_v51 }
  0xd6   : > { %14807 = vmatprep.subr.bf16.mxu0 %v15186_v23 }
  0xd8   : > { %2135 = vmatmul.mubr.bf16.gmra.mrb[72].mxu0 %v16094_v16  ;;  %v20515_v16 = vld [vmem:[#allocation15_spill] sm:$0xff] }
  0xd9   : > { %2142 = vmatprep.mubr.bf16.mxu0 %v16188_v29  ;;  %14808 = vmatpush3.bf16.msra.mxu0 %v15186_v23 }
  0xda   : > { %2296 = vmatmul.mubr.bf16.gmra.mrb[72].mxu1 %v16082_v8  ;;  %14809 = vmatprep.subr.bf16.mxu0 %v15187_v50  ;;  %v20514_v8 = vld [vmem:[#allocation14_spill] sm:$0xff] }
  0xdb   : > { %2303 = vmatprep.mubr.bf16.mxu1 %v16194_v37 }
  0xdd   : > { %14810 = vmatpush3.bf16.msra.mxu0 %v15187_v50 }
  0xde   : > { %14811 = vmatprep.subr.bf16.mxu0 %v15188_v34 }
  0xe0   : > { %2143 = vmatmul.mubr.bf16.gmra.mrb[76].mxu0 %v16142_v56  ;;  %v20517_v56 = vld [vmem:[#allocation17_spill] sm:$0xff] }
  0xe1   : > { %2150 = vmatprep.mubr.bf16.mxu0 %v16246_v24  ;;  %14812 = vmatpush3.bf16.msra.mxu0 %v15188_v34 }
  0xe2   : > { %2304 = vmatmul.mubr.bf16.gmra.mrb[76].mxu1 %v16107_v28  ;;  %14813 = vmatprep.subr.bf16.mxu0 %v15189_v59  ;;  %v20516_v28 = vld [vmem:[#allocation16_spill] sm:$0xff] }
  0xe3   : > { %2311 = vmatprep.mubr.bf16.mxu1 %v16249_v25 }
  0xe5   : > { %14814 = vmatpush3.bf16.msra.mxu0 %v15189_v59 }
  0xe8   : > { %2151 = vmatmul.mubr.bf16.gmra.mrb[80].mxu0 %v16194_v37 }
  0xe9   : > { %2158 = vmatprep.mubr.bf16.mxu0 %v16294_v4 }
  0xea   : > { %2312 = vmatmul.mubr.bf16.gmra.mrb[80].mxu1 %v16147_v60  ;;  %v16575_v60 = vld [vmem:[%s20518_s28] ss:$0 sm:$0xff] }
  0xeb   : > { %2319 = vmatprep.mubr.bf16.mxu1 %v16297_v14 }
  0xf0   : > { %2159 = vmatmul.mubr.bf16.gmra.mrb[84].mxu0 %v16249_v25 }
  0xf1   : > { %2166 = vmatprep.mubr.bf16.mxu0 %v20515_v16 }
  0xf2   : > { %2320 = vmatmul.mubr.bf16.gmra.mrb[84].mxu1 %v20514_v8 }
  0xf3   : > { %2327 = vmatprep.mubr.bf16.mxu1 %v20516_v28 }
  0xf8   : > { %2167 = vmatmul.mubr.bf16.gmra.mrb[88].mxu0 %v16297_v14  ;;  %v1310_v14 = vshll.u32 %v16496_v58, 16 }
  0xf9   : > { %2174 = vmatprep.mubr.bf16.mxu0 %v16401_v0 }
  0xfa   : > { %2328 = vmatmul.mubr.bf16.gmra.mrb[88].mxu1 %v16211_v46  ;;  %v1312_v39 = vrot.slane %v1310_v14, 1 }
  0xfb   : > { %2335 = vmatprep.mubr.bf16.mxu1 %v20517_v56 }
  0xfc   : > { %v1313_v8 = vor.u32 %v1312_v39, %v1308_v36 }
 0x100   : > { %2175 = vmatmul.mubr.bf16.gmra.mrb[92].mxu0 %v20516_v28  ;;  %v1322_v28 = vrot.slane %v16496_v58, 1 }
 0x101   : > { %2182 = vmatprep.mubr.bf16.mxu0 %v16426_v2 }
 0x102   : > { %2336 = vmatmul.mubr.bf16.gmra.mrb[92].mxu1 %v16264_v31 }
 0x103   : > { %2343 = vmatprep.mubr.bf16.mxu1 %v16429_v22 }
 0x108   : > { %2183 = vmatmul.mubr.bf16.gmra.mrb[96].mxu0 %v20517_v56 }
 0x109   : > { %2190 = vmatprep.mubr.bf16.mxu0 %v16440_v30 }
 0x10a   : > { %2344 = vmatmul.mubr.bf16.gmra.mrb[96].mxu1 %v16284_v57 }
 0x10b   : > { %2351 = vmatprep.mubr.bf16.mxu1 %v16443_v27 }
 0x110   : > { %2191 = vmatmul.mubr.bf16.gmra.mrb[100].mxu0 %v16429_v22 }
 0x111   : > { %2198 = vmatprep.mubr.bf16.mxu0 %v16454_v41 }
 0x112   : > { %2352 = vmatmul.mubr.bf16.gmra.mrb[100].mxu1 %v16332_v17 }
 0x113   : > { %2359 = vmatprep.mubr.bf16.mxu1 %v16457_v47 }
 0x118   : > { %2199 = vmatmul.mubr.bf16.gmra.mrb[104].mxu0 %v16443_v27 }
 0x119   : > { %2206 = vmatprep.mubr.bf16.mxu0 %v16464_v9 }
 0x11a   : > { %2360 = vmatmul.mubr.bf16.gmra.mrb[104].mxu1 %v16351_v5 }
 0x11b   : > { %v12768_v37 = vpop.f32.mrb[0].mxu0  ;;  %2367 = vmatprep.mubr.bf16.mxu1 %v16467_v35 }
 0x11c   : > { %v12769_v46 = vpop.f32.mrb[1].mxu0 }
 0x11d   : > { %v12770_v25 = vadd.f32 %v12769_v46, %v12768_v37  ;;  %v12771_v31 = vpop.f32.mrb[2].mxu0  ;;  %v12880_v17 = vpop.f32.mrb[0].mxu1 }
 0x11e   : > { %v12772_v57 = vpop.f32.mrb[3].mxu0  ;;  %v12881_v38 = vpop.f32.mrb[1].mxu1 }
 0x11f   : > { %v1799_v44 = vadd.f32 %v12770_v25, %v16575_v60  ;;  %v12773_v22 = vadd.f32 %v12772_v57, %v12771_v31  ;;  %v12882_v18 = vadd.f32 %v12881_v38, %v12880_v17  ;;  %v12883_v27 = vpop.f32.mrb[2].mxu1  ;;  %v1323_v38 = vrot.slane %v16586_v21, 1 }
 0x120   : > { %v12884_v26 = vpop.f32.mrb[3].mxu1  ;;  %2207 = vmatmul.mubr.bf16.gmra.mrb[108].mxu0 %v16457_v47 }
 0x121   : > { %v1802_v5 = vadd.f32 %v12773_v22, %v16575_v60  ;;  %v16590_v61 = vadd.f32 %v12882_v18, %v1799_v44  ;;  %v12885_v54 = vadd.f32 %v12884_v26, %v12883_v27  ;;  %2214 = vmatprep.mubr.bf16.mxu0 %v16476_v32  ;;  %v1318_v22 = vsel %vm1001_vm5, %v1313_v8, %v1317_v13  ;;  %v15191_v18 = vld [vmem:[%s20519_s25] sm:$0xff]  }
 0x122   : > { %2368 = vmatmul.mubr.bf16.gmra.mrb[108].mxu1 %v16364_v63 }
 0x123   : > { %v16595_v7 = vadd.f32 %v12885_v54, %v1802_v5  ;;  %2375 = vmatprep.mubr.bf16.mxu1 %v16479_v42  ;;  %v12774_v12 = vpop.f32.mrb[4].mxu0  ;;  %v15190_v5 = vld [vmem:[%s20519_s25 + $0x40] sm:$0xff]  }
 0x124   : > { %v12775_v48 = vpop.f32.mrb[5].mxu0  ;;  %13224 = vmatprep.subr.bf16.mxu1 %v15190_v5 }
 0x125   : > { %v12886_v55 = vpop.f32.mrb[4].mxu1  ;;  %v12776_v62 = vadd.f32 %v12775_v48, %v12774_v12  ;;  %v12777_v6 = vpop.f32.mrb[6].mxu0  ;;  %13225 = vmatpush3.bf16.msra.mxu1 %v15191_v18 }
 0x126   : > { %v12887_v40 = vpop.f32.mrb[5].mxu1  ;;  %v12778_v43 = vpop.f32.mrb[7].mxu0 }
 0x127   : > { %v12888_v1 = vadd.f32 %v12887_v40, %v12886_v55  ;;  %v12889_v10 = vpop.f32.mrb[6].mxu1  ;;  %v1807_v47 = vadd.f32 %v12776_v62, %v16575_v60  ;;  %v12779_v63 = vadd.f32 %v12778_v43, %v12777_v6  ;;  %v16628_v40 = vsel %vm1242_vm4, %v1322_v28, %v1323_v38 }
 0x128   : > { %v12890_v19 = vpop.f32.mrb[7].mxu1  ;;  %2215 = vmatmul.mubr.bf16.gmra.mrb[112].mxu0 %v16467_v35 }
 0x129   : > { %v12891_v51 = vadd.f32 %v12890_v19, %v12889_v10  ;;  %v1810_v23 = vadd.f32 %v12779_v63, %v16575_v60  ;;  %v16602_v50 = vadd.f32 %v12888_v1, %v1807_v47  ;;  %2222 = vmatprep.mubr.bf16.mxu0 %v16489_v11  ;;  %v20520_v19 = vld [vmem:[#allocation12_spill] sm:$0xff] }
 0x12a   : > { %2376 = vmatmul.mubr.bf16.gmra.mrb[112].mxu1 %v16380_v3 }
 0x12b   : > { %2383 = vmatprep.mubr.bf16.mxu1 %v16492_v49  ;;  %v16607_v34 = vadd.f32 %v12891_v51, %v1810_v23  ;;  %v12780_v59 = vpop.f32.mrb[8].mxu0 }
 0x12c   : > { %v12781_v56 = vpop.f32.mrb[9].mxu0 }
 0x12d   : > { %v12892_v37 = vpop.f32.mrb[8].mxu1  ;;  %v12782_v46 = vadd.f32 %v12781_v56, %v12780_v59  ;;  %v12783_v35 = vpop.f32.mrb[10].mxu0 }
 0x12e   : > { %v12893_v25 = vpop.f32.mrb[9].mxu1  ;;  %v12784_v31 = vpop.f32.mrb[11].mxu0 }
 0x12f   : > { %v12894_v57 = vadd.f32 %v12893_v25, %v12892_v37  ;;  %v12895_v14 = vpop.f32.mrb[10].mxu1  ;;  %v1815_v3 = vadd.f32 %v12782_v46, %v16575_v60  ;;  %v12785_v44 = vadd.f32 %v12784_v31, %v12783_v35 }
 0x130   : > { %v12896_v17 = vpop.f32.mrb[11].mxu1  ;;  %2223 = vmatmul.mubr.bf16.gmra.mrb[116].mxu0 %v16479_v42 }
 0x131   : > { %v12897_v27 = vadd.f32 %v12896_v17, %v12895_v14  ;;  %v1818_v36 = vadd.f32 %v12785_v44, %v16575_v60  ;;  %v16621_v26 = vadd.f32 %v12894_v57, %v1815_v3  ;;  %2230 = vmatprep.mubr.bf16.mxu0 %v16504_v52  ;;  %v15193_v57 = vld [vmem:[%s20519_s25 + $0x8] sm:$0xff]  }
 0x132   : > { %2384 = vmatmul.mubr.bf16.gmra.mrb[116].mxu1 %v16415_v20  ;;  %v20521_v17 = vld [vmem:[#allocation11_spill] sm:$0xff] }
 0x133   : > { %2391 = vmatprep.mubr.bf16.mxu1 %v1318_v22  ;;  %v16625_v21 = vadd.f32 %v12897_v27, %v1818_v36  ;;  %v12786_v39 = vpop.f32.mrb[12].mxu0 }
 0x134   : > { %v12787_v54 = vpop.f32.mrb[13].mxu0 }
 0x135   : > { %v12898_v12 = vpop.f32.mrb[12].mxu1  ;;  %v12788_v45 = vadd.f32 %v12787_v54, %v12786_v39  ;;  %v12789_v48 = vpop.f32.mrb[14].mxu0 }
 0x136   : > { %v12899_v55 = vpop.f32.mrb[13].mxu1  ;;  %v12790_v42 = vpop.f32.mrb[15].mxu0 }
 0x137   : > { %v12900_v62 = vadd.f32 %v12899_v55, %v12898_v12  ;;  %v12901_v6 = vpop.f32.mrb[14].mxu1  ;;  %v1823_v20 = vadd.f32 %v12788_v45, %v16575_v60  ;;  %v12791_v43 = vadd.f32 %v12790_v42, %v12789_v48 }
 0x138   : > { %v12902_v1 = vpop.f32.mrb[15].mxu1  ;;  %2231 = vmatmul.mubr.bf16.gmra.mrb[120].mxu0 %v16492_v49 }
 0x139   : > { %v12903_v10 = vadd.f32 %v12902_v1, %v12901_v6  ;;  %v1826_v47 = vadd.f32 %v12791_v43, %v16575_v60  ;;  %v16633_v63 = vadd.f32 %v12900_v62, %v1823_v20  ;;  %2238 = vmatprep.mubr.bf16.mxu0 %v16628_v40 }
 0x13a   : > { %2392 = vmatmul.mubr.bf16.gmra.mrb[120].mxu1 %v16496_v58  ;;  %v15192_v58 = vld [vmem:[%s20519_s25 + $0x48] sm:$0xff]  }
 0x13b   : > { %2399 = vmatprep.mubr.bf16.mxu1 %v20520_v19  ;;  %v16638_v13 = vadd.f32 %v12903_v10, %v1826_v47  ;;  %v12792_v51 = vpop.f32.mrb[16].mxu0  ;;  %13226 = vmatprep.subr.bf16.mxu1 %v15192_v58 }
 0x13c   : > { %v12793_v23 = vpop.f32.mrb[17].mxu0  ;;  %13227 = vmatpush3.bf16.msra.mxu1 %v15193_v57 }
 0x13d   : > { %v12904_v59 = vpop.f32.mrb[16].mxu1  ;;  %v12794_v8 = vadd.f32 %v12793_v23, %v12792_v51  ;;  %v12795_v28 = vpop.f32.mrb[18].mxu0 }
 0x13e   : > { %v12905_v56 = vpop.f32.mrb[17].mxu1  ;;  %v12796_v37 = vpop.f32.mrb[19].mxu0 }
 0x13f   : > { %v12906_v49 = vadd.f32 %v12905_v56, %v12904_v59  ;;  %v12907_v46 = vpop.f32.mrb[18].mxu1  ;;  %v1831_v35 = vadd.f32 %v12794_v8, %v16575_v60  ;;  %v12797_v25 = vadd.f32 %v12796_v37, %v12795_v28 }
 0x140   : > { %v12908_v31 = vpop.f32.mrb[19].mxu1  ;;  %2239 = vmatmul.mubr.bf16.gmra.mrb[124].mxu0 %v1318_v22 }
 0x141   : > { %v12909_v14 = vadd.f32 %v12908_v31, %v12907_v46  ;;  %v1834_v3 = vadd.f32 %v12797_v25, %v16575_v60  ;;  %v16648_v44 = vadd.f32 %v12906_v49, %v1831_v35  ;;  %14815 = vmatprep.mubr.bf16.mxu0 %v16091_v15  ;;  %v15194_v49 = vld [vmem:[%s20519_s25 + $0x50] sm:$0xff]  }
 0x142   : > { %2400 = vmatmul.mubr.bf16.gmra.mrb[124].mxu1 %v20521_v17  ;;  %13228 = vmatprep.subr.bf16.mxu1 %v15194_v49 }
 0x143   : > { %3712 = vmatprep.mubr.bf16.mxu1 %v20520_v19  ;;  %v16653_v38 = vadd.f32 %v12909_v14, %v1834_v3  ;;  %v12798_v5 = vpop.f32.mrb[20].mxu0 }
 0x144   : > { %v12799_v18 = vpop.f32.mrb[21].mxu0 }
 0x145   : > { %v12910_v27 = vpop.f32.mrb[20].mxu1  ;;  %v12800_v36 = vadd.f32 %v12799_v18, %v12798_v5  ;;  %v12801_v39 = vpop.f32.mrb[22].mxu0 }
 0x146   : > { %v12911_v22 = vpop.f32.mrb[21].mxu1  ;;  %v12802_v54 = vpop.f32.mrb[23].mxu0 }
 0x147   : > { %v12912_v12 = vadd.f32 %v12911_v22, %v12910_v27  ;;  %v12913_v45 = vpop.f32.mrb[22].mxu1  ;;  %v1839_v48 = vadd.f32 %v12800_v36, %v16575_v60  ;;  %v12803_v55 = vadd.f32 %v12802_v54, %v12801_v39 }
 0x148   : > { %v12914_v42 = vpop.f32.mrb[23].mxu1  ;;  %14816 = vmatmul.mubr.bf16.vlgmr.msra.gmra.mrb[128].mxu0 %v16137_v53 }
 0x149   : > { %v12915_v15 = vadd.f32 %v12914_v42, %v12913_v45  ;;  %v1842_v62 = vadd.f32 %v12803_v55, %v16575_v60  ;;  %v16658_v6 = vadd.f32 %v12912_v12, %v1839_v48  ;;  %14819 = vmatprep.mubr.bf16.mxu0 %v16188_v29  ;;  %v15195_v29 = vld [vmem:[%s20519_s25 + $0x10] sm:$0xff]  }
 0x14a   : > { %13229 = vmatpush3.bf16.msra.mxu1 %v15195_v29 }
 0x14b   : > { %v16661_v20 = vadd.f32 %v12915_v15, %v1842_v62  ;;  %v12804_v43 = vpop.f32.mrb[24].mxu0 }
 0x14c   : > { %v12805_v1 = vpop.f32.mrb[25].mxu0 }
 0x14d   : > { %v12916_v10 = vpop.f32.mrb[24].mxu1  ;;  %v12806_v47 = vadd.f32 %v12805_v1, %v12804_v43  ;;  %v12807_v51 = vpop.f32.mrb[26].mxu0 }
 0x14e   : > { %v12917_v23 = vpop.f32.mrb[25].mxu1  ;;  %v12808_v59 = vpop.f32.mrb[27].mxu0 }
 0x14f   : > { %v12918_v8 = vadd.f32 %v12917_v23, %v12916_v10  ;;  %v12919_v28 = vpop.f32.mrb[26].mxu1  ;;  %v1847_v56 = vadd.f32 %v12806_v47, %v16575_v60  ;;  %v12809_v53 = vadd.f32 %v12808_v59, %v12807_v51 }
 0x150   : > { %v12920_v37 = vpop.f32.mrb[27].mxu1  ;;  %14820 = vmatmul.mubr.bf16.gmra.mrb[132].mxu0 %v16246_v24 }
 0x151   : > { %v12921_v46 = vadd.f32 %v12920_v37, %v12919_v28  ;;  %v1850_v35 = vadd.f32 %v12809_v53, %v16575_v60  ;;  %v16672_v25 = vadd.f32 %v12918_v8, %v1847_v56  ;;  %14823 = vmatprep.mubr.bf16.mxu0 %v16294_v4  ;;  %v15196_v8 = vld [vmem:[%s20519_s25 + $0x58] sm:$0xff]  }
 0x152   : > { %13230 = vmatprep.subr.bf16.mxu1 %v15196_v8 }
 0x153   : > { %v16675_v31 = vadd.f32 %v12921_v46, %v1850_v35  ;;  %v12810_v58 = vpop.f32.mrb[28].mxu0 }
 0x154   : > { %v12811_v57 = vpop.f32.mrb[29].mxu0 }
 0x155   : > { %v12922_v14 = vpop.f32.mrb[28].mxu1  ;;  %v12812_v3 = vadd.f32 %v12811_v57, %v12810_v58  ;;  %v12813_v5 = vpop.f32.mrb[30].mxu0 }
 0x156   : > { %v12923_v18 = vpop.f32.mrb[29].mxu1  ;;  %v12814_v27 = vpop.f32.mrb[31].mxu0 }
 0x157   : > { %v12924_v36 = vadd.f32 %v12923_v18, %v12922_v14  ;;  %v12925_v39 = vpop.f32.mrb[30].mxu1  ;;  %v1855_v24 = vadd.f32 %v12812_v3, %v16575_v60  ;;  %v12815_v22 = vadd.f32 %v12814_v27, %v12813_v5 }
 0x158   : > { %v12926_v54 = vpop.f32.mrb[31].mxu1  ;;  %14824 = vmatmul.mubr.bf16.gmra.mrb[136].mxu0 %v20515_v16 }
 0x159   : > { %v12927_v12 = vadd.f32 %v12926_v54, %v12925_v39  ;;  %v1858_v4 = vadd.f32 %v12815_v22, %v16575_v60  ;;  %v16680_v45 = vadd.f32 %v12924_v36, %v1855_v24  ;;  %14827 = vmatprep.mubr.bf16.mxu0 %v16401_v0  ;;  %v15197_v0 = vld [vmem:[%s20519_s25 + $0x18] sm:$0xff]  }
 0x15a   : > { %13231 = vmatpush3.bf16.msra.mxu1 %v15197_v0 }
 0x15b   : > { %v16683_v48 = vadd.f32 %v12927_v12, %v1858_v4  ;;  %v12816_v55 = vpop.f32.mrb[32].mxu0 }
 0x15c   : > { %v12817_v42 = vpop.f32.mrb[33].mxu0 }
 0x15d   : > { %v12928_v15 = vpop.f32.mrb[32].mxu1  ;;  %v12818_v62 = vadd.f32 %v12817_v42, %v12816_v55  ;;  %v12819_v43 = vpop.f32.mrb[34].mxu0 }
 0x15e   : > { %v12929_v1 = vpop.f32.mrb[33].mxu1  ;;  %v12820_v10 = vpop.f32.mrb[35].mxu0 }
 0x15f   : > { %v12930_v47 = vadd.f32 %v12929_v1, %v12928_v15  ;;  %v12931_v51 = vpop.f32.mrb[34].mxu1  ;;  %v1863_v23 = vadd.f32 %v12818_v62, %v16575_v60  ;;  %v12821_v16 = vadd.f32 %v12820_v10, %v12819_v43 }
 0x160   : > { %v12932_v59 = vpop.f32.mrb[35].mxu1  ;;  %14828 = vmatmul.mubr.bf16.gmra.mrb[140].mxu0 %v16426_v2 }
 0x161   : > { %v12933_v28 = vadd.f32 %v12932_v59, %v12931_v51  ;;  %v1866_v56 = vadd.f32 %v12821_v16, %v16575_v60  ;;  %v16694_v53 = vadd.f32 %v12930_v47, %v1863_v23  ;;  %14831 = vmatprep.mubr.bf16.mxu0 %v16440_v30  ;;  %v15198_v47 = vld [vmem:[%s20519_s25 + $0x60] sm:$0xff]  }
 0x162   : > { %13232 = vmatprep.subr.bf16.mxu1 %v15198_v47 }
 0x163   : > { %v16697_v37 = vadd.f32 %v12933_v28, %v1866_v56  ;;  %v12822_v49 = vpop.f32.mrb[36].mxu0 }
 0x164   : > { %v12823_v29 = vpop.f32.mrb[37].mxu0 }
 0x165   : > { %v12934_v46 = vpop.f32.mrb[36].mxu1  ;;  %v12824_v35 = vadd.f32 %v12823_v29, %v12822_v49  ;;  %v12825_v58 = vpop.f32.mrb[38].mxu0 }
 0x166   : > { %v12935_v57 = vpop.f32.mrb[37].mxu1  ;;  %v12826_v14 = vpop.f32.mrb[39].mxu0 }
 0x167   : > { %v12936_v3 = vadd.f32 %v12935_v57, %v12934_v46  ;;  %v12937_v5 = vpop.f32.mrb[38].mxu1  ;;  %v1871_v2 = vadd.f32 %v12824_v35, %v16575_v60  ;;  %v12827_v18 = vadd.f32 %v12826_v14, %v12825_v58 }
 0x168   : > { %v12938_v27 = vpop.f32.mrb[39].mxu1  ;;  %14832 = vmatmul.mubr.bf16.gmra.mrb[144].mxu0 %v16454_v41 }
 0x169   : > { %v12939_v36 = vadd.f32 %v12938_v27, %v12937_v5  ;;  %v1874_v30 = vadd.f32 %v12827_v18, %v16575_v60  ;;  %v16702_v39 = vadd.f32 %v12936_v3, %v1871_v2  ;;  %14835 = vmatprep.mubr.bf16.mxu0 %v16464_v9  ;;  %v15199_v9 = vld [vmem:[%s20519_s25 + $0x20] sm:$0xff]  }
 0x16a   : > { %13233 = vmatpush3.bf16.msra.mxu1 %v15199_v9 }
 0x16b   : > { %v16705_v24 = vadd.f32 %v12939_v36, %v1874_v30  ;;  %v12828_v22 = vpop.f32.mrb[40].mxu0 }
 0x16c   : > { %v12829_v54 = vpop.f32.mrb[41].mxu0 }
 0x16d   : > { %v12940_v12 = vpop.f32.mrb[40].mxu1  ;;  %v12830_v4 = vadd.f32 %v12829_v54, %v12828_v22  ;;  %v12831_v55 = vpop.f32.mrb[42].mxu0 }
 0x16e   : > { %v12941_v42 = vpop.f32.mrb[41].mxu1  ;;  %v12832_v15 = vpop.f32.mrb[43].mxu0 }
 0x16f   : > { %v12942_v62 = vadd.f32 %v12941_v42, %v12940_v12  ;;  %v12943_v43 = vpop.f32.mrb[42].mxu1  ;;  %v1879_v1 = vadd.f32 %v12830_v4, %v16575_v60  ;;  %v12833_v41 = vadd.f32 %v12832_v15, %v12831_v55 }
 0x170   : > { %v12944_v10 = vpop.f32.mrb[43].mxu1  ;;  %14836 = vmatmul.mubr.bf16.gmra.mrb[148].mxu0 %v16476_v32 }
 0x171   : > { %v12945_v51 = vadd.f32 %v12944_v10, %v12943_v43  ;;  %v1882_v23 = vadd.f32 %v12833_v41, %v16575_v60  ;;  %v16716_v16 = vadd.f32 %v12942_v62, %v1879_v1  ;;  %14839 = vmatprep.mubr.bf16.mxu0 %v16489_v11  ;;  %v15200_v62 = vld [vmem:[%s20519_s25 + $0x68] sm:$0xff]   ;;  %v20522_v1 = vld [vmem:[#allocation13_spill] sm:$0xff]  ;;  %v16740_v41 = vld [vmem:[%s20518_s28] ss:$0 sm:$0xff] }
 0x172   : > { %13234 = vmatprep.subr.bf16.mxu1 %v15200_v62 }
 0x173   : > { %v16719_v59 = vadd.f32 %v12945_v51, %v1882_v23  ;;  %v12834_v8 = vpop.f32.mrb[44].mxu0 }
 0x174   : > { %v12835_v0 = vpop.f32.mrb[45].mxu0 }
 0x175   : > { %v12946_v28 = vpop.f32.mrb[44].mxu1  ;;  %v12836_v56 = vadd.f32 %v12835_v0, %v12834_v8  ;;  %v12837_v49 = vpop.f32.mrb[46].mxu0 }
 0x176   : > { %v12947_v29 = vpop.f32.mrb[45].mxu1  ;;  %v12838_v46 = vpop.f32.mrb[47].mxu0 }
 0x177   : > { %v12948_v35 = vadd.f32 %v12947_v29, %v12946_v28  ;;  %v12949_v58 = vpop.f32.mrb[46].mxu1  ;;  %v1887_v32 = vadd.f32 %v12836_v56, %v16575_v60  ;;  %v12839_v57 = vadd.f32 %v12838_v46, %v12837_v49 }
 0x178   : > { %v12950_v14 = vpop.f32.mrb[47].mxu1  ;;  %14840 = vmatmul.mubr.bf16.gmra.mrb[152].mxu0 %v16504_v52 }
 0x179   : > { %v12951_v3 = vadd.f32 %v12950_v14, %v12949_v58  ;;  %v1890_v11 = vadd.f32 %v12839_v57, %v16575_v60  ;;  %v16724_v5 = vadd.f32 %v12948_v35, %v1887_v32  ;;  %14843 = vmatprep.mubr.bf16.mxu0 %v16628_v40  ;;  %v15201_v40 = vld [vmem:[%s20519_s25 + $0x28] sm:$0xff]  }
 0x17a   : > { %13235 = vmatpush3.bf16.msra.mxu1 %v15201_v40  ;;  %v15202_v40 = vld [vmem:[%s20519_s25 + $0x70] sm:$0xff]  }
 0x17b   : > { %v16727_v2 = vadd.f32 %v12951_v3, %v1890_v11  ;;  %v12840_v18 = vpop.f32.mrb[48].mxu0  ;;  %13236 = vmatprep.subr.bf16.mxu1 %v15202_v40 }
 0x17c   : > { %v12841_v27 = vpop.f32.mrb[49].mxu0 }
 0x17d   : > { %v12952_v36 = vpop.f32.mrb[48].mxu1  ;;  %v12842_v30 = vadd.f32 %v12841_v27, %v12840_v18  ;;  %v12843_v22 = vpop.f32.mrb[50].mxu0  ;;  %v15204_v18 = vld [vmem:[%s20519_s25 + $0xc0] sm:$0xff]  }
 0x17e   : > { %v12953_v54 = vpop.f32.mrb[49].mxu1  ;;  %v12844_v12 = vpop.f32.mrb[51].mxu0  ;;  %13336 = vmatprep.subr.bf16.mxu0 %v15204_v18 }
 0x17f   : > { %v12954_v4 = vadd.f32 %v12953_v54, %v12952_v36  ;;  %v12955_v55 = vpop.f32.mrb[50].mxu1  ;;  %v1895_v42 = vadd.f32 %v12842_v30, %v16575_v60  ;;  %v12845_v52 = vadd.f32 %v12844_v12, %v12843_v22  ;;  %v15205_v30 = vld [vmem:[%s20519_s25 + $0x80] sm:$0xff]  }
 0x180   : > { %v12956_v15 = vpop.f32.mrb[51].mxu1  ;;  %14844 = vmatmul.mubr.bf16.gmra.mrb[156].mxu0 %v20522_v1 }
 0x181   : > { %v12957_v43 = vadd.f32 %v12956_v15, %v12955_v55  ;;  %v1898_v60 = vadd.f32 %v16740_v41, %v12845_v52  ;;  %v16743_v10 = vadd.f32 %v12954_v4, %v1895_v42  ;;  %13337 = vmatpush3.bf16.msra.mxu0 %v15205_v30 }
 0x183   : > { %v16745_v47 = vadd.f32 %v12957_v43, %v1898_v60  ;;  %v12846_v9 = vpop.f32.mrb[52].mxu0  ;;  %v15203_v43 = vld [vmem:[%s20519_s25 + $0x30] sm:$0xff]   ;;  %v15206_v60 = vld [vmem:[%s20519_s25 + $0xc8] sm:$0xff]  }
 0x184   : > { %v12847_v51 = vpop.f32.mrb[53].mxu0  ;;  %13338 = vmatprep.subr.bf16.mxu0 %v15206_v60  ;;  %13237 = vmatpush3.bf16.msra.mxu1 %v15203_v43  ;;  %v15215_v43 = vld [vmem:[%s20519_s25 + $0xa0] sm:$0xff]  }
 0x185   : > { %v12958_v23 = vpop.f32.mrb[52].mxu1  ;;  %v12848_v8 = vadd.f32 %v12847_v51, %v12846_v9  ;;  %v12849_v0 = vpop.f32.mrb[54].mxu0  ;;  %v15207_v51 = vld [vmem:[%s20519_s25 + $0x88] sm:$0xff]  }
 0x186   : > { %v12959_v28 = vpop.f32.mrb[53].mxu1  ;;  %v12850_v56 = vpop.f32.mrb[55].mxu0  ;;  %13339 = vmatpush3.bf16.msra.mxu0 %v15207_v51 }
 0x187   : > { %v12960_v49 = vadd.f32 %v12959_v28, %v12958_v23  ;;  %v12961_v29 = vpop.f32.mrb[54].mxu1  ;;  %v1903_v46 = vadd.f32 %v16740_v41, %v12848_v8  ;;  %v12851_v35 = vadd.f32 %v12850_v56, %v12849_v0  ;;  %v15208_v56 = vld [vmem:[%s20519_s25 + $0xd0] sm:$0xff]  }
 0x188   : > { %v12962_v58 = vpop.f32.mrb[55].mxu1  ;;  %13340 = vmatprep.subr.bf16.mxu0 %v15208_v56 }
 0x189   : > { %v12963_v32 = vadd.f32 %v12962_v58, %v12961_v29  ;;  %v1906_v57 = vadd.f32 %v16740_v41, %v12851_v35  ;;  %v16749_v14 = vadd.f32 %v12960_v49, %v1903_v46  ;;  %v15209_v46 = vld [vmem:[%s20519_s25 + $0x90] sm:$0xff]  }
 0x18a   : > { %13341 = vmatpush3.bf16.msra.mxu0 %v15209_v46  ;;  %v15212_v46 = vld [vmem:[%s20519_s25 + $0x78] sm:$0xff]  }
 0x18b   : > { %v16751_v3 = vadd.f32 %v12963_v32, %v1906_v57  ;;  %v12852_v11 = vpop.f32.mrb[56].mxu0  ;;  %13238 = vmatprep.subr.bf16.mxu1 %v15212_v46 }
 0x18c   : > { %v12853_v27 = vpop.f32.mrb[57].mxu0 }
 0x18d   : > { %v12964_v36 = vpop.f32.mrb[56].mxu1  ;;  %v12854_v22 = vadd.f32 %v12853_v27, %v12852_v11  ;;  %v12855_v54 = vpop.f32.mrb[58].mxu0 }
 0x18e   : > { %v12965_v12 = vpop.f32.mrb[57].mxu1  ;;  %v12856_v4 = vpop.f32.mrb[59].mxu0 }
 0x18f   : > { %v12966_v55 = vadd.f32 %v12965_v12, %v12964_v36  ;;  %v12967_v42 = vpop.f32.mrb[58].mxu1  ;;  %v1911_v52 = vadd.f32 %v16740_v41, %v12854_v22  ;;  %v12857_v15 = vadd.f32 %v12856_v4, %v12855_v54  ;;  %v15210_v22 = vld [vmem:[%s20519_s25 + $0xd8] sm:$0xff]  }
 0x190   : > { %v12968_v62 = vpop.f32.mrb[59].mxu1  ;;  %v15211_v12 = vld [vmem:[%s20519_s25 + $0x98] sm:$0xff]   ;;  %13342 = vmatprep.subr.bf16.mxu0 %v15210_v22 }
 0x191   : > { %v12969_v9 = vadd.f32 %v12968_v62, %v12967_v42  ;;  %v1914_v23 = vadd.f32 %v16740_v41, %v12857_v15  ;;  %v16773_v8 = vadd.f32 %v12966_v55, %v1911_v52  ;;  %13343 = vmatpush3.bf16.msra.mxu0 %v15211_v12  ;;  %v15214_v15 = vld [vmem:[%s20519_s25 + $0xe0] sm:$0xff]   ;;  %v15213_v22 = vld [vmem:[%s20519_s25 + $0x38] sm:$0xff]  }
 0x192   : > { %13344 = vmatprep.subr.bf16.mxu0 %v15214_v15  ;;  %13239 = vmatpush3.bf16.msra.mxu1 %v15213_v22 }
 0x193   : > { %v16775_v0 = vadd.f32 %v12969_v9, %v1914_v23  ;;  %v12858_v28 = vpop.f32.mrb[60].mxu0 }
 0x194   : > { %v12859_v49 = vpop.f32.mrb[61].mxu0 }
 0x195   : > { %v12970_v29 = vpop.f32.mrb[60].mxu1  ;;  %v12860_v35 = vadd.f32 %v12859_v49, %v12858_v28  ;;  %v12861_v58 = vpop.f32.mrb[62].mxu0  ;;  %13345 = vmatpush3.bf16.msra.mxu0 %v15215_v43  ;;  %3713 = vmatmul.mubr.bf16.vlgmr.msra.gmra.mrb[128].mxu1 %v20521_v17 }
 0x196   : > { %v12971_v32 = vpop.f32.mrb[61].mxu1  ;;  %v12862_v57 = vpop.f32.mrb[63].mxu0 }
 0x197   : > { %v12972_v11 = vadd.f32 %v12971_v32, %v12970_v29  ;;  %v12973_v18 = vpop.f32.mrb[62].mxu1  ;;  %v1919_v27 = vadd.f32 %v16740_v41, %v12860_v35  ;;  %v12863_v36 = vadd.f32 %v12862_v57, %v12861_v58  ;;  %v15216_v35 = vld [vmem:[%s20519_s25 + $0xe8] sm:$0xff]  }
 0x198   : > { %v12974_v30 = vpop.f32.mrb[63].mxu1  ;;  %v15217_v32 = vld [vmem:[%s20519_s25 + $0xa8] sm:$0xff]   ;;  %13346 = vmatprep.subr.bf16.mxu0 %v15216_v35 }
 0x199   : > { %v12975_v54 = vadd.f32 %v12974_v30, %v12973_v18  ;;  %v1922_v4 = vadd.f32 %v16740_v41, %v12863_v36  ;;  %v16791_v55 = vadd.f32 %v12972_v11, %v1919_v27  ;;  %13347 = vmatpush3.bf16.msra.mxu0 %v15217_v32  ;;  %v15218_v27 = vld [vmem:[%s20519_s25 + $0xf0] sm:$0xff]  }
 0x19a   : > { %13348 = vmatprep.subr.bf16.mxu0 %v15218_v27 }
 0x19b   : > { %v16793_v42 = vadd.f32 %v12975_v54, %v1922_v4  ;;  %v12992_v52 = vpop.f32.mrb[64].mxu0 }
 0x19c   : > { %v12993_v62 = vpop.f32.mrb[65].mxu0 }
 0x19d   : > { %v13104_v40 = vpop.f32.mrb[64].mxu1  ;;  %v12994_v60 = vadd.f32 %v12993_v62, %v12992_v52  ;;  %v12995_v9 = vpop.f32.mrb[66].mxu0 }
 0x19e   : > { %v13105_v41 = vpop.f32.mrb[65].mxu1  ;;  %v12996_v51 = vpop.f32.mrb[67].mxu0 }
 0x19f   : > { %v13106_v23 = vadd.f32 %v13105_v41, %v13104_v40  ;;  %v13107_v28 = vpop.f32.mrb[66].mxu1  ;;  %v2121_v56 = vadd.f32 %v12994_v60, %v16590_v61  ;;  %v12997_v49 = vadd.f32 %v12996_v51, %v12995_v9  ;;  %v15220_v9 = vld [vmem:[%s20519_s25 + $0xf8] sm:$0xff]  }
 0x1a0   : > { %v13108_v29 = vpop.f32.mrb[67].mxu1  ;;  %v15221_v51 = vld [vmem:[%s20519_s25 + $0xb8] sm:$0xff]  }
 0x1a1   : > { %v13109_v58 = vadd.f32 %v13108_v29, %v13107_v28  ;;  %v2124_v57 = vadd.f32 %v12997_v49, %v16595_v7  ;;  %v16812_v11 = vadd.f32 %v13106_v23, %v2121_v56  ;;  %v15219_v7 = vld [vmem:[%s20519_s25 + $0xb0] sm:$0xff]  }
 0x1a2   : > { %13349 = vmatpush3.bf16.msra.mxu0 %v15219_v7 }
 0x1a3   : > { %v12998_v61 = vpop.f32.mrb[68].mxu0  ;;  %v16814_v18 = vadd.f32 %v13109_v58, %v2124_v57  ;;  %13350 = vmatprep.subr.bf16.mxu0 %v15220_v9 }
 0x1a4   : > { %v12999_v36 = vpop.f32.mrb[69].mxu0 }
 0x1a5   : > { %v13110_v30 = vpop.f32.mrb[68].mxu1  ;;  %v13000_v54 = vadd.f32 %v12999_v36, %v12998_v61  ;;  %v13001_v12 = vpop.f32.mrb[70].mxu0 }
 0x1a6   : > { %v13111_v4 = vpop.f32.mrb[69].mxu1  ;;  %v13002_v52 = vpop.f32.mrb[71].mxu0  ;;  %13351 = vmatpush3.bf16.msra.mxu0 %v15221_v51 }
 0x1a7   : > { %v13112_v15 = vadd.f32 %v13111_v4, %v13110_v30  ;;  %v13113_v62 = vpop.f32.mrb[70].mxu1  ;;  %v2129_v40 = vadd.f32 %v13000_v54, %v16602_v50  ;;  %v13003_v43 = vadd.f32 %v13002_v52, %v13001_v12  ;;  %v15222_v54 = vld [vmem:[%s20519_s25 + $0x140] sm:$0xff]  }
 0x1a8   : > { %v13114_v60 = vpop.f32.mrb[71].mxu1  ;;  %13448 = vmatprep.subr.bf16.mxu1 %v15222_v54 }
 0x1a9   : > { %v13115_v41 = vadd.f32 %v13114_v60, %v13113_v62  ;;  %v2132_v23 = vadd.f32 %v13003_v43, %v16607_v34  ;;  %v16833_v28 = vadd.f32 %v13112_v15, %v2129_v40 }
 0x1ab   : > { %v13004_v50 = vpop.f32.mrb[72].mxu0  ;;  %v16836_v56 = vadd.f32 %v13115_v41, %v2132_v23 }
 0x1ac   : > { %v13005_v49 = vpop.f32.mrb[73].mxu0 }
 0x1ad   : > { %v13116_v29 = vpop.f32.mrb[72].mxu1  ;;  %v13006_v46 = vadd.f32 %v13005_v49, %v13004_v50  ;;  %v13007_v35 = vpop.f32.mrb[74].mxu0  ;;  %v15223_v50 = vld [vmem:[%s20519_s25 + $0x100] sm:$0xff]  }
 0x1ae   : > { %v13117_v58 = vpop.f32.mrb[73].mxu1  ;;  %v13008_v32 = vpop.f32.mrb[75].mxu0  ;;  %13449 = vmatpush3.bf16.msra.mxu1 %v15223_v50 }
 0x1af   : > { %v13118_v57 = vadd.f32 %v13117_v58, %v13116_v29  ;;  %v13119_v61 = vpop.f32.mrb[74].mxu1  ;;  %v2137_v27 = vadd.f32 %v13006_v46, %v16621_v26  ;;  %v13009_v34 = vadd.f32 %v13008_v32, %v13007_v35 }
 0x1b0   : > { %v13120_v36 = vpop.f32.mrb[75].mxu1 }
 0x1b1   : > { %v13121_v30 = vadd.f32 %v13120_v36, %v13119_v61  ;;  %v2140_v22 = vadd.f32 %v13009_v34, %v16625_v21  ;;  %v16840_v7 = vadd.f32 %v13118_v57, %v2137_v27 }
 0x1b3   : > { %v13010_v12 = vpop.f32.mrb[76].mxu0  ;;  %v16845_v4 = vadd.f32 %v13121_v30, %v2140_v22 }
 0x1b4   : > { %v13011_v52 = vpop.f32.mrb[77].mxu0 }
 0x1b5   : > { %v13122_v15 = vpop.f32.mrb[76].mxu1  ;;  %v13012_v62 = vadd.f32 %v13011_v52, %v13010_v12  ;;  %v13013_v40 = vpop.f32.mrb[78].mxu0 }
 0x1b6   : > { %v13123_v26 = vpop.f32.mrb[77].mxu1  ;;  %v13014_v43 = vpop.f32.mrb[79].mxu0 }
 0x1b7   : > { %v13124_v60 = vadd.f32 %v13123_v26, %v13122_v15  ;;  %v13125_v9 = vpop.f32.mrb[78].mxu1  ;;  %v2145_v21 = vadd.f32 %v13012_v62, %v16633_v63  ;;  %v13015_v41 = vadd.f32 %v13014_v43, %v13013_v40  ;;  %v15224_v15 = vld [vmem:[%s20519_s25 + $0x148] sm:$0xff]  }
 0x1b8   : > { %v13126_v51 = vpop.f32.mrb[79].mxu1  ;;  %13450 = vmatprep.subr.bf16.mxu1 %v15224_v15 }
 0x1b9   : > { %v13127_v23 = vadd.f32 %v13126_v51, %v13125_v9  ;;  %v2148_v49 = vadd.f32 %v13015_v41, %v16638_v13  ;;  %v16852_v29 = vadd.f32 %v13124_v60, %v2145_v21 }
 0x1bb   : > { %v13016_v46 = vpop.f32.mrb[80].mxu0  ;;  %v16854_v35 = vadd.f32 %v13127_v23, %v2148_v49 }
 0x1bc   : > { %v13017_v58 = vpop.f32.mrb[81].mxu0 }
 0x1bd   : > { %v13128_v32 = vpop.f32.mrb[80].mxu1  ;;  %v13018_v57 = vadd.f32 %v13017_v58, %v13016_v46  ;;  %v13019_v61 = vpop.f32.mrb[82].mxu0  ;;  %v15225_v46 = vld [vmem:[%s20519_s25 + $0x108] sm:$0xff]  }
 0x1be   : > { %v13129_v63 = vpop.f32.mrb[81].mxu1  ;;  %v13020_v27 = vpop.f32.mrb[83].mxu0  ;;  %13451 = vmatpush3.bf16.msra.mxu1 %v15225_v46 }
 0x1bf   : > { %v13130_v34 = vadd.f32 %v13129_v63, %v13128_v32  ;;  %v13131_v36 = vpop.f32.mrb[82].mxu1  ;;  %v2153_v30 = vadd.f32 %v13018_v57, %v16648_v44  ;;  %v13021_v22 = vadd.f32 %v13020_v27, %v13019_v61 }
 0x1c0   : > { %v13132_v54 = vpop.f32.mrb[83].mxu1 }
 0x1c1   : > { %v13133_v12 = vadd.f32 %v13132_v54, %v13131_v36  ;;  %v2156_v13 = vadd.f32 %v13021_v22, %v16653_v38  ;;  %v16858_v52 = vadd.f32 %v13130_v34, %v2153_v30 }
 0x1c3   : > { %v13022_v62 = vpop.f32.mrb[84].mxu0  ;;  %v16863_v40 = vadd.f32 %v13133_v12, %v2156_v13 }
 0x1c4   : > { %v13023_v26 = vpop.f32.mrb[85].mxu0 }
 0x1c5   : > { %v13134_v43 = vpop.f32.mrb[84].mxu1  ;;  %v13024_v60 = vadd.f32 %v13023_v26, %v13022_v62  ;;  %v13025_v9 = vpop.f32.mrb[86].mxu0 }
 0x1c6   : > { %v13135_v44 = vpop.f32.mrb[85].mxu1  ;;  %v13026_v21 = vpop.f32.mrb[87].mxu0 }
 0x1c7   : > { %v13136_v41 = vadd.f32 %v13135_v44, %v13134_v43  ;;  %v13137_v51 = vpop.f32.mrb[86].mxu1  ;;  %v2161_v38 = vadd.f32 %v13024_v60, %v16658_v6  ;;  %v13027_v23 = vadd.f32 %v13026_v21, %v13025_v9  ;;  %v15226_v43 = vld [vmem:[%s20519_s25 + $0x150] sm:$0xff]  }
 0x1c8   : > { %v13138_v50 = vpop.f32.mrb[87].mxu1  ;;  %13452 = vmatprep.subr.bf16.mxu1 %v15226_v43 }
 0x1c9   : > { %v13139_v49 = vadd.f32 %v13138_v50, %v13137_v51  ;;  %v2164_v58 = vadd.f32 %v13027_v23, %v16661_v20  ;;  %v16870_v32 = vadd.f32 %v13136_v41, %v2161_v38 }
 0x1cb   : > { %v13028_v57 = vpop.f32.mrb[88].mxu0  ;;  %v16872_v61 = vadd.f32 %v13139_v49, %v2164_v58 }
 0x1cc   : > { %v13029_v63 = vpop.f32.mrb[89].mxu0 }
 0x1cd   : > { %v13140_v27 = vpop.f32.mrb[88].mxu1  ;;  %v13030_v34 = vadd.f32 %v13029_v63, %v13028_v57  ;;  %v13031_v36 = vpop.f32.mrb[90].mxu0  ;;  %v15227_v57 = vld [vmem:[%s20519_s25 + $0x110] sm:$0xff]  }
 0x1ce   : > { %v13141_v6 = vpop.f32.mrb[89].mxu1  ;;  %v13032_v30 = vpop.f32.mrb[91].mxu0  ;;  %13453 = vmatpush3.bf16.msra.mxu1 %v15227_v57 }
 0x1cf   : > { %v13142_v22 = vadd.f32 %v13141_v6, %v13140_v27  ;;  %v13143_v54 = vpop.f32.mrb[90].mxu1  ;;  %v2169_v12 = vadd.f32 %v13030_v34, %v16672_v25  ;;  %v13033_v13 = vadd.f32 %v13032_v30, %v13031_v36 }
 0x1d0   : > { %v13144_v15 = vpop.f32.mrb[91].mxu1 }
 0x1d1   : > { %v13145_v62 = vadd.f32 %v13144_v15, %v13143_v54  ;;  %v2172_v20 = vadd.f32 %v13033_v13, %v16675_v31  ;;  %v16876_v26 = vadd.f32 %v13142_v22, %v2169_v12 }
 0x1d3   : > { %v13034_v60 = vpop.f32.mrb[92].mxu0  ;;  %v16881_v9 = vadd.f32 %v13145_v62, %v2172_v20 }
 0x1d4   : > { %v13035_v44 = vpop.f32.mrb[93].mxu0 }
 0x1d5   : > { %v13146_v21 = vpop.f32.mrb[92].mxu1  ;;  %v13036_v41 = vadd.f32 %v13035_v44, %v13034_v60  ;;  %v13037_v51 = vpop.f32.mrb[94].mxu0 }
 0x1d6   : > { %v13147_v25 = vpop.f32.mrb[93].mxu1  ;;  %v13038_v38 = vpop.f32.mrb[95].mxu0 }
 0x1d7   : > { %v13148_v23 = vadd.f32 %v13147_v25, %v13146_v21  ;;  %v13149_v50 = vpop.f32.mrb[94].mxu1  ;;  %v2177_v31 = vadd.f32 %v13036_v41, %v16680_v45  ;;  %v13039_v49 = vadd.f32 %v13038_v38, %v13037_v51  ;;  %v15228_v21 = vld [vmem:[%s20519_s25 + $0x158] sm:$0xff]  }
 0x1d8   : > { %v13150_v46 = vpop.f32.mrb[95].mxu1  ;;  %v15229_v41 = vld [vmem:[%s20519_s25 + $0x118] sm:$0xff]   ;;  %13454 = vmatprep.subr.bf16.mxu1 %v15228_v21 }
 0x1d9   : > { %v13151_v58 = vadd.f32 %v13150_v46, %v13149_v50  ;;  %v2180_v63 = vadd.f32 %v13039_v49, %v16683_v48  ;;  %v16888_v27 = vadd.f32 %v13148_v23, %v2177_v31  ;;  %13455 = vmatpush3.bf16.msra.mxu1 %v15229_v41 }
 0x1db   : > { %v13040_v34 = vpop.f32.mrb[96].mxu0  ;;  %v16890_v36 = vadd.f32 %v13151_v58, %v2180_v63 }
 0x1dc   : > { %v13041_v6 = vpop.f32.mrb[97].mxu0 }
 0x1dd   : > { %v13152_v30 = vpop.f32.mrb[96].mxu1  ;;  %v13042_v22 = vadd.f32 %v13041_v6, %v13040_v34  ;;  %v13043_v54 = vpop.f32.mrb[98].mxu0 }
 0x1de   : > { %v13153_v45 = vpop.f32.mrb[97].mxu1  ;;  %v13044_v12 = vpop.f32.mrb[99].mxu0 }
 0x1df   : > { %v13154_v13 = vadd.f32 %v13153_v45, %v13152_v30  ;;  %v13155_v15 = vpop.f32.mrb[98].mxu1  ;;  %v2185_v62 = vadd.f32 %v13042_v22, %v16694_v53  ;;  %v13045_v20 = vadd.f32 %v13044_v12, %v13043_v54 }
 0x1e0   : > { %v13156_v43 = vpop.f32.mrb[99].mxu1 }
 0x1e1   : > { %v13157_v60 = vadd.f32 %v13156_v43, %v13155_v15  ;;  %v2188_v48 = vadd.f32 %v13045_v20, %v16697_v37  ;;  %v16894_v44 = vadd.f32 %v13154_v13, %v2185_v62  ;;  %v15230_v20 = vld [vmem:[%s20519_s25 + $0x160] sm:$0xff]  }
 0x1e2   : > { %13456 = vmatprep.subr.bf16.mxu1 %v15230_v20 }
 0x1e3   : > { %v13046_v51 = vpop.f32.mrb[100].mxu0  ;;  %v16902_v25 = vadd.f32 %v13157_v60, %v2188_v48 }
 0x1e4   : > { %v13047_v53 = vpop.f32.mrb[101].mxu0 }
 0x1e5   : > { %v13158_v38 = vpop.f32.mrb[100].mxu1  ;;  %v13048_v23 = vadd.f32 %v13047_v53, %v13046_v51  ;;  %v13049_v50 = vpop.f32.mrb[102].mxu0 }
 0x1e6   : > { %v13159_v37 = vpop.f32.mrb[101].mxu1  ;;  %v13050_v31 = vpop.f32.mrb[103].mxu0 }
 0x1e7   : > { %v13160_v49 = vadd.f32 %v13159_v37, %v13158_v38  ;;  %v13161_v46 = vpop.f32.mrb[102].mxu1  ;;  %v2193_v58 = vadd.f32 %v13048_v23, %v16702_v39  ;;  %v13051_v57 = vadd.f32 %v13050_v31, %v13049_v50 }
 0x1e8   : > { %v13162_v63 = vpop.f32.mrb[103].mxu1 }
 0x1e9   : > { %v13163_v34 = vadd.f32 %v13162_v63, %v13161_v46  ;;  %v2196_v6 = vadd.f32 %v13051_v57, %v16705_v24  ;;  %v16906_v30 = vadd.f32 %v13160_v49, %v2193_v58  ;;  %v15231_v24 = vld [vmem:[%s20519_s25 + $0x120] sm:$0xff]  }
 0x1ea   : > { %13457 = vmatpush3.bf16.msra.mxu1 %v15231_v24  ;;  %v15232_v24 = vld [vmem:[%s20519_s25 + $0x168] sm:$0xff]  }
 0x1eb   : > { %v13052_v22 = vpop.f32.mrb[104].mxu0  ;;  %v16908_v54 = vadd.f32 %v13163_v34, %v2196_v6  ;;  %13458 = vmatprep.subr.bf16.mxu1 %v15232_v24 }
 0x1ec   : > { %v13053_v45 = vpop.f32.mrb[105].mxu0 }
 0x1ed   : > { %v13164_v12 = vpop.f32.mrb[104].mxu1  ;;  %v13054_v13 = vadd.f32 %v13053_v45, %v13052_v22  ;;  %v13055_v15 = vpop.f32.mrb[106].mxu0 }
 0x1ee   : > { %v13165_v62 = vpop.f32.mrb[105].mxu1  ;;  %v13056_v39 = vpop.f32.mrb[107].mxu0 }
 0x1ef   : > { %v13166_v43 = vadd.f32 %v13165_v62, %v13164_v12  ;;  %v13167_v60 = vpop.f32.mrb[106].mxu1  ;;  %v2201_v48 = vadd.f32 %v13054_v13, %v16716_v16  ;;  %v13057_v21 = vadd.f32 %v13056_v39, %v13055_v15 }
 0x1f0   : > { %v13168_v41 = vpop.f32.mrb[107].mxu1 }
 0x1f1   : > { %v13169_v51 = vadd.f32 %v13168_v41, %v13167_v60  ;;  %v2204_v53 = vadd.f32 %v13057_v21, %v16719_v59  ;;  %v16918_v38 = vadd.f32 %v13166_v43, %v2201_v48 }
 0x1f3   : > { %v13058_v23 = vpop.f32.mrb[108].mxu0  ;;  %v16920_v50 = vadd.f32 %v13169_v51, %v2204_v53 }
 0x1f4   : > { %v13059_v37 = vpop.f32.mrb[109].mxu0 }
 0x1f5   : > { %v13170_v31 = vpop.f32.mrb[108].mxu1  ;;  %v13060_v49 = vadd.f32 %v13059_v37, %v13058_v23  ;;  %v13061_v46 = vpop.f32.mrb[110].mxu0 }
 0x1f6   : > { %v13171_v58 = vpop.f32.mrb[109].mxu1  ;;  %v13062_v57 = vpop.f32.mrb[111].mxu0 }
 0x1f7   : > { %v13172_v63 = vadd.f32 %v13171_v58, %v13170_v31  ;;  %v13173_v16 = vpop.f32.mrb[110].mxu1  ;;  %v2209_v34 = vadd.f32 %v13060_v49, %v16724_v5  ;;  %v13063_v6 = vadd.f32 %v13062_v57, %v13061_v46 }
 0x1f8   : > { %v13174_v22 = vpop.f32.mrb[111].mxu1 }
 0x1f9   : > { %v13175_v45 = vadd.f32 %v13174_v22, %v13173_v16  ;;  %v2212_v59 = vadd.f32 %v13063_v6, %v16727_v2  ;;  %v16924_v12 = vadd.f32 %v13172_v63, %v2209_v34  ;;  %v15233_v2 = vld [vmem:[%s20519_s25 + $0x128] sm:$0xff]  }
 0x1fa   : > { %13459 = vmatpush3.bf16.msra.mxu1 %v15233_v2  ;;  %v15234_v2 = vld [vmem:[%s20519_s25 + $0x170] sm:$0xff]  }
 0x1fb   : > { %v13064_v13 = vpop.f32.mrb[112].mxu0  ;;  %v16926_v15 = vadd.f32 %v13175_v45, %v2212_v59  ;;  %13460 = vmatprep.subr.bf16.mxu1 %v15234_v2 }
 0x1fc   : > { %v13065_v62 = vpop.f32.mrb[113].mxu0 }
 0x1fd   : > { %v13176_v20 = vpop.f32.mrb[112].mxu1  ;;  %v13066_v39 = vadd.f32 %v13065_v62, %v13064_v13  ;;  %v13067_v43 = vpop.f32.mrb[114].mxu0 }
 0x1fe   : > { %v13177_v60 = vpop.f32.mrb[113].mxu1  ;;  %v13068_v5 = vpop.f32.mrb[115].mxu0 }
 0x1ff   : > { %v13178_v48 = vadd.f32 %v13177_v60, %v13176_v20  ;;  %v13179_v21 = vpop.f32.mrb[114].mxu1  ;;  %v2217_v41 = vadd.f32 %v13066_v39, %v16743_v10  ;;  %v13069_v51 = vadd.f32 %v13068_v5, %v13067_v43 }
 0x200   : > { %v13180_v53 = vpop.f32.mrb[115].mxu1 }
 0x201   : > { %v13181_v23 = vadd.f32 %v13180_v53, %v13179_v21  ;;  %v2220_v37 = vadd.f32 %v13069_v51, %v16745_v47  ;;  %v16936_v31 = vadd.f32 %v13178_v48, %v2217_v41  ;;  %v15236_v53 = vld [vmem:[%s20519_s25 + $0x1c0] sm:$0xff]  }
 0x202   : > { %13560 = vmatprep.subr.bf16.mxu0 %v15236_v53 }
 0x203   : > { %v13070_v49 = vpop.f32.mrb[116].mxu0  ;;  %v16938_v46 = vadd.f32 %v13181_v23, %v2220_v37 }
 0x204   : > { %v13071_v58 = vpop.f32.mrb[117].mxu0 }
 0x205   : > { %v13182_v57 = vpop.f32.mrb[116].mxu1  ;;  %v13072_v63 = vadd.f32 %v13071_v58, %v13070_v49  ;;  %v13073_v16 = vpop.f32.mrb[118].mxu0 }
 0x206   : > { %v13183_v34 = vpop.f32.mrb[117].mxu1  ;;  %v13074_v6 = vpop.f32.mrb[119].mxu0 }
 0x207   : > { %v13184_v22 = vadd.f32 %v13183_v34, %v13182_v57  ;;  %v13185_v10 = vpop.f32.mrb[118].mxu1  ;;  %v2225_v45 = vadd.f32 %v13072_v63, %v16749_v14  ;;  %v13075_v59 = vadd.f32 %v13074_v6, %v13073_v16 }
 0x208   : > { %v13186_v13 = vpop.f32.mrb[119].mxu1 }
 0x209   : > { %v13187_v62 = vadd.f32 %v13186_v13, %v13185_v10  ;;  %v2228_v47 = vadd.f32 %v13075_v59, %v16751_v3  ;;  %v16942_v20 = vadd.f32 %v13184_v22, %v2225_v45  ;;  %v15235_v3 = vld [vmem:[%s20519_s25 + $0x130] sm:$0xff]  }
 0x20a   : > { %13461 = vmatpush3.bf16.msra.mxu1 %v15235_v3 }
 0x20b   : > { %v13076_v39 = vpop.f32.mrb[120].mxu0  ;;  %v16944_v43 = vadd.f32 %v13187_v62, %v2228_v47 }
 0x20c   : > { %v13077_v60 = vpop.f32.mrb[121].mxu0 }
 0x20d   : > { %v13188_v24 = vpop.f32.mrb[120].mxu1  ;;  %v13078_v5 = vadd.f32 %v13077_v60, %v13076_v39  ;;  %v13079_v48 = vpop.f32.mrb[122].mxu0 }
 0x20e   : > { %v13189_v21 = vpop.f32.mrb[121].mxu1  ;;  %v13080_v14 = vpop.f32.mrb[123].mxu0 }
 0x20f   : > { %v13190_v41 = vadd.f32 %v13189_v21, %v13188_v24  ;;  %v13191_v51 = vpop.f32.mrb[122].mxu1  ;;  %v2233_v23 = vadd.f32 %v13078_v5, %v16773_v8  ;;  %v13081_v37 = vadd.f32 %v13080_v14, %v13079_v48 }
 0x210   : > { %v13192_v49 = vpop.f32.mrb[123].mxu1 }
 0x211   : > { %v13193_v58 = vadd.f32 %v13192_v49, %v13191_v51  ;;  %v2236_v57 = vadd.f32 %v13081_v37, %v16775_v0  ;;  %v16957_v63 = vadd.f32 %v13190_v41, %v2233_v23 }
 0x213   : > { %v13082_v16 = vpop.f32.mrb[124].mxu0  ;;  %v16959_v34 = vadd.f32 %v13193_v58, %v2236_v57 }
 0x214   : > { %v13083_v6 = vpop.f32.mrb[125].mxu0 }
 0x215   : > { %v13194_v22 = vpop.f32.mrb[124].mxu1  ;;  %v13084_v10 = vadd.f32 %v13083_v6, %v13082_v16  ;;  %v13085_v45 = vpop.f32.mrb[126].mxu0 }
 0x216   : > { %v13195_v59 = vpop.f32.mrb[125].mxu1  ;;  %v13086_v13 = vpop.f32.mrb[127].mxu0 }
 0x217   : > { %v13196_v8 = vadd.f32 %v13195_v59, %v13194_v22  ;;  %v13197_v62 = vpop.f32.mrb[126].mxu1  ;;  %v2241_v47 = vadd.f32 %v13084_v10, %v16791_v55  ;;  %v13087_v39 = vadd.f32 %v13086_v13, %v13085_v45  ;;  %v15244_v55 = vld [vmem:[%s20519_s25 + $0x178] sm:$0xff]  }
 0x218   : > { %v13198_v60 = vpop.f32.mrb[127].mxu1  ;;  %13462 = vmatprep.subr.bf16.mxu1 %v15244_v55 }
 0x219   : > { %v13199_v24 = vadd.f32 %v13198_v60, %v13197_v62  ;;  %v2244_v0 = vadd.f32 %v13087_v39, %v16793_v42  ;;  %v16963_v5 = vadd.f32 %v13196_v8, %v2241_v47  ;;  %v15245_v42 = vld [vmem:[%s20519_s25 + $0x138] sm:$0xff]  }
 0x21a   : > { %13463 = vmatpush3.bf16.msra.mxu1 %v15245_v42 }
 0x21b   : > { %v14817_v48 = vpop.f32.mrb[128].mxu0  ;;  %v16965_v21 = vadd.f32 %v13199_v24, %v2244_v0 }
 0x21c   : > { %v2451_v2 = vadd.f32 %v14817_v48, %v16833_v28  ;;  %v2442_v14 = vpop.f32.mrb[129].mxu0 }
 0x21d   : > { %v2443_v41 = vadd.f32 %v2442_v14, %v16812_v11  ;;  %v14818_v51 = vpop.f32.mrb[130].mxu0 }
 0x21e   : > { %v2454_v3 = vadd.f32 %v14818_v51, %v16836_v56  ;;  %v2445_v53 = vpop.f32.mrb[131].mxu0  ;;  %v2571_v37 = vmax.f32 %v2451_v2, 0.0 }
 0x21f   : > { %v2446_v23 = vadd.f32 %v2445_v53, %v16814_v18  ;;  %v2569_v49 = vmax.f32 %v2443_v41, 0.0 }
 0x220   : > { %v2572_v28 = vmax.f32 %v2454_v3, 0.0 }
 0x221   : > { %v2570_v11 = vmax.f32 %v2446_v23, 0.0  ;;  %v15238_v23 = vld [vmem:[%s20519_s25 + $0x1c8] sm:$0xff]  }
 0x222   : > { %v2602_v58 = vpack.c.bf16 %v2572_v28, %v2571_v37 }
 0x223   : > { %v2601_v57 = vpack.c.bf16 %v2570_v11, %v2569_v49  ;;  %v14821_v16 = vpop.f32.mrb[132].mxu0 }
 0x224   : > { %v2770_v6 = vshrl.u32 %v2602_v58, 16  ;;  %v2467_v22 = vadd.f32 %v14821_v16, %v16852_v29  ;;  %v2458_v56 = vpop.f32.mrb[133].mxu0  ;;  %v2773_v8 = vshll.u32 %v2602_v58, 16 }
 0x225   : > { %v2763_v10 = vshrl.u32 %v2601_v57, 16  ;;  %v2459_v45 = vadd.f32 %v2458_v56, %v16840_v7  ;;  %v14822_v59 = vpop.f32.mrb[134].mxu0  ;;  %v2766_v39 = vshll.u32 %v2601_v57, 16 }
 0x226   : > { %v2772_v13 = vrot.slane %v2770_v6, 7  ;;  %v2470_v18 = vadd.f32 %v14822_v59, %v16854_v35  ;;  %v2461_v62 = vpop.f32.mrb[135].mxu0  ;;  %v2575_v0 = vmax.f32 %v2467_v22, 0.0 }
 0x227   : > { %v2765_v47 = vrot.slane %v2763_v10, 7  ;;  %v2462_v60 = vadd.f32 %v2461_v62, %v16845_v4  ;;  %v2573_v2 = vmax.f32 %v2459_v45, 0.0  ;;  %v15237_v4 = vld [vmem:[%s20519_s25 + $0x180] sm:$0xff]  }
 0x228   : > { %v2775_v24 = vor.u32 %v2773_v8, %v2772_v13  ;;  %v2576_v48 = vmax.f32 %v2470_v18, 0.0  ;;  %v16983_v29 = vsel %vm15960_vm2, %v2772_v13, 0  ;;  %v17011_v10 = vld [vmem:[%s20519_s25 + $0x200] sm:$0xff]   ;;  %v15239_v8 = vld [vmem:[%s20519_s25 + $0x188] sm:$0xff]  }
 0x229   : > { %v2574_v14 = vmax.f32 %v2462_v60, 0.0  ;;  %v2768_v7 = vor.u32 %v2766_v39, %v2765_v47  ;;  %v2922_v41 = vsel %vm15960_vm2, %v2765_v47, 0  ;;  %v2958_v42 = vshll.u32 %v16983_v29, 16  ;;  %v15240_v60 = vld [vmem:[%s20519_s25 + $0x1d0] sm:$0xff]   ;;  %14847 = vmatprep.subr.bf16.mxu1 %v17011_v10 }
 0x22a   : > { %v16987_v51 = vpack.c.bf16 %v2576_v48, %v2575_v0  ;;  %v16991_v35 = vsel %vm15960_vm2, 0, %v2775_v24  ;;  %v2946_v11 = vshll.u32 %v2922_v41, 16 }
 0x22b   : > { %v2603_v55 = vpack.c.bf16 %v2574_v14, %v2573_v2  ;;  %v14825_v3 = vpop.f32.mrb[136].mxu0  ;;  %v2906_v53 = vsel %vm15960_vm2, 0, %v2768_v7  ;;  %v2953_v58 = vshll.u32 %v16991_v35, 16  ;;  %v2951_v56 = vshrl.u32 %v16991_v35, 16 }
 0x22c   : > { %v2784_v37 = vshrl.u32 %v16987_v51, 16  ;;  %v2483_v28 = vadd.f32 %v14825_v3, %v16870_v32  ;;  %v2474_v49 = vpop.f32.mrb[137].mxu0  ;;  %3873 = vmatprep.mubr.bf16.mxu0 %v2906_v53  ;;  %v2941_v22 = vshll.u32 %v2906_v53, 16  ;;  %v2948_v0 = vrot.slane %v2946_v11, 1 }
 0x22d   : > { %v2777_v57 = vshrl.u32 %v2603_v55, 16  ;;  %v2475_v16 = vadd.f32 %v2474_v49, %v16858_v52  ;;  %v14826_v6 = vpop.f32.mrb[138].mxu0  ;;  %3874 = vmatmul.mubr.bf16.vlgmr.msra.gmra.mrb[160].mxu0 %v20522_v1  ;;  %v2780_v45 = vshll.u32 %v2603_v55, 16  ;;  %v2939_v52 = vshrl.u32 %v2906_v53, 16 }
 0x22e   : > { %v17013_v32 = vrot.slane %v2784_v37, 7  ;;  %v2486_v59 = vadd.f32 %v14826_v6, %v16872_v61  ;;  %v2477_v13 = vpop.f32.mrb[139].mxu0  ;;  %3881 = vmatprep.mubr.bf16.mxu0 %v16991_v35  ;;  %13561 = vmatpush3.bf16.msra.mxu0 %v15237_v4  ;;  %v2579_v62 = vmax.f32 %v2483_v28, 0.0  ;;  %v2943_v39 = vrot.slane %v2941_v22, 1  ;;  %v15242_v6 = vld [vmem:[%s20519_s25 + $0x1d8] sm:$0xff]  }
 0x22f   : > { %v2779_v18 = vrot.slane %v2777_v57, 7  ;;  %v2478_v47 = vadd.f32 %v2477_v13, %v16863_v40  ;;  %13562 = vmatprep.subr.bf16.mxu0 %v15238_v23  ;;  %v2577_v61 = vmax.f32 %v2475_v16, 0.0  ;;  %v2955_v48 = vrot.slane %v2953_v58, 1 }
 0x230   : > { %v2580_v24 = vmax.f32 %v2486_v59, 0.0  ;;  %v2944_v7 = vor.u32 %v2943_v39, %v2939_v52  ;;  %v3163_v4 = vrot.slane %v2906_v53, 1  ;;  %v2787_v55 = vshll.u32 %v16987_v51, 16  ;;  %v15241_v51 = vld [vmem:[%s20519_s25 + $0x190] sm:$0xff]  }
 0x231   : > { %v2782_v2 = vor.u32 %v2780_v45, %v2779_v18  ;;  %v2578_v14 = vmax.f32 %v2478_v47, 0.0  ;;  %v2956_v40 = vor.u32 %v2955_v48, %v2951_v56  ;;  %v3164_v23 = vrot.slane %v2922_v41, 1 }
 0x232   : > { %v17026_v3 = vpack.c.bf16 %v2580_v24, %v2579_v62  ;;  %13563 = vmatpush3.bf16.msra.mxu0 %v15239_v8  ;;  %v17029_v49 = vsel %vm1001_vm5, %v2944_v7, %v2948_v0  ;;  %v2960_v57 = vrot.slane %v2958_v42, 1  ;;  %v17045_v42 = vsel %vm15960_vm2, %v2779_v18, 0  ;;  %v15243_v62 = vld [vmem:[%s20519_s25 + $0x198] sm:$0xff]  }
 0x233   : > { %v2605_v37 = vpack.c.bf16 %v2578_v14, %v2577_v61  ;;  %v14829_v28 = vpop.f32.mrb[140].mxu0  ;;  %v17033_v11 = vsel %vm15960_vm2, 0, %v2782_v2  ;;  %13564 = vmatprep.subr.bf16.mxu0 %v15240_v60  ;;  %3720 = vmatprep.mubr.bf16.mxu1 %v17029_v49  ;;  %v17041_v16 = vsel %vm1242_vm4, %v3163_v4, %v3164_v23  ;;  %v2789_v22 = vor.u32 %v2787_v55, %v17013_v32  ;;  %v15246_v61 = vld [vmem:[%s20519_s25 + $0x1e0] sm:$0xff]  }
 0x234   : > { %v2499_v58 = vadd.f32 %v14829_v28, %v16888_v27  ;;  %v2490_v41 = vpop.f32.mrb[141].mxu0  ;;  %3721 = vmatmul.mubr.bf16.gmra.mrb[132].mxu1 %v2906_v53  ;;  %v17053_v59 = vsel %vm1001_vm5, %v2956_v40, %v2960_v57  ;;  %v2965_v8 = vshll.u32 %v17033_v11, 16  ;;  %v3166_v53 = vrot.slane %v16991_v35, 1  ;;  %v15247_v57 = vld [vmem:[%s20519_s25 + $0x1a0] sm:$0xff]  }
 0x235   : > { %v2791_v56 = vshrl.u32 %v2605_v37, 16  ;;  %v2491_v45 = vadd.f32 %v2490_v41, %v16876_v26  ;;  %v14830_v27 = vpop.f32.mrb[142].mxu0  ;;  %3882 = vmatmul.mubr.bf16.gmra.mrb[164].mxu0 %v17041_v16  ;;  %3728 = vmatprep.mubr.bf16.mxu1 %v17053_v59  ;;  %v2970_v26 = vshll.u32 %v17045_v42, 16  ;;  %v2963_v39 = vshrl.u32 %v17033_v11, 16 }
 0x236   : > { %v2502_v13 = vadd.f32 %v14830_v27, %v16890_v36  ;;  %v2493_v52 = vpop.f32.mrb[143].mxu0  ;;  %3889 = vmatprep.mubr.bf16.mxu0 %v17033_v11  ;;  %13565 = vmatpush3.bf16.msra.mxu0 %v15241_v51  ;;  %v2583_v47 = vmax.f32 %v2499_v58, 0.0  ;;  %v2967_v60 = vrot.slane %v2965_v8, 1  ;;  %v17072_v48 = vsel %vm15960_vm2, 0, %v2789_v22 }
 0x237   : > { %v2494_v18 = vadd.f32 %v2493_v52, %v16881_v9  ;;  %13566 = vmatprep.subr.bf16.mxu0 %v15242_v6  ;;  %v2793_v9 = vrot.slane %v2791_v56, 7  ;;  %v2581_v24 = vmax.f32 %v2491_v45, 0.0  ;;  %v3167_v7 = vrot.slane %v16983_v29, 1 }
 0x238   : > { %v2584_v36 = vmax.f32 %v2502_v13, 0.0  ;;  %v2968_v14 = vor.u32 %v2967_v60, %v2963_v39  ;;  %v2794_v4 = vshll.u32 %v2605_v37, 16  ;;  %v2972_v23 = vrot.slane %v2970_v26, 1  ;;  %v15248_v37 = vld [vmem:[%s20519_s25 + $0x1e8] sm:$0xff]  }
 0x239   : > { %v2582_v0 = vmax.f32 %v2494_v18, 0.0  ;;  %v2977_v28 = vshll.u32 %v17072_v48, 16  ;;  %v2798_v51 = vshrl.u32 %v17026_v3, 16  ;;  %v17086_v6 = vsel %vm1242_vm4, %v3166_v53, %v3167_v7  ;;  %v15249_v18 = vld [vmem:[%s20519_s25 + $0x1a8] sm:$0xff]  }
 0x23a   : > { %v17074_v2 = vpack.c.bf16 %v2584_v36, %v2583_v47  ;;  %13567 = vmatpush3.bf16.msra.mxu0 %v15243_v62  ;;  %v17091_v29 = vsel %vm15960_vm2, %v17013_v32, 0  ;;  %v2796_v22 = vor.u32 %v2794_v4, %v2793_v9  ;;  %v17099_v45 = vsel %vm1001_vm5, %v2968_v14, %v2972_v23 }
 0x23b   : > { %v17077_v55 = vpack.c.bf16 %v2582_v0, %v2581_v24  ;;  %v14833_v40 = vpop.f32.mrb[144].mxu0  ;;  %13568 = vmatprep.subr.bf16.mxu0 %v15246_v61  ;;  %v2979_v27 = vrot.slane %v2977_v28, 1  ;;  %v2982_v8 = vshll.u32 %v17091_v29, 16  ;;  %v17111_v26 = vrot.slane %v2798_v51, 7  ;;  %v15251_v28 = vld [vmem:[%s20519_s25 + $0x1b0] sm:$0xff]  }
 0x23c   : > { %v2515_v58 = vadd.f32 %v14833_v40, %v16906_v30  ;;  %v2506_v41 = vpop.f32.mrb[145].mxu0  ;;  %3729 = vmatmul.mubr.bf16.gmra.mrb[136].mxu1 %v16991_v35  ;;  %v3169_v62 = vrot.slane %v17033_v11, 1  ;;  %v17119_v60 = vsel %vm15960_vm2, 0, %v2796_v22  ;;  %v2801_v61 = vshll.u32 %v17026_v3, 16 }
 0x23d   : > { %v2507_v56 = vadd.f32 %v2506_v41, %v16894_v44  ;;  %v14834_v30 = vpop.f32.mrb[146].mxu0  ;;  %3890 = vmatmul.mubr.bf16.gmra.mrb[168].mxu0 %v17086_v6  ;;  %3736 = vmatprep.mubr.bf16.mxu1 %v17099_v45  ;;  %v2975_v44 = vshrl.u32 %v17072_v48, 16  ;;  %v2805_v24 = vshrl.u32 %v17077_v55, 16  ;;  %v3170_v14 = vrot.slane %v17045_v42, 1  ;;  %v15252_v41 = vld [vmem:[%s20519_s25 + $0x1f8] sm:$0xff]  }
 0x23e   : > { %v2518_v32 = vadd.f32 %v14834_v30, %v16908_v54  ;;  %v2509_v13 = vpop.f32.mrb[147].mxu0  ;;  %3897 = vmatprep.mubr.bf16.mxu0 %v17072_v48  ;;  %13569 = vmatpush3.bf16.msra.mxu0 %v15247_v57  ;;  %v2587_v53 = vmax.f32 %v2515_v58, 0.0  ;;  %v2984_v40 = vrot.slane %v2982_v8, 1  ;;  %v2989_v23 = vshll.u32 %v17119_v60, 16 }
 0x23f   : > { %v2510_v52 = vadd.f32 %v2509_v13, %v16902_v25  ;;  %13570 = vmatprep.subr.bf16.mxu0 %v15248_v37  ;;  %v15250_v25 = vld [vmem:[%s20519_s25 + $0x1f0] sm:$0xff]   ;;  %v2585_v47 = vmax.f32 %v2507_v56, 0.0  ;;  %v2980_v39 = vor.u32 %v2979_v27, %v2975_v44  ;;  %v2803_v57 = vor.u32 %v2801_v61, %v17111_v26  ;;  %v15253_v44 = vld [vmem:[%s20519_s25 + $0x1b8] sm:$0xff]  }
 0x240   : > { %v2588_v54 = vmax.f32 %v2518_v32, 0.0  ;;  %v17135_v58 = vsel %vm1242_vm4, %v3169_v62, %v3170_v14  ;;  %v17139_v42 = vsel %vm15960_vm2, %v2793_v9, 0  ;;  %v2991_v56 = vrot.slane %v2989_v23, 1 }
 0x241   : > { %v2586_v36 = vmax.f32 %v2510_v52, 0.0  ;;  %v17150_v30 = vrot.slane %v2805_v24, 7  ;;  %v2987_v13 = vshrl.u32 %v17119_v60, 16  ;;  %v2994_v52 = vshll.u32 %v17139_v42, 16 }
 0x242   : > { %v17123_v0 = vpack.c.bf16 %v2588_v54, %v2587_v53  ;;  %13571 = vmatpush3.bf16.msra.mxu0 %v15249_v18  ;;  %v3172_v18 = vrot.slane %v17072_v48, 1  ;;  %v17165_v53 = vsel %vm15960_vm2, 0, %v2803_v57 }
 0x243   : > { %v17126_v7 = vpack.c.bf16 %v2586_v36, %v2585_v47  ;;  %v14837_v4 = vpop.f32.mrb[148].mxu0  ;;  %13572 = vmatprep.subr.bf16.mxu0 %v15250_v25  ;;  %v2992_v62 = vor.u32 %v2991_v56, %v2987_v13  ;;  %v3173_v36 = vrot.slane %v17091_v29, 1  ;;  %v2996_v14 = vrot.slane %v2994_v52, 1 }
 0x244   : > { %v2531_v3 = vadd.f32 %v14837_v4, %v16924_v12  ;;  %v2522_v51 = vpop.f32.mrb[149].mxu0  ;;  %3737 = vmatmul.mubr.bf16.gmra.mrb[140].mxu1 %v17033_v11  ;;  %v17147_v12 = vsel %vm1001_vm5, %v2980_v39, %v2984_v40  ;;  %v3001_v39 = vshll.u32 %v17165_v53, 16 }
 0x245   : > { %v2523_v37 = vadd.f32 %v2522_v51, %v16918_v38  ;;  %v14838_v22 = vpop.f32.mrb[150].mxu0  ;;  %3898 = vmatmul.mubr.bf16.gmra.mrb[172].mxu0 %v17135_v58  ;;  %3744 = vmatprep.mubr.bf16.mxu1 %v17147_v12  ;;  %v2808_v38 = vshll.u32 %v17077_v55, 16  ;;  %v17177_v23 = vsel %vm1242_vm4, %v3172_v18, %v3173_v36  ;;  %v2928_v36 = vsel %vm15960_vm2, %v17150_v30, 0 }
 0x246   : > { %v2534_v9 = vadd.f32 %v14838_v22, %v16926_v15  ;;  %v2525_v27 = vpop.f32.mrb[151].mxu0  ;;  %3905 = vmatprep.mubr.bf16.mxu0 %v17119_v60  ;;  %13573 = vmatpush3.bf16.msra.mxu0 %v15251_v28  ;;  %v2591_v8 = vmax.f32 %v2531_v3, 0.0  ;;  %v17182_v28 = vsel %vm15960_vm2, %v17111_v26, 0  ;;  %v17187_v3 = vsel %vm1001_vm5, %v2992_v62, %v2996_v14 }
 0x247   : > { %v2526_v32 = vadd.f32 %v2525_v27, %v16920_v50  ;;  %13574 = vmatprep.subr.bf16.mxu0 %v15252_v41  ;;  %v2812_v50 = vshrl.u32 %v17074_v2, 16  ;;  %v2589_v55 = vmax.f32 %v2523_v37, 0.0  ;;  %v2810_v25 = vor.u32 %v2808_v38, %v17150_v30 }
 0x248   : > { %v2592_v15 = vmax.f32 %v2534_v9, 0.0  ;;  %v2999_v22 = vshrl.u32 %v17165_v53, 16  ;;  %v3006_v56 = vshll.u32 %v17182_v28, 16  ;;  %v2815_v9 = vshll.u32 %v17074_v2, 16 }
 0x249   : > { %v2590_v54 = vmax.f32 %v2526_v32, 0.0  ;;  %v2814_v51 = vrot.slane %v2812_v50, 7 }
 0x24a   : > { %v17169_v47 = vpack.c.bf16 %v2592_v15, %v2591_v8  ;;  %13575 = vmatpush3.bf16.msra.mxu0 %v15253_v44  ;;  %v2819_v15 = vshrl.u32 %v17126_v7, 16  ;;  %v3008_v2 = vrot.slane %v3006_v56, 1 }
 0x24b   : > { %v17173_v61 = vpack.c.bf16 %v2590_v54, %v2589_v55  ;;  %v14841_v24 = vpop.f32.mrb[152].mxu0  ;;  %v2817_v8 = vor.u32 %v2815_v9, %v2814_v51 }
 0x24c   : > { %v2547_v4 = vadd.f32 %v14841_v24, %v16942_v20  ;;  %v2538_v40 = vpop.f32.mrb[153].mxu0  ;;  %3745 = vmatmul.mubr.bf16.gmra.mrb[144].mxu1 %v17072_v48  ;;  %v3003_v20 = vrot.slane %v3001_v39, 1 }
 0x24d   : > { %v2539_v29 = vadd.f32 %v2538_v40, %v16936_v31  ;;  %v14842_v57 = vpop.f32.mrb[154].mxu0  ;;  %3906 = vmatmul.mubr.bf16.gmra.mrb[176].mxu0 %v17177_v23  ;;  %3752 = vmatprep.mubr.bf16.mxu1 %v17187_v3  ;;  %v17195_v31 = vsel %vm15960_vm2, 0, %v2810_v25 }
 0x24e   : > { %v2550_v41 = vadd.f32 %v14842_v57, %v16944_v43  ;;  %v2541_v37 = vpop.f32.mrb[155].mxu0  ;;  %3913 = vmatprep.mubr.bf16.mxu0 %v17165_v53  ;;  %v2595_v27 = vmax.f32 %v2547_v4, 0.0  ;;  %v3175_v43 = vrot.slane %v17119_v60, 1  ;;  %v3004_v52 = vor.u32 %v3003_v20, %v2999_v22 }
 0x24f   : > { %v2542_v26 = vadd.f32 %v2541_v37, %v16938_v46  ;;  %v2593_v32 = vmax.f32 %v2539_v29, 0.0  ;;  %v3013_v44 = vshll.u32 %v17195_v31, 16  ;;  %v3176_v46 = vrot.slane %v17139_v42, 1 }
 0x250   : > { %v2596_v38 = vmax.f32 %v2550_v41, 0.0  ;;  %v17219_v42 = vsel %vm1001_vm5, %v3004_v52, %v3008_v2  ;;  %v3011_v29 = vshrl.u32 %v17195_v31, 16  ;;  %v3018_v57 = vshll.u32 %v2928_v36, 16 }
 0x251   : > { %v2594_v13 = vmax.f32 %v2542_v26, 0.0  ;;  %v17211_v25 = vsel %vm1242_vm4, %v3175_v43, %v3176_v46  ;;  %v3015_v14 = vrot.slane %v3013_v44, 1  ;;  %v2822_v20 = vshll.u32 %v17126_v7, 16 }
 0x252   : > { %v17204_v18 = vpack.c.bf16 %v2596_v38, %v2595_v27  ;;  %v2826_v27 = vshrl.u32 %v17123_v0, 16  ;;  %v2929_v52 = vsel %vm15960_vm2, %v2814_v51, 0  ;;  %v3181_v2 = vrot.slane %v17195_v31, 1 }
 0x253   : > { %v17207_v50 = vpack.c.bf16 %v2594_v13, %v2593_v32  ;;  %v14845_v55 = vpop.f32.mrb[156].mxu0  ;;  %v3016_v56 = vor.u32 %v3015_v14, %v3011_v29  ;;  %v3020_v13 = vrot.slane %v3018_v57, 1  ;;  %v3030_v51 = vshll.u32 %v2929_v52, 16 }
 0x254   : > { %v2563_v54 = vadd.f32 %v14845_v55, %v16963_v5  ;;  %v2554_v62 = vpop.f32.mrb[157].mxu0  ;;  %3753 = vmatmul.mubr.bf16.gmra.mrb[148].mxu1 %v17119_v60  ;;  %v2821_v5 = vrot.slane %v2819_v15, 7  ;;  %v2828_v15 = vrot.slane %v2826_v27, 7  ;;  %v2829_v55 = vshll.u32 %v17123_v0, 16 }
 0x255   : > { %v2555_v39 = vadd.f32 %v2554_v62, %v16957_v63  ;;  %v14846_v24 = vpop.f32.mrb[158].mxu0  ;;  %3914 = vmatmul.mubr.bf16.gmra.mrb[180].mxu0 %v17211_v25  ;;  %3760 = vmatprep.mubr.bf16.mxu1 %v17219_v42  ;;  %v17227_v63 = vsel %vm15960_vm2, 0, %v2817_v8  ;;  %v17247_v44 = vsel %vm1001_vm5, %v3016_v56, %v3020_v13  ;;  %v3182_v14 = vrot.slane %v2928_v36, 1 }
 0x256   : > { %v2566_v4 = vadd.f32 %v14846_v24, %v16965_v21  ;;  %v2557_v40 = vpop.f32.mrb[159].mxu0  ;;  %3921 = vmatprep.mubr.bf16.mxu0 %v17195_v31  ;;  %v2599_v41 = vmax.f32 %v2563_v54, 0.0  ;;  %v3178_v21 = vrot.slane %v17165_v53, 1  ;;  %v3025_v9 = vshll.u32 %v17227_v63, 16 }
 0x257   : > { %v2558_v30 = vadd.f32 %v2557_v40, %v16959_v34  ;;  %v2597_v26 = vmax.f32 %v2555_v39, 0.0  ;;  %v2824_v38 = vor.u32 %v2822_v20, %v2821_v5  ;;  %v3179_v34 = vrot.slane %v17182_v28, 1 }
 0x258   : > { %v2600_v37 = vmax.f32 %v2566_v4, 0.0  ;;  %v3027_v8 = vrot.slane %v3025_v9, 1  ;;  %v3023_v46 = vshrl.u32 %v17227_v63, 16  ;;  %v2831_v39 = vor.u32 %v2829_v55, %v2828_v15 }
 0x259   : > { %v2598_v22 = vmax.f32 %v2558_v30, 0.0  ;;  %v17241_v7 = vsel %vm1242_vm4, %v3178_v21, %v3179_v34  ;;  %v17254_v28 = vsel %vm15960_vm2, 0, %v2824_v38  ;;  %v2833_v24 = vshrl.u32 %v17173_v61, 16 }
 0x25a   : > { %v17235_v43 = vpack.c.bf16 %v2600_v37, %v2599_v41  ;;  %v3028_v54 = vor.u32 %v3027_v8, %v3023_v46  ;;  %v3037_v62 = vshll.u32 %v17254_v28, 16  ;;  %v3032_v4 = vrot.slane %v3030_v51, 1 }
 0x25b   : > { %v17238_v32 = vpack.c.bf16 %v2598_v22, %v2597_v26  ;;  %v17262_v40 = vsel %vm1242_vm4, %v3181_v2, %v3182_v14  ;;  %v2930_v30 = vsel %vm15960_vm2, %v2821_v5, 0  ;;  %v2835_v57 = vrot.slane %v2833_v24, 7 }
 0x25c   : > { %3761 = vmatmul.mubr.bf16.gmra.mrb[152].mxu1 %v17165_v53  ;;  %v17268_v0 = vsel %vm1001_vm5, %v3028_v54, %v3032_v4  ;;  %v3039_v29 = vrot.slane %v3037_v62, 1  ;;  %v17275_v36 = vsel %vm15960_vm2, 0, %v2831_v39  ;;  %v3035_v20 = vshrl.u32 %v17254_v28, 16 }
 0x25d   : > { %3922 = vmatmul.mubr.bf16.gmra.mrb[184].mxu0 %v17241_v7  ;;  %3768 = vmatprep.mubr.bf16.mxu1 %v17247_v44  ;;  %v3042_v5 = vshll.u32 %v2930_v30, 16  ;;  %v2836_v41 = vshll.u32 %v17173_v61, 16  ;;  %v3184_v37 = vrot.slane %v17227_v63, 1  ;;  %v3049_v26 = vshll.u32 %v17275_v36, 16 }
 0x25e   : > { %3929 = vmatprep.mubr.bf16.mxu0 %v17227_v63  ;;  %v3040_v21 = vor.u32 %v3039_v29, %v3035_v20  ;;  %v2840_v22 = vshrl.u32 %v17169_v47, 16  ;;  %v3185_v9 = vrot.slane %v2929_v52, 1  ;;  %v2931_v34 = vsel %vm15960_vm2, %v2828_v15, 0 }
 0x25f   : > { %v2838_v56 = vor.u32 %v2836_v41, %v2835_v57  ;;  %v3044_v27 = vrot.slane %v3042_v5, 1  ;;  %v3051_v13 = vrot.slane %v3049_v26, 1  ;;  %v3047_v46 = vshrl.u32 %v17275_v36, 16 }
 0x260   : > { %v17283_v38 = vsel %vm1242_vm4, %v3184_v37, %v3185_v9  ;;  %v2842_v8 = vrot.slane %v2840_v22, 7  ;;  %v3054_v15 = vshll.u32 %v2931_v34, 16  ;;  %v2843_v51 = vshll.u32 %v17169_v47, 16 }
 0x261   : > { %v17289_v61 = vsel %vm1001_vm5, %v3040_v21, %v3044_v27  ;;  %v17296_v52 = vsel %vm15960_vm2, 0, %v2838_v56  ;;  %v3187_v55 = vrot.slane %v17254_v28, 1  ;;  %v3052_v2 = vor.u32 %v3051_v13, %v3047_v46 }
 0x262   : > { %v3061_v54 = vshll.u32 %v17296_v52, 16  ;;  %v2845_v62 = vor.u32 %v2843_v51, %v2842_v8  ;;  %v2847_v39 = vshrl.u32 %v17207_v50, 16  ;;  %v3188_v24 = vrot.slane %v2930_v30, 1 }
 0x263   : > { %v3056_v14 = vrot.slane %v3054_v15, 1  ;;  %v2932_v29 = vsel %vm15960_vm2, %v2835_v57, 0  ;;  %v3059_v41 = vshrl.u32 %v17296_v52, 16  ;;  %v2850_v37 = vshll.u32 %v17207_v50, 16 }
 0x264   : > { %3769 = vmatmul.mubr.bf16.gmra.mrb[156].mxu1 %v17195_v31  ;;  %v17304_v4 = vsel %vm1242_vm4, %v3187_v55, %v3188_v24  ;;  %v3063_v20 = vrot.slane %v3061_v54, 1  ;;  %v2849_v5 = vrot.slane %v2847_v39, 7  ;;  %v17317_v30 = vsel %vm15960_vm2, 0, %v2845_v62 }
 0x265   : > { %3930 = vmatmul.mubr.bf16.gmra.mrb[188].mxu0 %v17262_v40  ;;  %3776 = vmatprep.mubr.bf16.mxu1 %v17268_v0  ;;  %v17310_v47 = vsel %vm1001_vm5, %v3052_v2, %v3056_v14  ;;  %v3066_v57 = vshll.u32 %v2932_v29, 16  ;;  %v3190_v21 = vrot.slane %v17275_v36, 1  ;;  %v3073_v22 = vshll.u32 %v17317_v30, 16 }
 0x266   : > { %3937 = vmatprep.mubr.bf16.mxu0 %v17254_v28  ;;  %v3064_v26 = vor.u32 %v3063_v20, %v3059_v41  ;;  %v2854_v56 = vshrl.u32 %v17204_v18, 16  ;;  %v2852_v9 = vor.u32 %v2850_v37, %v2849_v5  ;;  %v3191_v27 = vrot.slane %v2931_v34, 1 }
 0x267   : > { %v3068_v13 = vrot.slane %v3066_v57, 1  ;;  %v2933_v15 = vsel %vm15960_vm2, %v2842_v8, 0  ;;  %v3075_v51 = vrot.slane %v3073_v22, 1  ;;  %v3071_v8 = vshrl.u32 %v17317_v30, 16 }
 0x268   : > { %v17325_v46 = vsel %vm1242_vm4, %v3190_v21, %v3191_v27  ;;  %v13240_v55 = vpop.f32.mrb[128].mxu1  ;;  %v2856_v2 = vrot.slane %v2854_v56, 7  ;;  %v17338_v34 = vsel %vm15960_vm2, 0, %v2852_v9  ;;  %v3078_v62 = vshll.u32 %v2933_v15, 16 }
 0x269   : > { %v17331_v50 = vsel %vm1001_vm5, %v3064_v26, %v3068_v13  ;;  %v13241_v54 = vpop.f32.mrb[129].mxu1  ;;  %v2857_v14 = vshll.u32 %v17204_v18, 16  ;;  %v3193_v20 = vrot.slane %v17296_v52, 1  ;;  %v3076_v57 = vor.u32 %v3075_v51, %v3071_v8 }
 0x26a   : > { %v17341_v39 = vadd.f32 %v13241_v54, %v13240_v55  ;;  %v13243_v24 = vpop.f32.mrb[130].mxu1  ;;  %v3085_v37 = vshll.u32 %v17338_v34, 16  ;;  %v2861_v22 = vshrl.u32 %v17238_v32, 16  ;;  %v3194_v56 = vrot.slane %v2932_v29, 1 }
 0x26b   : > { %v13244_v41 = vpop.f32.mrb[131].mxu1  ;;  %v2859_v26 = vor.u32 %v2857_v14, %v2856_v2  ;;  %v3080_v9 = vrot.slane %v3078_v62, 1  ;;  %v2934_v13 = vsel %vm15960_vm2, %v2849_v5, 0  ;;  %v3083_v54 = vshrl.u32 %v17338_v34, 16 }
 0x26c   : > { %3777 = vmatmul.mubr.bf16.gmra.mrb[160].mxu1 %v17227_v63  ;;  %v17346_v21 = vadd.f32 %v13244_v41, %v13243_v24  ;;  %v17350_v27 = vsel %vm1242_vm4, %v3193_v20, %v3194_v56  ;;  %v3087_v51 = vrot.slane %v3085_v37, 1  ;;  %v2863_v55 = vrot.slane %v2861_v22, 7 }
 0x26d   : > { %3938 = vmatmul.mubr.bf16.gmra.mrb[192].mxu0 %v17283_v38  ;;  %3784 = vmatprep.mubr.bf16.mxu1 %v17289_v61  ;;  %v17356_v18 = vsel %vm1001_vm5, %v3076_v57, %v3080_v9  ;;  %v17363_v29 = vsel %vm15960_vm2, 0, %v2859_v26  ;;  %v3090_v5 = vshll.u32 %v2934_v13, 16  ;;  %v2864_v8 = vshll.u32 %v17238_v32, 16 }
 0x26e   : > { %3945 = vmatprep.mubr.bf16.mxu0 %v17275_v36  ;;  %v3196_v62 = vrot.slane %v17317_v30, 1  ;;  %v3088_v24 = vor.u32 %v3087_v51, %v3083_v54  ;;  %v3097_v14 = vshll.u32 %v17363_v29, 16  ;;  %v3197_v41 = vrot.slane %v2933_v15, 1 }
 0x26f   : > { %v2866_v20 = vor.u32 %v2864_v8, %v2863_v55  ;;  %v3092_v57 = vrot.slane %v3090_v5, 1  ;;  %v2935_v26 = vsel %vm15960_vm2, %v2856_v2, 0  ;;  %v3095_v56 = vshrl.u32 %v17363_v29, 16 }
 0x270   : > { %v17370_v37 = vsel %vm1242_vm4, %v3196_v62, %v3197_v41  ;;  %v3099_v32 = vrot.slane %v3097_v14, 1  ;;  %v3102_v9 = vshll.u32 %v2935_v26, 16  ;;  %v3199_v2 = vrot.slane %v17338_v34, 1 }
 0x271   : > { %v17376_v22 = vsel %vm1001_vm5, %v3088_v24, %v3092_v57  ;;  %v17383_v15 = vsel %vm15960_vm2, 0, %v2866_v20  ;;  %v2868_v51 = vshrl.u32 %v17235_v43, 16  ;;  %v3200_v8 = vrot.slane %v2934_v13, 1 }
 0x272   : > { %v3100_v54 = vor.u32 %v3099_v32, %v3095_v56  ;;  %v3109_v5 = vshll.u32 %v17383_v15, 16  ;;  %v3104_v62 = vrot.slane %v3102_v9, 1  ;;  %v2936_v14 = vsel %vm15960_vm2, %v2863_v55, 0 }
 0x273   : > { %v17390_v24 = vsel %vm1242_vm4, %v3199_v2, %v3200_v8  ;;  %v17394_v20 = vrot.slane %v2868_v51, 7  ;;  %v2871_v13 = vshll.u32 %v17235_v43, 16  ;;  %v3107_v32 = vshrl.u32 %v17383_v15, 16 }
 0x274   : > { %3785 = vmatmul.mubr.bf16.gmra.mrb[164].mxu1 %v17254_v28  ;;  %v17398_v41 = vsel %vm1001_vm5, %v3100_v54, %v3104_v62  ;;  %v3111_v57 = vrot.slane %v3109_v5, 1  ;;  %v3114_v56 = vshll.u32 %v2936_v14, 16  ;;  %v3202_v55 = vrot.slane %v17363_v29, 1 }
 0x275   : > { %3946 = vmatmul.mubr.bf16.gmra.mrb[196].mxu0 %v17304_v4  ;;  %3792 = vmatprep.mubr.bf16.mxu1 %v17310_v47  ;;  %v2873_v2 = vor.u32 %v2871_v13, %v17394_v20  ;;  %v3203_v51 = vrot.slane %v2935_v26, 1  ;;  %v3205_v26 = vrot.slane %v17383_v15, 1  ;;  %v3206_v62 = vrot.slane %v2936_v14, 1  ;;  %v15255_v13 = vld [vmem:[%s20519_s25 + $0x208] sm:$0xff]   ;;  %v15257_v14 = vld [vmem:[%s20519_s25 + $0x218] sm:$0xff]  }
 0x276   : > { %3953 = vmatprep.mubr.bf16.mxu0 %v17296_v52  ;;  %v3112_v9 = vor.u32 %v3111_v57, %v3107_v32  ;;  %v3116_v54 = vrot.slane %v3114_v56, 1 }
 0x277   : > { %v17408_v8 = vsel %vm1242_vm4, %v3202_v55, %v3203_v51  ;;  %v17417_v43 = vsel %vm15960_vm2, 0, %v2873_v2  ;;  %v17423_v57 = vsel %vm1242_vm4, %v3205_v26, %v3206_v62  ;;  %v2937_v55 = vsel %vm15960_vm2, %v17394_v20, 0 }
 0x278   : > { %v17412_v5 = vsel %vm1001_vm5, %v3112_v9, %v3116_v54  ;;  %v3224_v54 = vshrl.u32 %v17417_v43, 16  ;;  %v3231_v26 = vshll.u32 %v2937_v55, 16 }
 0x27c   : > { %3793 = vmatmul.mubr.bf16.gmra.mrb[168].mxu1 %v17275_v36 }
 0x27d   : > { %3954 = vmatmul.mubr.bf16.gmra.mrb[200].mxu0 %v17325_v46  ;;  %3800 = vmatprep.mubr.bf16.mxu1 %v17331_v50 }
 0x27e   : > { %3961 = vmatprep.mubr.bf16.mxu0 %v17317_v30 }
 0x284   : > { %3801 = vmatmul.mubr.bf16.gmra.mrb[172].mxu1 %v17296_v52 }
 0x285   : > { %3962 = vmatmul.mubr.bf16.gmra.mrb[204].mxu0 %v17350_v27  ;;  %3808 = vmatprep.mubr.bf16.mxu1 %v17356_v18 }
 0x286   : > { %3969 = vmatprep.mubr.bf16.mxu0 %v17338_v34 }
 0x28c   : > { %3809 = vmatmul.mubr.bf16.gmra.mrb[176].mxu1 %v17317_v30 }
 0x28d   : > { %3970 = vmatmul.mubr.bf16.gmra.mrb[208].mxu0 %v17370_v37  ;;  %3816 = vmatprep.mubr.bf16.mxu1 %v17376_v22 }
 0x28e   : > { %3977 = vmatprep.mubr.bf16.mxu0 %v17363_v29 }
 0x294   : > { %3817 = vmatmul.mubr.bf16.gmra.mrb[180].mxu1 %v17338_v34 }
 0x295   : > { %3978 = vmatmul.mubr.bf16.gmra.mrb[212].mxu0 %v17390_v24  ;;  %3824 = vmatprep.mubr.bf16.mxu1 %v17398_v41 }
 0x296   : > { %3985 = vmatprep.mubr.bf16.mxu0 %v17383_v15 }
 0x29c   : > { %3825 = vmatmul.mubr.bf16.gmra.mrb[184].mxu1 %v17363_v29 }
 0x29d   : > { %3986 = vmatmul.mubr.bf16.gmra.mrb[216].mxu0 %v17408_v8  ;;  %3832 = vmatprep.mubr.bf16.mxu1 %v17412_v5 }
 0x29e   : > { %3993 = vmatprep.mubr.bf16.mxu0 %v17417_v43 }
 0x2a4   : > { %3833 = vmatmul.mubr.bf16.gmra.mrb[188].mxu1 %v17383_v15 }
 0x2a5   : > { %3994 = vmatmul.mubr.bf16.gmra.mrb[220].mxu0 %v17423_v57  ;;  %4034 = vmatprep.mubr.bf16.mxu1 %v17041_v16  ;;  %v15256_v16 = vld [vmem:[%s20519_s25 + $0x210] sm:$0xff]  }
 0x2a6   : > { %4195 = vmatprep.mubr.bf16.mxu0 %v17053_v59 }
 0x2ac   : > { %4035 = vmatmul.mubr.bf16.vlgmr.msra.gmra.mrb[192].mxu1 %v17029_v49  ;;  %v15260_v49 = vld [vmem:[%s20519_s25 + $0x230] sm:$0xff]  }
 0x2ad   : > { %4196 = vmatmul.mubr.bf16.vlgmr.msra.gmra.mrb[224].mxu0 %v16991_v35  ;;  %4042 = vmatprep.mubr.bf16.mxu1 %v17086_v6  ;;  %v15258_v35 = vld [vmem:[%s20519_s25 + $0x220] sm:$0xff]  }
 0x2ae   : > { %14848 = vmatpush3.bf16.msra.mxu1 %v17011_v10  ;;  %4203 = vmatprep.mubr.bf16.mxu0 %v17099_v45  ;;  %v15259_v10 = vld [vmem:[%s20519_s25 + $0x228] sm:$0xff]  }
 0x2af   : > { %14849 = vmatprep.subr.bf16.mxu1 %v15255_v13 }
 0x2b2   : > { %14850 = vmatpush3.bf16.msra.mxu1 %v15255_v13 }
 0x2b3   : > { %14851 = vmatprep.subr.bf16.mxu1 %v15256_v16 }
 0x2b4   : > { %4043 = vmatmul.mubr.bf16.gmra.mrb[196].mxu1 %v17053_v59  ;;  %v17496_v59 = vld [vmem:[%s20523_s4] ss:$0 sm:$0xff]  ;;  %s12053_s4 = scalar_lea.sflag [#allocation3], %s593_s19 }
 0x2b5   : > { %4204 = vmatmul.mubr.bf16.gmra.mrb[228].mxu0 %v17033_v11  ;;  %4050 = vmatprep.mubr.bf16.mxu1 %v17135_v58  ;;  %v15261_v11 = vld [vmem:[%s20519_s25 + $0x238] sm:$0xff]  }
 0x2b6   : > { %4211 = vmatprep.mubr.bf16.mxu0 %v17147_v12  ;;  %14852 = vmatpush3.bf16.msra.mxu1 %v15256_v16 }
 0x2b7   : > { %14853 = vmatprep.subr.bf16.mxu1 %v15257_v14 }
 0x2ba   : > { %14854 = vmatpush3.bf16.msra.mxu1 %v15257_v14 }
 0x2bb   : > { %14855 = vmatprep.subr.bf16.mxu1 %v15258_v35 }
 0x2bc   : > { %4051 = vmatmul.mubr.bf16.gmra.mrb[200].mxu1 %v17099_v45 }
 0x2bd   : > { %4212 = vmatmul.mubr.bf16.gmra.mrb[232].mxu0 %v17072_v48  ;;  %4058 = vmatprep.mubr.bf16.mxu1 %v17177_v23  ;;  %v3715_v48 = vadd.f32 %v17341_v39, %v17496_v59 }
 0x2be   : > { %4219 = vmatprep.mubr.bf16.mxu0 %v17187_v3  ;;  %14856 = vmatpush3.bf16.msra.mxu1 %v15258_v35 }
 0x2bf   : > { %14857 = vmatprep.subr.bf16.mxu1 %v15259_v10 }
 0x2c2   : > { %14858 = vmatpush3.bf16.msra.mxu1 %v15259_v10 }
 0x2c3   : > { %14859 = vmatprep.subr.bf16.mxu1 %v15260_v49 }
 0x2c4   : > { %4059 = vmatmul.mubr.bf16.gmra.mrb[204].mxu1 %v17147_v12 }
 0x2c5   : > { %4220 = vmatmul.mubr.bf16.gmra.mrb[236].mxu0 %v17119_v60  ;;  %4066 = vmatprep.mubr.bf16.mxu1 %v17211_v25 }
 0x2c6   : > { %4227 = vmatprep.mubr.bf16.mxu0 %v17219_v42  ;;  %14860 = vmatpush3.bf16.msra.mxu1 %v15260_v49 }
 0x2c7   : > { %14861 = vmatprep.subr.bf16.mxu1 %v15261_v11 }
 0x2ca   : > { %14862 = vmatpush3.bf16.msra.mxu1 %v15261_v11 }
 0x2cc   : > { %4067 = vmatmul.mubr.bf16.gmra.mrb[208].mxu1 %v17187_v3 }
 0x2cd   : > { %4228 = vmatmul.mubr.bf16.gmra.mrb[240].mxu0 %v17165_v53  ;;  %4074 = vmatprep.mubr.bf16.mxu1 %v17241_v7 }
 0x2ce   : > { %4235 = vmatprep.mubr.bf16.mxu0 %v17247_v44 }
 0x2d4   : > { %4075 = vmatmul.mubr.bf16.gmra.mrb[212].mxu1 %v17219_v42 }
 0x2d5   : > { %4236 = vmatmul.mubr.bf16.gmra.mrb[244].mxu0 %v17195_v31  ;;  %4082 = vmatprep.mubr.bf16.mxu1 %v17262_v40  ;;  %v3718_v31 = vadd.f32 %v17346_v21, %v17496_v59 }
 0x2d6   : > { %4243 = vmatprep.mubr.bf16.mxu0 %v17268_v0 }
 0x2dc   : > { %4083 = vmatmul.mubr.bf16.gmra.mrb[216].mxu1 %v17247_v44 }
 0x2dd   : > { %4244 = vmatmul.mubr.bf16.gmra.mrb[248].mxu0 %v17227_v63  ;;  %4090 = vmatprep.mubr.bf16.mxu1 %v17283_v38 }
 0x2de   : > { %4251 = vmatprep.mubr.bf16.mxu0 %v17289_v61 }
 0x2e4   : > { %4091 = vmatmul.mubr.bf16.gmra.mrb[220].mxu1 %v17268_v0 }
 0x2e5   : > { %4252 = vmatmul.mubr.bf16.gmra.mrb[252].mxu0 %v17254_v28  ;;  %4098 = vmatprep.mubr.bf16.mxu1 %v17304_v4 }
 0x2e6   : > { %4259 = vmatprep.mubr.bf16.mxu0 %v17310_v47 }
 0x2ec   : > { %4099 = vmatmul.mubr.bf16.gmra.mrb[224].mxu1 %v17289_v61 }
 0x2ed   : > { %4260 = vmatmul.mubr.bf16.gmra.mrb[0].mxu0 %v17275_v36  ;;  %4106 = vmatprep.mubr.bf16.mxu1 %v17325_v46 }
 0x2ee   : > { %4267 = vmatprep.mubr.bf16.mxu0 %v17331_v50 }
 0x2f4   : > { %4107 = vmatmul.mubr.bf16.gmra.mrb[228].mxu1 %v17310_v47 }
 0x2f5   : > { %4268 = vmatmul.mubr.bf16.gmra.mrb[4].mxu0 %v17296_v52  ;;  %4114 = vmatprep.mubr.bf16.mxu1 %v17350_v27  ;;  %v3226_v52 = vshll.u32 %v17417_v43, 16 }
 0x2f6   : > { %4275 = vmatprep.mubr.bf16.mxu0 %v17356_v18 }
 0x2f7   : > { %v3228_v9 = vrot.slane %v3226_v52, 1 }
 0x2f9   : > { %v3229_v14 = vor.u32 %v3228_v9, %v3224_v54 }
 0x2fc   : > { %4115 = vmatmul.mubr.bf16.gmra.mrb[232].mxu1 %v17331_v50 }
 0x2fd   : > { %4276 = vmatmul.mubr.bf16.gmra.mrb[8].mxu0 %v17317_v30  ;;  %4122 = vmatprep.mubr.bf16.mxu1 %v17370_v37 }
 0x2fe   : > { %4283 = vmatprep.mubr.bf16.mxu0 %v17376_v22 }
 0x300   : > { %v13352_v45 = vpop.f32.mrb[160].mxu0 }
 0x301   : > { %v13353_v60 = vpop.f32.mrb[161].mxu0 }
 0x302   : > { %v13354_v12 = vadd.f32 %v13353_v60, %v13352_v45  ;;  %v13355_v53 = vpop.f32.mrb[162].mxu0  ;;  %v3233_v45 = vrot.slane %v3231_v26, 1 }
 0x303   : > { %v13356_v3 = vpop.f32.mrb[163].mxu0 }
 0x304   : > { %v17504_v42 = vadd.f32 %v13354_v12, %v3715_v48  ;;  %v13357_v63 = vadd.f32 %v13356_v3, %v13355_v53  ;;  %4123 = vmatmul.mubr.bf16.gmra.mrb[236].mxu1 %v17356_v18  ;;  %v15262_v3 = vld [vmem:[%s20524_s5 + $0x40] sm:$0xff]  }
 0x305   : > { %4284 = vmatmul.mubr.bf16.gmra.mrb[12].mxu0 %v17338_v34  ;;  %4130 = vmatprep.mubr.bf16.mxu1 %v17390_v24 }
 0x306   : > { %v17508_v44 = vadd.f32 %v13357_v63, %v3718_v31  ;;  %4291 = vmatprep.mubr.bf16.mxu0 %v17398_v41  ;;  %v15263_v31 = vld [vmem:[%s20524_s5] sm:$0xff]   ;;  %v3234_v63 = vsel %vm1001_vm5, %v3229_v14, %v3233_v45  ;;  %13696 = vmatprep.subr.bf16.mxu0 %v15262_v3 }
 0x307   : > { %v13246_v28 = vpop.f32.mrb[132].mxu1  ;;  %13697 = vmatpush3.bf16.msra.mxu0 %v15263_v31 }
 0x308   : > { %v13358_v0 = vpop.f32.mrb[164].mxu0  ;;  %v13247_v36 = vpop.f32.mrb[133].mxu1 }
 0x309   : > { %v13359_v61 = vpop.f32.mrb[165].mxu0  ;;  %v13248_v47 = vadd.f32 %v13247_v36, %v13246_v28  ;;  %v13249_v30 = vpop.f32.mrb[134].mxu1 }
 0x30a   : > { %v13360_v50 = vadd.f32 %v13359_v61, %v13358_v0  ;;  %v13361_v39 = vpop.f32.mrb[166].mxu0  ;;  %v13250_v21 = vpop.f32.mrb[135].mxu1 }
 0x30b   : > { %v13362_v18 = vpop.f32.mrb[167].mxu0  ;;  %v3723_v34 = vadd.f32 %v13248_v47, %v17496_v59  ;;  %v13251_v32 = vadd.f32 %v13250_v21, %v13249_v30 }
 0x30c   : > { %v13363_v56 = vadd.f32 %v13362_v18, %v13361_v39  ;;  %4131 = vmatmul.mubr.bf16.gmra.mrb[240].mxu1 %v17376_v22 }
 0x30d   : > { %4292 = vmatmul.mubr.bf16.gmra.mrb[16].mxu0 %v17363_v29  ;;  %v17519_v2 = vadd.f32 %v13360_v50, %v3723_v34  ;;  %v3726_v51 = vadd.f32 %v13251_v32, %v17496_v59  ;;  %4138 = vmatprep.mubr.bf16.mxu1 %v17408_v8  ;;  %v3239_v32 = vrot.slane %v2937_v55, 1 }
 0x30e   : > { %4299 = vmatprep.mubr.bf16.mxu0 %v17412_v5 }
 0x30f   : > { %v17525_v62 = vadd.f32 %v13363_v56, %v3726_v51  ;;  %v13252_v13 = vpop.f32.mrb[136].mxu1 }
 0x310   : > { %v13364_v20 = vpop.f32.mrb[168].mxu0  ;;  %v13253_v16 = vpop.f32.mrb[137].mxu1 }
 0x311   : > { %v13365_v22 = vpop.f32.mrb[169].mxu0  ;;  %v13254_v29 = vadd.f32 %v13253_v16, %v13252_v13  ;;  %v13255_v35 = vpop.f32.mrb[138].mxu1 }
 0x312   : > { %v13366_v10 = vadd.f32 %v13365_v22, %v13364_v20  ;;  %v13367_v49 = vpop.f32.mrb[170].mxu0  ;;  %v13256_v11 = vpop.f32.mrb[139].mxu1 }
 0x313   : > { %v13368_v48 = vpop.f32.mrb[171].mxu0  ;;  %v3731_v60 = vadd.f32 %v13254_v29, %v17496_v59  ;;  %v13257_v12 = vadd.f32 %v13256_v11, %v13255_v35 }
 0x314   : > { %v13369_v53 = vadd.f32 %v13368_v48, %v13367_v49  ;;  %4139 = vmatmul.mubr.bf16.gmra.mrb[244].mxu1 %v17398_v41  ;;  %v3238_v41 = vrot.slane %v17417_v43, 1 }
 0x315   : > { %4300 = vmatmul.mubr.bf16.gmra.mrb[20].mxu0 %v17383_v15  ;;  %v17537_v28 = vadd.f32 %v13366_v10, %v3731_v60  ;;  %v3734_v0 = vadd.f32 %v13257_v12, %v17496_v59  ;;  %4146 = vmatprep.mubr.bf16.mxu1 %v17423_v57  ;;  %v15264_v60 = vld [vmem:[%s20524_s5 + $0x48] sm:$0xff]  }
 0x316   : > { %4307 = vmatprep.mubr.bf16.mxu0 %v3234_v63  ;;  %v17547_v54 = vsel %vm1242_vm4, %v3238_v41, %v3239_v32  ;;  %v15265_v12 = vld [vmem:[%s20524_s5 + $0x8] sm:$0xff]   ;;  %13698 = vmatprep.subr.bf16.mxu0 %v15264_v60 }
 0x317   : > { %v17541_v36 = vadd.f32 %v13369_v53, %v3734_v0  ;;  %v13258_v61 = vpop.f32.mrb[140].mxu1  ;;  %13699 = vmatpush3.bf16.msra.mxu0 %v15265_v12 }
 0x318   : > { %v13370_v52 = vpop.f32.mrb[172].mxu0  ;;  %v13259_v47 = vpop.f32.mrb[141].mxu1 }
 0x319   : > { %v13371_v30 = vpop.f32.mrb[173].mxu0  ;;  %v13260_v15 = vadd.f32 %v13259_v47, %v13258_v61  ;;  %v13261_v50 = vpop.f32.mrb[142].mxu1 }
 0x31a   : > { %v13372_v39 = vadd.f32 %v13371_v30, %v13370_v52  ;;  %v13373_v21 = vpop.f32.mrb[174].mxu0  ;;  %v13262_v18 = vpop.f32.mrb[143].mxu1 }
 0x31b   : > { %v13374_v34 = vpop.f32.mrb[175].mxu0  ;;  %v3739_v56 = vadd.f32 %v13260_v15, %v17496_v59  ;;  %v13263_v9 = vadd.f32 %v13262_v18, %v13261_v50 }
 0x31c   : > { %v13375_v51 = vadd.f32 %v13374_v34, %v13373_v21  ;;  %4147 = vmatmul.mubr.bf16.gmra.mrb[248].mxu1 %v17412_v5 }
 0x31d   : > { %4308 = vmatmul.mubr.bf16.gmra.mrb[24].mxu0 %v17417_v43  ;;  %v17550_v26 = vadd.f32 %v13372_v39, %v3739_v56  ;;  %v3742_v13 = vadd.f32 %v13263_v9, %v17496_v59  ;;  %4154 = vmatprep.mubr.bf16.mxu1 %v17547_v54 }
 0x31e   : > { %4315 = vmatprep.mubr.bf16.mxu0 %v20520_v19 }
 0x31f   : > { %v17555_v55 = vadd.f32 %v13375_v51, %v3742_v13  ;;  %v13264_v20 = vpop.f32.mrb[144].mxu1 }
 0x320   : > { %v13376_v16 = vpop.f32.mrb[176].mxu0  ;;  %v13265_v22 = vpop.f32.mrb[145].mxu1 }
 0x321   : > { %v13377_v14 = vpop.f32.mrb[177].mxu0  ;;  %v13266_v5 = vadd.f32 %v13265_v22, %v13264_v20  ;;  %v13267_v29 = vpop.f32.mrb[146].mxu1 }
 0x322   : > { %v13378_v35 = vadd.f32 %v13377_v14, %v13376_v16  ;;  %v13379_v10 = vpop.f32.mrb[178].mxu0  ;;  %v13268_v49 = vpop.f32.mrb[147].mxu1 }
 0x323   : > { %v13380_v43 = vpop.f32.mrb[179].mxu0  ;;  %v3747_v11 = vadd.f32 %v13266_v5, %v17496_v59  ;;  %v13269_v48 = vadd.f32 %v13268_v49, %v13267_v29 }
 0x324   : > { %v13381_v45 = vadd.f32 %v13380_v43, %v13379_v10  ;;  %4155 = vmatmul.mubr.bf16.gmra.mrb[252].mxu1 %v3234_v63  ;;  %v15267_v43 = vld [vmem:[%s20524_s5 + $0x10] sm:$0xff]  }
 0x325   : > { %4316 = vmatmul.mubr.bf16.gmra.mrb[28].mxu0 %v20521_v17  ;;  %v17565_v53 = vadd.f32 %v13378_v35, %v3747_v11  ;;  %v3750_v3 = vadd.f32 %v13269_v48, %v17496_v59  ;;  %14863 = vmatprep.mubr.bf16.mxu1 %v17086_v6 }
 0x326   : > { %5628 = vmatprep.mubr.bf16.mxu0 %v20520_v19 }
 0x327   : > { %v17570_v31 = vadd.f32 %v13381_v45, %v3750_v3  ;;  %v13270_v0 = vpop.f32.mrb[148].mxu1 }
 0x328   : > { %v13382_v61 = vpop.f32.mrb[180].mxu0  ;;  %v13271_v52 = vpop.f32.mrb[149].mxu1 }
 0x329   : > { %v13383_v47 = vpop.f32.mrb[181].mxu0  ;;  %v13272_v30 = vadd.f32 %v13271_v52, %v13270_v0  ;;  %v13273_v63 = vpop.f32.mrb[150].mxu1 }
 0x32a   : > { %v13384_v41 = vadd.f32 %v13383_v47, %v13382_v61  ;;  %v13385_v15 = vpop.f32.mrb[182].mxu0  ;;  %v13274_v50 = vpop.f32.mrb[151].mxu1 }
 0x32b   : > { %v13386_v39 = vpop.f32.mrb[183].mxu0  ;;  %v3755_v21 = vadd.f32 %v13272_v30, %v17496_v59  ;;  %v13275_v18 = vadd.f32 %v13274_v50, %v13273_v63 }
 0x32c   : > { %v13387_v6 = vadd.f32 %v13386_v39, %v13385_v15  ;;  %14864 = vmatmul.mubr.bf16.vlgmr.msra.gmra.mrb[0].mxu1 %v17135_v58 }
 0x32d   : > { %v17574_v34 = vadd.f32 %v13384_v41, %v3755_v21  ;;  %v3758_v32 = vadd.f32 %v13275_v18, %v17496_v59  ;;  %14867 = vmatprep.mubr.bf16.mxu1 %v17177_v23  ;;  %v15266_v23 = vld [vmem:[%s20524_s5 + $0x50] sm:$0xff]  }
 0x32e   : > { %13700 = vmatprep.subr.bf16.mxu0 %v15266_v23 }
 0x32f   : > { %v17578_v56 = vadd.f32 %v13387_v6, %v3758_v32  ;;  %v13276_v9 = vpop.f32.mrb[152].mxu1  ;;  %13701 = vmatpush3.bf16.msra.mxu0 %v15267_v43 }
 0x330   : > { %v13388_v51 = vpop.f32.mrb[184].mxu0  ;;  %v13277_v13 = vpop.f32.mrb[153].mxu1 }
 0x331   : > { %v13389_v20 = vpop.f32.mrb[185].mxu0  ;;  %v13278_v16 = vadd.f32 %v13277_v13, %v13276_v9  ;;  %v13279_v22 = vpop.f32.mrb[154].mxu1 }
 0x332   : > { %v13390_v14 = vadd.f32 %v13389_v20, %v13388_v51  ;;  %v13391_v5 = vpop.f32.mrb[186].mxu0  ;;  %v13280_v29 = vpop.f32.mrb[155].mxu1 }
 0x333   : > { %v13392_v35 = vpop.f32.mrb[187].mxu0  ;;  %v3763_v58 = vadd.f32 %v13278_v16, %v17496_v59  ;;  %v13281_v10 = vadd.f32 %v13280_v29, %v13279_v22 }
 0x334   : > { %v13393_v49 = vadd.f32 %v13392_v35, %v13391_v5  ;;  %14868 = vmatmul.mubr.bf16.gmra.mrb[4].mxu1 %v17211_v25  ;;  %v15269_v35 = vld [vmem:[%s20524_s5 + $0x18] sm:$0xff]  }
 0x335   : > { %v17588_v11 = vadd.f32 %v13390_v14, %v3763_v58  ;;  %v3766_v48 = vadd.f32 %v13281_v10, %v17496_v59  ;;  %14871 = vmatprep.mubr.bf16.mxu1 %v17241_v7 }
 0x337   : > { %v17592_v45 = vadd.f32 %v13393_v49, %v3766_v48  ;;  %v13282_v60 = vpop.f32.mrb[156].mxu1 }
 0x338   : > { %v13394_v12 = vpop.f32.mrb[188].mxu0  ;;  %v13283_v3 = vpop.f32.mrb[157].mxu1 }
 0x339   : > { %v13395_v0 = vpop.f32.mrb[189].mxu0  ;;  %v13284_v61 = vadd.f32 %v13283_v3, %v13282_v60  ;;  %v13285_v52 = vpop.f32.mrb[158].mxu1 }
 0x33a   : > { %v13396_v47 = vadd.f32 %v13395_v0, %v13394_v12  ;;  %v13397_v30 = vpop.f32.mrb[190].mxu0  ;;  %v13286_v63 = vpop.f32.mrb[159].mxu1 }
 0x33b   : > { %v13398_v25 = vpop.f32.mrb[191].mxu0  ;;  %v3771_v41 = vadd.f32 %v13284_v61, %v17496_v59  ;;  %v13287_v15 = vadd.f32 %v13286_v63, %v13285_v52 }
 0x33c   : > { %v13399_v50 = vadd.f32 %v13398_v25, %v13397_v30  ;;  %14872 = vmatmul.mubr.bf16.gmra.mrb[8].mxu1 %v17262_v40 }
 0x33d   : > { %v17596_v7 = vadd.f32 %v13396_v47, %v3771_v41  ;;  %v3774_v39 = vadd.f32 %v13287_v15, %v17496_v59  ;;  %14875 = vmatprep.mubr.bf16.mxu1 %v17283_v38  ;;  %v15268_v38 = vld [vmem:[%s20524_s5 + $0x58] sm:$0xff]  }
 0x33e   : > { %13702 = vmatprep.subr.bf16.mxu0 %v15268_v38 }
 0x33f   : > { %v17600_v21 = vadd.f32 %v13399_v50, %v3774_v39  ;;  %v13288_v18 = vpop.f32.mrb[160].mxu1  ;;  %13703 = vmatpush3.bf16.msra.mxu0 %v15269_v35 }
 0x340   : > { %v13400_v6 = vpop.f32.mrb[192].mxu0  ;;  %v13289_v32 = vpop.f32.mrb[161].mxu1 }
 0x341   : > { %v13401_v9 = vpop.f32.mrb[193].mxu0  ;;  %v13290_v51 = vadd.f32 %v13289_v32, %v13288_v18  ;;  %v13291_v13 = vpop.f32.mrb[162].mxu1 }
 0x342   : > { %v13402_v20 = vadd.f32 %v13401_v9, %v13400_v6  ;;  %v13403_v16 = vpop.f32.mrb[194].mxu0  ;;  %v13292_v22 = vpop.f32.mrb[163].mxu1 }
 0x343   : > { %v13404_v14 = vpop.f32.mrb[195].mxu0  ;;  %v3779_v40 = vadd.f32 %v13290_v51, %v17496_v59  ;;  %v13293_v5 = vadd.f32 %v13292_v22, %v13291_v13 }
 0x344   : > { %v13405_v29 = vadd.f32 %v13404_v14, %v13403_v16  ;;  %14876 = vmatmul.mubr.bf16.gmra.mrb[12].mxu1 %v17304_v4  ;;  %v15271_v14 = vld [vmem:[%s20524_s5 + $0x20] sm:$0xff]  }
 0x345   : > { %v17610_v58 = vadd.f32 %v13402_v20, %v3779_v40  ;;  %v3782_v10 = vadd.f32 %v13293_v5, %v17496_v59  ;;  %14879 = vmatprep.mubr.bf16.mxu1 %v17325_v46 }
 0x347   : > { %v17614_v49 = vadd.f32 %v13405_v29, %v3782_v10  ;;  %v13294_v23 = vpop.f32.mrb[164].mxu1 }
 0x348   : > { %v13406_v43 = vpop.f32.mrb[196].mxu0  ;;  %v13295_v48 = vpop.f32.mrb[165].mxu1 }
 0x349   : > { %v13407_v60 = vpop.f32.mrb[197].mxu0  ;;  %v13296_v12 = vadd.f32 %v13295_v48, %v13294_v23  ;;  %v13297_v3 = vpop.f32.mrb[166].mxu1 }
 0x34a   : > { %v13408_v0 = vadd.f32 %v13407_v60, %v13406_v43  ;;  %v13409_v61 = vpop.f32.mrb[198].mxu0  ;;  %v13298_v52 = vpop.f32.mrb[167].mxu1 }
 0x34b   : > { %v13410_v4 = vpop.f32.mrb[199].mxu0  ;;  %v3787_v47 = vadd.f32 %v13296_v12, %v17496_v59  ;;  %v13299_v30 = vadd.f32 %v13298_v52, %v13297_v3 }
 0x34c   : > { %v13411_v63 = vadd.f32 %v13410_v4, %v13409_v61  ;;  %14880 = vmatmul.mubr.bf16.gmra.mrb[16].mxu1 %v17350_v27 }
 0x34d   : > { %v17618_v46 = vadd.f32 %v13408_v0, %v3787_v47  ;;  %v3790_v25 = vadd.f32 %v13299_v30, %v17496_v59  ;;  %14883 = vmatprep.mubr.bf16.mxu1 %v17370_v37  ;;  %v15270_v37 = vld [vmem:[%s20524_s5 + $0x60] sm:$0xff]  }
 0x34e   : > { %13704 = vmatprep.subr.bf16.mxu0 %v15270_v37 }
 0x34f   : > { %v17622_v41 = vadd.f32 %v13411_v63, %v3790_v25  ;;  %v13300_v15 = vpop.f32.mrb[168].mxu1  ;;  %13705 = vmatpush3.bf16.msra.mxu0 %v15271_v14 }
 0x350   : > { %v13412_v50 = vpop.f32.mrb[200].mxu0  ;;  %v13301_v39 = vpop.f32.mrb[169].mxu1 }
 0x351   : > { %v13413_v18 = vpop.f32.mrb[201].mxu0  ;;  %v13302_v6 = vadd.f32 %v13301_v39, %v13300_v15  ;;  %v13303_v32 = vpop.f32.mrb[170].mxu1 }
 0x352   : > { %v13414_v9 = vadd.f32 %v13413_v18, %v13412_v50  ;;  %v13415_v51 = vpop.f32.mrb[202].mxu0  ;;  %v13304_v13 = vpop.f32.mrb[171].mxu1 }
 0x353   : > { %v13416_v20 = vpop.f32.mrb[203].mxu0  ;;  %v3795_v27 = vadd.f32 %v13302_v6, %v17496_v59  ;;  %v13305_v16 = vadd.f32 %v13304_v13, %v13303_v32 }
 0x354   : > { %v13417_v22 = vadd.f32 %v13416_v20, %v13415_v51  ;;  %14884 = vmatmul.mubr.bf16.gmra.mrb[20].mxu1 %v17390_v24  ;;  %v15273_v20 = vld [vmem:[%s20524_s5 + $0x28] sm:$0xff]  }
 0x355   : > { %v17632_v40 = vadd.f32 %v13414_v9, %v3795_v27  ;;  %v3798_v5 = vadd.f32 %v13305_v16, %v17496_v59  ;;  %14887 = vmatprep.mubr.bf16.mxu1 %v17408_v8 }
 0x357   : > { %v17636_v29 = vadd.f32 %v13417_v22, %v3798_v5  ;;  %v13306_v38 = vpop.f32.mrb[172].mxu1 }
 0x358   : > { %v13418_v35 = vpop.f32.mrb[204].mxu0  ;;  %v13307_v10 = vpop.f32.mrb[173].mxu1 }
 0x359   : > { %v13419_v23 = vpop.f32.mrb[205].mxu0  ;;  %v13308_v43 = vadd.f32 %v13307_v10, %v13306_v38  ;;  %v13309_v48 = vpop.f32.mrb[174].mxu1 }
 0x35a   : > { %v13420_v60 = vadd.f32 %v13419_v23, %v13418_v35  ;;  %v13421_v12 = vpop.f32.mrb[206].mxu0  ;;  %v13310_v3 = vpop.f32.mrb[175].mxu1 }
 0x35b   : > { %v13422_v24 = vpop.f32.mrb[207].mxu0  ;;  %v3803_v0 = vadd.f32 %v13308_v43, %v17496_v59  ;;  %v13311_v61 = vadd.f32 %v13310_v3, %v13309_v48 }
 0x35c   : > { %v13423_v52 = vadd.f32 %v13422_v24, %v13421_v12  ;;  %14888 = vmatmul.mubr.bf16.gmra.mrb[24].mxu1 %v17423_v57 }
 0x35d   : > { %v17640_v8 = vadd.f32 %v13420_v60, %v3803_v0  ;;  %v3806_v4 = vadd.f32 %v13311_v61, %v17496_v59  ;;  %14891 = vmatprep.mubr.bf16.mxu1 %v17547_v54  ;;  %v15272_v54 = vld [vmem:[%s20524_s5 + $0x68] sm:$0xff]  }
 0x35e   : > { %13706 = vmatprep.subr.bf16.mxu0 %v15272_v54  ;;  %v15275_v54 = vld [vmem:[%s20524_s5 + $0x30] sm:$0xff]  }
 0x35f   : > { %v17644_v47 = vadd.f32 %v13423_v52, %v3806_v4  ;;  %v13312_v30 = vpop.f32.mrb[176].mxu1  ;;  %13707 = vmatpush3.bf16.msra.mxu0 %v15273_v20  ;;  %v15276_v20 = vld [vmem:[%s20524_s5 + $0xc0] sm:$0xff]  }
 0x360   : > { %v13424_v63 = vpop.f32.mrb[208].mxu0  ;;  %v13313_v25 = vpop.f32.mrb[177].mxu1  ;;  %13808 = vmatprep.subr.bf16.mxu1 %v15276_v20 }
 0x361   : > { %v13425_v15 = vpop.f32.mrb[209].mxu0  ;;  %v13314_v50 = vadd.f32 %v13313_v25, %v13312_v30  ;;  %v13315_v39 = vpop.f32.mrb[178].mxu1 }
 0x362   : > { %v13426_v18 = vadd.f32 %v13425_v15, %v13424_v63  ;;  %v13427_v6 = vpop.f32.mrb[210].mxu0  ;;  %v13316_v32 = vpop.f32.mrb[179].mxu1 }
 0x363   : > { %v13428_v9 = vpop.f32.mrb[211].mxu0  ;;  %v3811_v57 = vadd.f32 %v13314_v50, %v17496_v59  ;;  %v13317_v51 = vadd.f32 %v13316_v32, %v13315_v39 }
 0x364   : > { %v13429_v13 = vadd.f32 %v13428_v9, %v13427_v6  ;;  %14892 = vmatmul.mubr.bf16.gmra.mrb[28].mxu1 %v20522_v1 }
 0x365   : > { %v17654_v27 = vadd.f32 %v13426_v18, %v3811_v57  ;;  %v3814_v16 = vadd.f32 %v13317_v51, %v17496_v59 }
 0x367   : > { %v17657_v22 = vadd.f32 %v13429_v13, %v3814_v16  ;;  %v13318_v37 = vpop.f32.mrb[180].mxu1  ;;  %v15274_v13 = vld [vmem:[%s20524_s5 + $0x70] sm:$0xff]  }
 0x368   : > { %v13430_v14 = vpop.f32.mrb[212].mxu0  ;;  %v13319_v5 = vpop.f32.mrb[181].mxu1  ;;  %13708 = vmatprep.subr.bf16.mxu0 %v15274_v13 }
 0x369   : > { %v13431_v38 = vpop.f32.mrb[213].mxu0  ;;  %v13320_v35 = vadd.f32 %v13319_v5, %v13318_v37  ;;  %v13321_v10 = vpop.f32.mrb[182].mxu1  ;;  %v15278_v5 = vld [vmem:[%s20524_s5 + $0xc8] sm:$0xff]   ;;  %13709 = vmatpush3.bf16.msra.mxu0 %v15275_v54 }
 0x36a   : > { %v13432_v23 = vadd.f32 %v13431_v38, %v13430_v14  ;;  %v13433_v43 = vpop.f32.mrb[214].mxu0  ;;  %v13322_v48 = vpop.f32.mrb[183].mxu1  ;;  %v15277_v14 = vld [vmem:[%s20524_s5 + $0x80] sm:$0xff]  }
 0x36b   : > { %v13434_v60 = vpop.f32.mrb[215].mxu0  ;;  %v3819_v12 = vadd.f32 %v13320_v35, %v17496_v59  ;;  %v13323_v3 = vadd.f32 %v13322_v48, %v13321_v10  ;;  %13809 = vmatpush3.bf16.msra.mxu1 %v15277_v14 }
 0x36c   : > { %v13435_v24 = vadd.f32 %v13434_v60, %v13433_v43  ;;  %13810 = vmatprep.subr.bf16.mxu1 %v15278_v5 }
 0x36d   : > { %v17660_v0 = vadd.f32 %v13432_v23, %v3819_v12  ;;  %v3822_v61 = vadd.f32 %v13323_v3, %v17496_v59  ;;  %v15279_v23 = vld [vmem:[%s20524_s5 + $0x88] sm:$0xff]  }
 0x36f   : > { %v17663_v52 = vadd.f32 %v13435_v24, %v3822_v61  ;;  %v13324_v4 = vpop.f32.mrb[184].mxu1  ;;  %13811 = vmatpush3.bf16.msra.mxu1 %v15279_v23 }
 0x370   : > { %v13436_v30 = vpop.f32.mrb[216].mxu0  ;;  %v13325_v63 = vpop.f32.mrb[185].mxu1 }
 0x371   : > { %v13437_v25 = vpop.f32.mrb[217].mxu0  ;;  %v13326_v15 = vadd.f32 %v13325_v63, %v13324_v4  ;;  %v13327_v50 = vpop.f32.mrb[186].mxu1 }
 0x372   : > { %v13438_v39 = vadd.f32 %v13437_v25, %v13436_v30  ;;  %v13439_v18 = vpop.f32.mrb[218].mxu0  ;;  %v13328_v6 = vpop.f32.mrb[187].mxu1 }
 0x373   : > { %v13440_v32 = vpop.f32.mrb[219].mxu0  ;;  %v3827_v9 = vadd.f32 %v13326_v15, %v17496_v59  ;;  %v13329_v57 = vadd.f32 %v13328_v6, %v13327_v50  ;;  %v15280_v15 = vld [vmem:[%s20524_s5 + $0xd0] sm:$0xff]   ;;  %v15282_v6 = vld [vmem:[%s20524_s5 + $0xd8] sm:$0xff]  }
 0x374   : > { %v13441_v51 = vadd.f32 %v13440_v32, %v13439_v18  ;;  %13812 = vmatprep.subr.bf16.mxu1 %v15280_v15  ;;  %v15281_v18 = vld [vmem:[%s20524_s5 + $0x90] sm:$0xff]  }
 0x375   : > { %v17675_v16 = vadd.f32 %v13438_v39, %v3827_v9  ;;  %v3830_v37 = vadd.f32 %v13329_v57, %v17496_v59  ;;  %13813 = vmatpush3.bf16.msra.mxu1 %v15281_v18 }
 0x376   : > { %13814 = vmatprep.subr.bf16.mxu1 %v15282_v6 }
 0x377   : > { %v17684_v38 = vadd.f32 %v13441_v51, %v3830_v37  ;;  %v13330_v35 = vpop.f32.mrb[188].mxu1  ;;  %v15283_v51 = vld [vmem:[%s20524_s5 + $0x98] sm:$0xff]  }
 0x378   : > { %v13442_v10 = vpop.f32.mrb[220].mxu0  ;;  %v13331_v43 = vpop.f32.mrb[189].mxu1 }
 0x379   : > { %v13443_v48 = vpop.f32.mrb[221].mxu0  ;;  %v13332_v60 = vadd.f32 %v13331_v43, %v13330_v35  ;;  %v13333_v12 = vpop.f32.mrb[190].mxu1  ;;  %13815 = vmatpush3.bf16.msra.mxu1 %v15283_v51  ;;  %v15286_v51 = vld [vmem:[%s20524_s5 + $0xe0] sm:$0xff]  }
 0x37a   : > { %v13444_v3 = vadd.f32 %v13443_v48, %v13442_v10  ;;  %v13445_v24 = vpop.f32.mrb[222].mxu0  ;;  %v13334_v61 = vpop.f32.mrb[191].mxu1  ;;  %v15284_v48 = vld [vmem:[%s20524_s5 + $0x78] sm:$0xff]   ;;  %13816 = vmatprep.subr.bf16.mxu1 %v15286_v51 }
 0x37b   : > { %v13446_v4 = vpop.f32.mrb[223].mxu0  ;;  %v3835_v30 = vadd.f32 %v13332_v60, %v17496_v59  ;;  %v13335_v63 = vadd.f32 %v13334_v61, %v13333_v12  ;;  %13710 = vmatprep.subr.bf16.mxu0 %v15284_v48 }
 0x37c   : > { %v13447_v25 = vadd.f32 %v13446_v4, %v13445_v24 }
 0x37d   : > { %v17693_v50 = vadd.f32 %v13444_v3, %v3835_v30  ;;  %v3838_v39 = vadd.f32 %v13335_v63, %v17496_v59 }
 0x37f   : > { %v17702_v32 = vadd.f32 %v13447_v25, %v3838_v39  ;;  %v13464_v9 = vpop.f32.mrb[192].mxu1 }
 0x380   : > { %v13576_v57 = vpop.f32.mrb[224].mxu0  ;;  %v13465_v13 = vpop.f32.mrb[193].mxu1 }
 0x381   : > { %v13577_v59 = vpop.f32.mrb[225].mxu0  ;;  %v13466_v54 = vadd.f32 %v13465_v13, %v13464_v9  ;;  %v13467_v20 = vpop.f32.mrb[194].mxu1  ;;  %v15287_v13 = vld [vmem:[%s20524_s5 + $0xa0] sm:$0xff]  }
 0x382   : > { %v13578_v37 = vadd.f32 %v13577_v59, %v13576_v57  ;;  %v13579_v14 = vpop.f32.mrb[226].mxu0  ;;  %v13468_v5 = vpop.f32.mrb[195].mxu1  ;;  %13817 = vmatpush3.bf16.msra.mxu1 %v15287_v13 }
 0x383   : > { %v13580_v35 = vpop.f32.mrb[227].mxu0  ;;  %v4037_v10 = vadd.f32 %v13466_v54, %v17504_v42  ;;  %v13469_v23 = vadd.f32 %v13468_v5, %v13467_v20  ;;  %v15289_v5 = vld [vmem:[%s20524_s5 + $0xa8] sm:$0xff]  }
 0x384   : > { %v13581_v43 = vadd.f32 %v13580_v35, %v13579_v14 }
 0x385   : > { %v4040_v60 = vadd.f32 %v13469_v23, %v17508_v44  ;;  %v17712_v12 = vadd.f32 %v13578_v37, %v4037_v10  ;;  %v15285_v44 = vld [vmem:[%s20524_s5 + $0x38] sm:$0xff]  }
 0x386   : > { %13711 = vmatpush3.bf16.msra.mxu0 %v15285_v44 }
 0x387   : > { %v13470_v3 = vpop.f32.mrb[196].mxu1  ;;  %v17714_v61 = vadd.f32 %v13581_v43, %v4040_v60 }
 0x388   : > { %v13582_v24 = vpop.f32.mrb[228].mxu0  ;;  %v13471_v4 = vpop.f32.mrb[197].mxu1 }
 0x389   : > { %v13583_v30 = vpop.f32.mrb[229].mxu0  ;;  %v13472_v63 = vadd.f32 %v13471_v4, %v13470_v3  ;;  %v13473_v42 = vpop.f32.mrb[198].mxu1  ;;  %5629 = vmatmul.mubr.bf16.vlgmr.msra.gmra.mrb[32].mxu0 %v20521_v17 }
 0x38a   : > { %v13584_v25 = vadd.f32 %v13583_v30, %v13582_v24  ;;  %v13585_v15 = vpop.f32.mrb[230].mxu0  ;;  %v13474_v39 = vpop.f32.mrb[199].mxu1 }
 0x38b   : > { %v13586_v18 = vpop.f32.mrb[231].mxu0  ;;  %v4045_v6 = vadd.f32 %v13472_v63, %v17519_v2  ;;  %v13475_v9 = vadd.f32 %v13474_v39, %v13473_v42  ;;  %v15288_v2 = vld [vmem:[%s20524_s5 + $0xe8] sm:$0xff]   ;;  %v15290_v63 = vld [vmem:[%s20524_s5 + $0xf0] sm:$0xff]   ;;  %v15292_v39 = vld [vmem:[%s20524_s5 + $0xf8] sm:$0xff]  }
 0x38c   : > { %v13587_v57 = vadd.f32 %v13586_v18, %v13585_v15  ;;  %13818 = vmatprep.subr.bf16.mxu1 %v15288_v2  ;;  %v15291_v15 = vld [vmem:[%s20524_s5 + $0xb0] sm:$0xff]  }
 0x38d   : > { %v4048_v59 = vadd.f32 %v13475_v9, %v17525_v62  ;;  %v17727_v54 = vadd.f32 %v13584_v25, %v4045_v6  ;;  %13819 = vmatpush3.bf16.msra.mxu1 %v15289_v5 }
 0x38e   : > { %13820 = vmatprep.subr.bf16.mxu1 %v15290_v63 }
 0x38f   : > { %v13476_v20 = vpop.f32.mrb[200].mxu1  ;;  %v17732_v14 = vadd.f32 %v13587_v57, %v4048_v59 }
 0x390   : > { %v13588_v37 = vpop.f32.mrb[232].mxu0  ;;  %v13477_v35 = vpop.f32.mrb[201].mxu1 }
 0x391   : > { %v13589_v10 = vpop.f32.mrb[233].mxu0  ;;  %v13478_v62 = vadd.f32 %v13477_v35, %v13476_v20  ;;  %v13479_v23 = vpop.f32.mrb[202].mxu1  ;;  %13821 = vmatpush3.bf16.msra.mxu1 %v15291_v15 }
 0x392   : > { %v13590_v43 = vadd.f32 %v13589_v10, %v13588_v37  ;;  %v13591_v48 = vpop.f32.mrb[234].mxu0  ;;  %v13480_v60 = vpop.f32.mrb[203].mxu1  ;;  %13822 = vmatprep.subr.bf16.mxu1 %v15292_v39 }
 0x393   : > { %v13592_v3 = vpop.f32.mrb[235].mxu0  ;;  %v4053_v24 = vadd.f32 %v13478_v62, %v17537_v28  ;;  %v13481_v4 = vadd.f32 %v13480_v60, %v13479_v23  ;;  %v15294_v28 = vld [vmem:[%s20524_s5 + $0x140] sm:$0xff]  }
 0x394   : > { %v13593_v30 = vadd.f32 %v13592_v3, %v13591_v48  ;;  %13920 = vmatprep.subr.bf16.mxu0 %v15294_v28  ;;  %v15295_v62 = vld [vmem:[%s20524_s5 + $0x100] sm:$0xff]  }
 0x395   : > { %v4056_v42 = vadd.f32 %v13481_v4, %v17541_v36  ;;  %v17743_v25 = vadd.f32 %v13590_v43, %v4053_v24  ;;  %v15293_v36 = vld [vmem:[%s20524_s5 + $0xb8] sm:$0xff]   ;;  %13921 = vmatpush3.bf16.msra.mxu0 %v15295_v62 }
 0x396   : > { %13823 = vmatpush3.bf16.msra.mxu1 %v15293_v36 }
 0x397   : > { %v13482_v18 = vpop.f32.mrb[204].mxu1  ;;  %v17754_v9 = vadd.f32 %v13593_v30, %v4056_v42 }
 0x398   : > { %v13594_v6 = vpop.f32.mrb[236].mxu0  ;;  %v13483_v57 = vpop.f32.mrb[205].mxu1 }
 0x399   : > { %v13595_v44 = vpop.f32.mrb[237].mxu0  ;;  %v13484_v51 = vadd.f32 %v13483_v57, %v13482_v18  ;;  %v13485_v13 = vpop.f32.mrb[206].mxu1  ;;  %v15296_v57 = vld [vmem:[%s20524_s5 + $0x148] sm:$0xff]  }
 0x39a   : > { %v13596_v59 = vadd.f32 %v13595_v44, %v13594_v6  ;;  %v13597_v2 = vpop.f32.mrb[238].mxu0  ;;  %v13486_v20 = vpop.f32.mrb[207].mxu1  ;;  %13922 = vmatprep.subr.bf16.mxu0 %v15296_v57 }
 0x39b   : > { %v13598_v37 = vpop.f32.mrb[239].mxu0  ;;  %v4061_v5 = vadd.f32 %v13484_v51, %v17550_v26  ;;  %v13487_v35 = vadd.f32 %v13486_v20, %v13485_v13 }
 0x39c   : > { %v13599_v10 = vadd.f32 %v13598_v37, %v13597_v2 }
 0x39d   : > { %v4064_v23 = vadd.f32 %v13487_v35, %v17555_v55  ;;  %v17764_v43 = vadd.f32 %v13596_v59, %v4061_v5 }
 0x39f   : > { %v13488_v48 = vpop.f32.mrb[208].mxu1  ;;  %v17766_v3 = vadd.f32 %v13599_v10, %v4064_v23 }
 0x3a0   : > { %v13600_v60 = vpop.f32.mrb[240].mxu0  ;;  %v13489_v24 = vpop.f32.mrb[209].mxu1 }
 0x3a1   : > { %v13601_v4 = vpop.f32.mrb[241].mxu0  ;;  %v13490_v30 = vadd.f32 %v13489_v24, %v13488_v48  ;;  %v13491_v26 = vpop.f32.mrb[210].mxu1  ;;  %v15297_v48 = vld [vmem:[%s20524_s5 + $0x108] sm:$0xff]  }
 0x3a2   : > { %v13602_v63 = vadd.f32 %v13601_v4, %v13600_v60  ;;  %v13603_v42 = vpop.f32.mrb[242].mxu0  ;;  %v13492_v15 = vpop.f32.mrb[211].mxu1  ;;  %13923 = vmatpush3.bf16.msra.mxu0 %v15297_v48 }
 0x3a3   : > { %v13604_v39 = vpop.f32.mrb[243].mxu0  ;;  %v4069_v28 = vadd.f32 %v13490_v30, %v17565_v53  ;;  %v13493_v18 = vadd.f32 %v13492_v15, %v13491_v26 }
 0x3a4   : > { %v13605_v6 = vadd.f32 %v13604_v39, %v13603_v42 }
 0x3a5   : > { %v4072_v55 = vadd.f32 %v13493_v18, %v17570_v31  ;;  %v17770_v36 = vadd.f32 %v13602_v63, %v4069_v28 }
 0x3a7   : > { %v13494_v44 = vpop.f32.mrb[212].mxu1  ;;  %v17775_v13 = vadd.f32 %v13605_v6, %v4072_v55 }
 0x3a8   : > { %v13606_v51 = vpop.f32.mrb[244].mxu0  ;;  %v13495_v59 = vpop.f32.mrb[213].mxu1 }
 0x3a9   : > { %v13607_v2 = vpop.f32.mrb[245].mxu0  ;;  %v13496_v20 = vadd.f32 %v13495_v59, %v13494_v44  ;;  %v13497_v37 = vpop.f32.mrb[214].mxu1  ;;  %v15298_v59 = vld [vmem:[%s20524_s5 + $0x150] sm:$0xff]  }
 0x3aa   : > { %v13608_v53 = vadd.f32 %v13607_v2, %v13606_v51  ;;  %v13609_v5 = vpop.f32.mrb[246].mxu0  ;;  %v13498_v35 = vpop.f32.mrb[215].mxu1  ;;  %13924 = vmatprep.subr.bf16.mxu0 %v15298_v59 }
 0x3ab   : > { %v13610_v10 = vpop.f32.mrb[247].mxu0  ;;  %v4077_v31 = vadd.f32 %v13496_v20, %v17574_v34  ;;  %v13499_v62 = vadd.f32 %v13498_v35, %v13497_v37 }
 0x3ac   : > { %v13611_v23 = vadd.f32 %v13610_v10, %v13609_v5 }
 0x3ad   : > { %v4080_v60 = vadd.f32 %v13499_v62, %v17578_v56  ;;  %v17782_v24 = vadd.f32 %v13608_v53, %v4077_v31 }
 0x3af   : > { %v13500_v4 = vpop.f32.mrb[216].mxu1  ;;  %v17784_v26 = vadd.f32 %v13611_v23, %v4080_v60 }
 0x3b0   : > { %v13612_v30 = vpop.f32.mrb[248].mxu0  ;;  %v13501_v63 = vpop.f32.mrb[217].mxu1 }
 0x3b1   : > { %v13613_v42 = vpop.f32.mrb[249].mxu0  ;;  %v13502_v15 = vadd.f32 %v13501_v63, %v13500_v4  ;;  %v13503_v39 = vpop.f32.mrb[218].mxu1  ;;  %v15299_v4 = vld [vmem:[%s20524_s5 + $0x110] sm:$0xff]  }
 0x3b2   : > { %v13614_v34 = vadd.f32 %v13613_v42, %v13612_v30  ;;  %v13615_v28 = vpop.f32.mrb[250].mxu0  ;;  %v13504_v18 = vpop.f32.mrb[219].mxu1  ;;  %13925 = vmatpush3.bf16.msra.mxu0 %v15299_v4 }
 0x3b3   : > { %v13616_v6 = vpop.f32.mrb[251].mxu0  ;;  %v4085_v55 = vadd.f32 %v13502_v15, %v17588_v11  ;;  %v13505_v57 = vadd.f32 %v13504_v18, %v13503_v39 }
 0x3b4   : > { %v13617_v44 = vadd.f32 %v13616_v6, %v13615_v28 }
 0x3b5   : > { %v4088_v56 = vadd.f32 %v13505_v57, %v17592_v45  ;;  %v17788_v51 = vadd.f32 %v13614_v34, %v4085_v55 }
 0x3b7   : > { %v13506_v2 = vpop.f32.mrb[220].mxu1  ;;  %v17793_v37 = vadd.f32 %v13617_v44, %v4088_v56 }
 0x3b8   : > { %v13618_v20 = vpop.f32.mrb[252].mxu0  ;;  %v13507_v53 = vpop.f32.mrb[221].mxu1 }
 0x3b9   : > { %v13619_v5 = vpop.f32.mrb[253].mxu0  ;;  %v13508_v35 = vadd.f32 %v13507_v53, %v13506_v2  ;;  %v13509_v10 = vpop.f32.mrb[222].mxu1  ;;  %v15300_v53 = vld [vmem:[%s20524_s5 + $0x158] sm:$0xff]  }
 0x3ba   : > { %v13620_v11 = vadd.f32 %v13619_v5, %v13618_v20  ;;  %v13621_v31 = vpop.f32.mrb[254].mxu0  ;;  %v13510_v62 = vpop.f32.mrb[223].mxu1  ;;  %v15301_v5 = vld [vmem:[%s20524_s5 + $0x118] sm:$0xff]   ;;  %13926 = vmatprep.subr.bf16.mxu0 %v15300_v53 }
 0x3bb   : > { %v13622_v23 = vpop.f32.mrb[255].mxu0  ;;  %v4093_v45 = vadd.f32 %v13508_v35, %v17596_v7  ;;  %v13511_v48 = vadd.f32 %v13510_v62, %v13509_v10  ;;  %13927 = vmatpush3.bf16.msra.mxu0 %v15301_v5 }
 0x3bc   : > { %v13623_v60 = vadd.f32 %v13622_v23, %v13621_v31 }
 0x3bd   : > { %v4096_v30 = vadd.f32 %v13511_v48, %v17600_v21  ;;  %v17800_v63 = vadd.f32 %v13620_v11, %v4093_v45 }
 0x3bf   : > { %v13512_v42 = vpop.f32.mrb[224].mxu1  ;;  %v17802_v39 = vadd.f32 %v13623_v60, %v4096_v30 }
 0x3c0   : > { %v13624_v15 = vpop.f32.mrb[0].mxu0  ;;  %v13513_v34 = vpop.f32.mrb[225].mxu1 }
 0x3c1   : > { %v13625_v28 = vpop.f32.mrb[1].mxu0  ;;  %v13514_v18 = vadd.f32 %v13513_v34, %v13512_v42  ;;  %v13515_v6 = vpop.f32.mrb[226].mxu1 }
 0x3c2   : > { %v13626_v7 = vadd.f32 %v13625_v28, %v13624_v15  ;;  %v13627_v55 = vpop.f32.mrb[2].mxu0  ;;  %v13516_v57 = vpop.f32.mrb[227].mxu1 }
 0x3c3   : > { %v13628_v44 = vpop.f32.mrb[3].mxu0  ;;  %v4101_v56 = vadd.f32 %v13514_v18, %v17610_v58  ;;  %v13517_v59 = vadd.f32 %v13516_v57, %v13515_v6 }
 0x3c4   : > { %v13629_v2 = vadd.f32 %v13628_v44, %v13627_v55 }
 0x3c5   : > { %v4104_v21 = vadd.f32 %v13517_v59, %v17614_v49  ;;  %v17806_v20 = vadd.f32 %v13626_v7, %v4101_v56 }
 0x3c7   : > { %v13518_v35 = vpop.f32.mrb[228].mxu1  ;;  %v17814_v11 = vadd.f32 %v13629_v2, %v4104_v21 }
 0x3c8   : > { %v13630_v10 = vpop.f32.mrb[4].mxu0  ;;  %v13519_v58 = vpop.f32.mrb[229].mxu1 }
 0x3c9   : > { %v13631_v31 = vpop.f32.mrb[5].mxu0  ;;  %v13520_v62 = vadd.f32 %v13519_v58, %v13518_v35  ;;  %v13521_v49 = vpop.f32.mrb[230].mxu1  ;;  %v15303_v35 = vld [vmem:[%s20524_s5 + $0x120] sm:$0xff]  }
 0x3ca   : > { %v13632_v23 = vadd.f32 %v13631_v31, %v13630_v10  ;;  %v13633_v45 = vpop.f32.mrb[6].mxu0  ;;  %v13522_v48 = vpop.f32.mrb[231].mxu1 }
 0x3cb   : > { %v13634_v60 = vpop.f32.mrb[7].mxu0  ;;  %v4109_v4 = vadd.f32 %v13520_v62, %v17618_v46  ;;  %v13523_v30 = vadd.f32 %v13522_v48, %v13521_v49  ;;  %v15302_v46 = vld [vmem:[%s20524_s5 + $0x160] sm:$0xff]  }
 0x3cc   : > { %v13635_v42 = vadd.f32 %v13634_v60, %v13633_v45  ;;  %13928 = vmatprep.subr.bf16.mxu0 %v15302_v46 }
 0x3cd   : > { %v4112_v15 = vadd.f32 %v13523_v30, %v17622_v41  ;;  %v17818_v34 = vadd.f32 %v13632_v23, %v4109_v4  ;;  %13929 = vmatpush3.bf16.msra.mxu0 %v15303_v35  ;;  %v15306_v35 = vld [vmem:[%s20524_s5 + $0x168] sm:$0xff]  }
 0x3ce   : > { %13930 = vmatprep.subr.bf16.mxu0 %v15306_v35 }
 0x3cf   : > { %v13524_v28 = vpop.f32.mrb[232].mxu1  ;;  %v17820_v6 = vadd.f32 %v13635_v42, %v4112_v15 }
 0x3d0   : > { %v13636_v18 = vpop.f32.mrb[8].mxu0  ;;  %v13525_v7 = vpop.f32.mrb[233].mxu1 }
 0x3d1   : > { %v13637_v55 = vpop.f32.mrb[9].mxu0  ;;  %v13526_v57 = vadd.f32 %v13525_v7, %v13524_v28  ;;  %v13527_v44 = vpop.f32.mrb[234].mxu1 }
 0x3d2   : > { %v13638_v56 = vadd.f32 %v13637_v55, %v13636_v18  ;;  %v13639_v59 = vpop.f32.mrb[10].mxu0  ;;  %v13528_v2 = vpop.f32.mrb[235].mxu1 }
 0x3d3   : > { %v13640_v21 = vpop.f32.mrb[11].mxu0  ;;  %v4117_v41 = vadd.f32 %v13526_v57, %v17632_v40  ;;  %v13529_v53 = vadd.f32 %v13528_v2, %v13527_v44 }
 0x3d4   : > { %v13641_v5 = vadd.f32 %v13640_v21, %v13639_v59 }
 0x3d5   : > { %v4120_v10 = vadd.f32 %v13529_v53, %v17636_v29  ;;  %v17830_v58 = vadd.f32 %v13638_v56, %v4117_v41  ;;  %v15304_v29 = vld [vmem:[%s20524_s5 + $0x1c0] sm:$0xff]  }
 0x3d6   : > { %14032 = vmatprep.subr.bf16.mxu1 %v15304_v29 }
 0x3d7   : > { %v13530_v31 = vpop.f32.mrb[236].mxu1  ;;  %v17832_v49 = vadd.f32 %v13641_v5, %v4120_v10 }
 0x3d8   : > { %v13642_v62 = vpop.f32.mrb[12].mxu0  ;;  %v13531_v23 = vpop.f32.mrb[237].mxu1 }
 0x3d9   : > { %v13643_v45 = vpop.f32.mrb[13].mxu0  ;;  %v13532_v48 = vadd.f32 %v13531_v23, %v13530_v31  ;;  %v13533_v40 = vpop.f32.mrb[238].mxu1 }
 0x3da   : > { %v13644_v60 = vadd.f32 %v13643_v45, %v13642_v62  ;;  %v13645_v4 = vpop.f32.mrb[14].mxu0  ;;  %v13534_v30 = vpop.f32.mrb[239].mxu1  ;;  %v15307_v62 = vld [vmem:[%s20524_s5 + $0x128] sm:$0xff]  }
 0x3db   : > { %v13646_v42 = vpop.f32.mrb[15].mxu0  ;;  %v4125_v15 = vadd.f32 %v13532_v48, %v17640_v8  ;;  %v13535_v28 = vadd.f32 %v13534_v30, %v13533_v40  ;;  %13931 = vmatpush3.bf16.msra.mxu0 %v15307_v62 }
 0x3dc   : > { %v13647_v18 = vadd.f32 %v13646_v42, %v13645_v4 }
 0x3dd   : > { %v4128_v7 = vadd.f32 %v13535_v28, %v17644_v47  ;;  %v17839_v55 = vadd.f32 %v13644_v60, %v4125_v15 }
 0x3df   : > { %v13536_v57 = vpop.f32.mrb[240].mxu1  ;;  %v17841_v56 = vadd.f32 %v13647_v18, %v4128_v7 }
 0x3e0   : > { %v13648_v44 = vpop.f32.mrb[16].mxu0  ;;  %v13537_v59 = vpop.f32.mrb[241].mxu1 }
 0x3e1   : > { %v13649_v2 = vpop.f32.mrb[17].mxu0  ;;  %v13538_v21 = vadd.f32 %v13537_v59, %v13536_v57  ;;  %v13539_v46 = vpop.f32.mrb[242].mxu1 }
 0x3e2   : > { %v13650_v8 = vadd.f32 %v13649_v2, %v13648_v44  ;;  %v13651_v41 = vpop.f32.mrb[18].mxu0  ;;  %v13540_v53 = vpop.f32.mrb[243].mxu1 }
 0x3e3   : > { %v13652_v5 = vpop.f32.mrb[19].mxu0  ;;  %v4133_v47 = vadd.f32 %v13538_v21, %v17654_v27  ;;  %v13541_v10 = vadd.f32 %v13540_v53, %v13539_v46 }
 0x3e4   : > { %v13653_v31 = vadd.f32 %v13652_v5, %v13651_v41 }
 0x3e5   : > { %v4136_v23 = vadd.f32 %v13541_v10, %v17657_v22  ;;  %v17851_v45 = vadd.f32 %v13650_v8, %v4133_v47 }
 0x3e7   : > { %v13542_v48 = vpop.f32.mrb[244].mxu1  ;;  %v17853_v60 = vadd.f32 %v13653_v31, %v4136_v23 }
 0x3e8   : > { %v13654_v40 = vpop.f32.mrb[20].mxu0  ;;  %v13543_v4 = vpop.f32.mrb[245].mxu1 }
 0x3e9   : > { %v13655_v30 = vpop.f32.mrb[21].mxu0  ;;  %v13544_v42 = vadd.f32 %v13543_v4, %v13542_v48  ;;  %v13545_v27 = vpop.f32.mrb[246].mxu1  ;;  %v15311_v48 = vld [vmem:[%s20524_s5 + $0x130] sm:$0xff]  }
 0x3ea   : > { %v13656_v15 = vadd.f32 %v13655_v30, %v13654_v40  ;;  %v13657_v28 = vpop.f32.mrb[22].mxu0  ;;  %v13546_v18 = vpop.f32.mrb[247].mxu1 }
 0x3eb   : > { %v13658_v29 = vpop.f32.mrb[23].mxu0  ;;  %v4141_v7 = vadd.f32 %v13544_v42, %v17660_v0  ;;  %v13547_v57 = vadd.f32 %v13546_v18, %v13545_v27  ;;  %v15310_v0 = vld [vmem:[%s20524_s5 + $0x170] sm:$0xff]  }
 0x3ec   : > { %v13659_v44 = vadd.f32 %v13658_v29, %v13657_v28  ;;  %13932 = vmatprep.subr.bf16.mxu0 %v15310_v0 }
 0x3ed   : > { %v4144_v22 = vadd.f32 %v13547_v57, %v17663_v52  ;;  %v17857_v59 = vadd.f32 %v13656_v15, %v4141_v7  ;;  %13933 = vmatpush3.bf16.msra.mxu0 %v15311_v48 }
 0x3ef   : > { %v13548_v2 = vpop.f32.mrb[248].mxu1  ;;  %v17859_v46 = vadd.f32 %v13659_v44, %v4144_v22 }
 0x3f0   : > { %v13660_v21 = vpop.f32.mrb[24].mxu0  ;;  %v13549_v8 = vpop.f32.mrb[249].mxu1 }
 0x3f1   : > { %v13661_v41 = vpop.f32.mrb[25].mxu0  ;;  %v13550_v53 = vadd.f32 %v13549_v8, %v13548_v2  ;;  %v13551_v5 = vpop.f32.mrb[250].mxu1 }
 0x3f2   : > { %v13662_v35 = vadd.f32 %v13661_v41, %v13660_v21  ;;  %v13663_v47 = vpop.f32.mrb[26].mxu0  ;;  %v13552_v10 = vpop.f32.mrb[251].mxu1 }
 0x3f3   : > { %v13664_v31 = vpop.f32.mrb[27].mxu0  ;;  %v4149_v52 = vadd.f32 %v13550_v53, %v17675_v16  ;;  %v13553_v62 = vadd.f32 %v13552_v10, %v13551_v5 }
 0x3f4   : > { %v13665_v23 = vadd.f32 %v13664_v31, %v13663_v47 }
 0x3f5   : > { %v4152_v40 = vadd.f32 %v13553_v62, %v17684_v38  ;;  %v17869_v4 = vadd.f32 %v13662_v35, %v4149_v52  ;;  %v15317_v52 = vld [vmem:[%s20524_s5 + $0x138] sm:$0xff]  }
 0x3f7   : > { %v13554_v30 = vpop.f32.mrb[252].mxu1  ;;  %v17871_v27 = vadd.f32 %v13665_v23, %v4152_v40 }
 0x3f8   : > { %v13666_v42 = vpop.f32.mrb[28].mxu0  ;;  %v13555_v15 = vpop.f32.mrb[253].mxu1 }
 0x3f9   : > { %v13667_v28 = vpop.f32.mrb[29].mxu0  ;;  %v13556_v18 = vadd.f32 %v13555_v15, %v13554_v30  ;;  %v13557_v16 = vpop.f32.mrb[254].mxu1 }
 0x3fa   : > { %v13668_v29 = vadd.f32 %v13667_v28, %v13666_v42  ;;  %v13669_v7 = vpop.f32.mrb[30].mxu0  ;;  %v13558_v57 = vpop.f32.mrb[255].mxu1 }
 0x3fb   : > { %v13670_v44 = vpop.f32.mrb[31].mxu0  ;;  %v4157_v22 = vadd.f32 %v13556_v18, %v17693_v50  ;;  %v13559_v2 = vadd.f32 %v13558_v57, %v13557_v16  ;;  %v15316_v50 = vld [vmem:[%s20524_s5 + $0x178] sm:$0xff]  }
 0x3fc   : > { %v13671_v21 = vadd.f32 %v13670_v44, %v13669_v7  ;;  %13934 = vmatprep.subr.bf16.mxu0 %v15316_v50 }
 0x3fd   : > { %v4160_v38 = vadd.f32 %v13559_v2, %v17702_v32  ;;  %v17875_v8 = vadd.f32 %v13668_v29, %v4157_v22  ;;  %13935 = vmatpush3.bf16.msra.mxu0 %v15317_v52 }
 0x3ff   : > { %v14865_v41 = vpop.f32.mrb[0].mxu1  ;;  %v17877_v53 = vadd.f32 %v13671_v21, %v4160_v38 }
 0x400   : > { %v4367_v5 = vadd.f32 %v14865_v41, %v17727_v54  ;;  %v4358_v35 = vpop.f32.mrb[1].mxu1 }
 0x401   : > { %v4359_v47 = vadd.f32 %v4358_v35, %v17712_v12  ;;  %v14866_v10 = vpop.f32.mrb[2].mxu1 }
 0x402   : > { %v4370_v31 = vadd.f32 %v14866_v10, %v17732_v14  ;;  %v4361_v0 = vpop.f32.mrb[3].mxu1  ;;  %v4487_v62 = vmax.f32 %v4367_v5, 0.0 }
 0x403   : > { %v4362_v32 = vadd.f32 %v4361_v0, %v17714_v61  ;;  %v4485_v54 = vmax.f32 %v4359_v47, 0.0 }
 0x404   : > { %v4488_v23 = vmax.f32 %v4370_v31, 0.0 }
 0x405   : > { %v4486_v48 = vmax.f32 %v4362_v32, 0.0  ;;  %v15308_v32 = vld [vmem:[%s20524_s5 + $0x1c8] sm:$0xff]  }
 0x406   : > { %v4518_v12 = vpack.c.bf16 %v4488_v23, %v4487_v62 }
 0x407   : > { %v4517_v40 = vpack.c.bf16 %v4486_v48, %v4485_v54  ;;  %v14869_v14 = vpop.f32.mrb[4].mxu1 }
 0x408   : > { %v4686_v30 = vshrl.u32 %v4518_v12, 16  ;;  %v4383_v42 = vadd.f32 %v14869_v14, %v17764_v43  ;;  %v4374_v15 = vpop.f32.mrb[5].mxu1  ;;  %v4689_v29 = vshll.u32 %v4518_v12, 16 }
 0x409   : > { %v4679_v28 = vshrl.u32 %v4517_v40, 16  ;;  %v4375_v61 = vadd.f32 %v4374_v15, %v17743_v25  ;;  %v14870_v18 = vpop.f32.mrb[6].mxu1  ;;  %v4682_v22 = vshll.u32 %v4517_v40, 16 }
 0x40a   : > { %v4688_v16 = vrot.slane %v4686_v30, 7  ;;  %v4386_v7 = vadd.f32 %v14870_v18, %v17766_v3  ;;  %v4377_v57 = vpop.f32.mrb[7].mxu1  ;;  %v4491_v38 = vmax.f32 %v4383_v42, 0.0 }
 0x40b   : > { %v4681_v44 = vrot.slane %v4679_v28, 7  ;;  %v4378_v2 = vadd.f32 %v4377_v57, %v17754_v9  ;;  %v4489_v41 = vmax.f32 %v4375_v61, 0.0  ;;  %v15305_v9 = vld [vmem:[%s20524_s5 + $0x180] sm:$0xff]  }
 0x40c   : > { %v4691_v21 = vor.u32 %v4689_v29, %v4688_v16  ;;  %v4492_v5 = vmax.f32 %v4386_v7, 0.0  ;;  %v17897_v25 = vsel %vm15960_vm2, %v4688_v16, 0  ;;  %v15309_v16 = vld [vmem:[%s20524_s5 + $0x188] sm:$0xff]  }
 0x40d   : > { %v4490_v35 = vmax.f32 %v4378_v2, 0.0  ;;  %v4684_v43 = vor.u32 %v4682_v22, %v4681_v44  ;;  %v4838_v47 = vsel %vm15960_vm2, %v4681_v44, 0  ;;  %v4874_v48 = vshll.u32 %v17897_v25, 16  ;;  %v15312_v44 = vld [vmem:[%s20524_s5 + $0x1d0] sm:$0xff]  }
 0x40e   : > { %v17899_v10 = vpack.c.bf16 %v4492_v5, %v4491_v38  ;;  %v17903_v3 = vsel %vm15960_vm2, 0, %v4691_v21  ;;  %v4862_v23 = vshll.u32 %v4838_v47, 16  ;;  %v5080_v42 = vrot.slane %v4838_v47, 1 }
 0x40f   : > { %v4519_v31 = vpack.c.bf16 %v4490_v35, %v4489_v41  ;;  %v14873_v0 = vpop.f32.mrb[8].mxu1  ;;  %v4822_v50 = vsel %vm15960_vm2, 0, %v4684_v43  ;;  %v4869_v54 = vshll.u32 %v17903_v3, 16  ;;  %v4867_v18 = vshrl.u32 %v17903_v3, 16 }
 0x410   : > { %v4399_v52 = vadd.f32 %v14873_v0, %v17782_v24  ;;  %v4390_v62 = vpop.f32.mrb[9].mxu1  ;;  %5773 = vmatprep.mubr.bf16.mxu1 %v4822_v50  ;;  %v4700_v12 = vshrl.u32 %v17899_v10, 16  ;;  %v5079_v15 = vrot.slane %v4822_v50, 1  ;;  %v4857_v61 = vshll.u32 %v4822_v50, 16 }
 0x411   : > { %v4693_v40 = vshrl.u32 %v4519_v31, 16  ;;  %v4391_v14 = vadd.f32 %v4390_v62, %v17770_v36  ;;  %v14874_v30 = vpop.f32.mrb[10].mxu1  ;;  %5774 = vmatmul.mubr.bf16.vlgmr.msra.gmra.mrb[32].mxu1 %v20522_v1  ;;  %v17928_v36 = vld [vmem:[%s20524_s5 + $0x200] sm:$0xff]   ;;  %v4696_v7 = vshll.u32 %v4519_v31, 16  ;;  %v4855_v57 = vshrl.u32 %v4822_v50, 16 }
 0x412   : > { %v4402_v28 = vadd.f32 %v14874_v30, %v17784_v26  ;;  %v4393_v24 = vpop.f32.mrb[11].mxu1  ;;  %5781 = vmatprep.mubr.bf16.mxu1 %v17903_v3  ;;  %14033 = vmatpush3.bf16.msra.mxu1 %v15305_v9  ;;  %v4495_v22 = vmax.f32 %v4399_v52, 0.0  ;;  %v4859_v21 = vrot.slane %v4857_v61, 1  ;;  %v4871_v38 = vrot.slane %v4869_v54, 1  ;;  %v15313_v54 = vld [vmem:[%s20524_s5 + $0x190] sm:$0xff]  }
 0x413   : > { %v4695_v29 = vrot.slane %v4693_v40, 7  ;;  %v4394_v26 = vadd.f32 %v4393_v24, %v17775_v13  ;;  %14034 = vmatprep.subr.bf16.mxu1 %v15308_v32  ;;  %14895 = vmatprep.subr.bf16.mxu0 %v17928_v36  ;;  %v17935_v41 = vrot.slane %v4700_v12, 7  ;;  %v4493_v35 = vmax.f32 %v4391_v14, 0.0 }
 0x414   : > { %v4496_v2 = vmax.f32 %v4402_v28, 0.0  ;;  %v4860_v13 = vor.u32 %v4859_v21, %v4855_v57  ;;  %v4864_v9 = vrot.slane %v4862_v23, 1  ;;  %v4872_v31 = vor.u32 %v4871_v38, %v4867_v18 }
 0x415   : > { %v4698_v5 = vor.u32 %v4696_v7, %v4695_v29  ;;  %v4494_v43 = vmax.f32 %v4394_v26, 0.0  ;;  %v4703_v0 = vshll.u32 %v17899_v10, 16  ;;  %v4876_v62 = vrot.slane %v4874_v48, 1  ;;  %v15314_v48 = vld [vmem:[%s20524_s5 + $0x1d8] sm:$0xff]  }
 0x416   : > { %v17937_v47 = vpack.c.bf16 %v4496_v2, %v4495_v22  ;;  %14035 = vmatpush3.bf16.msra.mxu1 %v15309_v16  ;;  %v17945_v40 = vsel %vm1001_vm5, %v4860_v13, %v4864_v9  ;;  %v17948_v23 = vsel %vm1242_vm4, %v5079_v15, %v5080_v42  ;;  %v17962_v42 = vsel %vm15960_vm2, %v4695_v29, 0 }
 0x417   : > { %v4521_v32 = vpack.c.bf16 %v4494_v43, %v4493_v35  ;;  %v14877_v52 = vpop.f32.mrb[12].mxu1  ;;  %14036 = vmatprep.subr.bf16.mxu1 %v15312_v44  ;;  %v17952_v10 = vsel %vm15960_vm2, 0, %v4698_v5  ;;  %5636 = vmatprep.mubr.bf16.mxu0 %v17945_v40  ;;  %v4705_v15 = vor.u32 %v4703_v0, %v17935_v41  ;;  %v17967_v61 = vsel %vm1001_vm5, %v4872_v31, %v4876_v62  ;;  %v15319_v62 = vld [vmem:[%s20524_s5 + $0x1a0] sm:$0xff]  }
 0x418   : > { %v4415_v12 = vadd.f32 %v14877_v52, %v17800_v63  ;;  %v4406_v14 = vpop.f32.mrb[13].mxu1  ;;  %5637 = vmatmul.mubr.bf16.gmra.mrb[36].mxu0 %v4822_v50  ;;  %v4881_v16 = vshll.u32 %v17952_v10, 16  ;;  %v5082_v29 = vrot.slane %v17903_v3, 1  ;;  %v15315_v50 = vld [vmem:[%s20524_s5 + $0x198] sm:$0xff]   ;;  %v4879_v26 = vshrl.u32 %v17952_v10, 16 }
 0x419   : > { %v4707_v30 = vshrl.u32 %v4521_v32, 16  ;;  %v4407_v63 = vadd.f32 %v4406_v14, %v17788_v51  ;;  %v14878_v28 = vpop.f32.mrb[14].mxu1  ;;  %5782 = vmatmul.mubr.bf16.gmra.mrb[36].mxu1 %v17948_v23  ;;  %5642 = vmatprep.mubr.bf16.mxu0 %v17967_v61  ;;  %v4886_v57 = vshll.u32 %v17962_v42, 16  ;;  %v4714_v38 = vshrl.u32 %v17937_v47, 16 }
 0x41a   : > { %v4418_v24 = vadd.f32 %v14878_v28, %v17802_v39  ;;  %v4409_v18 = vpop.f32.mrb[15].mxu1  ;;  %5787 = vmatprep.mubr.bf16.mxu1 %v17952_v10  ;;  %14037 = vmatpush3.bf16.msra.mxu1 %v15313_v54  ;;  %v4499_v39 = vmax.f32 %v4415_v12, 0.0  ;;  %v4883_v21 = vrot.slane %v4881_v16, 1  ;;  %v5083_v35 = vrot.slane %v17897_v25, 1 }
 0x41b   : > { %v4410_v51 = vadd.f32 %v4409_v18, %v17793_v37  ;;  %14038 = vmatprep.subr.bf16.mxu1 %v15314_v48  ;;  %v15318_v37 = vld [vmem:[%s20524_s5 + $0x1e0] sm:$0xff]   ;;  %v17982_v44 = vrot.slane %v4707_v30, 7  ;;  %v4497_v22 = vmax.f32 %v4407_v63, 0.0  ;;  %v17990_v43 = vsel %vm15960_vm2, 0, %v4705_v15 }
 0x41c   : > { %v4500_v7 = vmax.f32 %v4418_v24, 0.0  ;;  %v4710_v13 = vshll.u32 %v4521_v32, 16  ;;  %v4884_v0 = vor.u32 %v4883_v21, %v4879_v26  ;;  %v4893_v52 = vshll.u32 %v17990_v43, 16  ;;  %v15320_v32 = vld [vmem:[%s20524_s5 + $0x1e8] sm:$0xff]  }
 0x41d   : > { %v4498_v2 = vmax.f32 %v4410_v51, 0.0  ;;  %v4888_v25 = vrot.slane %v4886_v57, 1  ;;  %v18000_v14 = vsel %vm1242_vm4, %v5082_v29, %v5083_v35  ;;  %v4717_v51 = vshll.u32 %v17937_v47, 16  ;;  %v15322_v47 = vld [vmem:[%s20524_s5 + $0x1f0] sm:$0xff]  }
 0x41e   : > { %v17985_v5 = vpack.c.bf16 %v4500_v7, %v4499_v39  ;;  %14039 = vmatpush3.bf16.msra.mxu1 %v15315_v50  ;;  %v4712_v48 = vor.u32 %v4710_v13, %v17982_v44  ;;  %v4895_v18 = vrot.slane %v4893_v52, 1  ;;  %v4891_v50 = vshrl.u32 %v17990_v43, 16 }
 0x41f   : > { %v17992_v9 = vpack.c.bf16 %v4498_v2, %v4497_v22  ;;  %v14881_v31 = vpop.f32.mrb[16].mxu1  ;;  %14040 = vmatprep.subr.bf16.mxu1 %v15318_v37  ;;  %v18016_v15 = vsel %vm1001_vm5, %v4884_v0, %v4888_v25  ;;  %v5086_v22 = vrot.slane %v17962_v42, 1  ;;  %v15323_v0 = vld [vmem:[%s20524_s5 + $0x1b0] sm:$0xff]   ;;  %v15324_v25 = vld [vmem:[%s20524_s5 + $0x1f8] sm:$0xff]  }
 0x420   : > { %v4431_v54 = vadd.f32 %v14881_v31, %v17818_v34  ;;  %v4422_v12 = vpop.f32.mrb[17].mxu1  ;;  %v18011_v34 = vsel %vm15960_vm2, %v17935_v41, 0  ;;  %5643 = vmatmul.mubr.bf16.gmra.mrb[40].mxu0 %v17903_v3  ;;  %v18035_v57 = vsel %vm15960_vm2, 0, %v4712_v48  ;;  %v4896_v2 = vor.u32 %v4895_v18, %v4891_v50 }
 0x421   : > { %v4423_v30 = vadd.f32 %v4422_v12, %v17806_v20  ;;  %v14882_v63 = vpop.f32.mrb[18].mxu1  ;;  %5788 = vmatmul.mubr.bf16.gmra.mrb[40].mxu1 %v18000_v14  ;;  %v18019_v20 = vrot.slane %v4714_v38, 7  ;;  %5650 = vmatprep.mubr.bf16.mxu0 %v18016_v15  ;;  %v4898_v39 = vshll.u32 %v18011_v34, 16  ;;  %v4721_v38 = vshrl.u32 %v17992_v9, 16 }
 0x422   : > { %v4434_v28 = vadd.f32 %v14882_v63, %v17820_v6  ;;  %v4425_v24 = vpop.f32.mrb[19].mxu1  ;;  %5795 = vmatprep.mubr.bf16.mxu1 %v17990_v43  ;;  %14041 = vmatpush3.bf16.msra.mxu1 %v15319_v62  ;;  %v15321_v6 = vld [vmem:[%s20524_s5 + $0x1a8] sm:$0xff]   ;;  %v4503_v16 = vmax.f32 %v4431_v54, 0.0  ;;  %v4905_v31 = vshll.u32 %v18035_v57, 16  ;;  %v18055_v12 = vsel %vm15960_vm2, %v17982_v44, 0 }
 0x423   : > { %v4426_v41 = vadd.f32 %v4425_v24, %v17814_v11  ;;  %14042 = vmatprep.subr.bf16.mxu1 %v15320_v32  ;;  %v4501_v7 = vmax.f32 %v4423_v30, 0.0  ;;  %v5085_v11 = vrot.slane %v17952_v10, 1  ;;  %v4719_v21 = vor.u32 %v4717_v51, %v18019_v20 }
 0x424   : > { %v4504_v29 = vmax.f32 %v4434_v28, 0.0  ;;  %v4900_v54 = vrot.slane %v4898_v39, 1  ;;  %v4907_v44 = vrot.slane %v4905_v31, 1  ;;  %v18068_v28 = vrot.slane %v4721_v38, 7 }
 0x425   : > { %v4502_v26 = vmax.f32 %v4426_v41, 0.0  ;;  %v18050_v42 = vsel %vm1242_vm4, %v5085_v11, %v5086_v22  ;;  %v4903_v24 = vshrl.u32 %v18035_v57, 16  ;;  %v4910_v18 = vshll.u32 %v18055_v12, 16 }
 0x426   : > { %v18037_v37 = vpack.c.bf16 %v4504_v29, %v4503_v16  ;;  %14043 = vmatpush3.bf16.msra.mxu1 %v15321_v6  ;;  %v18065_v30 = vsel %vm1001_vm5, %v4896_v2, %v4900_v54  ;;  %v5088_v6 = vrot.slane %v17990_v43, 1  ;;  %v18080_v16 = vsel %vm15960_vm2, 0, %v4719_v21 }
 0x427   : > { %v18042_v35 = vpack.c.bf16 %v4502_v26, %v4501_v7  ;;  %v14885_v13 = vpop.f32.mrb[20].mxu1  ;;  %14044 = vmatprep.subr.bf16.mxu1 %v15322_v47  ;;  %v5089_v47 = vrot.slane %v18011_v34, 1  ;;  %v4908_v7 = vor.u32 %v4907_v44, %v4903_v24  ;;  %v4917_v26 = vshll.u32 %v18080_v16, 16 }
 0x428   : > { %v4447_v52 = vadd.f32 %v14885_v13, %v17839_v55  ;;  %v4438_v62 = vpop.f32.mrb[21].mxu1  ;;  %5651 = vmatmul.mubr.bf16.gmra.mrb[44].mxu0 %v17952_v10  ;;  %v4728_v11 = vshrl.u32 %v17985_v5, 16  ;;  %v4912_v13 = vrot.slane %v4910_v18, 1  ;;  %v18098_v34 = vsel %vm15960_vm2, %v18019_v20, 0 }
 0x429   : > { %v4439_v32 = vadd.f32 %v4438_v62, %v17830_v58  ;;  %v14886_v48 = vpop.f32.mrb[22].mxu1  ;;  %5796 = vmatmul.mubr.bf16.gmra.mrb[44].mxu1 %v18050_v42  ;;  %5656 = vmatprep.mubr.bf16.mxu0 %v18065_v30  ;;  %v18093_v31 = vsel %vm1242_vm4, %v5088_v6, %v5089_v47 }
 0x42a   : > { %v4450_v55 = vadd.f32 %v14886_v48, %v17841_v56  ;;  %v4441_v63 = vpop.f32.mrb[23].mxu1  ;;  %5801 = vmatprep.mubr.bf16.mxu1 %v18035_v57  ;;  %14045 = vmatpush3.bf16.msra.mxu1 %v15323_v0  ;;  %v15325_v56 = vld [vmem:[%s20524_s5 + $0x1b8] sm:$0xff]   ;;  %v4507_v51 = vmax.f32 %v4447_v52, 0.0  ;;  %v4922_v48 = vshll.u32 %v18098_v34, 16 }
 0x42b   : > { %v4442_v58 = vadd.f32 %v4441_v63, %v17832_v49  ;;  %14046 = vmatprep.subr.bf16.mxu1 %v15324_v25  ;;  %v4724_v49 = vshll.u32 %v17992_v9, 16  ;;  %v4505_v29 = vmax.f32 %v4439_v32, 0.0  ;;  %v4919_v25 = vrot.slane %v4917_v26, 1 }
 0x42c   : > { %v4508_v41 = vmax.f32 %v4450_v55, 0.0  ;;  %v4730_v32 = vrot.slane %v4728_v11, 7  ;;  %v4924_v26 = vrot.slane %v4922_v48, 1 }
 0x42d   : > { %v4506_v50 = vmax.f32 %v4442_v58, 0.0  ;;  %v4726_v22 = vor.u32 %v4724_v49, %v18068_v28  ;;  %v4731_v58 = vshll.u32 %v17985_v5, 16  ;;  %v4735_v49 = vshrl.u32 %v18042_v35, 16 }
 0x42e   : > { %v18083_v39 = vpack.c.bf16 %v4508_v41, %v4507_v51  ;;  %14047 = vmatpush3.bf16.msra.mxu1 %v15325_v56 }
 0x42f   : > { %v18089_v2 = vpack.c.bf16 %v4506_v50, %v4505_v29  ;;  %v14889_v21 = vpop.f32.mrb[24].mxu1  ;;  %v18115_v44 = vsel %vm15960_vm2, 0, %v4726_v22  ;;  %v4733_v6 = vor.u32 %v4731_v58, %v4730_v32 }
 0x430   : > { %v4463_v38 = vadd.f32 %v14889_v21, %v17857_v59  ;;  %v4454_v9 = vpop.f32.mrb[25].mxu1  ;;  %5657 = vmatmul.mubr.bf16.gmra.mrb[48].mxu0 %v17990_v43  ;;  %v18105_v59 = vsel %vm1001_vm5, %v4908_v7, %v4912_v13  ;;  %v4929_v41 = vshll.u32 %v18115_v44, 16  ;;  %v4737_v13 = vrot.slane %v4735_v49, 7 }
 0x431   : > { %v4455_v0 = vadd.f32 %v4454_v9, %v17851_v45  ;;  %v14890_v52 = vpop.f32.mrb[26].mxu1  ;;  %5802 = vmatmul.mubr.bf16.gmra.mrb[48].mxu1 %v18093_v31  ;;  %5664 = vmatprep.mubr.bf16.mxu0 %v18105_v59  ;;  %v4915_v45 = vshrl.u32 %v18080_v16, 16 }
 0x432   : > { %v4466_v62 = vadd.f32 %v14890_v52, %v17859_v46  ;;  %v4457_v54 = vpop.f32.mrb[27].mxu1  ;;  %5809 = vmatprep.mubr.bf16.mxu1 %v18080_v16  ;;  %v4511_v55 = vmax.f32 %v4463_v38, 0.0  ;;  %v5091_v46 = vrot.slane %v18035_v57, 1  ;;  %v4931_v9 = vrot.slane %v4929_v41, 1 }
 0x433   : > { %v4458_v20 = vadd.f32 %v4457_v54, %v17853_v60  ;;  %v4509_v24 = vmax.f32 %v4455_v0, 0.0  ;;  %v5092_v60 = vrot.slane %v18055_v12, 1  ;;  %v4920_v51 = vor.u32 %v4919_v25, %v4915_v45 }
 0x434   : > { %v4512_v63 = vmax.f32 %v4466_v62, 0.0  ;;  %v4844_v12 = vsel %vm15960_vm2, %v18068_v28, 0  ;;  %v4927_v0 = vshrl.u32 %v18115_v44, 16  ;;  %v18145_v28 = vsel %vm15960_vm2, 0, %v4733_v6 }
 0x435   : > { %v4510_v18 = vmax.f32 %v4458_v20, 0.0  ;;  %v18127_v5 = vsel %vm1242_vm4, %v5091_v46, %v5092_v60  ;;  %v4934_v62 = vshll.u32 %v4844_v12, 16  ;;  %v5094_v54 = vrot.slane %v18080_v16, 1 }
 0x436   : > { %v18118_v56 = vpack.c.bf16 %v4512_v63, %v4511_v55  ;;  %v4738_v25 = vshll.u32 %v18042_v35, 16  ;;  %v5095_v55 = vrot.slane %v18098_v34, 1  ;;  %v4941_v63 = vshll.u32 %v18145_v28, 16 }
 0x437   : > { %v18123_v29 = vpack.c.bf16 %v4510_v18, %v4509_v24  ;;  %v14893_v50 = vpop.f32.mrb[28].mxu1  ;;  %v4742_v46 = vshrl.u32 %v18037_v37, 16  ;;  %v4936_v18 = vrot.slane %v4934_v62, 1  ;;  %v4845_v35 = vsel %vm15960_vm2, %v4730_v32, 0 }
 0x438   : > { %v4479_v47 = vadd.f32 %v14893_v50, %v17875_v8  ;;  %v4470_v7 = vpop.f32.mrb[29].mxu1  ;;  %5665 = vmatmul.mubr.bf16.gmra.mrb[52].mxu0 %v18035_v57  ;;  %v18137_v8 = vsel %vm1001_vm5, %v4920_v51, %v4924_v26  ;;  %v4740_v58 = vor.u32 %v4738_v25, %v4737_v13  ;;  %v18157_v60 = vsel %vm1242_vm4, %v5094_v54, %v5095_v55 }
 0x439   : > { %v4471_v11 = vadd.f32 %v4470_v7, %v17869_v4  ;;  %v14894_v22 = vpop.f32.mrb[30].mxu1  ;;  %5810 = vmatmul.mubr.bf16.gmra.mrb[52].mxu1 %v18127_v5  ;;  %5670 = vmatprep.mubr.bf16.mxu0 %v18137_v8  ;;  %v4943_v51 = vrot.slane %v4941_v63, 1  ;;  %v4744_v41 = vrot.slane %v4742_v46, 7  ;;  %v4939_v49 = vshrl.u32 %v18145_v28, 16 }
 0x43a   : > { %v4482_v21 = vadd.f32 %v14894_v22, %v17877_v53  ;;  %v4473_v38 = vpop.f32.mrb[31].mxu1  ;;  %5815 = vmatprep.mubr.bf16.mxu1 %v18115_v44  ;;  %v4515_v52 = vmax.f32 %v4479_v47, 0.0  ;;  %v18170_v6 = vsel %vm15960_vm2, 0, %v4740_v58  ;;  %v4946_v50 = vshll.u32 %v4845_v35, 16 }
 0x43b   : > { %v4474_v4 = vadd.f32 %v4473_v38, %v17871_v27  ;;  %v4513_v20 = vmax.f32 %v4471_v11, 0.0  ;;  %v4932_v27 = vor.u32 %v4931_v9, %v4927_v0  ;;  %v5097_v32 = vrot.slane %v18115_v44, 1 }
 0x43c   : > { %v4516_v53 = vmax.f32 %v4482_v21, 0.0  ;;  %v4745_v47 = vshll.u32 %v18037_v37, 16  ;;  %v5098_v7 = vrot.slane %v4844_v12, 1  ;;  %v4944_v26 = vor.u32 %v4943_v51, %v4939_v49 }
 0x43d   : > { %v4514_v45 = vmax.f32 %v4474_v4, 0.0  ;;  %v18164_v34 = vsel %vm1001_vm5, %v4932_v27, %v4936_v18  ;;  %v4953_v11 = vshll.u32 %v18170_v6, 16  ;;  %v4749_v21 = vshrl.u32 %v18089_v2, 16 }
 0x43e   : > { %v18149_v48 = vpack.c.bf16 %v4516_v53, %v4515_v52  ;;  %v4747_v22 = vor.u32 %v4745_v47, %v4744_v41  ;;  %v4948_v38 = vrot.slane %v4946_v50, 1  ;;  %v18178_v9 = vsel %vm1242_vm4, %v5097_v32, %v5098_v7 }
 0x43f   : > { %v18154_v24 = vpack.c.bf16 %v4514_v45, %v4513_v20  ;;  %v4846_v4 = vsel %vm15960_vm2, %v4737_v13, 0  ;;  %v4955_v12 = vrot.slane %v4953_v11, 1  ;;  %v4751_v0 = vrot.slane %v4749_v21, 7 }
 0x440   : > { %5671 = vmatmul.mubr.bf16.gmra.mrb[56].mxu0 %v18080_v16  ;;  %v18185_v37 = vsel %vm1001_vm5, %v4944_v26, %v4948_v38  ;;  %v18191_v52 = vsel %vm15960_vm2, 0, %v4747_v22  ;;  %v4951_v53 = vshrl.u32 %v18170_v6, 16  ;;  %v4958_v62 = vshll.u32 %v4846_v4, 16 }
 0x441   : > { %5816 = vmatmul.mubr.bf16.gmra.mrb[56].mxu1 %v18157_v60  ;;  %5678 = vmatprep.mubr.bf16.mxu0 %v18164_v34  ;;  %v5100_v13 = vrot.slane %v18145_v28, 1  ;;  %v4752_v54 = vshll.u32 %v18089_v2, 16  ;;  %v5101_v25 = vrot.slane %v4845_v35, 1  ;;  %v4965_v45 = vshll.u32 %v18191_v52, 16 }
 0x442   : > { %5823 = vmatprep.mubr.bf16.mxu1 %v18145_v28  ;;  %v4956_v20 = vor.u32 %v4955_v12, %v4951_v53  ;;  %v4756_v55 = vshrl.u32 %v18083_v39, 16  ;;  %v4960_v63 = vrot.slane %v4958_v62, 1  ;;  %v4847_v58 = vsel %vm15960_vm2, %v4744_v41, 0 }
 0x443   : > { %v4754_v27 = vor.u32 %v4752_v54, %v4751_v0  ;;  %v18199_v46 = vsel %vm1242_vm4, %v5100_v13, %v5101_v25  ;;  %v4967_v18 = vrot.slane %v4965_v45, 1  ;;  %v4963_v49 = vshrl.u32 %v18191_v52, 16 }
 0x444   : > { %v18206_v2 = vsel %vm1001_vm5, %v4956_v20, %v4960_v63  ;;  %v4758_v35 = vrot.slane %v4756_v55, 7  ;;  %v4970_v50 = vshll.u32 %v4847_v58, 16  ;;  %v5103_v41 = vrot.slane %v18170_v6, 1 }
 0x445   : > { %v18212_v51 = vsel %vm15960_vm2, 0, %v4754_v27  ;;  %v4759_v32 = vshll.u32 %v18083_v39, 16  ;;  %v5104_v47 = vrot.slane %v4846_v4, 1  ;;  %v4968_v7 = vor.u32 %v4967_v18, %v4963_v49 }
 0x446   : > { %v4977_v26 = vshll.u32 %v18212_v51, 16  ;;  %v4763_v22 = vshrl.u32 %v18123_v29, 16  ;;  %v4972_v21 = vrot.slane %v4970_v50, 1  ;;  %v4848_v12 = vsel %vm15960_vm2, %v4751_v0, 0 }
 0x447   : > { %v4761_v11 = vor.u32 %v4759_v32, %v4758_v35  ;;  %v18220_v38 = vsel %vm1242_vm4, %v5103_v41, %v5104_v47  ;;  %v4975_v13 = vshrl.u32 %v18212_v51, 16  ;;  %v4982_v54 = vshll.u32 %v4848_v12, 16 }
 0x448   : > { %5679 = vmatmul.mubr.bf16.gmra.mrb[60].mxu0 %v18115_v44  ;;  %v18227_v39 = vsel %vm1001_vm5, %v4968_v7, %v4972_v21  ;;  %v4979_v4 = vrot.slane %v4977_v26, 1  ;;  %v4765_v53 = vrot.slane %v4763_v22, 7  ;;  %v5106_v0 = vrot.slane %v18191_v52, 1 }
 0x449   : > { %5824 = vmatmul.mubr.bf16.gmra.mrb[60].mxu1 %v18178_v9  ;;  %5684 = vmatprep.mubr.bf16.mxu0 %v18185_v37  ;;  %v18233_v62 = vsel %vm15960_vm2, 0, %v4761_v11  ;;  %v4766_v25 = vshll.u32 %v18123_v29, 16  ;;  %v5107_v20 = vrot.slane %v4847_v58, 1  ;;  %v4770_v27 = vshrl.u32 %v18118_v56, 16 }
 0x44a   : > { %5829 = vmatprep.mubr.bf16.mxu1 %v18170_v6  ;;  %v4980_v45 = vor.u32 %v4979_v4, %v4975_v13  ;;  %v4989_v55 = vshll.u32 %v18233_v62, 16  ;;  %v4984_v18 = vrot.slane %v4982_v54, 1  ;;  %v4849_v50 = vsel %vm15960_vm2, %v4758_v35, 0 }
 0x44b   : > { %v4768_v63 = vor.u32 %v4766_v25, %v4765_v53  ;;  %v18241_v49 = vsel %vm1242_vm4, %v5106_v0, %v5107_v20  ;;  %v4772_v41 = vrot.slane %v4770_v27, 7  ;;  %v4987_v47 = vshrl.u32 %v18233_v62, 16 }
 0x44c   : > { %v18248_v29 = vsel %vm1001_vm5, %v4980_v45, %v4984_v18  ;;  %v4991_v58 = vrot.slane %v4989_v55, 1  ;;  %v4994_v7 = vshll.u32 %v4849_v50, 16  ;;  %v5109_v35 = vrot.slane %v18212_v51, 1 }
 0x44d   : > { %v18254_v32 = vsel %vm15960_vm2, 0, %v4768_v63  ;;  %v4773_v11 = vshll.u32 %v18118_v56, 16  ;;  %v5110_v21 = vrot.slane %v4848_v12, 1  ;;  %v4777_v20 = vshrl.u32 %v18154_v24, 16 }
 0x44e   : > { %v4992_v4 = vor.u32 %v4991_v58, %v4987_v47  ;;  %v5001_v13 = vshll.u32 %v18254_v32, 16  ;;  %v4996_v55 = vrot.slane %v4994_v7, 1  ;;  %v4850_v56 = vsel %vm15960_vm2, %v4765_v53, 0 }
 0x44f   : > { %v4775_v25 = vor.u32 %v4773_v11, %v4772_v41  ;;  %v18264_v27 = vsel %vm1242_vm4, %v5109_v35, %v5110_v21  ;;  %v4779_v58 = vrot.slane %v4777_v20, 7  ;;  %v4999_v7 = vshrl.u32 %v18254_v32, 16 }
 0x450   : > { %5685 = vmatmul.mubr.bf16.gmra.mrb[64].mxu0 %v18145_v28  ;;  %v18273_v12 = vsel %vm1001_vm5, %v4992_v4, %v4996_v55  ;;  %v5003_v18 = vrot.slane %v5001_v13, 1  ;;  %v5006_v35 = vshll.u32 %v4850_v56, 16  ;;  %v5112_v53 = vrot.slane %v18233_v62, 1 }
 0x451   : > { %5830 = vmatmul.mubr.bf16.gmra.mrb[64].mxu1 %v18199_v46  ;;  %5692 = vmatprep.mubr.bf16.mxu0 %v18206_v2  ;;  %v18279_v47 = vsel %vm15960_vm2, 0, %v4775_v25  ;;  %v5113_v11 = vrot.slane %v4849_v50, 1  ;;  %v4851_v25 = vsel %vm15960_vm2, %v4772_v41, 0  ;;  %v4784_v41 = vshrl.u32 %v18149_v48, 16 }
 0x452   : > { %5837 = vmatprep.mubr.bf16.mxu1 %v18191_v52  ;;  %v5013_v21 = vshll.u32 %v18279_v47, 16  ;;  %v5008_v13 = vrot.slane %v5006_v35, 1  ;;  %v5018_v55 = vshll.u32 %v4851_v25, 16 }
 0x458   : > { %5693 = vmatmul.mubr.bf16.gmra.mrb[68].mxu0 %v18170_v6 }
 0x459   : > { %5838 = vmatmul.mubr.bf16.gmra.mrb[68].mxu1 %v18220_v38  ;;  %5698 = vmatprep.mubr.bf16.mxu0 %v18227_v39 }
 0x45a   : > { %5843 = vmatprep.mubr.bf16.mxu1 %v18212_v51 }
 0x45c   : > { %v13712_v26 = vpop.f32.mrb[32].mxu0 }
 0x45d   : > { %v13713_v22 = vpop.f32.mrb[33].mxu0 }
 0x45e   : > { %v18260_v54 = vadd.f32 %v13713_v22, %v13712_v26  ;;  %v13715_v0 = vpop.f32.mrb[34].mxu0  ;;  %v4780_v26 = vshll.u32 %v18154_v24, 16  ;;  %v5004_v22 = vor.u32 %v5003_v18, %v4999_v7  ;;  %v5015_v24 = vrot.slane %v5013_v21, 1 }
 0x45f   : > { %v13716_v45 = vpop.f32.mrb[35].mxu0  ;;  %v5115_v18 = vrot.slane %v18254_v32, 1  ;;  %v5116_v7 = vrot.slane %v4850_v56, 1  ;;  %v4852_v21 = vsel %vm15960_vm2, %v4779_v58, 0 }
 0x460   : > { %5699 = vmatmul.mubr.bf16.gmra.mrb[72].mxu0 %v18191_v52  ;;  %v18266_v63 = vadd.f32 %v13716_v45, %v13715_v0  ;;  %v4782_v4 = vor.u32 %v4780_v26, %v4779_v58  ;;  %v18286_v0 = vsel %vm1242_vm4, %v5112_v53, %v5113_v11  ;;  %v18293_v20 = vsel %vm1001_vm5, %v5004_v22, %v5008_v13 }
 0x461   : > { %5844 = vmatmul.mubr.bf16.gmra.mrb[72].mxu1 %v18241_v49  ;;  %5706 = vmatprep.mubr.bf16.mxu0 %v18248_v29  ;;  %v5011_v45 = vshrl.u32 %v18279_v47, 16  ;;  %v5020_v26 = vrot.slane %v5018_v55, 1  ;;  %v18306_v11 = vsel %vm1242_vm4, %v5115_v18, %v5116_v7  ;;  %v18308_v22 = vrot.slane %v4784_v41, 7 }
 0x462   : > { %5851 = vmatprep.mubr.bf16.mxu1 %v18233_v62  ;;  %v18299_v50 = vsel %vm15960_vm2, 0, %v4782_v4  ;;  %v4787_v13 = vshll.u32 %v18149_v48, 16  ;;  %v5118_v55 = vrot.slane %v18279_v47, 1  ;;  %v5119_v58 = vrot.slane %v4851_v25, 1 }
 0x463   : > { %v5016_v35 = vor.u32 %v5015_v24, %v5011_v45  ;;  %v5025_v53 = vshll.u32 %v18299_v50, 16  ;;  %v5023_v24 = vshrl.u32 %v18299_v50, 16  ;;  %v5030_v45 = vshll.u32 %v4852_v21, 16 }
 0x464   : > { %v4789_v18 = vor.u32 %v4787_v13, %v18308_v22  ;;  %v5121_v25 = vrot.slane %v18299_v50, 1  ;;  %v15327_v13 = vld [vmem:[%s20524_s5 + $0x208] sm:$0xff]  }
 0x465   : > { %v18315_v4 = vsel %vm1001_vm5, %v5016_v35, %v5020_v26  ;;  %v5027_v56 = vrot.slane %v5025_v53, 1  ;;  %v5032_v7 = vrot.slane %v5030_v45, 1  ;;  %v18324_v35 = vsel %vm1242_vm4, %v5118_v55, %v5119_v58 }
 0x466   : > { %v18329_v48 = vsel %vm15960_vm2, 0, %v4789_v18  ;;  %v5122_v26 = vrot.slane %v4852_v21, 1  ;;  %v15328_v21 = vld [vmem:[%s20524_s5 + $0x210] sm:$0xff]  }
 0x467   : > { %v5028_v41 = vor.u32 %v5027_v56, %v5023_v24 }
 0x468   : > { %5707 = vmatmul.mubr.bf16.gmra.mrb[76].mxu0 %v18212_v51  ;;  %v18339_v56 = vsel %vm1242_vm4, %v5121_v25, %v5122_v26 }
 0x469   : > { %5852 = vmatmul.mubr.bf16.gmra.mrb[76].mxu1 %v18264_v27  ;;  %5712 = vmatprep.mubr.bf16.mxu0 %v18273_v12  ;;  %v18333_v53 = vsel %vm1001_vm5, %v5028_v41, %v5032_v7 }
 0x46a   : > { %5857 = vmatprep.mubr.bf16.mxu1 %v18254_v32 }
 0x470   : > { %5713 = vmatmul.mubr.bf16.gmra.mrb[80].mxu0 %v18233_v62 }
 0x471   : > { %5858 = vmatmul.mubr.bf16.gmra.mrb[80].mxu1 %v18286_v0  ;;  %5720 = vmatprep.mubr.bf16.mxu0 %v18293_v20 }
 0x472   : > { %5865 = vmatprep.mubr.bf16.mxu1 %v18279_v47 }
 0x478   : > { %5721 = vmatmul.mubr.bf16.gmra.mrb[84].mxu0 %v18254_v32 }
 0x479   : > { %5866 = vmatmul.mubr.bf16.gmra.mrb[84].mxu1 %v18306_v11  ;;  %5726 = vmatprep.mubr.bf16.mxu0 %v18315_v4 }
 0x47a   : > { %5871 = vmatprep.mubr.bf16.mxu1 %v18299_v50 }
 0x480   : > { %5727 = vmatmul.mubr.bf16.gmra.mrb[88].mxu0 %v18279_v47 }
 0x481   : > { %5872 = vmatmul.mubr.bf16.gmra.mrb[88].mxu1 %v18324_v35  ;;  %5734 = vmatprep.mubr.bf16.mxu0 %v18333_v53 }
 0x482   : > { %5879 = vmatprep.mubr.bf16.mxu1 %v18329_v48 }
 0x488   : > { %5735 = vmatmul.mubr.bf16.gmra.mrb[92].mxu0 %v18299_v50 }
 0x489   : > { %5880 = vmatmul.mubr.bf16.gmra.mrb[92].mxu1 %v18339_v56  ;;  %5918 = vmatprep.mubr.bf16.mxu0 %v17948_v23  ;;  %v15329_v23 = vld [vmem:[%s20524_s5 + $0x218] sm:$0xff]  }
 0x48a   : > { %6063 = vmatprep.mubr.bf16.mxu1 %v17967_v61 }
 0x490   : > { %5919 = vmatmul.mubr.bf16.vlgmr.msra.gmra.mrb[96].mxu0 %v17945_v40  ;;  %v15332_v40 = vld [vmem:[%s20524_s5 + $0x230] sm:$0xff]  }
 0x491   : > { %6064 = vmatmul.mubr.bf16.vlgmr.msra.gmra.mrb[96].mxu1 %v17903_v3  ;;  %5926 = vmatprep.mubr.bf16.mxu0 %v18000_v14  ;;  %v15330_v3 = vld [vmem:[%s20524_s5 + $0x220] sm:$0xff]  }
 0x492   : > { %6071 = vmatprep.mubr.bf16.mxu1 %v18016_v15  ;;  %14896 = vmatpush3.bf16.msra.mxu0 %v17928_v36  ;;  %v15331_v36 = vld [vmem:[%s20524_s5 + $0x228] sm:$0xff]  }
 0x493   : > { %14897 = vmatprep.subr.bf16.mxu0 %v15327_v13 }
 0x496   : > { %14898 = vmatpush3.bf16.msra.mxu0 %v15327_v13 }
 0x497   : > { %14899 = vmatprep.subr.bf16.mxu0 %v15328_v21 }
 0x498   : > { %5927 = vmatmul.mubr.bf16.gmra.mrb[100].mxu0 %v17967_v61  ;;  %v18411_v61 = vld [vmem:[%s20443_s6] ss:$0 sm:$0xff] }
 0x499   : > { %6072 = vmatmul.mubr.bf16.gmra.mrb[100].mxu1 %v17952_v10  ;;  %5932 = vmatprep.mubr.bf16.mxu0 %v18050_v42  ;;  %v15333_v10 = vld [vmem:[%s20524_s5 + $0x238] sm:$0xff]   ;;  %s15643_s5 = scalar_lea.vmem %s20397_s26, 16 }
 0x49a   : > { %6077 = vmatprep.mubr.bf16.mxu1 %v18065_v30  ;;  %14900 = vmatpush3.bf16.msra.mxu0 %v15328_v21  ;;  %p15644_p11 = scmp.ne.s32.totalorder %s20397_s26, %s15643_s5  ;;  %p15651_p1 = scmp.lt.s32.totalorder %s15649_s2, %s15643_s5 }
 0x49b   : > { %14901 = vmatprep.subr.bf16.mxu0 %v15329_v23 }
 0x49c   : > { %p15645_p12 = pnand %p15644_p11, %p15850_p5  ;;  %p15652_p2 = por %p15651_p1, %p15650_p0 }
 0x49e   : > { %14902 = vmatpush3.bf16.msra.mxu0 %v15329_v23  ;;  %p15646_p13 = pneg %p15645_p12 }
 0x49f   : > { %14903 = vmatprep.subr.bf16.mxu0 %v15330_v3 }
 0x4a0   : > { %5933 = vmatmul.mubr.bf16.gmra.mrb[104].mxu0 %v18016_v15  ;;  %p15653_p3 = pnand %p15652_p2, %p15646_p13 }
 0x4a1   : > { %6078 = vmatmul.mubr.bf16.gmra.mrb[104].mxu1 %v17990_v43  ;;  %5940 = vmatprep.mubr.bf16.mxu0 %v18093_v31  ;;  %v5631_v43 = vadd.f32 %v18260_v54, %v18411_v61 }
 0x4a2   : > { %6085 = vmatprep.mubr.bf16.mxu1 %v18105_v59  ;;  %14904 = vmatpush3.bf16.msra.mxu0 %v15330_v3 }
 0x4a3   : > { %14905 = vmatprep.subr.bf16.mxu0 %v15331_v36 }
 0x4a6   : > { %14906 = vmatpush3.bf16.msra.mxu0 %v15331_v36 }
 0x4a7   : > { %14907 = vmatprep.subr.bf16.mxu0 %v15332_v40 }
 0x4a8   : > { %5941 = vmatmul.mubr.bf16.gmra.mrb[108].mxu0 %v18065_v30 }
 0x4a9   : > { %6086 = vmatmul.mubr.bf16.gmra.mrb[108].mxu1 %v18035_v57  ;;  %5946 = vmatprep.mubr.bf16.mxu0 %v18127_v5 }
 0x4aa   : > { %6091 = vmatprep.mubr.bf16.mxu1 %v18137_v8  ;;  %14908 = vmatpush3.bf16.msra.mxu0 %v15332_v40 }
 0x4ab   : > { %14909 = vmatprep.subr.bf16.mxu0 %v15333_v10 }
 0x4ae   : > { %14910 = vmatpush3.bf16.msra.mxu0 %v15333_v10 }
 0x4b0   : > { %5947 = vmatmul.mubr.bf16.gmra.mrb[112].mxu0 %v18105_v59 }
 0x4b1   : > { %6092 = vmatmul.mubr.bf16.gmra.mrb[112].mxu1 %v18080_v16  ;;  %5954 = vmatprep.mubr.bf16.mxu0 %v18157_v60 }
 0x4b2   : > { %6099 = vmatprep.mubr.bf16.mxu1 %v18164_v34 }
 0x4b8   : > { %5955 = vmatmul.mubr.bf16.gmra.mrb[116].mxu0 %v18137_v8 }
 0x4b9   : > { %6100 = vmatmul.mubr.bf16.gmra.mrb[116].mxu1 %v18115_v44  ;;  %5960 = vmatprep.mubr.bf16.mxu0 %v18178_v9  ;;  %v5634_v44 = vadd.f32 %v18266_v63, %v18411_v61 }
 0x4ba   : > { %6105 = vmatprep.mubr.bf16.mxu1 %v18185_v37 }
 0x4c0   : > { %5961 = vmatmul.mubr.bf16.gmra.mrb[120].mxu0 %v18164_v34 }
 0x4c1   : > { %6106 = vmatmul.mubr.bf16.gmra.mrb[120].mxu1 %v18145_v28  ;;  %5968 = vmatprep.mubr.bf16.mxu0 %v18199_v46 }
 0x4c2   : > { %6113 = vmatprep.mubr.bf16.mxu1 %v18206_v2 }
 0x4c8   : > { %5969 = vmatmul.mubr.bf16.gmra.mrb[124].mxu0 %v18185_v37 }
 0x4c9   : > { %6114 = vmatmul.mubr.bf16.gmra.mrb[124].mxu1 %v18170_v6  ;;  %5974 = vmatprep.mubr.bf16.mxu0 %v18220_v38 }
 0x4ca   : > { %6119 = vmatprep.mubr.bf16.mxu1 %v18227_v39 }
 0x4d0   : > { %5975 = vmatmul.mubr.bf16.gmra.mrb[128].mxu0 %v18206_v2  ;;  %v5142_v2 = vshll.u32 %v18329_v48, 16 }
 0x4d1   : > { %6120 = vmatmul.mubr.bf16.gmra.mrb[128].mxu1 %v18191_v52  ;;  %5982 = vmatprep.mubr.bf16.mxu0 %v18241_v49 }
 0x4d2   : > { %6127 = vmatprep.mubr.bf16.mxu1 %v18248_v29  ;;  %v5144_v63 = vrot.slane %v5142_v2, 1 }
 0x4d8   : > { %5983 = vmatmul.mubr.bf16.gmra.mrb[132].mxu0 %v18227_v39 }
 0x4d9   : > { %6128 = vmatmul.mubr.bf16.gmra.mrb[132].mxu1 %v18212_v51  ;;  %5988 = vmatprep.mubr.bf16.mxu0 %v18264_v27 }
 0x4da   : > { %6133 = vmatprep.mubr.bf16.mxu1 %v18273_v12 }
 0x4e0   : > { %5989 = vmatmul.mubr.bf16.gmra.mrb[136].mxu0 %v18248_v29 }
 0x4e1   : > { %6134 = vmatmul.mubr.bf16.gmra.mrb[136].mxu1 %v18233_v62  ;;  %5996 = vmatprep.mubr.bf16.mxu0 %v18286_v0 }
 0x4e2   : > { %6141 = vmatprep.mubr.bf16.mxu1 %v18293_v20 }
 0x4e4   : > { %v13824_v15 = vpop.f32.mrb[32].mxu1 }
 0x4e5   : > { %v13825_v57 = vpop.f32.mrb[33].mxu1 }
 0x4e6   : > { %v13826_v30 = vadd.f32 %v13825_v57, %v13824_v15  ;;  %v13827_v16 = vpop.f32.mrb[34].mxu1 }
 0x4e7   : > { %v13828_v59 = vpop.f32.mrb[35].mxu1 }
 0x4e8   : > { %v13829_v8 = vadd.f32 %v13828_v59, %v13827_v16  ;;  %v18420_v28 = vadd.f32 %v13826_v30, %v5631_v43  ;;  %5997 = vmatmul.mubr.bf16.gmra.mrb[140].mxu0 %v18273_v12  ;;  %v5140_v12 = vshrl.u32 %v18329_v48, 16 }
 0x4e9   : > { %6142 = vmatmul.mubr.bf16.gmra.mrb[140].mxu1 %v18254_v32  ;;  %6002 = vmatprep.mubr.bf16.mxu0 %v18306_v11  ;;  %v4853_v32 = vsel %vm15960_vm2, %v18308_v22, 0 }
 0x4ea   : > { %6147 = vmatprep.mubr.bf16.mxu1 %v18315_v4  ;;  %v18425_v34 = vadd.f32 %v13829_v8, %v5634_v44  ;;  %v5147_v24 = vshll.u32 %v4853_v32, 16  ;;  %v5145_v58 = vor.u32 %v5144_v63, %v5140_v12 }
 0x4eb   : > { %v13718_v37 = vpop.f32.mrb[36].mxu0 }
 0x4ec   : > { %v13830_v6 = vpop.f32.mrb[36].mxu1  ;;  %v13719_v51 = vpop.f32.mrb[37].mxu0  ;;  %v5149_v13 = vrot.slane %v5147_v24, 1 }
 0x4ed   : > { %v13831_v52 = vpop.f32.mrb[37].mxu1  ;;  %v13721_v62 = vpop.f32.mrb[38].mxu0 }
 0x4ee   : > { %v13833_v39 = vpop.f32.mrb[38].mxu1  ;;  %v13722_v54 = vpop.f32.mrb[39].mxu0  ;;  %v5150_v36 = vsel %vm1001_vm5, %v5145_v58, %v5149_v13  ;;  %vm12050_vm5 = vcmask 73728  }
 0x4ef   : > { %v13834_v29 = vpop.f32.mrb[39].mxu1 }
 0x4f0   : > { %6003 = vmatmul.mubr.bf16.gmra.mrb[144].mxu0 %v18293_v20 }
 0x4f1   : > { %6148 = vmatmul.mubr.bf16.gmra.mrb[144].mxu1 %v18279_v47  ;;  %6010 = vmatprep.mubr.bf16.mxu0 %v18324_v35 }
 0x4f2   : > { %6155 = vmatprep.mubr.bf16.mxu1 %v18333_v53 }
 0x4f3   : > { %v13724_v55 = vpop.f32.mrb[40].mxu0 }
 0x4f4   : > { %v13836_v45 = vpop.f32.mrb[40].mxu1  ;;  %v13725_v41 = vpop.f32.mrb[41].mxu0 }
 0x4f5   : > { %v13837_v18 = vpop.f32.mrb[41].mxu1  ;;  %v13726_v22 = vadd.f32 %v13725_v41, %v13724_v55  ;;  %v13727_v26 = vpop.f32.mrb[42].mxu0 }
 0x4f6   : > { %v13838_v7 = vadd.f32 %v13837_v18, %v13836_v45  ;;  %v13839_v25 = vpop.f32.mrb[42].mxu1  ;;  %v13728_v21 = vpop.f32.mrb[43].mxu0 }
 0x4f7   : > { %v13840_v47 = vpop.f32.mrb[43].mxu1  ;;  %v5645_v23 = vadd.f32 %v13726_v22, %v18411_v61  ;;  %v13729_v3 = vadd.f32 %v13728_v21, %v13727_v26 }
 0x4f8   : > { %v13841_v20 = vadd.f32 %v13840_v47, %v13839_v25  ;;  %6011 = vmatmul.mubr.bf16.gmra.mrb[148].mxu0 %v18315_v4  ;;  %v5155_v4 = vrot.slane %v4853_v32, 1 }
 0x4f9   : > { %6156 = vmatmul.mubr.bf16.gmra.mrb[148].mxu1 %v18299_v50  ;;  %v18441_v40 = vadd.f32 %v13838_v7, %v5645_v23  ;;  %v5648_v10 = vadd.f32 %v13729_v3, %v18411_v61  ;;  %6016 = vmatprep.mubr.bf16.mxu0 %v18339_v56  ;;  %v5154_v50 = vrot.slane %v18329_v48, 1 }
 0x4fa   : > { %6161 = vmatprep.mubr.bf16.mxu1 %v5150_v36 }
 0x4fb   : > { %v18445_v15 = vadd.f32 %v13841_v20, %v5648_v10  ;;  %v13730_v57 = vpop.f32.mrb[44].mxu0  ;;  %v18451_v37 = vsel %vm1242_vm4, %v5154_v50, %v5155_v4 }
 0x4fc   : > { %v13842_v43 = vpop.f32.mrb[44].mxu1  ;;  %v13731_v16 = vpop.f32.mrb[45].mxu0 }
 0x4fd   : > { %v13843_v30 = vpop.f32.mrb[45].mxu1  ;;  %v13733_v44 = vpop.f32.mrb[46].mxu0 }
 0x4fe   : > { %v13845_v59 = vpop.f32.mrb[46].mxu1  ;;  %v13734_v6 = vpop.f32.mrb[47].mxu0 }
 0x4ff   : > { %v13846_v8 = vpop.f32.mrb[47].mxu1 }
 0x500   : > { %6017 = vmatmul.mubr.bf16.gmra.mrb[152].mxu0 %v18333_v53 }
 0x501   : > { %6162 = vmatmul.mubr.bf16.gmra.mrb[152].mxu1 %v18329_v48  ;;  %6024 = vmatprep.mubr.bf16.mxu0 %v18451_v37 }
 0x502   : > { %6169 = vmatprep.mubr.bf16.mxu1 %v20520_v19 }
 0x503   : > { %v13736_v2 = vpop.f32.mrb[48].mxu0 }
 0x504   : > { %v13848_v52 = vpop.f32.mrb[48].mxu1  ;;  %v13737_v39 = vpop.f32.mrb[49].mxu0 }
 0x505   : > { %v13849_v51 = vpop.f32.mrb[49].mxu1  ;;  %v13738_v54 = vadd.f32 %v13737_v39, %v13736_v2  ;;  %v13739_v63 = vpop.f32.mrb[50].mxu0 }
 0x506   : > { %v13850_v62 = vadd.f32 %v13849_v51, %v13848_v52  ;;  %v13851_v29 = vpop.f32.mrb[50].mxu1  ;;  %v13740_v12 = vpop.f32.mrb[51].mxu0 }
 0x507   : > { %v13852_v32 = vpop.f32.mrb[51].mxu1  ;;  %v5659_v53 = vadd.f32 %v13738_v54, %v18411_v61  ;;  %v13741_v24 = vadd.f32 %v13740_v12, %v13739_v63 }
 0x508   : > { %v13853_v48 = vadd.f32 %v13852_v32, %v13851_v29  ;;  %6025 = vmatmul.mubr.bf16.gmra.mrb[156].mxu0 %v5150_v36 }
 0x509   : > { %6170 = vmatmul.mubr.bf16.gmra.mrb[156].mxu1 %v20521_v17  ;;  %v18457_v19 = vadd.f32 %v13850_v62, %v5659_v53  ;;  %v5662_v45 = vadd.f32 %v13741_v24, %v18411_v61  ;;  %14911 = vmatprep.mubr.bf16.mxu0 %v18000_v14 }
 0x50b   : > { %v18461_v18 = vadd.f32 %v13853_v48, %v5662_v45  ;;  %v13742_v58 = vpop.f32.mrb[52].mxu0 }
 0x50c   : > { %v13854_v55 = vpop.f32.mrb[52].mxu1  ;;  %v13743_v7 = vpop.f32.mrb[53].mxu0 }
 0x50d   : > { %v13855_v41 = vpop.f32.mrb[53].mxu1  ;;  %v13745_v22 = vpop.f32.mrb[54].mxu0 }
 0x50e   : > { %v13857_v25 = vpop.f32.mrb[54].mxu1  ;;  %v13746_v47 = vpop.f32.mrb[55].mxu0  ;;  %v15335_v41 = vld [vmem:[%s20444_s7] sm:$0xff]  }
 0x50f   : > { %v13858_v26 = vpop.f32.mrb[55].mxu1 }
 0x510   : > { %14912 = vmatmul.mubr.bf16.vlgmr.msra.gmra.mrb[160].mxu0 %v18050_v42 }
 0x511   : > { %14915 = vmatprep.mubr.bf16.mxu0 %v18093_v31 }
 0x513   : > { %v13748_v21 = vpop.f32.mrb[56].mxu0 }
 0x514   : > { %v13860_v13 = vpop.f32.mrb[56].mxu1  ;;  %v13749_v23 = vpop.f32.mrb[57].mxu0 }
 0x515   : > { %v13861_v20 = vpop.f32.mrb[57].mxu1  ;;  %v13750_v36 = vadd.f32 %v13749_v23, %v13748_v21  ;;  %v13751_v10 = vpop.f32.mrb[58].mxu0 }
 0x516   : > { %v13862_v3 = vadd.f32 %v13861_v20, %v13860_v13  ;;  %v13863_v14 = vpop.f32.mrb[58].mxu1  ;;  %v13752_v57 = vpop.f32.mrb[59].mxu0 }
 0x517   : > { %v13864_v43 = vpop.f32.mrb[59].mxu1  ;;  %v5673_v16 = vadd.f32 %v13750_v36, %v18411_v61  ;;  %v13753_v59 = vadd.f32 %v13752_v57, %v13751_v10 }
 0x518   : > { %v13865_v30 = vadd.f32 %v13864_v43, %v13863_v14  ;;  %14916 = vmatmul.mubr.bf16.gmra.mrb[164].mxu0 %v18127_v5 }
 0x519   : > { %v18467_v50 = vadd.f32 %v13862_v3, %v5673_v16  ;;  %v5676_v42 = vadd.f32 %v13753_v59, %v18411_v61  ;;  %14919 = vmatprep.mubr.bf16.mxu0 %v18157_v60 }
 0x51b   : > { %v18471_v44 = vadd.f32 %v13865_v30, %v5676_v42  ;;  %v13754_v8 = vpop.f32.mrb[60].mxu0 }
 0x51c   : > { %v13866_v31 = vpop.f32.mrb[60].mxu1  ;;  %v13755_v4 = vpop.f32.mrb[61].mxu0 }
 0x51d   : > { %v13867_v6 = vpop.f32.mrb[61].mxu1  ;;  %v13757_v2 = vpop.f32.mrb[62].mxu0 }
 0x51e   : > { %v13869_v52 = vpop.f32.mrb[62].mxu1  ;;  %v13758_v39 = vpop.f32.mrb[63].mxu0  ;;  %v15337_v6 = vld [vmem:[%s20444_s7 + $0x8] sm:$0xff]  }
 0x51f   : > { %v13870_v51 = vpop.f32.mrb[63].mxu1 }
 0x520   : > { %14920 = vmatmul.mubr.bf16.gmra.mrb[168].mxu0 %v18178_v9  ;;  %v15334_v9 = vld [vmem:[%s20444_s7 + $0x40] sm:$0xff]  }
 0x521   : > { %14923 = vmatprep.mubr.bf16.mxu0 %v18199_v46  ;;  %14168 = vmatprep.subr.bf16.mxu1 %v15334_v9 }
 0x522   : > { %14169 = vmatpush3.bf16.msra.mxu1 %v15335_v41 }
 0x523   : > { %v13760_v62 = vpop.f32.mrb[64].mxu0 }
 0x524   : > { %v13872_v5 = vpop.f32.mrb[64].mxu1  ;;  %v13761_v54 = vpop.f32.mrb[65].mxu0 }
 0x525   : > { %v13873_v29 = vpop.f32.mrb[65].mxu1  ;;  %v13762_v32 = vadd.f32 %v13761_v54, %v13760_v62  ;;  %v13763_v12 = vpop.f32.mrb[66].mxu0 }
 0x526   : > { %v13874_v63 = vadd.f32 %v13873_v29, %v13872_v5  ;;  %v13875_v60 = vpop.f32.mrb[66].mxu1  ;;  %v13764_v53 = vpop.f32.mrb[67].mxu0 }
 0x527   : > { %v13876_v48 = vpop.f32.mrb[67].mxu1  ;;  %v5687_v45 = vadd.f32 %v13762_v32, %v18411_v61  ;;  %v13765_v55 = vadd.f32 %v13764_v53, %v13763_v12 }
 0x528   : > { %v13877_v24 = vadd.f32 %v13876_v48, %v13875_v60  ;;  %14924 = vmatmul.mubr.bf16.gmra.mrb[172].mxu0 %v18220_v38 }
 0x529   : > { %v18480_v46 = vadd.f32 %v13874_v63, %v5687_v45  ;;  %v5690_v58 = vadd.f32 %v13765_v55, %v18411_v61  ;;  %14927 = vmatprep.mubr.bf16.mxu0 %v18241_v49 }
 0x52b   : > { %v18487_v25 = vadd.f32 %v13877_v24, %v5690_v58  ;;  %v13766_v22 = vpop.f32.mrb[68].mxu0 }
 0x52c   : > { %v13878_v7 = vpop.f32.mrb[68].mxu1  ;;  %v13767_v47 = vpop.f32.mrb[69].mxu0 }
 0x52d   : > { %v13879_v26 = vpop.f32.mrb[69].mxu1  ;;  %v13769_v38 = vpop.f32.mrb[70].mxu0  ;;  %v15339_v7 = vld [vmem:[%s20444_s7 + $0x10] sm:$0xff]  }
 0x52e   : > { %v13881_v13 = vpop.f32.mrb[70].mxu1  ;;  %v13770_v20 = vpop.f32.mrb[71].mxu0 }
 0x52f   : > { %v13882_v21 = vpop.f32.mrb[71].mxu1 }
 0x530   : > { %14928 = vmatmul.mubr.bf16.gmra.mrb[176].mxu0 %v18264_v27  ;;  %v15336_v27 = vld [vmem:[%s20444_s7 + $0x48] sm:$0xff]  }
 0x531   : > { %14931 = vmatprep.mubr.bf16.mxu0 %v18286_v0  ;;  %14170 = vmatprep.subr.bf16.mxu1 %v15336_v27 }
 0x532   : > { %14171 = vmatpush3.bf16.msra.mxu1 %v15337_v6 }
 0x533   : > { %v13772_v23 = vpop.f32.mrb[72].mxu0 }
 0x534   : > { %v13884_v49 = vpop.f32.mrb[72].mxu1  ;;  %v13773_v14 = vpop.f32.mrb[73].mxu0 }
 0x535   : > { %v13885_v3 = vpop.f32.mrb[73].mxu1  ;;  %v13774_v43 = vadd.f32 %v13773_v14, %v13772_v23  ;;  %v13775_v57 = vpop.f32.mrb[74].mxu0 }
 0x536   : > { %v13886_v36 = vadd.f32 %v13885_v3, %v13884_v49  ;;  %v13887_v10 = vpop.f32.mrb[74].mxu1  ;;  %v13776_v16 = vpop.f32.mrb[75].mxu0 }
 0x537   : > { %v13888_v30 = vpop.f32.mrb[75].mxu1  ;;  %v5701_v42 = vadd.f32 %v13774_v43, %v18411_v61  ;;  %v13777_v31 = vadd.f32 %v13776_v16, %v13775_v57 }
 0x538   : > { %v13889_v59 = vadd.f32 %v13888_v30, %v13887_v10  ;;  %14932 = vmatmul.mubr.bf16.gmra.mrb[180].mxu0 %v18306_v11 }
 0x539   : > { %v18496_v0 = vadd.f32 %v13886_v36, %v5701_v42  ;;  %v5704_v8 = vadd.f32 %v13777_v31, %v18411_v61  ;;  %14935 = vmatprep.mubr.bf16.mxu0 %v18324_v35 }
 0x53b   : > { %v18503_v52 = vadd.f32 %v13889_v59, %v5704_v8  ;;  %v13778_v2 = vpop.f32.mrb[76].mxu0  ;;  %v15340_v8 = vld [vmem:[%s20444_s7 + $0x58] sm:$0xff]  }
 0x53c   : > { %v13890_v4 = vpop.f32.mrb[76].mxu1  ;;  %v13779_v39 = vpop.f32.mrb[77].mxu0  ;;  %v15341_v2 = vld [vmem:[%s20444_s7 + $0x18] sm:$0xff]  }
 0x53d   : > { %v13891_v51 = vpop.f32.mrb[77].mxu1  ;;  %v13781_v11 = vpop.f32.mrb[78].mxu0 }
 0x53e   : > { %v13893_v5 = vpop.f32.mrb[78].mxu1  ;;  %v13782_v29 = vpop.f32.mrb[79].mxu0 }
 0x53f   : > { %v13894_v62 = vpop.f32.mrb[79].mxu1 }
 0x540   : > { %14936 = vmatmul.mubr.bf16.gmra.mrb[184].mxu0 %v18339_v56  ;;  %v15338_v56 = vld [vmem:[%s20444_s7 + $0x50] sm:$0xff]  }
 0x541   : > { %14939 = vmatprep.mubr.bf16.mxu0 %v18451_v37  ;;  %14172 = vmatprep.subr.bf16.mxu1 %v15338_v56 }
 0x542   : > { %14173 = vmatpush3.bf16.msra.mxu1 %v15339_v7 }
 0x543   : > { %v13784_v54 = vpop.f32.mrb[80].mxu0  ;;  %14174 = vmatprep.subr.bf16.mxu1 %v15340_v8 }
 0x544   : > { %v13896_v35 = vpop.f32.mrb[80].mxu1  ;;  %v13785_v60 = vpop.f32.mrb[81].mxu0 }
 0x545   : > { %v13897_v63 = vpop.f32.mrb[81].mxu1  ;;  %v13786_v48 = vadd.f32 %v13785_v60, %v13784_v54  ;;  %v13787_v53 = vpop.f32.mrb[82].mxu0 }
 0x546   : > { %v13898_v32 = vadd.f32 %v13897_v63, %v13896_v35  ;;  %v13899_v12 = vpop.f32.mrb[82].mxu1  ;;  %v13788_v45 = vpop.f32.mrb[83].mxu0  ;;  %14175 = vmatpush3.bf16.msra.mxu1 %v15341_v2 }
 0x547   : > { %v13900_v24 = vpop.f32.mrb[83].mxu1  ;;  %v5715_v9 = vadd.f32 %v13786_v48, %v18411_v61  ;;  %v13789_v58 = vadd.f32 %v13788_v45, %v13787_v53 }
 0x548   : > { %v13901_v55 = vadd.f32 %v13900_v24, %v13899_v12  ;;  %14940 = vmatmul.mubr.bf16.gmra.mrb[188].mxu0 %v20522_v1 }
 0x549   : > { %v18512_v37 = vadd.f32 %v13898_v32, %v5715_v9  ;;  %v5718_v41 = vadd.f32 %v13789_v58, %v18411_v61 }
 0x54b   : > { %v18518_v26 = vadd.f32 %v13901_v55, %v5718_v41  ;;  %v13790_v47 = vpop.f32.mrb[84].mxu0 }
 0x54c   : > { %v13902_v22 = vpop.f32.mrb[84].mxu1  ;;  %v13791_v38 = vpop.f32.mrb[85].mxu0 }
 0x54d   : > { %v13903_v13 = vpop.f32.mrb[85].mxu1  ;;  %v13793_v20 = vpop.f32.mrb[86].mxu0 }
 0x54e   : > { %v13905_v21 = vpop.f32.mrb[86].mxu1  ;;  %v13794_v1 = vpop.f32.mrb[87].mxu0 }
 0x54f   : > { %v13906_v49 = vpop.f32.mrb[87].mxu1 }
 0x553   : > { %v13796_v3 = vpop.f32.mrb[88].mxu0 }
 0x554   : > { %v13908_v23 = vpop.f32.mrb[88].mxu1  ;;  %v13797_v36 = vpop.f32.mrb[89].mxu0 }
 0x555   : > { %v13909_v14 = vpop.f32.mrb[89].mxu1  ;;  %v13798_v57 = vadd.f32 %v13797_v36, %v13796_v3  ;;  %v13799_v30 = vpop.f32.mrb[90].mxu0 }
 0x556   : > { %v13910_v10 = vadd.f32 %v13909_v14, %v13908_v23  ;;  %v13911_v43 = vpop.f32.mrb[90].mxu1  ;;  %v13800_v59 = vpop.f32.mrb[91].mxu0 }
 0x557   : > { %v13912_v16 = vpop.f32.mrb[91].mxu1  ;;  %v5729_v31 = vadd.f32 %v13798_v57, %v18411_v61  ;;  %v13801_v27 = vadd.f32 %v13800_v59, %v13799_v30 }
 0x558   : > { %v13913_v42 = vadd.f32 %v13912_v16, %v13911_v43 }
 0x559   : > { %v18524_v6 = vadd.f32 %v13910_v10, %v5729_v31  ;;  %v5732_v4 = vadd.f32 %v13801_v27, %v18411_v61 }
 0x55b   : > { %v18530_v39 = vadd.f32 %v13913_v42, %v5732_v4  ;;  %v13802_v5 = vpop.f32.mrb[92].mxu0 }
 0x55c   : > { %v13914_v51 = vpop.f32.mrb[92].mxu1  ;;  %v13803_v62 = vpop.f32.mrb[93].mxu0 }
 0x55d   : > { %v13915_v11 = vpop.f32.mrb[93].mxu1  ;;  %v13805_v35 = vpop.f32.mrb[94].mxu0 }
 0x55e   : > { %v13917_v29 = vpop.f32.mrb[94].mxu1  ;;  %v13806_v63 = vpop.f32.mrb[95].mxu0 }
 0x55f   : > { %v13918_v54 = vpop.f32.mrb[95].mxu1 }
 0x563   : > { %v13936_v32 = vpop.f32.mrb[96].mxu0 }
 0x564   : > { %v14048_v60 = vpop.f32.mrb[96].mxu1  ;;  %v13937_v61 = vpop.f32.mrb[97].mxu0 }
 0x565   : > { %v14049_v12 = vpop.f32.mrb[97].mxu1  ;;  %v13938_v24 = vadd.f32 %v13937_v61, %v13936_v32  ;;  %v13939_v45 = vpop.f32.mrb[98].mxu0  ;;  %v15343_v32 = vld [vmem:[%s20444_s7 + $0x20] sm:$0xff]  }
 0x566   : > { %v14050_v48 = vadd.f32 %v14049_v12, %v14048_v60  ;;  %v14051_v53 = vpop.f32.mrb[98].mxu1  ;;  %v13940_v9 = vpop.f32.mrb[99].mxu0 }
 0x567   : > { %v14052_v55 = vpop.f32.mrb[99].mxu1  ;;  %v5921_v56 = vadd.f32 %v13938_v24, %v18420_v28  ;;  %v13941_v41 = vadd.f32 %v13940_v9, %v13939_v45 }
 0x568   : > { %v14053_v58 = vadd.f32 %v14052_v55, %v14051_v53 }
 0x569   : > { %v5924_v7 = vadd.f32 %v13941_v41, %v18425_v34  ;;  %v18534_v22 = vadd.f32 %v14050_v48, %v5921_v56  ;;  %v15342_v34 = vld [vmem:[%s20444_s7 + $0x60] sm:$0xff]  }
 0x56a   : > { %14176 = vmatprep.subr.bf16.mxu1 %v15342_v34 }
 0x56b   : > { %v13942_v13 = vpop.f32.mrb[100].mxu0  ;;  %v18536_v21 = vadd.f32 %v14053_v58, %v5924_v7  ;;  %14177 = vmatpush3.bf16.msra.mxu1 %v15343_v32 }
 0x56c   : > { %v14054_v47 = vpop.f32.mrb[100].mxu1  ;;  %v13943_v20 = vpop.f32.mrb[101].mxu0 }
 0x56d   : > { %v14055_v38 = vpop.f32.mrb[101].mxu1  ;;  %v13945_v1 = vpop.f32.mrb[102].mxu0 }
 0x56e   : > { %v14057_v49 = vpop.f32.mrb[102].mxu1  ;;  %v13946_v3 = vpop.f32.mrb[103].mxu0  ;;  %v15345_v1 = vld [vmem:[%s20444_s7 + $0x68] sm:$0xff]  }
 0x56f   : > { %v14058_v23 = vpop.f32.mrb[103].mxu1  ;;  %v15344_v49 = vld [vmem:[%s20444_s7 + $0x140] sm:$0xff]   ;;  %14178 = vmatprep.subr.bf16.mxu1 %v15345_v1 }
 0x570   : > { %14248 = vmatprep.subr.bf16.mxu0 %v15344_v49 }
 0x573   : > { %v13948_v36 = vpop.f32.mrb[104].mxu0 }
 0x574   : > { %v14060_v14 = vpop.f32.mrb[104].mxu1  ;;  %v13949_v43 = vpop.f32.mrb[105].mxu0 }
 0x575   : > { %v14061_v10 = vpop.f32.mrb[105].mxu1  ;;  %v13950_v30 = vadd.f32 %v13949_v43, %v13948_v36  ;;  %v13951_v16 = vpop.f32.mrb[106].mxu0  ;;  %v15348_v43 = vld [vmem:[%s20444_s7 + $0x148] sm:$0xff]  }
 0x576   : > { %v14062_v28 = vadd.f32 %v14061_v10, %v14060_v14  ;;  %v14063_v57 = vpop.f32.mrb[106].mxu1  ;;  %v13952_v42 = vpop.f32.mrb[107].mxu0 }
 0x577   : > { %v14064_v59 = vpop.f32.mrb[107].mxu1  ;;  %v5935_v27 = vadd.f32 %v13950_v30, %v18441_v40  ;;  %v13953_v8 = vadd.f32 %v13952_v42, %v13951_v16 }
 0x578   : > { %v14065_v31 = vadd.f32 %v14064_v59, %v14063_v57 }
 0x579   : > { %v5938_v4 = vadd.f32 %v13953_v8, %v18445_v15  ;;  %v18543_v2 = vadd.f32 %v14062_v28, %v5935_v27  ;;  %v15349_v28 = vld [vmem:[%s20444_s7 + $0x108] sm:$0xff]  }
 0x57b   : > { %v13954_v5 = vpop.f32.mrb[108].mxu0  ;;  %v18545_v62 = vadd.f32 %v14065_v31, %v5938_v4  ;;  %v15350_v31 = vld [vmem:[%s20444_s7 + $0x150] sm:$0xff]  }
 0x57c   : > { %v14066_v51 = vpop.f32.mrb[108].mxu1  ;;  %v13955_v29 = vpop.f32.mrb[109].mxu0 }
 0x57d   : > { %v14067_v11 = vpop.f32.mrb[109].mxu1  ;;  %v13957_v54 = vpop.f32.mrb[110].mxu0  ;;  %v15351_v51 = vld [vmem:[%s20444_s7 + $0x110] sm:$0xff]  }
 0x57e   : > { %v14069_v35 = vpop.f32.mrb[110].mxu1  ;;  %v13958_v60 = vpop.f32.mrb[111].mxu0  ;;  %v15347_v54 = vld [vmem:[%s20444_s7 + $0x28] sm:$0xff]  }
 0x57f   : > { %v14070_v63 = vpop.f32.mrb[111].mxu1  ;;  %14179 = vmatpush3.bf16.msra.mxu1 %v15347_v54 }
 0x580   : > { %v15352_v63 = vld [vmem:[%s20444_s7 + $0x158] sm:$0xff]  }
 0x583   : > { %v13960_v12 = vpop.f32.mrb[112].mxu0 }
 0x584   : > { %v14072_v40 = vpop.f32.mrb[112].mxu1  ;;  %v13961_v61 = vpop.f32.mrb[113].mxu0 }
 0x585   : > { %v14073_v15 = vpop.f32.mrb[113].mxu1  ;;  %v13962_v24 = vadd.f32 %v13961_v61, %v13960_v12  ;;  %v13963_v45 = vpop.f32.mrb[114].mxu0 }
 0x586   : > { %v14074_v48 = vadd.f32 %v14073_v15, %v14072_v40  ;;  %v14075_v53 = vpop.f32.mrb[114].mxu1  ;;  %v13964_v9 = vpop.f32.mrb[115].mxu0  ;;  %v15353_v40 = vld [vmem:[%s20444_s7 + $0x118] sm:$0xff]  }
 0x587   : > { %v14076_v55 = vpop.f32.mrb[115].mxu1  ;;  %v5949_v56 = vadd.f32 %v13962_v24, %v18457_v19  ;;  %v13965_v41 = vadd.f32 %v13964_v9, %v13963_v45  ;;  %v15346_v19 = vld [vmem:[%s20444_s7 + $0x100] sm:$0xff]  }
 0x588   : > { %v14077_v58 = vadd.f32 %v14076_v55, %v14075_v53  ;;  %14249 = vmatpush3.bf16.msra.mxu0 %v15346_v19  ;;  %v15355_v55 = vld [vmem:[%s20444_s7 + $0x70] sm:$0xff]   ;;  %v15356_v9 = vld [vmem:[%s20444_s7 + $0x120] sm:$0xff]  }
 0x589   : > { %v5952_v7 = vadd.f32 %v13965_v41, %v18461_v18  ;;  %v18552_v47 = vadd.f32 %v14074_v48, %v5949_v56  ;;  %14250 = vmatprep.subr.bf16.mxu0 %v15348_v43  ;;  %v15357_v56 = vld [vmem:[%s20444_s7 + $0x30] sm:$0xff]   ;;  %14180 = vmatprep.subr.bf16.mxu1 %v15355_v55  ;;  %v15358_v41 = vld [vmem:[%s20444_s7 + $0x168] sm:$0xff]  }
 0x58a   : > { %14181 = vmatpush3.bf16.msra.mxu1 %v15357_v56  ;;  %v15365_v56 = vld [vmem:[%s20444_s7 + $0x138] sm:$0xff]  }
 0x58b   : > { %v13966_v38 = vpop.f32.mrb[116].mxu0  ;;  %v18563_v23 = vadd.f32 %v14077_v58, %v5952_v7  ;;  %v15359_v7 = vld [vmem:[%s20444_s7 + $0x78] sm:$0xff]  }
 0x58c   : > { %v14078_v13 = vpop.f32.mrb[116].mxu1  ;;  %v13967_v18 = vpop.f32.mrb[117].mxu0  ;;  %14251 = vmatpush3.bf16.msra.mxu0 %v15349_v28  ;;  %14182 = vmatprep.subr.bf16.mxu1 %v15359_v7 }
 0x58d   : > { %v14079_v20 = vpop.f32.mrb[117].mxu1  ;;  %v13969_v14 = vpop.f32.mrb[118].mxu0  ;;  %14252 = vmatprep.subr.bf16.mxu0 %v15350_v31  ;;  %v15360_v13 = vld [vmem:[%s20444_s7 + $0x128] sm:$0xff]  }
 0x58e   : > { %v14081_v3 = vpop.f32.mrb[118].mxu1  ;;  %v13970_v10 = vpop.f32.mrb[119].mxu0  ;;  %v15361_v20 = vld [vmem:[%s20444_s7 + $0x38] sm:$0xff]  }
 0x58f   : > { %v14082_v36 = vpop.f32.mrb[119].mxu1  ;;  %14183 = vmatpush3.bf16.msra.mxu1 %v15361_v20 }
 0x590   : > { %14253 = vmatpush3.bf16.msra.mxu0 %v15351_v51 }
 0x591   : > { %14254 = vmatprep.subr.bf16.mxu0 %v15352_v63 }
 0x593   : > { %v13972_v34 = vpop.f32.mrb[120].mxu0 }
 0x594   : > { %v14084_v57 = vpop.f32.mrb[120].mxu1  ;;  %v13973_v16 = vpop.f32.mrb[121].mxu0  ;;  %14255 = vmatpush3.bf16.msra.mxu0 %v15353_v40  ;;  %v15363_v40 = vld [vmem:[%s20444_s7 + $0x130] sm:$0xff]  }
 0x595   : > { %v14085_v30 = vpop.f32.mrb[121].mxu1  ;;  %v13974_v27 = vadd.f32 %v13973_v16, %v13972_v34  ;;  %v13975_v8 = vpop.f32.mrb[122].mxu0 }
 0x596   : > { %v14086_v59 = vadd.f32 %v14085_v30, %v14084_v57  ;;  %v14087_v42 = vpop.f32.mrb[122].mxu1  ;;  %v13976_v5 = vpop.f32.mrb[123].mxu0 }
 0x597   : > { %v14088_v4 = vpop.f32.mrb[123].mxu1  ;;  %v5963_v29 = vadd.f32 %v13974_v27, %v18467_v50  ;;  %v13977_v35 = vadd.f32 %v13976_v5, %v13975_v8 }
 0x598   : > { %v14089_v11 = vadd.f32 %v14088_v4, %v14087_v42 }
 0x599   : > { %v5966_v60 = vadd.f32 %v13977_v35, %v18471_v44  ;;  %v18585_v32 = vadd.f32 %v14086_v59, %v5963_v29  ;;  %v15354_v44 = vld [vmem:[%s20444_s7 + $0x160] sm:$0xff]  }
 0x59a   : > { %14256 = vmatprep.subr.bf16.mxu0 %v15354_v44 }
 0x59b   : > { %v13978_v12 = vpop.f32.mrb[124].mxu0  ;;  %v18590_v61 = vadd.f32 %v14089_v11, %v5966_v60  ;;  %14257 = vmatpush3.bf16.msra.mxu0 %v15356_v9 }
 0x59c   : > { %v14090_v50 = vpop.f32.mrb[124].mxu1  ;;  %v13979_v48 = vpop.f32.mrb[125].mxu0  ;;  %14258 = vmatprep.subr.bf16.mxu0 %v15358_v41 }
 0x59d   : > { %v14091_v15 = vpop.f32.mrb[125].mxu1  ;;  %v13981_v24 = vpop.f32.mrb[126].mxu0 }
 0x59e   : > { %v14093_v53 = vpop.f32.mrb[126].mxu1  ;;  %v13982_v58 = vpop.f32.mrb[127].mxu0 }
 0x59f   : > { %v14094_v45 = vpop.f32.mrb[127].mxu1  ;;  %14259 = vmatpush3.bf16.msra.mxu0 %v15360_v13 }
 0x5a0   : > { %v15364_v45 = vld [vmem:[%s20444_s7 + $0x178] sm:$0xff]  }
 0x5a3   : > { %v13984_v49 = vpop.f32.mrb[128].mxu0 }
 0x5a4   : > { %v14096_v38 = vpop.f32.mrb[128].mxu1  ;;  %v13985_v19 = vpop.f32.mrb[129].mxu0 }
 0x5a5   : > { %v14097_v1 = vpop.f32.mrb[129].mxu1  ;;  %v13986_v14 = vadd.f32 %v13985_v19, %v13984_v49  ;;  %v13987_v36 = vpop.f32.mrb[130].mxu0 }
 0x5a6   : > { %v14098_v18 = vadd.f32 %v14097_v1, %v14096_v38  ;;  %v14099_v3 = vpop.f32.mrb[130].mxu1  ;;  %v13988_v43 = vpop.f32.mrb[131].mxu0 }
 0x5a7   : > { %v14100_v10 = vpop.f32.mrb[131].mxu1  ;;  %v5977_v57 = vadd.f32 %v13986_v14, %v18480_v46  ;;  %v13989_v34 = vadd.f32 %v13988_v43, %v13987_v36  ;;  %v15362_v46 = vld [vmem:[%s20444_s7 + $0x170] sm:$0xff]  }
 0x5a8   : > { %v14101_v28 = vadd.f32 %v14100_v10, %v14099_v3  ;;  %14260 = vmatprep.subr.bf16.mxu0 %v15362_v46 }
 0x5a9   : > { %v5980_v30 = vadd.f32 %v13989_v34, %v18487_v25  ;;  %v18618_v16 = vadd.f32 %v14098_v18, %v5977_v57  ;;  %14261 = vmatpush3.bf16.msra.mxu0 %v15363_v40 }
 0x5aa   : > { %14262 = vmatprep.subr.bf16.mxu0 %v15364_v45 }
 0x5ab   : > { %v13990_v42 = vpop.f32.mrb[132].mxu0  ;;  %v18620_v27 = vadd.f32 %v14101_v28, %v5980_v30 }
 0x5ac   : > { %v14102_v59 = vpop.f32.mrb[132].mxu1  ;;  %v13991_v8 = vpop.f32.mrb[133].mxu0 }
 0x5ad   : > { %v14103_v31 = vpop.f32.mrb[133].mxu1  ;;  %v13993_v51 = vpop.f32.mrb[134].mxu0  ;;  %14263 = vmatpush3.bf16.msra.mxu0 %v15365_v56 }
 0x5ae   : > { %v14105_v4 = vpop.f32.mrb[134].mxu1  ;;  %v13994_v11 = vpop.f32.mrb[135].mxu0 }
 0x5af   : > { %v14106_v5 = vpop.f32.mrb[135].mxu1 }
 0x5b3   : > { %v13996_v35 = vpop.f32.mrb[136].mxu0 }
 0x5b4   : > { %v14108_v29 = vpop.f32.mrb[136].mxu1  ;;  %v13997_v25 = vpop.f32.mrb[137].mxu0 }
 0x5b5   : > { %v14109_v54 = vpop.f32.mrb[137].mxu1  ;;  %v13998_v50 = vadd.f32 %v13997_v25, %v13996_v35  ;;  %v13999_v12 = vpop.f32.mrb[138].mxu0 }
 0x5b6   : > { %v14110_v63 = vadd.f32 %v14109_v54, %v14108_v29  ;;  %v14111_v60 = vpop.f32.mrb[138].mxu1  ;;  %v14000_v48 = vpop.f32.mrb[139].mxu0 }
 0x5b7   : > { %v14112_v15 = vpop.f32.mrb[139].mxu1  ;;  %v5991_v44 = vadd.f32 %v13998_v50, %v18496_v0  ;;  %v14001_v24 = vadd.f32 %v14000_v48, %v13999_v12 }
 0x5b8   : > { %v14113_v53 = vadd.f32 %v14112_v15, %v14111_v60 }
 0x5b9   : > { %v5994_v55 = vadd.f32 %v14001_v24, %v18503_v52  ;;  %v18633_v9 = vadd.f32 %v14110_v63, %v5991_v44 }
 0x5bb   : > { %v14002_v41 = vpop.f32.mrb[140].mxu0  ;;  %v18638_v13 = vadd.f32 %v14113_v53, %v5994_v55 }
 0x5bc   : > { %v14114_v58 = vpop.f32.mrb[140].mxu1  ;;  %v14003_v0 = vpop.f32.mrb[141].mxu0 }
 0x5bd   : > { %v14115_v7 = vpop.f32.mrb[141].mxu1  ;;  %v14005_v20 = vpop.f32.mrb[142].mxu0  ;;  %v15366_v58 = vld [vmem:[%s20444_s7 + $0xc0] sm:$0xff]  }
 0x5be   : > { %v14117_v38 = vpop.f32.mrb[142].mxu1  ;;  %v14006_v1 = vpop.f32.mrb[143].mxu0  ;;  %14208 = vmatprep.subr.bf16.mxu1 %v15366_v58 }
 0x5bf   : > { %v14118_v49 = vpop.f32.mrb[143].mxu1  ;;  %v15708_v1 = vmov 1983009808  }
 0x5c3   : > { %v14008_v52 = vpop.f32.mrb[144].mxu0 }
 0x5c4   : > { %v14120_v19 = vpop.f32.mrb[144].mxu1  ;;  %v14009_v3 = vpop.f32.mrb[145].mxu0 }
 0x5c5   : > { %v14121_v18 = vpop.f32.mrb[145].mxu1  ;;  %v14010_v10 = vadd.f32 %v14009_v3, %v14008_v52  ;;  %v14011_v43 = vpop.f32.mrb[146].mxu0 }
 0x5c6   : > { %v14122_v14 = vadd.f32 %v14121_v18, %v14120_v19  ;;  %v14123_v36 = vpop.f32.mrb[146].mxu1  ;;  %v14012_v57 = vpop.f32.mrb[147].mxu0  ;;  %v6357_v19 = vlaneseq }
 0x5c7   : > { %v14124_v28 = vpop.f32.mrb[147].mxu1  ;;  %v6005_v30 = vadd.f32 %v14010_v10, %v18512_v37  ;;  %v14013_v59 = vadd.f32 %v14012_v57, %v14011_v43 }
 0x5c8   : > { %v14125_v34 = vadd.f32 %v14124_v28, %v14123_v36  ;;  %v6358_v3 = vshrl.u32 %v6357_v19, 7 }
 0x5c9   : > { %v6008_v42 = vadd.f32 %v14013_v59, %v18518_v26  ;;  %v18642_v31 = vadd.f32 %v14122_v14, %v6005_v30  ;;  %v18659_v14 = vld [vmem:[%s20444_s7 + $0x200] sm:$0xff]   ;;  %v18672_v30 = vsel %vm18661_vm8, %v20521_v17, 0 }
 0x5ca   : > { %14943 = vmatprep.subr.bf16.mxu0 %v18659_v14 }
 0x5cb   : > { %v14014_v4 = vpop.f32.mrb[148].mxu0  ;;  %v18644_v5 = vadd.f32 %v14125_v34, %v6008_v42 }
 0x5cc   : > { %v14126_v8 = vpop.f32.mrb[148].mxu1  ;;  %v14015_v11 = vpop.f32.mrb[149].mxu0  ;;  %v7240_v4 = vshll.u32 %v18672_v30, 16 }
 0x5cd   : > { %v14127_v51 = vpop.f32.mrb[149].mxu1  ;;  %v14017_v35 = vpop.f32.mrb[150].mxu0 }
 0x5ce   : > { %v14129_v29 = vpop.f32.mrb[150].mxu1  ;;  %v14018_v46 = vpop.f32.mrb[151].mxu0 }
 0x5cf   : > { %v14130_v54 = vpop.f32.mrb[151].mxu1 }
 0x5d3   : > { %v14020_v63 = vpop.f32.mrb[152].mxu0 }
 0x5d4   : > { %v14132_v25 = vpop.f32.mrb[152].mxu1  ;;  %v14021_v40 = vpop.f32.mrb[153].mxu0 }
 0x5d5   : > { %v14133_v60 = vpop.f32.mrb[153].mxu1  ;;  %v14022_v12 = vadd.f32 %v14021_v40, %v14020_v63  ;;  %v14023_v26 = vpop.f32.mrb[154].mxu0  ;;  %v18680_v40 = vrot.slane %v7240_v4, 1 }
 0x5d6   : > { %v14134_v37 = vadd.f32 %v14133_v60, %v14132_v25  ;;  %v14135_v50 = vpop.f32.mrb[154].mxu1  ;;  %v14024_v48 = vpop.f32.mrb[155].mxu0  ;;  %v7238_v60 = vshrl.u32 %v18672_v30, 16 }
 0x5d7   : > { %v14136_v15 = vpop.f32.mrb[155].mxu1  ;;  %v6019_v44 = vadd.f32 %v14022_v12, %v18524_v6  ;;  %v14025_v24 = vadd.f32 %v14024_v48, %v14023_v26  ;;  %v6355_v6 = vunpack.c.l.s4 %v15708_v1 }
 0x5d8   : > { %v14137_v53 = vadd.f32 %v14136_v15, %v14135_v50 }
 0x5d9   : > { %v6022_v45 = vadd.f32 %v14025_v24, %v18530_v39  ;;  %v18648_v55 = vadd.f32 %v14134_v37, %v6019_v44  ;;  %v6356_v18 = vunpack.c.0.s8 %v6355_v6 }
 0x5db   : > { %v14026_v41 = vpop.f32.mrb[156].mxu0  ;;  %v18653_v7 = vadd.f32 %v14137_v53, %v6022_v45  ;;  %v18667_v57 = vsub.s32 %v6356_v18, %v6358_v3 }
 0x5dc   : > { %v14138_v56 = vpop.f32.mrb[156].mxu1  ;;  %v14027_v38 = vpop.f32.mrb[157].mxu0 }
 0x5dd   : > { %v14139_v0 = vpop.f32.mrb[157].mxu1  ;;  %v14029_v49 = vpop.f32.mrb[158].mxu0 }
 0x5de   : > { %v14141_v20 = vpop.f32.mrb[158].mxu1  ;;  %v14030_v39 = vpop.f32.mrb[159].mxu0 }
 0x5df   : > { %v14142_v52 = vpop.f32.mrb[159].mxu1 }
 0x5e3   : > { %v14913_v10 = vpop.f32.mrb[160].mxu0 }
 0x5e4   : > { %v6210_v43 = vpop.f32.mrb[161].mxu0 }
 0x5e5   : > { %v6211_v28 = vadd.f32 %v6210_v43, %v18534_v22  ;;  %v14914_v34 = vpop.f32.mrb[162].mxu0 }
 0x5e6   : > { %v6213_v59 = vpop.f32.mrb[163].mxu0 }
 0x5e7   : > { %v6321_v42 = vmax.f32 %v6211_v28, 0.0  ;;  %v6214_v8 = vadd.f32 %v6213_v59, %v18536_v21 }
 0x5e9   : > { %v6353_v51 = vcombine.high %v6321_v42, %v6321_v42  ;;  %v6360_v11 = vrot.slane %v6321_v42, %v18667_v57  ;;  %v6322_v29 = vmax.f32 %v6214_v8, 0.0 }
 0x5eb   : > { %v6367_v22 = vrot.slane %v6353_v51, %v18667_v57  ;;  %v6368_v35 = vcombine.high %v6360_v11, %v6360_v11  ;;  %v6689_v54 = vpack.c.bf16 %v6360_v11, %v6360_v11  ;;  %v6370_v46 = vcombine.high %v6322_v29, %v6322_v29  ;;  %v14917_v25 = vpop.f32.mrb[164].mxu0 }
 0x5ec   : > { %v6377_v63 = vrot.slane %v6322_v29, %v18667_v57  ;;  %v6224_v21 = vpop.f32.mrb[165].mxu0 }
 0x5ed   : > { %v6369_v37 = vcombine.high %v6367_v22, %v6367_v22  ;;  %v6690_v50 = vpack.c.bf16 %v6368_v35, %v6368_v35  ;;  %v6691_v12 = vpack.c.bf16 %v6367_v22, %v6367_v22  ;;  %v6962_v26 = vunpack.c.l.b16 %v6689_v54  ;;  %v14918_v15 = vpop.f32.mrb[166].mxu0 }
 0x5ee   : > { %v6384_v48 = vrot.slane %v6370_v46, %v18667_v57  ;;  %v6385_v53 = vcombine.high %v6377_v63, %v6377_v63  ;;  %v6693_v44 = vpack.c.bf16 %v6377_v63, %v6377_v63  ;;  %v6225_v24 = vadd.f32 %v6224_v21, %v18543_v2  ;;  %v6227_v45 = vpop.f32.mrb[167].mxu0 }
 0x5ef   : > { %v6692_v58 = vpack.c.bf16 %v6369_v37, %v6369_v37  ;;  %v6963_v56 = vunpack.c.l.b16 %v6690_v50  ;;  %v6964_v41 = vunpack.c.l.b16 %v6691_v12  ;;  %v6228_v0 = vadd.f32 %v6227_v45, %v18545_v62 }
 0x5f0   : > { %v6386_v38 = vcombine.high %v6384_v48, %v6384_v48  ;;  %v6694_v20 = vpack.c.bf16 %v6385_v53, %v6385_v53  ;;  %v6695_v49 = vpack.c.bf16 %v6384_v48, %v6384_v48  ;;  %v6966_v1 = vunpack.c.l.b16 %v6693_v44 }
 0x5f1   : > { %v6965_v6 = vunpack.c.l.b16 %v6692_v58  ;;  %v7026_v52 = vrot.slane %v6963_v56, 7  ;;  %v7029_v39 = vrot.slane %v6964_v41, 6  ;;  %v6323_v18 = vmax.f32 %v6225_v24, 0.0 }
 0x5f2   : > { %v6696_v3 = vpack.c.bf16 %v6386_v38, %v6386_v38  ;;  %v6967_v10 = vunpack.c.l.b16 %v6694_v20  ;;  %v6968_v43 = vunpack.c.l.b16 %v6695_v49  ;;  %v7035_v28 = vrot.slane %v6966_v1, 4 }
 0x5f3   : > { %v7028_v2 = vsel %vm7027_vm9, %v7026_v52, %v6962_v26  ;;  %v7032_v34 = vrot.slane %v6965_v6, 5  ;;  %v6387_v59 = vcombine.high %v6323_v18, %v6323_v18  ;;  %v6394_v42 = vrot.slane %v6323_v18, %v18667_v57  ;;  %v14921_v8 = vpop.f32.mrb[168].mxu0 }
 0x5f4   : > { %v7031_v62 = vsel %vm7030_vm10, %v7029_v39, %v7028_v2  ;;  %v6969_v4 = vunpack.c.l.b16 %v6696_v3  ;;  %v7038_v51 = vrot.slane %v6967_v10, 3  ;;  %v7041_v11 = vrot.slane %v6968_v43, 2  ;;  %v6238_v29 = vpop.f32.mrb[169].mxu0 }
 0x5f5   : > { %v7034_v22 = vsel %vm7033_vm11, %v7032_v34, %v7031_v62  ;;  %v6401_v35 = vrot.slane %v6387_v59, %v18667_v57  ;;  %v6402_v54 = vcombine.high %v6394_v42, %v6394_v42  ;;  %v6697_v46 = vpack.c.bf16 %v6394_v42, %v6394_v42  ;;  %v14922_v25 = vpop.f32.mrb[170].mxu0 }
 0x5f6   : > { %v7037_v63 = vsel %vm7036_vm12, %v7035_v28, %v7034_v22  ;;  %v7044_v21 = vrot.slane %v6969_v4, 1  ;;  %v6324_v37 = vmax.f32 %v6228_v0, 0.0  ;;  %v6239_v50 = vadd.f32 %v6238_v29, %v18552_v47  ;;  %v6241_v12 = vpop.f32.mrb[171].mxu0 }
 0x5f7   : > { %v7040_v26 = vsel %vm7039_vm13, %v7038_v51, %v7037_v63  ;;  %v6403_v15 = vcombine.high %v6401_v35, %v6401_v35  ;;  %v6698_v48 = vpack.c.bf16 %v6402_v54, %v6402_v54  ;;  %v6699_v53 = vpack.c.bf16 %v6401_v35, %v6401_v35 }
 0x5f8   : > { %v7043_v44 = vsel %vm7042_vm14, %v7041_v11, %v7040_v26  ;;  %v6970_v24 = vunpack.c.l.b16 %v6697_v46  ;;  %v6404_v45 = vcombine.high %v6324_v37, %v6324_v37  ;;  %v6411_v58 = vrot.slane %v6324_v37, %v18667_v57 }
 0x5f9   : > { %v7046_v56 = vsel %vm7045_vm15, %v7044_v21, %v7043_v44  ;;  %v6700_v41 = vpack.c.bf16 %v6403_v15, %v6403_v15  ;;  %v6971_v38 = vunpack.c.l.b16 %v6698_v48  ;;  %v6972_v20 = vunpack.c.l.b16 %v6699_v53 }
 0x5fa   : > { %v18696_v0 = vpack.c.b16 %v7046_v56, %v7046_v56  ;;  %v6418_v47 = vrot.slane %v6404_v45, %v18667_v57  ;;  %v6419_v49 = vcombine.high %v6411_v58, %v6411_v58  ;;  %v6701_v1 = vpack.c.bf16 %v6411_v58, %v6411_v58 }
 0x5fb   : > { %v6973_v6 = vunpack.c.l.b16 %v6700_v41  ;;  %v7047_v52 = vrot.slane %v6971_v38, 7  ;;  %v7049_v39 = vrot.slane %v6972_v20, 6  ;;  %v6325_v18 = vmax.f32 %v6239_v50, 0.0  ;;  %v14925_v3 = vpop.f32.mrb[172].mxu0 }
 0x5fc   : > { %v7154_v10 = vshrl.u32 %v18696_v0, 16  ;;  %v6420_v43 = vcombine.high %v6418_v47, %v6418_v47  ;;  %v6702_v28 = vpack.c.bf16 %v6419_v49, %v6419_v49  ;;  %v6252_v2 = vpop.f32.mrb[173].mxu0  ;;  %v18703_v34 = vor.u32 %v18680_v40, %v7238_v60 }
 0x5fd   : > { %v7048_v59 = vsel %vm7027_vm9, %v7047_v52, %v6970_v24  ;;  %v7051_v42 = vrot.slane %v6973_v6, 5  ;;  %v6703_v8 = vpack.c.bf16 %v6418_v47, %v6418_v47  ;;  %v6974_v62 = vunpack.c.l.b16 %v6701_v1  ;;  %v14926_v4 = vpop.f32.mrb[174].mxu0 }
 0x5fe   : > { %v7157_v51 = vshll.u32 %v18696_v0, 16  ;;  %v7050_v11 = vsel %vm7030_vm10, %v7049_v39, %v7048_v59  ;;  %v6704_v29 = vpack.c.bf16 %v6420_v43, %v6420_v43  ;;  %v6975_v22 = vunpack.c.l.b16 %v6702_v28  ;;  %v18708_v35 = vpop.f32.mrb[175].mxu0 }
 0x5ff   : > { %v6976_v54 = vunpack.c.l.b16 %v6703_v8  ;;  %v7052_v46 = vsel %vm7033_vm11, %v7051_v42, %v7050_v11  ;;  %v7053_v25 = vrot.slane %v6974_v62, 4  ;;  %v6421_v60 = vcombine.high %v6325_v18, %v6325_v18 }
 0x600   : > { %v6977_v40 = vunpack.c.l.b16 %v6704_v29  ;;  %v7055_v63 = vrot.slane %v6975_v22, 3  ;;  %v6428_v21 = vrot.slane %v6325_v18, %v18667_v57  ;;  %v6242_v37 = vadd.f32 %v6241_v12, %v18563_v23 }
 0x601   : > { %v7054_v50 = vsel %vm7036_vm12, %v7053_v25, %v7052_v46  ;;  %v7057_v26 = vrot.slane %v6976_v54, 2  ;;  %v6435_v15 = vrot.slane %v6421_v60, %v18667_v57  ;;  %v6253_v48 = vadd.f32 %v6252_v2, %v18585_v32 }
 0x602   : > { %v7056_v53 = vsel %vm7039_vm13, %v7055_v63, %v7054_v50  ;;  %v7059_v44 = vrot.slane %v6977_v40, 1  ;;  %v6436_v24 = vcombine.high %v6428_v21, %v6428_v21  ;;  %v6705_v45 = vpack.c.bf16 %v6428_v21, %v6428_v21 }
 0x603   : > { %v7058_v58 = vsel %vm7042_vm14, %v7057_v26, %v7056_v53  ;;  %v6437_v56 = vcombine.high %v6435_v15, %v6435_v15  ;;  %v6707_v41 = vpack.c.bf16 %v6435_v15, %v6435_v15  ;;  %v6326_v38 = vmax.f32 %v6242_v37, 0.0  ;;  %v14929_v20 = vpop.f32.mrb[176].mxu0 }
 0x604   : > { %v18718_v47 = vrot.slane %v7154_v10, 7  ;;  %v7060_v23 = vsel %vm7045_vm15, %v7059_v44, %v7058_v58  ;;  %v6706_v12 = vpack.c.bf16 %v6436_v24, %v6436_v24  ;;  %v6327_v49 = vmax.f32 %v6253_v48, 0.0  ;;  %v6266_v1 = vpop.f32.mrb[177].mxu0 }
 0x605   : > { %v18721_v6 = vpack.c.b16 %v7060_v23, %v7060_v23  ;;  %v6708_v32 = vpack.c.bf16 %v6437_v56, %v6437_v56  ;;  %v6980_v52 = vunpack.c.l.b16 %v6707_v41  ;;  %v6438_v39 = vcombine.high %v6326_v38, %v6326_v38  ;;  %v14930_v18 = vpop.f32.mrb[178].mxu0 }
 0x606   : > { %v6979_v3 = vunpack.c.l.b16 %v6706_v12  ;;  %v6445_v43 = vrot.slane %v6326_v38, %v18667_v57  ;;  %v6455_v28 = vcombine.high %v6327_v49, %v6327_v49  ;;  %v6462_v2 = vrot.slane %v6327_v49, %v18667_v57  ;;  %v6269_v59 = vpop.f32.mrb[179].mxu0 }
 0x607   : > { %v7161_v10 = vshrl.u32 %v18721_v6, 16  ;;  %v6978_v42 = vunpack.c.l.b16 %v6705_v45  ;;  %v6981_v8 = vunpack.c.l.b16 %v6708_v32  ;;  %v7063_v62 = vrot.slane %v6980_v52, 6 }
 0x608   : > { %v7061_v4 = vrot.slane %v6979_v3, 7  ;;  %v6452_v11 = vrot.slane %v6438_v39, %v18667_v57  ;;  %v6453_v29 = vcombine.high %v6445_v43, %v6445_v43  ;;  %v6709_v22 = vpack.c.bf16 %v6445_v43, %v6445_v43 }
 0x609   : > { %v7164_v54 = vshll.u32 %v18721_v6, 16  ;;  %v7065_v46 = vrot.slane %v6981_v8, 5  ;;  %v6469_v25 = vrot.slane %v6455_v28, %v18667_v57  ;;  %v6470_v60 = vcombine.high %v6462_v2, %v6462_v2 }
 0x60a   : > { %v7062_v40 = vsel %vm7027_vm9, %v7061_v4, %v6978_v42  ;;  %v6454_v63 = vcombine.high %v6452_v11, %v6452_v11  ;;  %v6710_v21 = vpack.c.bf16 %v6453_v29, %v6453_v29  ;;  %v6711_v37 = vpack.c.bf16 %v6452_v11, %v6452_v11 }
 0x60b   : > { %v7163_v50 = vrot.slane %v7161_v10, 7  ;;  %v7064_v26 = vsel %vm7030_vm10, %v7063_v62, %v7062_v40  ;;  %v6982_v15 = vunpack.c.l.b16 %v6709_v22  ;;  %v6471_v48 = vcombine.high %v6469_v25, %v6469_v25  ;;  %v14933_v53 = vpop.f32.mrb[180].mxu0 }
 0x60c   : > { %v6712_v44 = vpack.c.bf16 %v6454_v63, %v6454_v63  ;;  %v6983_v24 = vunpack.c.l.b16 %v6710_v21  ;;  %v6984_v45 = vunpack.c.l.b16 %v6711_v37  ;;  %v7066_v58 = vsel %vm7033_vm11, %v7065_v46, %v7064_v26  ;;  %v6280_v56 = vpop.f32.mrb[181].mxu0 }
 0x60d   : > { %v7067_v41 = vrot.slane %v6982_v15, 4  ;;  %v6713_v38 = vpack.c.bf16 %v6462_v2, %v6462_v2  ;;  %v6714_v20 = vpack.c.bf16 %v6470_v60, %v6470_v60  ;;  %v6715_v23 = vpack.c.bf16 %v6469_v25, %v6469_v25  ;;  %v14934_v12 = vpop.f32.mrb[182].mxu0 }
 0x60e   : > { %v6985_v49 = vunpack.c.l.b16 %v6712_v44  ;;  %v7069_v6 = vrot.slane %v6983_v24, 3  ;;  %v7071_v32 = vrot.slane %v6984_v45, 2  ;;  %v6716_v52 = vpack.c.bf16 %v6471_v48, %v6471_v48  ;;  %v18732_v39 = vpop.f32.mrb[183].mxu0 }
 0x60f   : > { %v7068_v18 = vsel %vm7036_vm12, %v7067_v41, %v7066_v58  ;;  %v6986_v3 = vunpack.c.l.b16 %v6713_v38  ;;  %v6987_v43 = vunpack.c.l.b16 %v6714_v20  ;;  %v6988_v28 = vunpack.c.l.b16 %v6715_v23 }
 0x610   : > { %v7070_v10 = vsel %vm7039_vm13, %v7069_v6, %v7068_v18  ;;  %v7073_v42 = vrot.slane %v6985_v49, 1  ;;  %v6989_v8 = vunpack.c.l.b16 %v6716_v52  ;;  %v6256_v2 = vadd.f32 %v18708_v35, %v18590_v61 }
 0x611   : > { %v7072_v62 = vsel %vm7042_vm14, %v7071_v32, %v7070_v10  ;;  %v7075_v4 = vrot.slane %v6987_v43, 7  ;;  %v7077_v11 = vrot.slane %v6988_v28, 6  ;;  %v6267_v29 = vadd.f32 %v6266_v1, %v18618_v16 }
 0x612   : > { %v7074_v22 = vsel %vm7045_vm15, %v7073_v42, %v7072_v62  ;;  %v7079_v46 = vrot.slane %v6989_v8, 5  ;;  %v6328_v25 = vmax.f32 %v6256_v2, 0.0  ;;  %v6270_v60 = vadd.f32 %v6269_v59, %v18620_v27 }
 0x613   : > { %v18742_v40 = vpack.c.b16 %v7074_v22, %v7074_v22  ;;  %v7076_v63 = vsel %vm7027_vm9, %v7075_v4, %v6986_v3  ;;  %v6329_v21 = vmax.f32 %v6267_v29, 0.0  ;;  %v18746_v37 = vadd.f32 %v6280_v56, %v18633_v9  ;;  %v14937_v61 = vpop.f32.mrb[184].mxu0 }
 0x614   : > { %v7078_v35 = vsel %vm7030_vm10, %v7077_v11, %v7076_v63  ;;  %v6472_v26 = vcombine.high %v6328_v25, %v6328_v25  ;;  %v6479_v16 = vrot.slane %v6328_v25, %v18667_v57  ;;  %v6330_v1 = vmax.f32 %v6270_v60, 0.0  ;;  %v18750_v15 = vpop.f32.mrb[185].mxu0 }
 0x615   : > { %v18752_v48 = vor.u32 %v7164_v54, %v7163_v50  ;;  %v7168_v27 = vshrl.u32 %v18742_v40, 16  ;;  %v7171_v59 = vshll.u32 %v18742_v40, 16  ;;  %v6489_v53 = vcombine.high %v6329_v21, %v6329_v21  ;;  %v14938_v44 = vpop.f32.mrb[186].mxu0 }
 0x616   : > { %v6486_v9 = vrot.slane %v6472_v26, %v18667_v57  ;;  %v6487_v24 = vcombine.high %v6479_v16, %v6479_v16  ;;  %v6717_v45 = vpack.c.bf16 %v6479_v16, %v6479_v16  ;;  %v6496_v58 = vrot.slane %v6329_v21, %v18667_v57  ;;  %v18758_v56 = vpop.f32.mrb[187].mxu0 }
 0x617   : > { %v7080_v41 = vsel %vm7033_vm11, %v7079_v46, %v7078_v35  ;;  %v6503_v38 = vrot.slane %v6489_v53, %v18667_v57  ;;  %v6506_v54 = vcombine.high %v6330_v1, %v6330_v1  ;;  %v6513_v50 = vrot.slane %v6330_v1, %v18667_v57 }
 0x618   : > { %v6488_v20 = vcombine.high %v6486_v9, %v6486_v9  ;;  %v6718_v23 = vpack.c.bf16 %v6487_v24, %v6487_v24  ;;  %v6719_v12 = vpack.c.bf16 %v6486_v9, %v6486_v9  ;;  %v6990_v49 = vunpack.c.l.b16 %v6717_v45 }
 0x619   : > { %v6504_v6 = vcombine.high %v6496_v58, %v6496_v58  ;;  %v6505_v32 = vcombine.high %v6503_v38, %v6503_v38  ;;  %v6721_v52 = vpack.c.bf16 %v6496_v58, %v6496_v58  ;;  %v6723_v18 = vpack.c.bf16 %v6503_v38, %v6503_v38 }
 0x61a   : > { %v6720_v3 = vpack.c.bf16 %v6488_v20, %v6488_v20  ;;  %v6991_v43 = vunpack.c.l.b16 %v6718_v23  ;;  %v6992_v28 = vunpack.c.l.b16 %v6719_v12  ;;  %v7081_v10 = vrot.slane %v6990_v49, 4 }
 0x61b   : > { %v6722_v42 = vpack.c.bf16 %v6504_v6, %v6504_v6  ;;  %v6724_v8 = vpack.c.bf16 %v6505_v32, %v6505_v32  ;;  %v6994_v2 = vunpack.c.l.b16 %v6721_v52  ;;  %v6996_v62 = vunpack.c.l.b16 %v6723_v18  ;;  %v14941_v4 = vpop.f32.mrb[188].mxu0 }
 0x61c   : > { %v6993_v11 = vunpack.c.l.b16 %v6720_v3  ;;  %v7082_v29 = vsel %vm7036_vm12, %v7081_v10, %v7080_v41  ;;  %v7083_v22 = vrot.slane %v6991_v43, 3  ;;  %v7085_v46 = vrot.slane %v6992_v28, 2  ;;  %v18764_v25 = vpop.f32.mrb[189].mxu0 }
 0x61d   : > { %v6995_v60 = vunpack.c.l.b16 %v6722_v42  ;;  %v6997_v63 = vunpack.c.l.b16 %v6724_v8  ;;  %v7091_v21 = vrot.slane %v6996_v62, 6  ;;  %v6520_v61 = vrot.slane %v6506_v54, %v18667_v57  ;;  %v14942_v35 = vpop.f32.mrb[190].mxu0 }
 0x61e   : > { %v7084_v26 = vsel %vm7039_vm13, %v7083_v22, %v7082_v29  ;;  %v7087_v16 = vrot.slane %v6993_v11, 1  ;;  %v6521_v1 = vcombine.high %v6513_v50, %v6513_v50  ;;  %v6725_v53 = vpack.c.bf16 %v6513_v50, %v6513_v50  ;;  %v18768_v44 = vpop.f32.mrb[191].mxu0 }
 0x61f   : > { %v7086_v9 = vsel %vm7042_vm14, %v7085_v46, %v7084_v26  ;;  %v7089_v24 = vrot.slane %v6995_v60, 7  ;;  %v7093_v45 = vrot.slane %v6997_v63, 5  ;;  %v6522_v58 = vcombine.high %v6520_v61, %v6520_v61 }
 0x620   : > { %v7088_v41 = vsel %vm7045_vm15, %v7087_v16, %v7086_v9  ;;  %v6726_v38 = vpack.c.bf16 %v6521_v1, %v6521_v1  ;;  %v6727_v20 = vpack.c.bf16 %v6520_v61, %v6520_v61  ;;  %v6998_v23 = vunpack.c.l.b16 %v6725_v53 }
 0x621   : > { %v7148_v12 = vpack.c.b16 %v7088_v41, %v7088_v41  ;;  %v7090_v54 = vsel %vm7027_vm9, %v7089_v24, %v6994_v2  ;;  %v6728_v49 = vpack.c.bf16 %v6522_v58, %v6522_v58  ;;  %v6331_v6 = vmax.f32 %v18746_v37, 0.0 }
 0x622   : > { %v7092_v50 = vsel %vm7030_vm10, %v7091_v21, %v7090_v54  ;;  %v6999_v32 = vunpack.c.l.b16 %v6726_v38  ;;  %v7000_v52 = vunpack.c.l.b16 %v6727_v20  ;;  %v7095_v18 = vrot.slane %v6998_v23, 4 }
 0x623   : > { %v18775_v3 = vrot.slane %v7168_v27, 7  ;;  %v7175_v43 = vshrl.u32 %v7148_v12, 16  ;;  %v7001_v28 = vunpack.c.l.b16 %v6728_v49  ;;  %v7094_v10 = vsel %vm7033_vm11, %v7093_v45, %v7092_v50 }
 0x624   : > { %v7178_v42 = vshll.u32 %v7148_v12, 16  ;;  %v7096_v8 = vsel %vm7036_vm12, %v7095_v18, %v7094_v10  ;;  %v7097_v62 = vrot.slane %v6999_v32, 3  ;;  %v6523_v4 = vcombine.high %v6331_v6, %v6331_v6 }
 0x625   : > { %v7177_v2 = vrot.slane %v7175_v43, 7  ;;  %v7099_v11 = vrot.slane %v7000_v52, 2  ;;  %v6530_v37 = vrot.slane %v6331_v6, %v18667_v57  ;;  %v7159_v29 = vor.u32 %v7157_v51, %v18718_v47 }
 0x626   : > { %v7098_v27 = vsel %vm7039_vm13, %v7097_v62, %v7096_v8  ;;  %v7101_v22 = vrot.slane %v7001_v28, 1  ;;  %v6537_v46 = vrot.slane %v6523_v4, %v18667_v57  ;;  %v6284_v60 = vadd.f32 %v18732_v39, %v18638_v13 }
 0x627   : > { %v7100_v63 = vsel %vm7042_vm14, %v7099_v11, %v7098_v27  ;;  %v6538_v21 = vcombine.high %v6530_v37, %v6530_v37  ;;  %v6729_v61 = vpack.c.bf16 %v6530_v37, %v6530_v37  ;;  %v7218_v35 = vsel %vm15960_vm2, 0, %v18752_v48 }
 0x628   : > { %v7102_v26 = vsel %vm7045_vm15, %v7101_v22, %v7100_v63  ;;  %v6539_v0 = vcombine.high %v6537_v46, %v6537_v46  ;;  %v6731_v51 = vpack.c.bf16 %v6537_v46, %v6537_v46  ;;  %v7217_v47 = vsel %vm15960_vm2, 0, %v7159_v29 }
 0x629   : > { %v18794_v16 = vor.u32 %v7178_v42, %v7177_v2  ;;  %v18796_v1 = vpack.c.b16 %v7102_v26, %v7102_v26  ;;  %v6730_v13 = vpack.c.bf16 %v6538_v21, %v6538_v21  ;;  %v18800_v39 = vsel %vm18661_vm8, %v7217_v47, 0 }
 0x62a   : > { %v6732_v53 = vpack.c.bf16 %v6539_v0, %v6539_v0  ;;  %v7002_v9 = vunpack.c.l.b16 %v6729_v61  ;;  %v7004_v24 = vunpack.c.l.b16 %v6731_v51  ;;  %v18804_v48 = vsel %vm18661_vm8, %v7218_v35, 0  ;;  %v15368_v61 = vld [vmem:[%s20444_s7 + $0xc8] sm:$0xff]  }
 0x62b   : > { %v7182_v45 = vshrl.u32 %v18796_v1, 16  ;;  %v7003_v58 = vunpack.c.l.b16 %v6730_v13  ;;  %v7245_v41 = vshrl.u32 %v18800_v39, 16  ;;  %v7247_v38 = vshll.u32 %v18800_v39, 16  ;;  %v15373_v35 = vld [vmem:[%s20444_s7 + $0x208] sm:$0xff]  }
 0x62c   : > { %v7185_v20 = vshll.u32 %v18796_v1, 16  ;;  %v7005_v23 = vunpack.c.l.b16 %v6732_v53  ;;  %v7105_v12 = vrot.slane %v7004_v24, 6  ;;  %v7254_v54 = vshll.u32 %v18804_v48, 16 }
 0x62d   : > { %v18811_v49 = vrot.slane %v7182_v45, 7  ;;  %v7103_v6 = vrot.slane %v7003_v58, 7  ;;  %v7249_v50 = vrot.slane %v7247_v38, 1  ;;  %v7252_v32 = vshrl.u32 %v18804_v48, 16 }
 0x62e   : > { %v7107_v52 = vrot.slane %v7005_v23, 5  ;;  %v7256_v18 = vrot.slane %v7254_v54, 1  ;;  %v6332_v43 = vmax.f32 %v6284_v60, 0.0  ;;  %v7302_v28 = vrot.slane %v18800_v39, 1 }
 0x62f   : > { %v7104_v10 = vsel %vm7027_vm9, %v7103_v6, %v7002_v9  ;;  %v7250_v42 = vor.u32 %v7249_v50, %v7245_v41  ;;  %v7303_v8 = vrot.slane %v18804_v48, 1  ;;  %v6295_v62 = vadd.f32 %v18750_v15, %v18642_v31  ;;  %v15367_v31 = vld [vmem:[%s20444_s7 + $0x80] sm:$0xff]  }
 0x630   : > { %v7106_v4 = vsel %vm7030_vm10, %v7105_v12, %v7104_v10  ;;  %v18820_v2 = vor.u32 %v7256_v18, %v7252_v32  ;;  %v6540_v11 = vcombine.high %v6332_v43, %v6332_v43  ;;  %v6547_v37 = vrot.slane %v6332_v43, %v18667_v57 }
 0x631   : > { %v12346_v29 = vcombine.low %v18672_v30, %v18800_v39  ;;  %v12347_v27 = vcombine.low %v18703_v34, %v7250_v42  ;;  %v7108_v22 = vsel %vm7033_vm11, %v7107_v52, %v7106_v4  ;;  %v12351_v46 = vcombine.low %v7302_v28, %v7303_v8 }
 0x632   : > { %v12350_v15 = vcombine.low %v7250_v42, %v18820_v2  ;;  %v6554_v60 = vrot.slane %v6540_v11, %v18667_v57  ;;  %v6555_v63 = vcombine.high %v6547_v37, %v6547_v37  ;;  %v6733_v21 = vpack.c.bf16 %v6547_v37, %v6547_v37 }
 0x633   : > { %7869 = vmatprep.mubr.bf16.mxu1 %v12347_v27  ;;  %7999 = vmatprep.mubr.bf16.mxu0 %v12351_v46  ;;  %v6333_v26 = vmax.f32 %v6295_v62, 0.0  ;;  %v6298_v0 = vadd.f32 %v18758_v56, %v18644_v5  ;;  %v6309_v51 = vadd.f32 %v18764_v25, %v18648_v55  ;;  %v18849_v47 = vor.u32 %v7171_v59, %v18775_v3  ;;  %v15369_v5 = vld [vmem:[%s20444_s7 + $0x88] sm:$0xff]   ;;  %v15371_v25 = vld [vmem:[%s20444_s7 + $0xd0] sm:$0xff]   ;;  %v15374_v27 = vld [vmem:[%s20444_s7 + $0xd8] sm:$0xff]  }
 0x634   : > { %7870 = vmatmul.mubr.bf16.vlgmr.msra.gmra.mrb[160].mxu1 %v12346_v29  ;;  %v6556_v13 = vcombine.high %v6554_v60, %v6554_v60  ;;  %v6734_v53 = vpack.c.bf16 %v6555_v63, %v6555_v63  ;;  %v6735_v9 = vpack.c.bf16 %v6554_v60, %v6554_v60  ;;  %v7006_v24 = vunpack.c.l.b16 %v6733_v21  ;;  %8000 = vmatmul.mubr.bf16.vlgmr.msra.gmra.mrb[192].mxu0 %v12350_v15  ;;  %v15376_v3 = vld [vmem:[%s20444_s7 + $0x210] sm:$0xff]  }
 0x635   : > { %v6557_v45 = vcombine.high %v6333_v26, %v6333_v26  ;;  %v6564_v58 = vrot.slane %v6333_v26, %v18667_v57  ;;  %v6334_v41 = vmax.f32 %v6298_v0, 0.0  ;;  %v18852_v38 = vmax.f32 %v6309_v51, 0.0  ;;  %14209 = vmatpush3.bf16.msra.mxu1 %v15367_v31  ;;  %14944 = vmatpush3.bf16.msra.mxu0 %v18659_v14  ;;  %v15372_v62 = vld [vmem:[%s20444_s7 + $0x90] sm:$0xff]  }
 0x636   : > { %v6736_v55 = vpack.c.bf16 %v6556_v13, %v6556_v13  ;;  %v7007_v40 = vunpack.c.l.b16 %v6734_v53  ;;  %v7008_v59 = vunpack.c.l.b16 %v6735_v9  ;;  %v7109_v56 = vrot.slane %v7006_v24, 4  ;;  %14210 = vmatprep.subr.bf16.mxu1 %v15368_v61  ;;  %14945 = vmatprep.subr.bf16.mxu0 %v15373_v35  ;;  %v15375_v53 = vld [vmem:[%s20444_s7 + $0x98] sm:$0xff]  }
 0x637   : > { %v6571_v23 = vrot.slane %v6557_v45, %v18667_v57  ;;  %v6572_v12 = vcombine.high %v6564_v58, %v6564_v58  ;;  %v6737_v54 = vpack.c.bf16 %v6564_v58, %v6564_v58  ;;  %v6574_v6 = vcombine.high %v6334_v41, %v6334_v41 }
 0x638   : > { %v7009_v14 = vunpack.c.l.b16 %v6736_v55  ;;  %v7110_v50 = vsel %vm7036_vm12, %v7109_v56, %v7108_v22  ;;  %v7111_v32 = vrot.slane %v7007_v40, 3  ;;  %v7113_v52 = vrot.slane %v7008_v59, 2  ;;  %v15379_v22 = vld [vmem:[%s20444_s7 + $0x218] sm:$0xff]  }
 0x639   : > { %v6573_v18 = vcombine.high %v6571_v23, %v6571_v23  ;;  %v6738_v43 = vpack.c.bf16 %v6572_v12, %v6572_v12  ;;  %v6739_v10 = vpack.c.bf16 %v6571_v23, %v6571_v23  ;;  %v7010_v42 = vunpack.c.l.b16 %v6737_v54  ;;  %14211 = vmatpush3.bf16.msra.mxu1 %v15369_v5  ;;  %14946 = vmatpush3.bf16.msra.mxu0 %v15373_v35  ;;  %v15382_v5 = vld [vmem:[%s20444_s7 + $0x220] sm:$0xff]  }
 0x63a   : > { %v7112_v4 = vsel %vm7039_vm13, %v7111_v32, %v7110_v50  ;;  %v7115_v11 = vrot.slane %v7009_v14, 1  ;;  %v6581_v37 = vrot.slane %v6334_v41, %v18667_v57  ;;  %v6588_v29 = vrot.slane %v6574_v6, %v18667_v57  ;;  %14212 = vmatprep.subr.bf16.mxu1 %v15371_v25  ;;  %14947 = vmatprep.subr.bf16.mxu0 %v15376_v3  ;;  %v15377_v41 = vld [vmem:[%s20444_s7 + $0xe0] sm:$0xff]  }
 0x63b   : > { %v7114_v46 = vsel %vm7042_vm14, %v7113_v52, %v7112_v4  ;;  %v6740_v31 = vpack.c.bf16 %v6573_v18, %v6573_v18  ;;  %v7011_v15 = vunpack.c.l.b16 %v6738_v43  ;;  %v7012_v60 = vunpack.c.l.b16 %v6739_v10  ;;  %v15378_v32 = vld [vmem:[%s20444_s7 + $0xa0] sm:$0xff]  }
 0x63c   : > { %v7116_v63 = vsel %vm7045_vm15, %v7115_v11, %v7114_v46  ;;  %v6589_v21 = vcombine.high %v6581_v37, %v6581_v37  ;;  %v6590_v61 = vcombine.high %v6588_v29, %v6588_v29  ;;  %v6741_v35 = vpack.c.bf16 %v6581_v37, %v6581_v37 }
 0x63d   : > { %v7150_v26 = vpack.c.b16 %v7116_v63, %v7116_v63  ;;  %v7013_v0 = vunpack.c.l.b16 %v6740_v31  ;;  %v7117_v51 = vrot.slane %v7011_v15, 7  ;;  %v7119_v13 = vrot.slane %v7012_v60, 6  ;;  %14213 = vmatpush3.bf16.msra.mxu1 %v15372_v62  ;;  %14948 = vmatpush3.bf16.msra.mxu0 %v15376_v3  ;;  %v15385_v62 = vld [vmem:[%s20444_s7 + $0x228] sm:$0xff]  }
 0x63e   : > { %v6742_v9 = vpack.c.bf16 %v6589_v21, %v6589_v21  ;;  %v6743_v24 = vpack.c.bf16 %v6588_v29, %v6588_v29  ;;  %v6744_v45 = vpack.c.bf16 %v6590_v61, %v6590_v61  ;;  %v7014_v58 = vunpack.c.l.b16 %v6741_v35  ;;  %14214 = vmatprep.subr.bf16.mxu1 %v15374_v27  ;;  %14949 = vmatprep.subr.bf16.mxu0 %v15379_v22 }
 0x63f   : > { %v7189_v55 = vshrl.u32 %v7150_v26, 16  ;;  %v7192_v40 = vshll.u32 %v7150_v26, 16  ;;  %v7118_v59 = vsel %vm7027_vm9, %v7117_v51, %v7010_v42  ;;  %v7121_v56 = vrot.slane %v7013_v0, 5  ;;  %v15380_v42 = vld [vmem:[%s20444_s7 + $0xe8] sm:$0xff]   ;;  %v15383_v26 = vld [vmem:[%s20444_s7 + $0xf0] sm:$0xff]  }
 0x640   : > { %v7120_v25 = vsel %vm7030_vm10, %v7119_v13, %v7118_v59  ;;  %v7015_v3 = vunpack.c.l.b16 %v6742_v9  ;;  %v7016_v23 = vunpack.c.l.b16 %v6743_v24  ;;  %v7017_v12 = vunpack.c.l.b16 %v6744_v45  ;;  %v15388_v0 = vld [vmem:[%s20444_s7 + $0x230] sm:$0xff]  }
 0x641   : > { %v7191_v54 = vrot.slane %v7189_v55, 7  ;;  %v7122_v6 = vsel %vm7033_vm11, %v7121_v56, %v7120_v25  ;;  %v7123_v14 = vrot.slane %v7014_v58, 4  ;;  %v6591_v50 = vcombine.high %v18852_v38, %v18852_v38  ;;  %14215 = vmatpush3.bf16.msra.mxu1 %v15375_v53  ;;  %14950 = vmatpush3.bf16.msra.mxu0 %v15379_v22  ;;  %v15384_v56 = vld [vmem:[%s20444_s7 + $0xb0] sm:$0xff]  }
 0x642   : > { %v7125_v52 = vrot.slane %v7015_v3, 3  ;;  %v7127_v18 = vrot.slane %v7016_v23, 2  ;;  %v7129_v43 = vrot.slane %v7017_v12, 1  ;;  %v6598_v10 = vrot.slane %v18852_v38, %v18667_v57  ;;  %14216 = vmatprep.subr.bf16.mxu1 %v15377_v41  ;;  %14951 = vmatprep.subr.bf16.mxu0 %v15382_v5 }
 0x643   : > { %v18905_v4 = vor.u32 %v7192_v40, %v7191_v54  ;;  %v7124_v11 = vsel %vm7036_vm12, %v7123_v14, %v7122_v6  ;;  %v6605_v37 = vrot.slane %v6591_v50, %v18667_v57  ;;  %v7219_v38 = vsel %vm15960_vm2, 0, %v18849_v47  ;;  %v15381_v47 = vld [vmem:[%s20444_s7 + $0xa8] sm:$0xff]   ;;  %v15386_v54 = vld [vmem:[%s20444_s7 + $0xf8] sm:$0xff]  }
 0x644   : > { %v7126_v29 = vsel %vm7039_vm13, %v7125_v52, %v7124_v11  ;;  %v6606_v27 = vcombine.high %v6598_v10, %v6598_v10  ;;  %v6745_v22 = vpack.c.bf16 %v6598_v10, %v6598_v10  ;;  %v7220_v46 = vsel %vm15960_vm2, 0, %v18794_v16  ;;  %v15391_v52 = vld [vmem:[%s20444_s7 + $0x238] sm:$0xff]  }
 0x645   : > { %v7128_v31 = vsel %vm7042_vm14, %v7127_v18, %v7126_v29  ;;  %v6607_v15 = vcombine.high %v6605_v37, %v6605_v37  ;;  %v6747_v60 = vpack.c.bf16 %v6605_v37, %v6605_v37  ;;  %v18919_v63 = vsel %vm18661_vm8, %v7219_v38, 0  ;;  %14217 = vmatpush3.bf16.msra.mxu1 %v15378_v32  ;;  %14952 = vmatpush3.bf16.msra.mxu0 %v15382_v5 }
 0x646   : > { %v7130_v21 = vsel %vm7045_vm15, %v7129_v43, %v7128_v31  ;;  %v6746_v61 = vpack.c.bf16 %v6606_v27, %v6606_v27  ;;  %v7018_v35 = vunpack.c.l.b16 %v6745_v22  ;;  %v18927_v16 = vsel %vm18661_vm8, %v7220_v46, 0  ;;  %14218 = vmatprep.subr.bf16.mxu1 %v15380_v42  ;;  %14953 = vmatprep.subr.bf16.mxu0 %v15385_v62  ;;  %v15387_v22 = vld [vmem:[%s20444_s7 + $0xb8] sm:$0xff]  }
 0x647   : > { %v18935_v51 = vpack.c.b16 %v7130_v21, %v7130_v21  ;;  %v6748_v13 = vpack.c.bf16 %v6607_v15, %v6607_v15  ;;  %v7020_v53 = vunpack.c.l.b16 %v6747_v60  ;;  %v7259_v9 = vshrl.u32 %v18919_v63, 16 }
 0x648   : > { %v7019_v24 = vunpack.c.l.b16 %v6746_v61  ;;  %v7261_v45 = vshll.u32 %v18919_v63, 16  ;;  %v7266_v58 = vshrl.u32 %v18927_v16, 16  ;;  %v7268_v41 = vshll.u32 %v18927_v16, 16 }
 0x649   : > { %v7196_v5 = vshrl.u32 %v18935_v51, 16  ;;  %v7199_v55 = vshll.u32 %v18935_v51, 16  ;;  %v7021_v40 = vunpack.c.l.b16 %v6748_v13  ;;  %v7133_v59 = vrot.slane %v7020_v53, 6  ;;  %14219 = vmatpush3.bf16.msra.mxu1 %v15381_v47  ;;  %14954 = vmatpush3.bf16.msra.mxu0 %v15385_v62 }
 0x64a   : > { %v7131_v25 = vrot.slane %v7019_v24, 7  ;;  %v7263_v3 = vrot.slane %v7261_v45, 1  ;;  %v7270_v23 = vrot.slane %v7268_v41, 1  ;;  %v18948_v12 = vcombine.low %v18804_v48, %v18919_v63  ;;  %14220 = vmatprep.subr.bf16.mxu1 %v15383_v26  ;;  %14955 = vmatprep.subr.bf16.mxu0 %v15388_v0 }
 0x64b   : > { %v7198_v6 = vrot.slane %v7196_v5, 7  ;;  %v7135_v14 = vrot.slane %v7021_v40, 5  ;;  %v6312_v50 = vadd.f32 %v18768_v44, %v18653_v7  ;;  %v7304_v32 = vrot.slane %v18919_v63, 1 }
 0x64c   : > { %v7132_v18 = vsel %vm7027_vm9, %v7131_v25, %v7018_v35  ;;  %v7264_v43 = vor.u32 %v7263_v3, %v7259_v9  ;;  %v7271_v10 = vor.u32 %v7270_v23, %v7266_v58  ;;  %v7305_v42 = vrot.slane %v18927_v16, 1 }
 0x64d   : > { %v7134_v62 = vsel %vm7030_vm10, %v7133_v59, %v7132_v18  ;;  %v6336_v11 = vmax.f32 %v6312_v50, 0.0  ;;  %v7187_v37 = vor.u32 %v7185_v20, %v18811_v49  ;;  %v7222_v7 = vsel %vm15960_vm2, 0, %v18905_v4  ;;  %14221 = vmatpush3.bf16.msra.mxu1 %v15384_v56  ;;  %14956 = vmatpush3.bf16.msra.mxu0 %v15388_v0 }
 0x64e   : > { %v18969_v44 = vcombine.low %v18820_v2, %v7264_v43  ;;  %v12356_v38 = vcombine.low %v7264_v43, %v7271_v10  ;;  %v7136_v29 = vsel %vm7033_vm11, %v7135_v14, %v7134_v62  ;;  %v12357_v27 = vcombine.low %v7304_v32, %v7305_v42  ;;  %14222 = vmatprep.subr.bf16.mxu1 %v15386_v54  ;;  %v15389_v2 = vld [vmem:[%s20444_s7 + $0x1c0] sm:$0xff]  }
 0x64f   : > { %v6608_v1 = vcombine.high %v6336_v11, %v6336_v11  ;;  %v6615_v20 = vrot.slane %v6336_v11, %v18667_v57  ;;  %v7221_v49 = vsel %vm15960_vm2, 0, %v7187_v37  ;;  %v18980_v4 = vsel %vm18661_vm8, %v7222_v7, 0  ;;  %14957 = vmatprep.subr.bf16.mxu0 %v15391_v52 }
 0x650   : > { %7877 = vmatprep.mubr.bf16.mxu1 %v18969_v44  ;;  %8007 = vmatprep.mubr.bf16.mxu0 %v12357_v27  ;;  %v18988_v46 = vsel %vm18661_vm8, %v7221_v49, 0  ;;  %v7280_v31 = vshrl.u32 %v18980_v4, 16  ;;  %v7282_v15 = vshll.u32 %v18980_v4, 16  ;;  %v7307_v60 = vrot.slane %v18980_v4, 1 }
 0x651   : > { %7878 = vmatmul.mubr.bf16.gmra.mrb[164].mxu1 %v18948_v12  ;;  %v6622_v47 = vrot.slane %v6608_v1, %v18667_v57  ;;  %v6623_v21 = vcombine.high %v6615_v20, %v6615_v20  ;;  %v6749_v61 = vpack.c.bf16 %v6615_v20, %v6615_v20  ;;  %8008 = vmatmul.mubr.bf16.gmra.mrb[196].mxu0 %v12356_v38  ;;  %v7273_v35 = vshrl.u32 %v18988_v46, 16 }
 0x652   : > { %v7275_v26 = vshll.u32 %v18988_v46, 16  ;;  %v7284_v0 = vrot.slane %v7282_v15, 1  ;;  %v18999_v13 = vcombine.low %v18927_v16, %v18988_v46  ;;  %v7306_v53 = vrot.slane %v18988_v46, 1  ;;  %14223 = vmatpush3.bf16.msra.mxu1 %v15387_v22  ;;  %14958 = vmatpush3.bf16.msra.mxu0 %v15391_v52 }
 0x653   : > { %v6624_v9 = vcombine.high %v6622_v47, %v6622_v47  ;;  %v6750_v24 = vpack.c.bf16 %v6623_v21, %v6623_v21  ;;  %v6751_v45 = vpack.c.bf16 %v6622_v47, %v6622_v47  ;;  %v7022_v58 = vunpack.c.l.b16 %v6749_v61  ;;  %14288 = vmatprep.subr.bf16.mxu1 %v15389_v2 }
 0x654   : > { %v7277_v41 = vrot.slane %v7275_v26, 1  ;;  %v7285_v5 = vor.u32 %v7284_v0, %v7280_v31  ;;  %v19002_v40 = vcombine.low %v7305_v42, %v7306_v53  ;;  %v12363_v59 = vcombine.low %v7306_v53, %v7307_v60 }
 0x655   : > { %v6752_v56 = vpack.c.bf16 %v6624_v9, %v6624_v9  ;;  %v7023_v25 = vunpack.c.l.b16 %v6750_v24  ;;  %v7024_v3 = vunpack.c.l.b16 %v6751_v45  ;;  %v7137_v23 = vrot.slane %v7022_v58, 4  ;;  %v15390_v9 = vld [vmem:[%s20444_s7 + $0x180] sm:$0xff]   ;;  %v15392_v45 = vld [vmem:[%s20444_s7 + $0x1c8] sm:$0xff]  }
 0x656   : > { %v7278_v54 = vor.u32 %v7277_v41, %v7273_v35  ;;  %8015 = vmatprep.mubr.bf16.mxu0 %v12363_v59  ;;  %v7201_v14 = vor.u32 %v7199_v55, %v7198_v6  ;;  %v12349_v50 = vcombine.low %v18800_v39, %v18804_v48  ;;  %v12354_v52 = vcombine.low %v7303_v8, %v7304_v32  ;;  %v15394_v39 = vld [vmem:[%s20444_s7 + $0x1d0] sm:$0xff]   ;;  %v15396_v59 = vld [vmem:[%s20444_s7 + $0x1d8] sm:$0xff]  }
 0x657   : > { %v7025_v18 = vunpack.c.l.b16 %v6752_v56  ;;  %v7138_v43 = vsel %vm7036_vm12, %v7137_v23, %v7136_v29  ;;  %v7139_v42 = vrot.slane %v7023_v25, 3  ;;  %v7141_v62 = vrot.slane %v7024_v3, 2  ;;  %v15397_v56 = vld [vmem:[%s20444_s7 + $0x198] sm:$0xff]   ;;  %v15398_v25 = vld [vmem:[%s20444_s7 + $0x1e0] sm:$0xff]   ;;  %v15400_v23 = vld [vmem:[%s20444_s7 + $0x1e8] sm:$0xff]  }
 0x658   : > { %v19011_v11 = vcombine.low %v7271_v10, %v7278_v54  ;;  %v12362_v37 = vcombine.low %v7278_v54, %v7285_v5  ;;  %v7223_v7 = vsel %vm15960_vm2, 0, %v7201_v14  ;;  %v12355_v51 = vcombine.low %v18919_v63, %v18927_v16  ;;  %v15399_v3 = vld [vmem:[%s20444_s7 + $0x1a0] sm:$0xff]   ;;  %v15401_v14 = vld [vmem:[%s20444_s7 + $0x1a8] sm:$0xff]  }
 0x659   : > { %v7140_v55 = vsel %vm7039_vm13, %v7139_v42, %v7138_v43  ;;  %v7143_v6 = vrot.slane %v7025_v18, 1  ;;  %v19020_v48 = vsel %vm18661_vm8, %v7223_v7, 0  ;;  %v12361_v8 = vcombine.low %v18988_v46, %v18980_v4  ;;  %v15405_v18 = vld [vmem:[%s20444_s7 + $0x1b8] sm:$0xff]   ;;  %v15406_v42 = vld [vmem:[%s20446_s9 + $0xc0] sm:$0xff]   ;;  %v15412_v7 = vld [vmem:[%s20446_s9 + $0x48] sm:$0xff]  }
 0x65a   : > { %v7142_v32 = vsel %vm7042_vm14, %v7141_v62, %v7140_v55  ;;  %7885 = vmatprep.mubr.bf16.mxu1 %v19011_v11  ;;  %8016 = vmatmul.mubr.bf16.gmra.mrb[200].mxu0 %v12362_v37  ;;  %v7289_v10 = vshll.u32 %v19020_v48, 16  ;;  %v19029_v63 = vcombine.low %v18980_v4, %v19020_v48  ;;  %v7308_v38 = vrot.slane %v19020_v48, 1  ;;  %v15409_v62 = vld [vmem:[%s20446_s9 + $0xc8] sm:$0xff]  }
 0x65b   : > { %v7144_v16 = vsel %vm7045_vm15, %v7143_v6, %v7142_v32  ;;  %7886 = vmatmul.mubr.bf16.gmra.mrb[168].mxu1 %v18999_v13  ;;  %v7287_v27 = vshrl.u32 %v19020_v48, 16  ;;  %v19042_v47 = vrot.slane %v18672_v30, 1  ;;  %14380 = vmatprep.subr.bf16.mxu0 %v15406_v42  ;;  %v15411_v37 = vld [vmem:[%s20446_s9 + $0x88] sm:$0xff]   ;;  %v15415_v6 = vld [vmem:[%s20446_s9 + $0x90] sm:$0xff]  }
 0x65c   : > { %v7152_v29 = vpack.c.b16 %v7144_v16, %v7144_v16  ;;  %v7291_v22 = vrot.slane %v7289_v10, 1  ;;  %v12366_v1 = vcombine.low %v7307_v60, %v7308_v38  ;;  %v15414_v55 = vld [vmem:[%s20446_s9 + $0x8] sm:$0xff]   ;;  %v15418_v32 = vld [vmem:[%s20446_s9 + $0x10] sm:$0xff]   ;;  %v15419_v10 = vld [vmem:[%s20446_s9 + $0x98] sm:$0xff]  }
 0x65d   : > { %v12348_v24 = vcombine.low %v19042_v47, %v7302_v28  ;;  %v15395_v28 = vld [vmem:[%s20444_s7 + $0x190] sm:$0xff]   ;;  %v15421_v16 = vld [vmem:[%s20446_s9 + $0xe0] sm:$0xff]  }
 0x65e   : > { %v7203_v20 = vshrl.u32 %v7152_v29, 16  ;;  %v7292_v49 = vor.u32 %v7291_v22, %v7287_v27  ;;  %v7206_v46 = vshll.u32 %v7152_v29, 16  ;;  %v15423_v29 = vld [vmem:[%s20446_s9 + $0xa0] sm:$0xff]   ;;  %v15425_v22 = vld [vmem:[%s20446_s9 + $0xe8] sm:$0xff]  }
 0x65f   : > { %v15424_v27 = vld [vmem:[%s20446_s9 + $0x60] sm:$0xff]  }
 0x660   : > { %v7205_v2 = vrot.slane %v7203_v20, 7  ;;  %v19035_v31 = vcombine.low %v7285_v5, %v7292_v49  ;;  %v15393_v5 = vld [vmem:[%s20444_s7 + $0x188] sm:$0xff]  }
 0x661   : > { %v15427_v20 = vld [vmem:[%s20446_s9 + $0xa8] sm:$0xff]  }
 0x662   : > { %v7208_v15 = vor.u32 %v7206_v46, %v7205_v2  ;;  %7893 = vmatprep.mubr.bf16.mxu1 %v19035_v31  ;;  %v15429_v2 = vld [vmem:[%s20446_s9 + $0xf0] sm:$0xff]   ;;  %v15430_v46 = vld [vmem:[%s20446_s9 + $0x28] sm:$0xff]  }
 0x663   : > { %7894 = vmatmul.mubr.bf16.gmra.mrb[172].mxu1 %v19029_v63 }
 0x664   : > { %v7224_v4 = vsel %vm15960_vm2, 0, %v7208_v15  ;;  %7934 = vmatprep.mubr.bf16.mxu1 %v12349_v50  ;;  %v15402_v50 = vld [vmem:[%s20444_s7 + $0x1f0] sm:$0xff]  }
 0x665   : > { %v19046_v60 = vsel %vm18661_vm8, %v7224_v4, 0  ;;  %v15432_v15 = vld [vmem:[%s20446_s9 + $0x70] sm:$0xff]   ;;  %v15433_v4 = vld [vmem:[%s20446_s9 + $0xf8] sm:$0xff]  }
 0x666   : > { %v7312_v21 = vshll.u32 %v19046_v60, 16  ;;  %v7317_v61 = vrot.slane %v19046_v60, 1  ;;  %v12367_v35 = vcombine.low %v19020_v48, %v19046_v60  ;;  %v7310_v26 = vshrl.u32 %v19046_v60, 16  ;;  %v15416_v48 = vld [vmem:[%s20446_s9 + $0x50] sm:$0xff]  }
 0x668   : > { %v7314_v0 = vrot.slane %v7312_v21, 1  ;;  %v12369_v53 = vcombine.low %v7308_v38, %v7317_v61  ;;  %v12372_v54 = vcombine.low %v7317_v61, %v19042_v47  ;;  %v15422_v38 = vld [vmem:[%s20446_s9 + $0x18] sm:$0xff]  }
 0x669   : > { %v15435_v21 = vld [vmem:[%s20446_s9 + $0xb8] sm:$0xff]  }
 0x66a   : > { %v7315_v58 = vor.u32 %v7314_v0, %v7310_v26  ;;  %8023 = vmatprep.mubr.bf16.mxu0 %v12369_v53  ;;  %v15436_v61 = vld [vmem:[%s20446_s9 + $0x78] sm:$0xff]  }
 0x66b   : > { %7935 = vmatmul.mubr.bf16.vlgmr.msra.gmra.mrb[176].mxu1 %v12348_v24  ;;  %v15438_v26 = vld [vmem:[%s20446_s9 + $0x38] sm:$0xff]  }
 0x66c   : > { %v12368_v41 = vcombine.low %v7292_v49, %v7315_v58  ;;  %7942 = vmatprep.mubr.bf16.mxu1 %v12355_v51  ;;  %14289 = vmatpush3.bf16.msra.mxu1 %v15390_v9  ;;  %v12371_v43 = vcombine.low %v7315_v58, %v18703_v34  ;;  %v15413_v51 = vld [vmem:[%s20446_s9 + $0xd0] sm:$0xff]   ;;  %v15428_v49 = vld [vmem:[%s20446_s9 + $0x68] sm:$0xff]  }
 0x66d   : > { %14290 = vmatprep.subr.bf16.mxu1 %v15392_v45 }
 0x66e   : > { %8024 = vmatmul.mubr.bf16.gmra.mrb[204].mxu0 %v12368_v41 }
 0x66f   : > { %14959 = vmatprep.mubr.bf16.mxu0 %v12354_v52 }
 0x670   : > { %14291 = vmatpush3.bf16.msra.mxu1 %v15393_v5 }
 0x671   : > { %14292 = vmatprep.subr.bf16.mxu1 %v15394_v39  ;;  %v15440_v39 = vld [vmem:[%s20446_s9 + $0x140] sm:$0xff]  }
 0x673   : > { %7943 = vmatmul.mubr.bf16.gmra.mrb[180].mxu1 %v12354_v52  ;;  %v15403_v52 = vld [vmem:[%s20444_s7 + $0x1b0] sm:$0xff]  }
 0x674   : > { %7950 = vmatprep.mubr.bf16.mxu1 %v12361_v8  ;;  %14293 = vmatpush3.bf16.msra.mxu1 %v15395_v28  ;;  %v15417_v8 = vld [vmem:[%s20446_s9 + $0xd8] sm:$0xff]  }
 0x675   : > { %14294 = vmatprep.subr.bf16.mxu1 %v15396_v59 }
 0x676   : > { %14960 = vmatmul.mubr.bf16.vlgmr.msra.gmra.mrb[208].mxu0 %v19002_v40 }
 0x677   : > { %14963 = vmatprep.mubr.bf16.mxu0 %v12366_v1 }
 0x678   : > { %14295 = vmatpush3.bf16.msra.mxu1 %v15397_v56 }
 0x679   : > { %14296 = vmatprep.subr.bf16.mxu1 %v15398_v25 }
 0x67b   : > { %7951 = vmatmul.mubr.bf16.gmra.mrb[184].mxu1 %v19002_v40  ;;  %v15404_v40 = vld [vmem:[%s20444_s7 + $0x1f8] sm:$0xff]  }
 0x67c   : > { %7958 = vmatprep.mubr.bf16.mxu1 %v12367_v35  ;;  %14297 = vmatpush3.bf16.msra.mxu1 %v15399_v3  ;;  %v15437_v35 = vld [vmem:[%s20446_s9 + $0x1c0] sm:$0xff]  }
 0x67d   : > { %14298 = vmatprep.subr.bf16.mxu1 %v15400_v23 }
 0x67e   : > { %14964 = vmatmul.mubr.bf16.gmra.mrb[212].mxu0 %v12372_v54 }
 0x680   : > { %14299 = vmatpush3.bf16.msra.mxu1 %v15401_v14 }
 0x681   : > { %14300 = vmatprep.subr.bf16.mxu1 %v15402_v50 }
 0x683   : > { %7959 = vmatmul.mubr.bf16.gmra.mrb[188].mxu1 %v12366_v1  ;;  %v15426_v1 = vld [vmem:[%s20446_s9 + $0x20] sm:$0xff]  }
 0x684   : > { %14301 = vmatpush3.bf16.msra.mxu1 %v15403_v52  ;;  %8064 = vmatprep.mubr.bf16.mxu1 %v18969_v44  ;;  %v12370_v44 = vcombine.low %v19046_v60, %v18672_v30  ;;  %v15434_v60 = vld [vmem:[%s20446_s9 + $0x30] sm:$0xff]  }
 0x685   : > { %14302 = vmatprep.subr.bf16.mxu1 %v15404_v40 }
 0x688   : > { %14303 = vmatpush3.bf16.msra.mxu1 %v15405_v18 }
 0x68b   : > { %8065 = vmatmul.mubr.bf16.vlgmr.msra.gmra.mrb[192].mxu1 %v18948_v12  ;;  %v15407_v12 = vld [vmem:[%s20446_s9 + $0x80] sm:$0xff]  }
 0x68c   : > { %8072 = vmatprep.mubr.bf16.mxu1 %v19011_v11  ;;  %v15410_v11 = vld [vmem:[%s20446_s9] sm:$0xff]   ;;  %14381 = vmatpush3.bf16.msra.mxu0 %v15407_v12 }
 0x68d   : > { %14382 = vmatprep.subr.bf16.mxu0 %v15409_v62 }
 0x690   : > { %14383 = vmatpush3.bf16.msra.mxu0 %v15411_v37 }
 0x691   : > { %14384 = vmatprep.subr.bf16.mxu0 %v15413_v51 }
 0x693   : > { %8073 = vmatmul.mubr.bf16.gmra.mrb[196].mxu1 %v18999_v13  ;;  %v15408_v13 = vld [vmem:[%s20446_s9 + $0x40] sm:$0xff]  }
 0x694   : > { %8080 = vmatprep.mubr.bf16.mxu1 %v19035_v31  ;;  %14340 = vmatprep.subr.bf16.mxu1 %v15408_v13  ;;  %v15431_v31 = vld [vmem:[%s20446_s9 + $0xb0] sm:$0xff]  }
 0x695   : > { %14341 = vmatpush3.bf16.msra.mxu1 %v15410_v11  ;;  %14385 = vmatpush3.bf16.msra.mxu0 %v15415_v6 }
 0x696   : > { %14342 = vmatprep.subr.bf16.mxu1 %v15412_v7  ;;  %14386 = vmatprep.subr.bf16.mxu0 %v15417_v8 }
 0x699   : > { %14343 = vmatpush3.bf16.msra.mxu1 %v15414_v55  ;;  %14387 = vmatpush3.bf16.msra.mxu0 %v15419_v10 }
 0x69a   : > { %14344 = vmatprep.subr.bf16.mxu1 %v15416_v48  ;;  %14388 = vmatprep.subr.bf16.mxu0 %v15421_v16 }
 0x69b   : > { %8081 = vmatmul.mubr.bf16.gmra.mrb[200].mxu1 %v19029_v63  ;;  %v15420_v63 = vld [vmem:[%s20446_s9 + $0x58] sm:$0xff]  }
 0x69c   : > { %8088 = vmatprep.mubr.bf16.mxu1 %v12371_v43 }
 0x69d   : > { %14345 = vmatpush3.bf16.msra.mxu1 %v15418_v32  ;;  %14389 = vmatpush3.bf16.msra.mxu0 %v15423_v29 }
 0x69e   : > { %14346 = vmatprep.subr.bf16.mxu1 %v15420_v63  ;;  %14390 = vmatprep.subr.bf16.mxu0 %v15425_v22 }
 0x6a1   : > { %14347 = vmatpush3.bf16.msra.mxu1 %v15422_v38  ;;  %14391 = vmatpush3.bf16.msra.mxu0 %v15427_v20 }
 0x6a2   : > { %14348 = vmatprep.subr.bf16.mxu1 %v15424_v27  ;;  %14392 = vmatprep.subr.bf16.mxu0 %v15429_v2 }
 0x6a3   : > { %8089 = vmatmul.mubr.bf16.gmra.mrb[204].mxu1 %v12370_v44 }
 0x6a5   : > { %14349 = vmatpush3.bf16.msra.mxu1 %v15426_v1  ;;  %14393 = vmatpush3.bf16.msra.mxu0 %v15431_v31  ;;  %v12345_v1 = vld [vmem:[%s20445_s8] ss:$0 sm:$0xff] }
 0x6a6   : > { %14350 = vmatprep.subr.bf16.mxu1 %v15428_v49  ;;  %14394 = vmatprep.subr.bf16.mxu0 %v15433_v4 }
 0x6a9   : > { %14351 = vmatpush3.bf16.msra.mxu1 %v15430_v46  ;;  %14395 = vmatpush3.bf16.msra.mxu0 %v15435_v21 }
 0x6aa   : > { %14352 = vmatprep.subr.bf16.mxu1 %v15432_v15  ;;  %14460 = vmatprep.subr.bf16.mxu0 %v15437_v35 }
 0x6ad   : > { %14353 = vmatpush3.bf16.msra.mxu1 %v15434_v60 }
 0x6ae   : > { %14354 = vmatprep.subr.bf16.mxu1 %v15436_v61 }
 0x6b1   : > { %14355 = vmatpush3.bf16.msra.mxu1 %v15438_v26 }
 0x6b2   : > { %14420 = vmatprep.subr.bf16.mxu1 %v15440_v39 }
 0x707   : > { %v14184_v0 = vpop.f32.mrb[160].mxu1  ;;  %v14264_v53 = vpop.f32.mrb[192].mxu0 }
 0x708   : > { %v14185_v9 = vpop.f32.mrb[161].mxu1  ;;  %v14265_v24 = vpop.f32.mrb[193].mxu0 }
 0x709   : > { %v14186_v45 = vadd.f32 %v14185_v9, %v14184_v0  ;;  %v14187_v58 = vpop.f32.mrb[162].mxu1  ;;  %v14266_v41 = vadd.f32 %v14265_v24, %v14264_v53  ;;  %v14267_v5 = vpop.f32.mrb[194].mxu0 }
 0x70a   : > { %v14188_v28 = vpop.f32.mrb[163].mxu1  ;;  %v14268_v59 = vpop.f32.mrb[195].mxu0 }
 0x70b   : > { %v14189_v56 = vadd.f32 %v14188_v28, %v14187_v58  ;;  %v14269_v25 = vadd.f32 %v14268_v59, %v14267_v5  ;;  %v7872_v2 = vadd.f32 %v14186_v45, %v12345_v1 }
 0x70d   : > { %v7875_v60 = vadd.f32 %v14189_v56, %v12345_v1 }
 0x724   : > { %v14190_v3 = vpop.f32.mrb[164].mxu1  ;;  %v14270_v23 = vpop.f32.mrb[196].mxu0 }
 0x725   : > { %v14191_v54 = vpop.f32.mrb[165].mxu1  ;;  %v14271_v14 = vpop.f32.mrb[197].mxu0 }
 0x726   : > { %v14192_v50 = vadd.f32 %v14191_v54, %v14190_v3  ;;  %v14193_v52 = vpop.f32.mrb[166].mxu1  ;;  %v14272_v40 = vadd.f32 %v14271_v14, %v14270_v23  ;;  %v14273_v18 = vpop.f32.mrb[198].mxu0 }
 0x727   : > { %v14194_v43 = vpop.f32.mrb[167].mxu1  ;;  %v14274_v44 = vpop.f32.mrb[199].mxu0 }
 0x728   : > { %v14195_v42 = vadd.f32 %v14194_v43, %v14193_v52  ;;  %v14275_v12 = vadd.f32 %v14274_v44, %v14273_v18  ;;  %v7880_v59 = vadd.f32 %v14192_v50, %v12345_v1 }
 0x72a   : > { %v7883_v14 = vadd.f32 %v14195_v42, %v12345_v1 }
 0x72d   : > { %v14276_v13 = vpop.f32.mrb[200].mxu0 }
 0x72e   : > { %v14196_v62 = vpop.f32.mrb[168].mxu1  ;;  %v14277_v11 = vpop.f32.mrb[201].mxu0 }
 0x72f   : > { %v14197_v37 = vpop.f32.mrb[169].mxu1  ;;  %v19215_v7 = vadd.f32 %v14277_v11, %v14276_v13  ;;  %v14279_v51 = vpop.f32.mrb[202].mxu0 }
 0x730   : > { %v14198_v55 = vadd.f32 %v14197_v37, %v14196_v62  ;;  %v14199_v6 = vpop.f32.mrb[170].mxu1  ;;  %v14280_v48 = vpop.f32.mrb[203].mxu0 }
 0x731   : > { %v14200_v8 = vpop.f32.mrb[171].mxu1  ;;  %v14281_v32 = vadd.f32 %v14280_v48, %v14279_v51 }
 0x732   : > { %v14201_v10 = vadd.f32 %v14200_v8, %v14199_v6 }
 0x734   : > { %v7891_v8 = vadd.f32 %v14201_v10, %v12345_v1 }
 0x736   : > { %v14202_v63 = vpop.f32.mrb[172].mxu1 }
 0x737   : > { %v14203_v16 = vpop.f32.mrb[173].mxu1 }
 0x738   : > { %v14204_v38 = vadd.f32 %v14203_v16, %v14202_v63  ;;  %v14205_v29 = vpop.f32.mrb[174].mxu1 }
 0x739   : > { %v14206_v27 = vpop.f32.mrb[175].mxu1 }
 0x73a   : > { %v14207_v22 = vadd.f32 %v14206_v27, %v14205_v29 }
 0x73c   : > { %v7899_v10 = vadd.f32 %v14207_v22, %v12345_v1 }
 0x73e   : > { %v14224_v20 = vpop.f32.mrb[176].mxu1 }
 0x73f   : > { %v14225_v49 = vpop.f32.mrb[177].mxu1 }
 0x740   : > { %v14226_v46 = vadd.f32 %v14225_v49, %v14224_v20  ;;  %v14227_v31 = vpop.f32.mrb[178].mxu1 }
 0x741   : > { %v14282_v15 = vpop.f32.mrb[204].mxu0  ;;  %v14228_v4 = vpop.f32.mrb[179].mxu1 }
 0x742   : > { %v14283_v21 = vpop.f32.mrb[205].mxu0  ;;  %v7937_v61 = vadd.f32 %v14226_v46, %v7872_v2  ;;  %v14229_v35 = vadd.f32 %v14228_v4, %v14227_v31  ;;  %v7896_v2 = vadd.f32 %v14204_v38, %v12345_v1 }
 0x743   : > { %v14284_v26 = vadd.f32 %v14283_v21, %v14282_v15  ;;  %v14285_v0 = vpop.f32.mrb[206].mxu0 }
 0x744   : > { %v14286_v53 = vpop.f32.mrb[207].mxu0  ;;  %v7940_v9 = vadd.f32 %v14229_v35, %v7875_v60  ;;  %v8002_v24 = vadd.f32 %v14266_v41, %v7937_v61 }
 0x745   : > { %v14287_v58 = vadd.f32 %v14286_v53, %v14285_v0 }
 0x746   : > { %v14230_v5 = vpop.f32.mrb[180].mxu1  ;;  %v8005_v39 = vadd.f32 %v14269_v25, %v7940_v9  ;;  %v7888_v25 = vadd.f32 %v14198_v55, %v12345_v1 }
 0x747   : > { %v14231_v28 = vpop.f32.mrb[181].mxu1 }
 0x748   : > { %v14232_v3 = vadd.f32 %v14231_v28, %v14230_v5  ;;  %v14233_v45 = vpop.f32.mrb[182].mxu1 }
 0x749   : > { %v19220_v23 = vpop.f32.mrb[208].mxu0  ;;  %v14234_v54 = vpop.f32.mrb[183].mxu1 }
 0x74a   : > { %v8131_v56 = vpop.f32.mrb[209].mxu0  ;;  %v7945_v52 = vadd.f32 %v14232_v3, %v7880_v59  ;;  %v14235_v18 = vadd.f32 %v14234_v54, %v14233_v45 }
 0x74b   : > { %v19222_v43 = vpop.f32.mrb[210].mxu0 }
 0x74c   : > { %v8134_v44 = vpop.f32.mrb[211].mxu0  ;;  %v7948_v13 = vadd.f32 %v14235_v18, %v7883_v14  ;;  %v8010_v62 = vadd.f32 %v14272_v40, %v7945_v52 }
 0x74e   : > { %v14236_v41 = vpop.f32.mrb[184].mxu1  ;;  %v8013_v11 = vadd.f32 %v14275_v12, %v7948_v13 }
 0x74f   : > { %v14237_v37 = vpop.f32.mrb[185].mxu1 }
 0x750   : > { %v14238_v51 = vadd.f32 %v14237_v37, %v14236_v41  ;;  %v14239_v50 = vpop.f32.mrb[186].mxu1 }
 0x751   : > { %v19224_v6 = vpop.f32.mrb[212].mxu0  ;;  %v14240_v48 = vpop.f32.mrb[187].mxu1 }
 0x752   : > { %v19226_v63 = vpop.f32.mrb[213].mxu0  ;;  %v7953_v42 = vadd.f32 %v14238_v51, %v7888_v25  ;;  %v14241_v16 = vadd.f32 %v14240_v48, %v14239_v50 }
 0x753   : > { %v19228_v29 = vpop.f32.mrb[214].mxu0 }
 0x754   : > { %v19230_v27 = vpop.f32.mrb[215].mxu0  ;;  %v7956_v20 = vadd.f32 %v14241_v16, %v7891_v8  ;;  %v8018_v40 = vadd.f32 %v19215_v7, %v7953_v42 }
 0x756   : > { %v14242_v12 = vpop.f32.mrb[188].mxu1  ;;  %v19233_v49 = vadd.f32 %v14281_v32, %v7956_v20 }
 0x757   : > { %v14243_v55 = vpop.f32.mrb[189].mxu1 }
 0x758   : > { %v14244_v46 = vadd.f32 %v14243_v55, %v14242_v12  ;;  %v14245_v31 = vpop.f32.mrb[190].mxu1 }
 0x759   : > { %v14246_v15 = vpop.f32.mrb[191].mxu1 }
 0x75a   : > { %v7961_v4 = vadd.f32 %v14244_v46, %v7896_v2  ;;  %v14247_v60 = vadd.f32 %v14246_v15, %v14245_v31 }
 0x75c   : > { %v7964_v21 = vadd.f32 %v14247_v60, %v7899_v10  ;;  %v19235_v61 = vadd.f32 %v14284_v26, %v7961_v4 }
 0x75e   : > { %v14304_v35 = vpop.f32.mrb[192].mxu1  ;;  %v19237_v0 = vadd.f32 %v14287_v58, %v7964_v21 }
 0x75f   : > { %v14305_v53 = vpop.f32.mrb[193].mxu1 }
 0x760   : > { %v14306_v9 = vadd.f32 %v14305_v53, %v14304_v35  ;;  %v14307_v7 = vpop.f32.mrb[194].mxu1 }
 0x761   : > { %v14308_v5 = vpop.f32.mrb[195].mxu1 }
 0x762   : > { %v8067_v32 = vadd.f32 %v14306_v9, %v8002_v24  ;;  %v14309_v28 = vadd.f32 %v14308_v5, %v14307_v7 }
 0x764   : > { %v8132_v59 = vadd.f32 %v8131_v56, %v8067_v32  ;;  %v8070_v38 = vadd.f32 %v14309_v28, %v8005_v39 }
 0x766   : > { %v8162_v3 = vmax.f32 %v8132_v59, 0.0  ;;  %v8135_v45 = vadd.f32 %v8134_v44, %v8070_v38  ;;  %v14310_v54 = vpop.f32.mrb[196].mxu1 }
 0x767   : > { %v14311_v22 = vpop.f32.mrb[197].mxu1 }
 0x768   : > { %v8170_v1 = vpack.c.bf16 %v8162_v3, %v8162_v3  ;;  %v8163_v14 = vmax.f32 %v8135_v45, 0.0  ;;  %v14312_v52 = vadd.f32 %v14311_v22, %v14310_v54  ;;  %v14313_v26 = vpop.f32.mrb[198].mxu1 }
 0x769   : > { %v14314_v18 = vpop.f32.mrb[199].mxu1 }
 0x76a   : > { %v8324_v13 = vshrl.u32 %v8170_v1, 16  ;;  %v8171_v58 = vpack.c.bf16 %v8163_v14, %v8163_v14  ;;  %v8075_v41 = vadd.f32 %v14312_v52, %v8010_v62  ;;  %v14315_v37 = vadd.f32 %v14314_v18, %v14313_v26  ;;  %v15441_v18 = vld [vmem:[%s20446_s9 + $0x1c8] sm:$0xff]  }
 0x76b   : > { %v8327_v51 = vshll.u32 %v8170_v1, 16 }
 0x76c   : > { %v8326_v25 = vrot.slane %v8324_v13, 7  ;;  %v8331_v50 = vshrl.u32 %v8171_v58, 16  ;;  %v8140_v24 = vadd.f32 %v19220_v23, %v8075_v41  ;;  %v8078_v56 = vadd.f32 %v14315_v37, %v8013_v11 }
 0x76d   : > { %v8334_v44 = vshll.u32 %v8171_v58, 16 }
 0x76e   : > { %v8329_v39 = vor.u32 %v8327_v51, %v8326_v25  ;;  %v8333_v48 = vrot.slane %v8331_v50, 7  ;;  %v8164_v8 = vmax.f32 %v8140_v24, 0.0  ;;  %v14316_v42 = vpop.f32.mrb[200].mxu1  ;;  %v8143_v16 = vadd.f32 %v19222_v43, %v8078_v56 }
 0x76f   : > { %v14317_v20 = vpop.f32.mrb[201].mxu1 }
 0x770   : > { %v8336_v12 = vor.u32 %v8334_v44, %v8333_v48  ;;  %v8172_v55 = vpack.c.bf16 %v8164_v8, %v8164_v8  ;;  %v14318_v2 = vadd.f32 %v14317_v20, %v14316_v42  ;;  %v14319_v46 = vpop.f32.mrb[202].mxu1  ;;  %v8387_v62 = vsel %vm15960_vm2, 0, %v8329_v39 }
 0x771   : > { %v8165_v31 = vmax.f32 %v8143_v16, 0.0  ;;  %v14320_v15 = vpop.f32.mrb[203].mxu1  ;;  %v19245_v23 = vsel %vm18661_vm8, %v8387_v62, 0  ;;  %v15443_v16 = vld [vmem:[%s20446_s9 + $0x188] sm:$0xff]  }
 0x772   : > { %v8338_v11 = vshrl.u32 %v8172_v55, 16  ;;  %v8341_v10 = vshll.u32 %v8172_v55, 16  ;;  %v8083_v4 = vadd.f32 %v14318_v2, %v8018_v40  ;;  %v14321_v60 = vadd.f32 %v14320_v15, %v14319_v46  ;;  %v15445_v46 = vld [vmem:[%s20446_s9 + $0x1d0] sm:$0xff]  }
 0x773   : > { %v8173_v21 = vpack.c.bf16 %v8165_v31, %v8165_v31  ;;  %v8388_v43 = vsel %vm15960_vm2, 0, %v8336_v12  ;;  %v8459_v35 = vrot.slane %v19245_v23, 1  ;;  %v12446_v53 = vcombine.low %v18672_v30, %v19245_v23 }
 0x774   : > { %v8340_v9 = vrot.slane %v8338_v11, 7  ;;  %v8148_v7 = vadd.f32 %v19226_v63, %v8083_v4  ;;  %v8086_v5 = vadd.f32 %v14321_v60, %v19233_v49  ;;  %v19256_v32 = vsel %vm18661_vm8, %v8388_v43, 0  ;;  %v15439_v49 = vld [vmem:[%s20446_s9 + $0x180] sm:$0xff]  }
 0x775   : > { %v8345_v40 = vshrl.u32 %v8173_v21, 16  ;;  %v8348_v28 = vshll.u32 %v8173_v21, 16  ;;  %v8460_v59 = vrot.slane %v19256_v32, 1  ;;  %v12448_v38 = vcombine.low %v19042_v47, %v8459_v35  ;;  %v15442_v4 = vld [vmem:[%s20446_s9 + $0x100] sm:$0xff]  }
 0x776   : > { %v8343_v3 = vor.u32 %v8341_v10, %v8340_v9  ;;  %v8166_v45 = vmax.f32 %v8148_v7, 0.0  ;;  %v8151_v54 = vadd.f32 %v19230_v27, %v8086_v5  ;;  %v14322_v22 = vpop.f32.mrb[204].mxu1  ;;  %v12449_v63 = vcombine.low %v19245_v23, %v19256_v32  ;;  %v15444_v7 = vld [vmem:[%s20446_s9 + $0x148] sm:$0xff]  }
 0x777   : > { %v8347_v1 = vrot.slane %v8345_v40, 7  ;;  %v14323_v14 = vpop.f32.mrb[205].mxu1  ;;  %v8404_v52 = vshrl.u32 %v19245_v23, 16  ;;  %v8406_v26 = vshll.u32 %v19245_v23, 16  ;;  %v8411_v27 = vshrl.u32 %v19256_v32, 16  ;;  %v15454_v23 = vld [vmem:[%s20446_s9 + $0x118] sm:$0xff]  }
 0x778   : > { %v8174_v13 = vpack.c.bf16 %v8166_v45, %v8166_v45  ;;  %v8167_v58 = vmax.f32 %v8151_v54, 0.0  ;;  %9088 = vmatprep.mubr.bf16.mxu0 %v12449_v63  ;;  %v14324_v41 = vadd.f32 %v14323_v14, %v14322_v22  ;;  %v14325_v37 = vpop.f32.mrb[206].mxu1  ;;  %v8389_v25 = vsel %vm15960_vm2, 0, %v8343_v3  ;;  %v15449_v63 = vld [vmem:[%s20446_s9 + $0x1d8] sm:$0xff]  }
 0x779   : > { %v8350_v51 = vor.u32 %v8348_v28, %v8347_v1  ;;  %9089 = vmatmul.mubr.bf16.vlgmr.msra.gmra.mrb[216].mxu0 %v12448_v38  ;;  %v14326_v50 = vpop.f32.mrb[207].mxu1  ;;  %v8408_v24 = vrot.slane %v8406_v26, 1  ;;  %v19278_v56 = vsel %vm18661_vm8, %v8389_v25, 0  ;;  %v8413_v39 = vshll.u32 %v19256_v32, 16  ;;  %v15447_v38 = vld [vmem:[%s20446_s9 + $0x190] sm:$0xff]   ;;  %v15446_v1 = vld [vmem:[%s20446_s9 + $0x108] sm:$0xff]  }
 0x77a   : > { %v8352_v48 = vshrl.u32 %v8174_v13, 16  ;;  %v8355_v44 = vshll.u32 %v8174_v13, 16  ;;  %v8175_v8 = vpack.c.bf16 %v8167_v58, %v8167_v58  ;;  %v8091_v42 = vadd.f32 %v14324_v41, %v19235_v61  ;;  %14461 = vmatpush3.bf16.msra.mxu0 %v15439_v49  ;;  %v15448_v58 = vld [vmem:[%s20446_s9 + $0x150] sm:$0xff]   ;;  %v15451_v25 = vld [vmem:[%s20446_s9 + $0x198] sm:$0xff]  }
 0x77b   : > { %v14327_v20 = vadd.f32 %v14326_v50, %v14325_v37  ;;  %v19285_v12 = vor.u32 %v8408_v24, %v8404_v52  ;;  %14462 = vmatprep.subr.bf16.mxu0 %v15441_v18  ;;  %v8390_v55 = vsel %vm15960_vm2, 0, %v8350_v51  ;;  %v8461_v2 = vrot.slane %v19278_v56, 1 }
 0x77c   : > { %v8354_v62 = vrot.slane %v8352_v48, 7  ;;  %v8359_v61 = vshrl.u32 %v8175_v8, 16  ;;  %v8362_v31 = vshll.u32 %v8175_v8, 16  ;;  %v8156_v15 = vadd.f32 %v19224_v6, %v8091_v42  ;;  %v15453_v8 = vld [vmem:[%s20446_s9 + $0x1e0] sm:$0xff]  }
 0x77d   : > { %v8094_v11 = vadd.f32 %v14327_v20, %v19237_v0  ;;  %v12447_v10 = vcombine.low %v18703_v34, %v19285_v12  ;;  %v19302_v60 = vsel %vm18661_vm8, %v8390_v55, 0  ;;  %v19306_v21 = vcombine.low %v19256_v32, %v19278_v56 }
 0x77e   : > { %v8357_v43 = vor.u32 %v8355_v44, %v8354_v62  ;;  %v8361_v9 = vrot.slane %v8359_v61, 7  ;;  %v8168_v6 = vmax.f32 %v8156_v15, 0.0  ;;  %14463 = vmatpush3.bf16.msra.mxu0 %v15443_v16  ;;  %v8462_v0 = vrot.slane %v19302_v60, 1  ;;  %v15450_v61 = vld [vmem:[%s20446_s9 + $0x110] sm:$0xff]  }
 0x77f   : > { %v8159_v5 = vadd.f32 %v19228_v29, %v8094_v11  ;;  %9023 = vmatprep.mubr.bf16.mxu1 %v12447_v10  ;;  %v19317_v40 = vcombine.low %v8460_v59, %v8461_v2  ;;  %v12455_v28 = vcombine.low %v19278_v56, %v19302_v60  ;;  %14464 = vmatprep.subr.bf16.mxu0 %v15445_v46  ;;  %v8415_v3 = vrot.slane %v8413_v39, 1  ;;  %v15452_v10 = vld [vmem:[%s20446_s9 + $0x158] sm:$0xff]  }
 0x780   : > { %v8364_v45 = vor.u32 %v8362_v31, %v8361_v9  ;;  %v8176_v54 = vpack.c.bf16 %v8168_v6, %v8168_v6  ;;  %9024 = vmatmul.mubr.bf16.vlgmr.msra.gmra.mrb[208].mxu1 %v12446_v53  ;;  %v8418_v29 = vshrl.u32 %v19278_v56, 16  ;;  %v8420_v22 = vshll.u32 %v19278_v56, 16  ;;  %v15456_v56 = vld [vmem:[%s20446_s9 + $0x160] sm:$0xff]  }
 0x781   : > { %v8169_v49 = vmax.f32 %v8159_v5, 0.0  ;;  %14421 = vmatpush3.bf16.msra.mxu1 %v15442_v4  ;;  %9096 = vmatprep.mubr.bf16.mxu0 %v12455_v28  ;;  %v19335_v14 = vor.u32 %v8415_v3, %v8411_v27  ;;  %v8391_v53 = vsel %vm15960_vm2, 0, %v8357_v43  ;;  %v8425_v52 = vshrl.u32 %v19302_v60, 16  ;;  %v15455_v4 = vld [vmem:[%s20446_s9 + $0x1a0] sm:$0xff]   ;;  %v15457_v5 = vld [vmem:[%s20446_s9 + $0x1e8] sm:$0xff]  }
 0x782   : > { %v8366_v26 = vshrl.u32 %v8176_v54, 16  ;;  %v8369_v18 = vshll.u32 %v8176_v54, 16  ;;  %9097 = vmatmul.mubr.bf16.gmra.mrb[220].mxu0 %v19317_v40  ;;  %14422 = vmatprep.subr.bf16.mxu1 %v15444_v7  ;;  %v8422_v13 = vrot.slane %v8420_v22, 1  ;;  %v8392_v41 = vsel %vm15960_vm2, 0, %v8364_v45 }
 0x783   : > { %v8177_v27 = vpack.c.bf16 %v8169_v49, %v8169_v49  ;;  %14465 = vmatpush3.bf16.msra.mxu0 %v15447_v38  ;;  %v12450_v37 = vcombine.low %v19285_v12, %v19335_v14  ;;  %v19353_v51 = vsel %vm18661_vm8, %v8391_v53, 0  ;;  %v19357_v50 = vsel %vm18661_vm8, %v8392_v41, 0 }
 0x784   : > { %v8368_v24 = vrot.slane %v8366_v26, 7  ;;  %v19359_v39 = vor.u32 %v8422_v13, %v8418_v29  ;;  %14466 = vmatprep.subr.bf16.mxu0 %v15449_v63  ;;  %v8463_v48 = vrot.slane %v19353_v51, 1  ;;  %v8464_v44 = vrot.slane %v19357_v50, 1 }
 0x785   : > { %v8373_v42 = vshrl.u32 %v8177_v27, 16  ;;  %v8376_v16 = vshll.u32 %v8177_v27, 16  ;;  %14423 = vmatpush3.bf16.msra.mxu1 %v15446_v1  ;;  %v19368_v20 = vcombine.low %v19302_v60, %v19353_v51  ;;  %v12461_v55 = vcombine.low %v19353_v51, %v19357_v50  ;;  %v15459_v1 = vld [vmem:[%s20446_s9 + $0x1a8] sm:$0xff]  }
 0x786   : > { %v8371_v46 = vor.u32 %v8369_v18, %v8368_v24  ;;  %v19374_v62 = vcombine.low %v19335_v14, %v19359_v39  ;;  %14424 = vmatprep.subr.bf16.mxu1 %v15448_v58  ;;  %v19381_v31 = vcombine.low %v8462_v0, %v8463_v48  ;;  %v8427_v15 = vshll.u32 %v19302_v60, 16  ;;  %v15461_v58 = vld [vmem:[%s20446_s9 + $0x1f0] sm:$0xff]   ;;  %v15474_v14 = vld [vmem:[%s20446_s9 + $0x220] sm:$0xff]  }
 0x787   : > { %v8375_v11 = vrot.slane %v8373_v42, 7  ;;  %14467 = vmatpush3.bf16.msra.mxu0 %v15451_v25  ;;  %9104 = vmatprep.mubr.bf16.mxu0 %v12461_v55  ;;  %v8432_v43 = vshrl.u32 %v19353_v51, 16  ;;  %v8434_v9 = vshll.u32 %v19353_v51, 16  ;;  %v8439_v6 = vshrl.u32 %v19357_v50, 16  ;;  %v15458_v25 = vld [vmem:[%s20446_s9 + $0x120] sm:$0xff]   ;;  %v15463_v55 = vld [vmem:[%s20446_s9 + $0x1b0] sm:$0xff]  }
 0x788   : > { %9031 = vmatprep.mubr.bf16.mxu1 %v19374_v62  ;;  %14468 = vmatprep.subr.bf16.mxu0 %v15453_v8  ;;  %v8429_v7 = vrot.slane %v8427_v15, 1  ;;  %v8393_v28 = vsel %vm15960_vm2, 0, %v8371_v46  ;;  %v8441_v38 = vshll.u32 %v19357_v50, 16  ;;  %v19404_v3 = vcombine.low %v8459_v35, %v8460_v59  ;;  %v15460_v8 = vld [vmem:[%s20446_s9 + $0x168] sm:$0xff]  }
 0x789   : > { %v8378_v45 = vor.u32 %v8376_v16, %v8375_v11  ;;  %9032 = vmatmul.mubr.bf16.gmra.mrb[212].mxu1 %v19306_v21  ;;  %v8436_v54 = vrot.slane %v8434_v9, 1  ;;  %v8401_v29 = vsel %vm18661_vm8, %v8393_v28, 0  ;;  %v19413_v22 = vcombine.low %v8461_v2, %v8462_v0  ;;  %v15462_v11 = vld [vmem:[%s20446_s9 + $0x128] sm:$0xff]  }
 0x78a   : > { %14425 = vmatpush3.bf16.msra.mxu1 %v15450_v61  ;;  %9105 = vmatmul.mubr.bf16.gmra.mrb[224].mxu0 %v19381_v31  ;;  %v19419_v35 = vor.u32 %v8429_v7, %v8425_v52  ;;  %v8465_v32 = vrot.slane %v8401_v29, 1  ;;  %v19422_v59 = vcombine.low %v19357_v50, %v8401_v29  ;;  %v8443_v63 = vrot.slane %v8441_v38, 1  ;;  %v15465_v61 = vld [vmem:[%s20446_s9 + $0x1f8] sm:$0xff]   ;;  %v15471_v28 = vld [vmem:[%s20446_s9 + $0x208] sm:$0xff]  }
 0x78b   : > { %14426 = vmatprep.subr.bf16.mxu1 %v15452_v10  ;;  %14469 = vmatpush3.bf16.msra.mxu0 %v15455_v4  ;;  %v19424_v60 = vor.u32 %v8436_v54, %v8432_v43  ;;  %v8394_v2 = vsel %vm15960_vm2, 0, %v8378_v45  ;;  %v8448_v0 = vshll.u32 %v8401_v29, 16  ;;  %v8446_v41 = vshrl.u32 %v8401_v29, 16  ;;  %v15464_v4 = vld [vmem:[%s20446_s9 + $0x170] sm:$0xff]   ;;  %v15467_v43 = vld [vmem:[%s20446_s9 + $0x1b8] sm:$0xff]   ;;  %v15478_v54 = vld [vmem:[%s20448_s11 + $0xc0] sm:$0xff]  }
 0x78c   : > { %v12456_v49 = vcombine.low %v19359_v39, %v19419_v35  ;;  %14470 = vmatprep.subr.bf16.mxu0 %v15457_v5  ;;  %v19438_v53 = vsel %vm18661_vm8, %v8394_v2, 0  ;;  %v19440_v52 = vcombine.low %v8464_v44, %v8465_v32  ;;  %v19442_v26 = vor.u32 %v8443_v63, %v8439_v6  ;;  %v15466_v6 = vld [vmem:[%s20446_s9 + $0x130] sm:$0xff]   ;;  %v15469_v7 = vld [vmem:[%s20446_s9 + $0x138] sm:$0xff]   ;;  %v15470_v5 = vld [vmem:[%s20446_s9 + $0x200] sm:$0xff]  }
 0x78d   : > { %v12459_v18 = vcombine.low %v19419_v35, %v19424_v60  ;;  %v12467_v13 = vcombine.low %v8401_v29, %v19438_v53  ;;  %v8450_v27 = vrot.slane %v8448_v0, 1  ;;  %v12463_v50 = vcombine.low %v8463_v48, %v8464_v44  ;;  %v15473_v38 = vld [vmem:[%s20446_s9 + $0x218] sm:$0xff]   ;;  %v15479_v29 = vld [vmem:[%s20448_s11 + $0x80] sm:$0xff]   ;;  %v15484_v35 = vld [vmem:[%s20448_s11 + $0x48] sm:$0xff]  }
 0x78e   : > { %14427 = vmatpush3.bf16.msra.mxu1 %v15454_v23  ;;  %v12462_v51 = vcombine.low %v19424_v60, %v19442_v26  ;;  %v8469_v24 = vshll.u32 %v19438_v53, 16  ;;  %v8474_v16 = vrot.slane %v19438_v53, 1  ;;  %v8467_v48 = vshrl.u32 %v19438_v53, 16  ;;  %v15483_v23 = vld [vmem:[%s20448_s11 + $0x88] sm:$0xff]   ;;  %v15487_v63 = vld [vmem:[%s20448_s11 + $0x90] sm:$0xff]   ;;  %v15491_v0 = vld [vmem:[%s20448_s11 + $0x98] sm:$0xff]  }
 0x78f   : > { %9039 = vmatprep.mubr.bf16.mxu1 %v12459_v18  ;;  %14428 = vmatprep.subr.bf16.mxu1 %v15456_v56  ;;  %v19459_v42 = vor.u32 %v8450_v27, %v8446_v41  ;;  %v12470_v39 = vcombine.low %v19438_v53, %v18672_v30  ;;  %v15488_v60 = vld [vmem:[%s20448_s11 + $0x50] sm:$0xff]   ;;  %v15489_v56 = vld [vmem:[%s20448_s11 + $0xd8] sm:$0xff]   ;;  %v15500_v41 = vld [vmem:[%s20448_s11 + $0x68] sm:$0xff]  }
 0x790   : > { %14471 = vmatpush3.bf16.msra.mxu0 %v15459_v1  ;;  %9112 = vmatprep.mubr.bf16.mxu0 %v12467_v13  ;;  %v8471_v44 = vrot.slane %v8469_v24, 1  ;;  %v12469_v15 = vcombine.low %v8465_v32, %v8474_v16  ;;  %v12472_v45 = vcombine.low %v8474_v16, %v19042_v47  ;;  %v15485_v32 = vld [vmem:[%s20448_s11 + $0xd0] sm:$0xff]   ;;  %v15493_v1 = vld [vmem:[%s20448_s11 + $0xe0] sm:$0xff]   ;;  %v15494_v53 = vld [vmem:[%s20448_s11 + $0x18] sm:$0xff]  }
 0x791   : > { %9040 = vmatmul.mubr.bf16.gmra.mrb[216].mxu1 %v19368_v20  ;;  %14472 = vmatprep.subr.bf16.mxu0 %v15461_v58  ;;  %v12465_v46 = vcombine.low %v19442_v26, %v19459_v42  ;;  %v15490_v2 = vld [vmem:[%s20448_s11 + $0x10] sm:$0xff]   ;;  %v15496_v26 = vld [vmem:[%s20448_s11 + $0x60] sm:$0xff]   ;;  %v15499_v58 = vld [vmem:[%s20448_s11 + $0xa8] sm:$0xff]  }
 0x792   : > { %14429 = vmatpush3.bf16.msra.mxu1 %v15458_v25  ;;  %9113 = vmatmul.mubr.bf16.gmra.mrb[228].mxu0 %v19440_v52  ;;  %v8472_v10 = vor.u32 %v8471_v44, %v8467_v48  ;;  %v15498_v13 = vld [vmem:[%s20448_s11 + $0x20] sm:$0xff]   ;;  %v15501_v27 = vld [vmem:[%s20448_s11 + $0xf0] sm:$0xff]   ;;  %v15502_v25 = vld [vmem:[%s20448_s11 + $0x28] sm:$0xff]  }
 0x793   : > { %14430 = vmatprep.subr.bf16.mxu1 %v15460_v8  ;;  %9218 = vmatprep.mubr.bf16.mxu0 %v19374_v62  ;;  %v15468_v62 = vld [vmem:[%s20446_s9 + $0x178] sm:$0xff]   ;;  %v15506_v8 = vld [vmem:[%s20448_s11 + $0x30] sm:$0xff]   ;;  %v15512_v44 = vld [vmem:[%s20448_s11 + $0x140] sm:$0xff]  }
 0x794   : > { %14473 = vmatpush3.bf16.msra.mxu0 %v15463_v55  ;;  %9047 = vmatprep.mubr.bf16.mxu1 %v12465_v46  ;;  %v12468_v9 = vcombine.low %v19459_v42, %v8472_v10  ;;  %v12471_v12 = vcombine.low %v8472_v10, %v18703_v34  ;;  %v15505_v24 = vld [vmem:[%s20448_s11 + $0xf8] sm:$0xff]   ;;  %v15509_v55 = vld [vmem:[%s20448_s11 + $0x1c0] sm:$0xff]  }
 0x795   : > { %14474 = vmatprep.subr.bf16.mxu0 %v15465_v61  ;;  %v15507_v42 = vld [vmem:[%s20448_s11 + $0xb8] sm:$0xff]  }
 0x796   : > { %14431 = vmatpush3.bf16.msra.mxu1 %v15462_v11  ;;  %v15508_v16 = vld [vmem:[%s20448_s11 + $0x78] sm:$0xff]  }
 0x797   : > { %14432 = vmatprep.subr.bf16.mxu1 %v15464_v4  ;;  %v15510_v48 = vld [vmem:[%s20448_s11 + $0x38] sm:$0xff]  }
 0x798   : > { %14475 = vmatpush3.bf16.msra.mxu0 %v15467_v43 }
 0x799   : > { %9048 = vmatmul.mubr.bf16.gmra.mrb[220].mxu1 %v19422_v59 }
 0x79a   : > { %14433 = vmatpush3.bf16.msra.mxu1 %v15466_v6  ;;  %9153 = vmatprep.mubr.bf16.mxu1 %v19404_v3  ;;  %v15477_v3 = vld [vmem:[%s20446_s9 + $0x238] sm:$0xff]  }
 0x79b   : > { %14434 = vmatprep.subr.bf16.mxu1 %v15468_v62  ;;  %9219 = vmatmul.mubr.bf16.vlgmr.msra.gmra.mrb[232].mxu0 %v19306_v21  ;;  %v15472_v21 = vld [vmem:[%s20446_s9 + $0x210] sm:$0xff]  }
 0x79c   : > { %9226 = vmatprep.mubr.bf16.mxu0 %v12459_v18  ;;  %v15497_v18 = vld [vmem:[%s20448_s11 + $0xe8] sm:$0xff]  }
 0x79e   : > { %14435 = vmatpush3.bf16.msra.mxu1 %v15469_v7 }
 0x79f   : > { %14967 = vmatprep.subr.bf16.mxu1 %v15470_v5 }
 0x7a1   : > { %9154 = vmatmul.mubr.bf16.vlgmr.msra.gmra.mrb[224].mxu1 %v12450_v37  ;;  %v15475_v37 = vld [vmem:[%s20446_s9 + $0x228] sm:$0xff]  }
 0x7a2   : > { %9161 = vmatprep.mubr.bf16.mxu1 %v19413_v22  ;;  %14968 = vmatpush3.bf16.msra.mxu1 %v15470_v5  ;;  %v15482_v22 = vld [vmem:[%s20448_s11] sm:$0xff]  }
 0x7a3   : > { %9227 = vmatmul.mubr.bf16.gmra.mrb[236].mxu0 %v19368_v20  ;;  %14969 = vmatprep.subr.bf16.mxu1 %v15471_v28  ;;  %v15476_v20 = vld [vmem:[%s20446_s9 + $0x230] sm:$0xff]  }
 0x7a4   : > { %9234 = vmatprep.mubr.bf16.mxu0 %v12465_v46 }
 0x7a6   : > { %14970 = vmatpush3.bf16.msra.mxu1 %v15471_v28 }
 0x7a7   : > { %14971 = vmatprep.subr.bf16.mxu1 %v15472_v21 }
 0x7a9   : > { %9162 = vmatmul.mubr.bf16.gmra.mrb[228].mxu1 %v12456_v49  ;;  %v15492_v49 = vld [vmem:[%s20448_s11 + $0x58] sm:$0xff]  }
 0x7aa   : > { %9169 = vmatprep.mubr.bf16.mxu1 %v12463_v50  ;;  %14972 = vmatpush3.bf16.msra.mxu1 %v15472_v21  ;;  %v15504_v50 = vld [vmem:[%s20448_s11 + $0x70] sm:$0xff]  }
 0x7ab   : > { %9235 = vmatmul.mubr.bf16.gmra.mrb[240].mxu0 %v19422_v59  ;;  %14973 = vmatprep.subr.bf16.mxu1 %v15473_v38  ;;  %v15486_v59 = vld [vmem:[%s20448_s11 + $0x8] sm:$0xff]  }
 0x7ac   : > { %9242 = vmatprep.mubr.bf16.mxu0 %v12471_v12 }
 0x7ae   : > { %14974 = vmatpush3.bf16.msra.mxu1 %v15473_v38 }
 0x7af   : > { %14975 = vmatprep.subr.bf16.mxu1 %v15474_v14 }
 0x7b1   : > { %9170 = vmatmul.mubr.bf16.gmra.mrb[232].mxu1 %v12462_v51  ;;  %v15503_v51 = vld [vmem:[%s20448_s11 + $0xb0] sm:$0xff]  }
 0x7b2   : > { %9177 = vmatprep.mubr.bf16.mxu1 %v12469_v15  ;;  %14976 = vmatpush3.bf16.msra.mxu1 %v15474_v14 }
 0x7b3   : > { %9243 = vmatmul.mubr.bf16.gmra.mrb[244].mxu0 %v12470_v39  ;;  %14977 = vmatprep.subr.bf16.mxu1 %v15475_v37 }
 0x7b6   : > { %14978 = vmatpush3.bf16.msra.mxu1 %v15475_v37 }
 0x7b7   : > { %14979 = vmatprep.subr.bf16.mxu1 %v15476_v20 }
 0x7b9   : > { %9178 = vmatmul.mubr.bf16.gmra.mrb[236].mxu1 %v12468_v9  ;;  %v12445_v9 = vld [vmem:[%s20447_s10] ss:$0 sm:$0xff] }
 0x7ba   : > { %14980 = vmatpush3.bf16.msra.mxu1 %v15476_v20  ;;  %14983 = vmatprep.mubr.bf16.mxu1 %v19317_v40  ;;  %v15480_v40 = vld [vmem:[%s20448_s11 + $0x40] sm:$0xff]  }
 0x7bb   : > { %14981 = vmatprep.subr.bf16.mxu1 %v15477_v3  ;;  %14512 = vmatprep.subr.bf16.mxu0 %v15480_v40 }
 0x7bc   : > { %14513 = vmatpush3.bf16.msra.mxu0 %v15482_v22 }
 0x7bd   : > { %14514 = vmatprep.subr.bf16.mxu0 %v15484_v35 }
 0x7be   : > { %14982 = vmatpush3.bf16.msra.mxu1 %v15477_v3 }
 0x7bf   : > { %14552 = vmatprep.subr.bf16.mxu1 %v15478_v54 }
 0x7c0   : > { %14515 = vmatpush3.bf16.msra.mxu0 %v15486_v59 }
 0x7c1   : > { %14984 = vmatmul.mubr.bf16.vlgmr.msra.gmra.mrb[240].mxu1 %v19381_v31  ;;  %v15481_v31 = vld [vmem:[%s20448_s11 + $0xc8] sm:$0xff]   ;;  %14516 = vmatprep.subr.bf16.mxu0 %v15488_v60 }
 0x7c2   : > { %14987 = vmatprep.mubr.bf16.mxu1 %v19440_v52  ;;  %14553 = vmatpush3.bf16.msra.mxu1 %v15479_v29  ;;  %v15495_v52 = vld [vmem:[%s20448_s11 + $0xa0] sm:$0xff]  }
 0x7c3   : > { %14554 = vmatprep.subr.bf16.mxu1 %v15481_v31 }
 0x7c4   : > { %14517 = vmatpush3.bf16.msra.mxu0 %v15490_v2 }
 0x7c5   : > { %14518 = vmatprep.subr.bf16.mxu0 %v15492_v49 }
 0x7c6   : > { %14555 = vmatpush3.bf16.msra.mxu1 %v15483_v23 }
 0x7c7   : > { %14556 = vmatprep.subr.bf16.mxu1 %v15485_v32 }
 0x7c8   : > { %14519 = vmatpush3.bf16.msra.mxu0 %v15494_v53 }
 0x7c9   : > { %14988 = vmatmul.mubr.bf16.gmra.mrb[244].mxu1 %v12472_v45  ;;  %14520 = vmatprep.subr.bf16.mxu0 %v15496_v26 }
 0x7ca   : > { %14557 = vmatpush3.bf16.msra.mxu1 %v15487_v63 }
 0x7cb   : > { %14558 = vmatprep.subr.bf16.mxu1 %v15489_v56 }
 0x7cc   : > { %14521 = vmatpush3.bf16.msra.mxu0 %v15498_v13 }
 0x7cd   : > { %14522 = vmatprep.subr.bf16.mxu0 %v15500_v41 }
 0x7ce   : > { %14559 = vmatpush3.bf16.msra.mxu1 %v15491_v0 }
 0x7cf   : > { %14560 = vmatprep.subr.bf16.mxu1 %v15493_v1 }
 0x7d0   : > { %14523 = vmatpush3.bf16.msra.mxu0 %v15502_v25 }
 0x7d1   : > { %14524 = vmatprep.subr.bf16.mxu0 %v15504_v50 }
 0x7d2   : > { %14561 = vmatpush3.bf16.msra.mxu1 %v15495_v52 }
 0x7d3   : > { %14562 = vmatprep.subr.bf16.mxu1 %v15497_v18 }
 0x7d4   : > { %14525 = vmatpush3.bf16.msra.mxu0 %v15506_v8 }
 0x7d5   : > { %14526 = vmatprep.subr.bf16.mxu0 %v15508_v16 }
 0x7d6   : > { %14563 = vmatpush3.bf16.msra.mxu1 %v15499_v58 }
 0x7d7   : > { %14564 = vmatprep.subr.bf16.mxu1 %v15501_v27 }
 0x7d8   : > { %14527 = vmatpush3.bf16.msra.mxu0 %v15510_v48 }
 0x7d9   : > { %14592 = vmatprep.subr.bf16.mxu0 %v15512_v44 }
 0x7da   : > { %14565 = vmatpush3.bf16.msra.mxu1 %v15503_v51 }
 0x7db   : > { %14566 = vmatprep.subr.bf16.mxu1 %v15505_v24 }
 0x7de   : > { %14567 = vmatpush3.bf16.msra.mxu1 %v15507_v42 }
 0x7df   : > { %14632 = vmatprep.subr.bf16.mxu1 %v15509_v55 }
 0x84c   : > { %v14396_v46 = vpop.f32.mrb[216].mxu0 }
 0x84d   : > { %v14397_v61 = vpop.f32.mrb[217].mxu0 }
 0x84e   : > { %v14398_v15 = vadd.f32 %v14397_v61, %v14396_v46  ;;  %v14399_v11 = vpop.f32.mrb[218].mxu0 }
 0x84f   : > { %v14400_v10 = vpop.f32.mrb[219].mxu0 }
 0x850   : > { %v14401_v4 = vadd.f32 %v14400_v10, %v14399_v11 }
 0x853   : > { %v14356_v43 = vpop.f32.mrb[208].mxu1 }
 0x854   : > { %v14357_v6 = vpop.f32.mrb[209].mxu1 }
 0x855   : > { %v14358_v62 = vadd.f32 %v14357_v6, %v14356_v43  ;;  %v14359_v7 = vpop.f32.mrb[210].mxu1  ;;  %v14402_v5 = vpop.f32.mrb[220].mxu0 }
 0x856   : > { %v14360_v28 = vpop.f32.mrb[211].mxu1  ;;  %v14403_v21 = vpop.f32.mrb[221].mxu0 }
 0x857   : > { %v9026_v38 = vadd.f32 %v14358_v62, %v12445_v9  ;;  %v14361_v12 = vadd.f32 %v14360_v28, %v14359_v7  ;;  %v14404_v14 = vadd.f32 %v14403_v21, %v14402_v5  ;;  %v14405_v37 = vpop.f32.mrb[222].mxu0 }
 0x858   : > { %v14406_v39 = vpop.f32.mrb[223].mxu0 }
 0x859   : > { %v9029_v20 = vadd.f32 %v14361_v12, %v12445_v9  ;;  %v14407_v3 = vadd.f32 %v14406_v39, %v14405_v37  ;;  %v9091_v45 = vadd.f32 %v14398_v15, %v9026_v38 }
 0x85b   : > { %v9094_v54 = vadd.f32 %v14401_v4, %v9029_v20 }
 0x85c   : > { %v14362_v29 = vpop.f32.mrb[212].mxu1 }
 0x85d   : > { %v14363_v40 = vpop.f32.mrb[213].mxu1  ;;  %v14408_v31 = vpop.f32.mrb[224].mxu0 }
 0x85e   : > { %v14364_v22 = vadd.f32 %v14363_v40, %v14362_v29  ;;  %v14365_v23 = vpop.f32.mrb[214].mxu1  ;;  %v14409_v35 = vpop.f32.mrb[225].mxu0 }
 0x85f   : > { %v14366_v32 = vpop.f32.mrb[215].mxu1  ;;  %v14410_v59 = vadd.f32 %v14409_v35, %v14408_v31  ;;  %v14411_v63 = vpop.f32.mrb[226].mxu0 }
 0x860   : > { %v9034_v60 = vadd.f32 %v14364_v22, %v12445_v9  ;;  %v14367_v56 = vadd.f32 %v14366_v32, %v14365_v23  ;;  %v14412_v2 = vpop.f32.mrb[227].mxu0 }
 0x861   : > { %v14413_v0 = vadd.f32 %v14412_v2, %v14411_v63 }
 0x862   : > { %v9037_v49 = vadd.f32 %v14367_v56, %v12445_v9  ;;  %v9099_v1 = vadd.f32 %v14404_v14, %v9034_v60 }
 0x864   : > { %v14368_v53 = vpop.f32.mrb[216].mxu1  ;;  %v9102_v52 = vadd.f32 %v14407_v3, %v9037_v49 }
 0x865   : > { %v14369_v26 = vpop.f32.mrb[217].mxu1  ;;  %v14414_v18 = vpop.f32.mrb[228].mxu0 }
 0x866   : > { %v14370_v13 = vadd.f32 %v14369_v26, %v14368_v53  ;;  %v14371_v58 = vpop.f32.mrb[218].mxu1  ;;  %v14415_v41 = vpop.f32.mrb[229].mxu0 }
 0x867   : > { %v14372_v27 = vpop.f32.mrb[219].mxu1  ;;  %v14416_v25 = vadd.f32 %v14415_v41, %v14414_v18  ;;  %v14417_v51 = vpop.f32.mrb[230].mxu0 }
 0x868   : > { %v9042_v50 = vadd.f32 %v14370_v13, %v12445_v9  ;;  %v14373_v24 = vadd.f32 %v14372_v27, %v14371_v58  ;;  %v14418_v8 = vpop.f32.mrb[231].mxu0 }
 0x869   : > { %v14419_v42 = vadd.f32 %v14418_v8, %v14417_v51 }
 0x86a   : > { %v9045_v16 = vadd.f32 %v14373_v24, %v12445_v9  ;;  %v9107_v55 = vadd.f32 %v14410_v59, %v9042_v50 }
 0x86c   : > { %v14374_v48 = vpop.f32.mrb[220].mxu1  ;;  %v9110_v44 = vadd.f32 %v14413_v0, %v9045_v16 }
 0x86d   : > { %v14375_v46 = vpop.f32.mrb[221].mxu1 }
 0x86e   : > { %v14376_v61 = vadd.f32 %v14375_v46, %v14374_v48  ;;  %v14377_v15 = vpop.f32.mrb[222].mxu1  ;;  %v14476_v11 = vpop.f32.mrb[232].mxu0 }
 0x86f   : > { %v14378_v10 = vpop.f32.mrb[223].mxu1  ;;  %v14477_v4 = vpop.f32.mrb[233].mxu0 }
 0x870   : > { %v9050_v43 = vadd.f32 %v14376_v61, %v12445_v9  ;;  %v14379_v6 = vadd.f32 %v14378_v10, %v14377_v15  ;;  %v14478_v62 = vadd.f32 %v14477_v4, %v14476_v11  ;;  %v14479_v7 = vpop.f32.mrb[234].mxu0 }
 0x871   : > { %v14480_v5 = vpop.f32.mrb[235].mxu0 }
 0x872   : > { %v9053_v28 = vadd.f32 %v14379_v6, %v12445_v9  ;;  %v14481_v21 = vadd.f32 %v14480_v5, %v14479_v7  ;;  %v9115_v38 = vadd.f32 %v14416_v25, %v9050_v43 }
 0x874   : > { %v14436_v12 = vpop.f32.mrb[224].mxu1  ;;  %v9118_v14 = vadd.f32 %v14419_v42, %v9053_v28 }
 0x875   : > { %v14437_v37 = vpop.f32.mrb[225].mxu1 }
 0x876   : > { %v14438_v39 = vadd.f32 %v14437_v37, %v14436_v12  ;;  %v14439_v20 = vpop.f32.mrb[226].mxu1  ;;  %v14482_v3 = vpop.f32.mrb[236].mxu0 }
 0x877   : > { %v14440_v29 = vpop.f32.mrb[227].mxu1  ;;  %v14483_v40 = vpop.f32.mrb[237].mxu0 }
 0x878   : > { %v9156_v31 = vadd.f32 %v14438_v39, %v9091_v45  ;;  %v14441_v22 = vadd.f32 %v14440_v29, %v14439_v20  ;;  %v14484_v23 = vadd.f32 %v14483_v40, %v14482_v3  ;;  %v14485_v35 = vpop.f32.mrb[238].mxu0 }
 0x879   : > { %v14486_v32 = vpop.f32.mrb[239].mxu0 }
 0x87a   : > { %v9159_v59 = vadd.f32 %v14441_v22, %v9094_v54  ;;  %v14487_v63 = vadd.f32 %v14486_v32, %v14485_v35  ;;  %v9221_v60 = vadd.f32 %v14478_v62, %v9156_v31 }
 0x87c   : > { %v14442_v56 = vpop.f32.mrb[228].mxu1  ;;  %v9224_v9 = vadd.f32 %v14481_v21, %v9159_v59 }
 0x87d   : > { %v14443_v2 = vpop.f32.mrb[229].mxu1 }
 0x87e   : > { %v14444_v0 = vadd.f32 %v14443_v2, %v14442_v56  ;;  %v14445_v49 = vpop.f32.mrb[230].mxu1  ;;  %v14488_v53 = vpop.f32.mrb[240].mxu0 }
 0x87f   : > { %v14446_v26 = vpop.f32.mrb[231].mxu1  ;;  %v14489_v18 = vpop.f32.mrb[241].mxu0 }
 0x880   : > { %v9164_v13 = vadd.f32 %v14444_v0, %v9099_v1  ;;  %v14447_v58 = vadd.f32 %v14446_v26, %v14445_v49  ;;  %v14490_v41 = vadd.f32 %v14489_v18, %v14488_v53  ;;  %v14491_v27 = vpop.f32.mrb[242].mxu0 }
 0x881   : > { %v14492_v45 = vpop.f32.mrb[243].mxu0 }
 0x882   : > { %v9167_v25 = vadd.f32 %v14447_v58, %v9102_v52  ;;  %v14493_v51 = vadd.f32 %v14492_v45, %v14491_v27  ;;  %v9229_v50 = vadd.f32 %v14484_v23, %v9164_v13 }
 0x884   : > { %v14448_v24 = vpop.f32.mrb[232].mxu1  ;;  %v9232_v54 = vadd.f32 %v14487_v63, %v9167_v25 }
 0x885   : > { %v14449_v8 = vpop.f32.mrb[233].mxu1 }
 0x886   : > { %v14450_v42 = vadd.f32 %v14449_v8, %v14448_v24  ;;  %v14451_v16 = vpop.f32.mrb[234].mxu1  ;;  %v14494_v48 = vpop.f32.mrb[244].mxu0 }
 0x887   : > { %v14452_v46 = vpop.f32.mrb[235].mxu1  ;;  %v14495_v61 = vpop.f32.mrb[245].mxu0 }
 0x888   : > { %v9172_v15 = vadd.f32 %v14450_v42, %v9107_v55  ;;  %v14453_v11 = vadd.f32 %v14452_v46, %v14451_v16  ;;  %v14496_v10 = vadd.f32 %v14495_v61, %v14494_v48  ;;  %v14497_v4 = vpop.f32.mrb[246].mxu0 }
 0x889   : > { %v14498_v1 = vpop.f32.mrb[247].mxu0 }
 0x88a   : > { %v9175_v43 = vadd.f32 %v14453_v11, %v9110_v44  ;;  %v14499_v6 = vadd.f32 %v14498_v1, %v14497_v4  ;;  %v9237_v62 = vadd.f32 %v14490_v41, %v9172_v15 }
 0x88c   : > { %v14454_v7 = vpop.f32.mrb[236].mxu1  ;;  %v9240_v52 = vadd.f32 %v14493_v51, %v9175_v43 }
 0x88d   : > { %v14455_v5 = vpop.f32.mrb[237].mxu1 }
 0x88e   : > { %v14456_v28 = vadd.f32 %v14455_v5, %v14454_v7  ;;  %v14457_v21 = vpop.f32.mrb[238].mxu1 }
 0x88f   : > { %v14458_v12 = vpop.f32.mrb[239].mxu1 }
 0x890   : > { %v9180_v37 = vadd.f32 %v14456_v28, %v9115_v38  ;;  %v14459_v39 = vadd.f32 %v14458_v12, %v14457_v21 }
 0x892   : > { %v9183_v20 = vadd.f32 %v14459_v39, %v9118_v14  ;;  %v9245_v3 = vadd.f32 %v14496_v10, %v9180_v37 }
 0x894   : > { %v14985_v29 = vpop.f32.mrb[240].mxu1  ;;  %v9248_v40 = vadd.f32 %v14499_v6, %v9183_v20 }
 0x895   : > { %v9294_v55 = vadd.f32 %v14985_v29, %v9229_v50  ;;  %v9285_v31 = vpop.f32.mrb[241].mxu1 }
 0x896   : > { %v9286_v22 = vadd.f32 %v9285_v31, %v9221_v60  ;;  %v14986_v23 = vpop.f32.mrb[242].mxu1 }
 0x897   : > { %v9318_v35 = vmax.f32 %v9294_v55, 0.0  ;;  %v9297_v44 = vadd.f32 %v14986_v23, %v9232_v54  ;;  %v9288_v32 = vpop.f32.mrb[243].mxu1 }
 0x898   : > { %v9316_v59 = vmax.f32 %v9286_v22, 0.0  ;;  %v9289_v63 = vadd.f32 %v9288_v32, %v9224_v9 }
 0x899   : > { %v9326_v56 = vpack.c.bf16 %v9318_v35, %v9318_v35  ;;  %v9319_v2 = vmax.f32 %v9297_v44, 0.0 }
 0x89a   : > { %v9324_v0 = vpack.c.bf16 %v9316_v59, %v9316_v59  ;;  %v9317_v49 = vmax.f32 %v9289_v63, 0.0 }
 0x89b   : > { %v9492_v53 = vshrl.u32 %v9326_v56, 16  ;;  %v9327_v38 = vpack.c.bf16 %v9319_v2, %v9319_v2  ;;  %v9495_v26 = vshll.u32 %v9326_v56, 16 }
 0x89c   : > { %v9478_v14 = vshrl.u32 %v9324_v0, 16  ;;  %v9481_v18 = vshll.u32 %v9324_v0, 16  ;;  %v9325_v13 = vpack.c.bf16 %v9317_v49, %v9317_v49  ;;  %v14989_v58 = vpop.f32.mrb[244].mxu1 }
 0x89d   : > { %v9494_v41 = vrot.slane %v9492_v53, 7  ;;  %v9499_v27 = vshrl.u32 %v9327_v38, 16  ;;  %v9502_v60 = vshll.u32 %v9327_v38, 16  ;;  %v9310_v45 = vadd.f32 %v14989_v58, %v9245_v3  ;;  %v9301_v25 = vpop.f32.mrb[245].mxu1  ;;  %v15511_v53 = vld [vmem:[%s20448_s11 + $0x180] sm:$0xff]  }
 0x89e   : > { %v9480_v51 = vrot.slane %v9478_v14, 7  ;;  %v9485_v50 = vshrl.u32 %v9325_v13, 16  ;;  %v9488_v24 = vshll.u32 %v9325_v13, 16  ;;  %v9302_v9 = vadd.f32 %v9301_v25, %v9237_v62  ;;  %v14990_v54 = vpop.f32.mrb[246].mxu1  ;;  %v15513_v13 = vld [vmem:[%s20448_s11 + $0x1c8] sm:$0xff]  }
 0x89f   : > { %v9497_v8 = vor.u32 %v9495_v26, %v9494_v41  ;;  %v9501_v42 = vrot.slane %v9499_v27, 7  ;;  %v9322_v16 = vmax.f32 %v9310_v45, 0.0  ;;  %v9313_v48 = vadd.f32 %v14990_v54, %v9248_v40  ;;  %v9304_v46 = vpop.f32.mrb[247].mxu1 }
 0x8a0   : > { %v9483_v61 = vor.u32 %v9481_v18, %v9480_v51  ;;  %v9487_v15 = vrot.slane %v9485_v50, 7  ;;  %v9320_v11 = vmax.f32 %v9302_v9, 0.0  ;;  %v9305_v10 = vadd.f32 %v9304_v46, %v9240_v52 }
 0x8a1   : > { %v9543_v4 = vsel %vm15960_vm2, 0, %v9497_v8  ;;  %v9504_v1 = vor.u32 %v9502_v60, %v9501_v42  ;;  %v9330_v43 = vpack.c.bf16 %v9322_v16, %v9322_v16  ;;  %v9323_v12 = vmax.f32 %v9313_v48, 0.0  ;;  %v15515_v42 = vld [vmem:[%s20448_s11 + $0x188] sm:$0xff]  }
 0x8a2   : > { %v19652_v6 = vsel %vm18661_vm8, %v9543_v4, 0  ;;  %v9541_v62 = vsel %vm15960_vm2, 0, %v9483_v61  ;;  %v9490_v7 = vor.u32 %v9488_v24, %v9487_v15  ;;  %v9328_v5 = vpack.c.bf16 %v9320_v11, %v9320_v11  ;;  %v15517_v15 = vld [vmem:[%s20448_s11 + $0x1d0] sm:$0xff]  }
 0x8a3   : > { %v19658_v28 = vsel %vm18661_vm8, %v9541_v62, 0  ;;  %v9544_v52 = vsel %vm15960_vm2, 0, %v9504_v1  ;;  %v9520_v21 = vshrl.u32 %v9330_v43, 16  ;;  %v9615_v37 = vrot.slane %v19652_v6, 1 }
 0x8a4   : > { %v9613_v39 = vrot.slane %v19658_v28, 1  ;;  %v9542_v20 = vsel %vm15960_vm2, 0, %v9490_v7  ;;  %v19668_v3 = vsel %vm18661_vm8, %v9544_v52, 0  ;;  %v9523_v55 = vshll.u32 %v9330_v43, 16 }
 0x8a5   : > { %v19672_v29 = vsel %vm18661_vm8, %v9542_v20, 0  ;;  %v9522_v40 = vrot.slane %v9520_v21, 7  ;;  %v9506_v35 = vshrl.u32 %v9328_v5, 16  ;;  %v9509_v32 = vshll.u32 %v9328_v5, 16 }
 0x8a6   : > { %v12548_v31 = vcombine.low %v19042_v47, %v9613_v39  ;;  %v9614_v22 = vrot.slane %v19672_v29, 1  ;;  %v19680_v23 = vcombine.low %v19672_v29, %v19652_v6  ;;  %v9331_v59 = vpack.c.bf16 %v9323_v12, %v9323_v12 }
 0x8a7   : > { %v9525_v44 = vor.u32 %v9523_v55, %v9522_v40  ;;  %v9321_v63 = vmax.f32 %v9305_v10, 0.0  ;;  %v9508_v2 = vrot.slane %v9506_v35, 7  ;;  %v12549_v0 = vcombine.low %v19658_v28, %v19672_v29  ;;  %v15514_v40 = vld [vmem:[%s20448_s11 + $0x100] sm:$0xff]   ;;  %v15519_v55 = vld [vmem:[%s20448_s11 + $0x190] sm:$0xff]  }
 0x8a8   : > { %v19686_v56 = vcombine.low %v9614_v22, %v9615_v37  ;;  %v12555_v49 = vcombine.low %v19652_v6, %v19668_v3  ;;  %v12546_v38 = vcombine.low %v18672_v30, %v19658_v28  ;;  %v9527_v14 = vshrl.u32 %v9331_v59, 16 }
 0x8a9   : > { %v9547_v26 = vsel %vm15960_vm2, 0, %v9525_v44  ;;  %v9329_v18 = vpack.c.bf16 %v9321_v63, %v9321_v63  ;;  %v9616_v58 = vrot.slane %v19668_v3, 1  ;;  %v9511_v41 = vor.u32 %v9509_v32, %v9508_v2  ;;  %10238 = vmatprep.mubr.bf16.mxu1 %v12549_v0  ;;  %v15516_v32 = vld [vmem:[%s20448_s11 + $0x148] sm:$0xff]   ;;  %v15521_v0 = vld [vmem:[%s20448_s11 + $0x1d8] sm:$0xff]  }
 0x8aa   : > { %v9530_v27 = vshll.u32 %v9331_v59, 16  ;;  %v9560_v60 = vshll.u32 %v19658_v28, 16  ;;  %v19706_v45 = vsel %vm18661_vm8, %v9547_v26, 0  ;;  %v9529_v25 = vrot.slane %v9527_v14, 7  ;;  %10239 = vmatmul.mubr.bf16.vlgmr.msra.gmra.mrb[248].mxu1 %v12548_v31 }
 0x8ab   : > { %v9513_v51 = vshrl.u32 %v9329_v18, 16  ;;  %v9558_v50 = vshrl.u32 %v19658_v28, 16  ;;  %v9545_v24 = vsel %vm15960_vm2, 0, %v9511_v41  ;;  %v9516_v9 = vshll.u32 %v9329_v18, 16  ;;  %10245 = vmatprep.mubr.bf16.mxu1 %v12555_v49  ;;  %14633 = vmatpush3.bf16.msra.mxu1 %v15511_v53 }
 0x8ac   : > { %v9562_v54 = vrot.slane %v9560_v60, 1  ;;  %v9567_v8 = vshll.u32 %v19672_v29, 16  ;;  %v19717_v16 = vsel %vm18661_vm8, %v9545_v24, 0  ;;  %v9532_v48 = vor.u32 %v9530_v27, %v9529_v25  ;;  %14634 = vmatprep.subr.bf16.mxu1 %v15513_v13  ;;  %v15518_v13 = vld [vmem:[%s20448_s11 + $0x108] sm:$0xff]   ;;  %v15520_v24 = vld [vmem:[%s20448_s11 + $0x150] sm:$0xff]  }
 0x8ad   : > { %v9515_v46 = vrot.slane %v9513_v51, 7  ;;  %v9565_v61 = vshrl.u32 %v19672_v29, 16  ;;  %v9617_v11 = vrot.slane %v19717_v16, 1  ;;  %v19726_v10 = vcombine.low %v19668_v3, %v19717_v16 }
 0x8ae   : > { %v19728_v4 = vor.u32 %v9562_v54, %v9558_v50  ;;  %v9569_v1 = vrot.slane %v9567_v8, 1  ;;  %v9619_v43 = vrot.slane %v19706_v45, 1  ;;  %v9548_v62 = vsel %vm15960_vm2, 0, %v9532_v48 }
 0x8af   : > { %v9518_v7 = vor.u32 %v9516_v9, %v9515_v46  ;;  %v9574_v5 = vshll.u32 %v19652_v6, 16  ;;  %v19736_v52 = vcombine.low %v9616_v58, %v9617_v11  ;;  %v9572_v20 = vshrl.u32 %v19652_v6, 16  ;;  %14635 = vmatpush3.bf16.msra.mxu1 %v15515_v42  ;;  %v15525_v9 = vld [vmem:[%s20448_s11 + $0x1e0] sm:$0xff]   ;;  %v15524_v6 = vld [vmem:[%s20448_s11 + $0x158] sm:$0xff]  }
 0x8b0   : > { %v12547_v21 = vcombine.low %v18703_v34, %v19728_v4  ;;  %v19740_v12 = vor.u32 %v9569_v1, %v9565_v61  ;;  %v19751_v31 = vsel %vm18661_vm8, %v9548_v62, 0  ;;  %14636 = vmatprep.subr.bf16.mxu1 %v15517_v15  ;;  %v9581_v59 = vshll.u32 %v19668_v3, 16 }
 0x8b1   : > { %v9546_v35 = vsel %vm15960_vm2, 0, %v9518_v7  ;;  %v9576_v44 = vrot.slane %v9574_v5, 1  ;;  %v9579_v49 = vshrl.u32 %v19668_v3, 16  ;;  %v9588_v53 = vshll.u32 %v19717_v16, 16 }
 0x8b2   : > { %v9554_v63 = vsel %vm18661_vm8, %v9546_v35, 0  ;;  %10177 = vmatprep.mubr.bf16.mxu0 %v12547_v21  ;;  %v12550_v2 = vcombine.low %v19728_v4, %v19740_v12  ;;  %10246 = vmatmul.mubr.bf16.gmra.mrb[252].mxu1 %v19686_v56  ;;  %v9583_v41 = vrot.slane %v9581_v59, 1  ;;  %v9586_v27 = vshrl.u32 %v19717_v16, 16  ;;  %v15526_v35 = vld [vmem:[%s20448_s11 + $0x118] sm:$0xff]   ;;  %v15528_v59 = vld [vmem:[%s20448_s11 + $0x160] sm:$0xff]  }
 0x8b3   : > { %v9618_v26 = vrot.slane %v9554_v63, 1  ;;  %v19769_v14 = vcombine.low %v9554_v63, %v19706_v45  ;;  %10178 = vmatmul.mubr.bf16.vlgmr.msra.gmra.mrb[248].mxu0 %v12546_v38  ;;  %v19771_v18 = vor.u32 %v9576_v44, %v9572_v20  ;;  %v12561_v36 = vcombine.low %v19717_v16, %v9554_v63  ;;  %14637 = vmatpush3.bf16.msra.mxu1 %v15519_v55  ;;  %v15523_v38 = vld [vmem:[%s20448_s11 + $0x198] sm:$0xff]   ;;  %v15529_v20 = vld [vmem:[%s20448_s11 + $0x1e8] sm:$0xff]   ;;  %v15546_v4 = vld [vmem:[%s20448_s11 + $0x220] sm:$0xff]  }
 0x8b4   : > { %14593 = vmatpush3.bf16.msra.mxu0 %v15514_v40  ;;  %v9590_v60 = vrot.slane %v9588_v53, 1  ;;  %v12567_v25 = vcombine.low %v19706_v45, %v19751_v31  ;;  %v9593_v54 = vshrl.u32 %v9554_v63, 16  ;;  %v9595_v8 = vshll.u32 %v9554_v63, 16  ;;  %14638 = vmatprep.subr.bf16.mxu1 %v15521_v0  ;;  %v15530_v63 = vld [vmem:[%s20448_s11 + $0x120] sm:$0xff]   ;;  %v15532_v0 = vld [vmem:[%s20448_s11 + $0x168] sm:$0xff]   ;;  %v15535_v53 = vld [vmem:[%s20448_s11 + $0x1b0] sm:$0xff]  }
 0x8b5   : > { %v19786_v51 = vcombine.low %v9618_v26, %v9619_v43  ;;  %v19790_v50 = vcombine.low %v19740_v12, %v19771_v18  ;;  %14594 = vmatprep.subr.bf16.mxu0 %v15516_v32  ;;  %10252 = vmatprep.mubr.bf16.mxu1 %v12561_v36  ;;  %v19798_v42 = vor.u32 %v9583_v41, %v9579_v49  ;;  %v9602_v48 = vshll.u32 %v19706_v45, 16  ;;  %v15533_v49 = vld [vmem:[%s20448_s11 + $0x1f0] sm:$0xff]   ;;  %v15534_v36 = vld [vmem:[%s20448_s11 + $0x128] sm:$0xff]   ;;  %v15539_v41 = vld [vmem:[%s20448_s11 + $0x1b8] sm:$0xff]  }
 0x8b6   : > { %v19800_v16 = vor.u32 %v9590_v60, %v9586_v27  ;;  %v19807_v46 = vcombine.low %v9613_v39, %v9614_v22  ;;  %v9597_v61 = vrot.slane %v9595_v8, 1  ;;  %v9600_v15 = vshrl.u32 %v19706_v45, 16  ;;  %v15522_v39 = vld [vmem:[%s20448_s11 + $0x110] sm:$0xff]   ;;  %v15531_v45 = vld [vmem:[%s20448_s11 + $0x1a8] sm:$0xff]   ;;  %v15540_v60 = vld [vmem:[%s20448_s11 + $0x178] sm:$0xff]  }
 0x8b7   : > { %10184 = vmatprep.mubr.bf16.mxu0 %v19790_v50  ;;  %v19815_v1 = vcombine.low %v9615_v37, %v9616_v58  ;;  %v19817_v62 = vcombine.low %v9617_v11, %v9618_v26  ;;  %v12556_v29 = vcombine.low %v19771_v18, %v19798_v42  ;;  %14639 = vmatpush3.bf16.msra.mxu1 %v15523_v38  ;;  %v9604_v22 = vrot.slane %v9602_v48, 1  ;;  %v15527_v11 = vld [vmem:[%s20448_s11 + $0x1a0] sm:$0xff]   ;;  %v15537_v26 = vld [vmem:[%s20448_s11 + $0x1f8] sm:$0xff]   ;;  %v15538_v27 = vld [vmem:[%s20448_s11 + $0x130] sm:$0xff]  }
 0x8b8   : > { %14595 = vmatpush3.bf16.msra.mxu0 %v15518_v13  ;;  %v12559_v28 = vcombine.low %v19798_v42, %v19800_v16  ;;  %v9623_v3 = vshll.u32 %v19751_v31, 16  ;;  %14640 = vmatprep.subr.bf16.mxu1 %v15525_v9  ;;  %v19830_v37 = vor.u32 %v9597_v61, %v9593_v54  ;;  %v9628_v58 = vrot.slane %v19751_v31, 1  ;;  %v15536_v13 = vld [vmem:[%s20448_s11 + $0x170] sm:$0xff]   ;;  %v15541_v38 = vld [vmem:[%s20448_s11 + $0x138] sm:$0xff]   ;;  %v15547_v12 = vld [vmem:[%s20448_s11 + $0x228] sm:$0xff]  }
 0x8b9   : > { %14596 = vmatprep.subr.bf16.mxu0 %v15520_v24  ;;  %v19836_v7 = vor.u32 %v9604_v22, %v9600_v15  ;;  %v9621_v5 = vshrl.u32 %v19751_v31, 16  ;;  %v15545_v24 = vld [vmem:[%s20448_s11 + $0x218] sm:$0xff]   ;;  %v15550_v18 = vld [vmem:[%s20450_s13 + $0xc0] sm:$0xff]   ;;  %v15558_v54 = vld [vmem:[%s20450_s13 + $0x8] sm:$0xff]  }
 0x8ba   : > { %v9625_v21 = vrot.slane %v9623_v3, 1  ;;  %10253 = vmatmul.mubr.bf16.gmra.mrb[0].mxu1 %v19736_v52  ;;  %v12562_v40 = vcombine.low %v19800_v16, %v19830_v37  ;;  %v19850_v55 = vcombine.low %v9619_v43, %v9628_v58  ;;  %v15551_v9 = vld [vmem:[%s20450_s13 + $0x80] sm:$0xff]   ;;  %v15557_v8 = vld [vmem:[%s20450_s13 + $0xd0] sm:$0xff]   ;;  %v15564_v61 = vld [vmem:[%s20450_s13 + $0x58] sm:$0xff]  }
 0x8bb   : > { %10185 = vmatmul.mubr.bf16.gmra.mrb[252].mxu0 %v19680_v23  ;;  %v12565_v44 = vcombine.low %v19830_v37, %v19836_v7  ;;  %10259 = vmatprep.mubr.bf16.mxu1 %v12567_v25  ;;  %v15542_v25 = vld [vmem:[%s20448_s11 + $0x200] sm:$0xff]   ;;  %v15560_v42 = vld [vmem:[%s20450_s13 + $0x50] sm:$0xff]   ;;  %v15563_v15 = vld [vmem:[%s20450_s13 + $0x98] sm:$0xff]  }
 0x8bc   : > { %10191 = vmatprep.mubr.bf16.mxu0 %v12559_v28  ;;  %14597 = vmatpush3.bf16.msra.mxu0 %v15522_v39  ;;  %v19857_v32 = vor.u32 %v9625_v21, %v9621_v5  ;;  %v15559_v16 = vld [vmem:[%s20450_s13 + $0x90] sm:$0xff]   ;;  %v15570_v39 = vld [vmem:[%s20450_s13 + $0x20] sm:$0xff]   ;;  %v15569_v22 = vld [vmem:[%s20450_s13 + $0xe8] sm:$0xff]  }
 0x8bd   : > { %14598 = vmatprep.subr.bf16.mxu0 %v15524_v6  ;;  %14641 = vmatpush3.bf16.msra.mxu1 %v15527_v11  ;;  %v15562_v48 = vld [vmem:[%s20450_s13 + $0x10] sm:$0xff]   ;;  %v15572_v3 = vld [vmem:[%s20450_s13 + $0x68] sm:$0xff]  }
 0x8be   : > { %v12568_v43 = vcombine.low %v19836_v7, %v19857_v32  ;;  %14642 = vmatprep.subr.bf16.mxu1 %v15529_v20  ;;  %v15571_v7 = vld [vmem:[%s20450_s13 + $0xa8] sm:$0xff]   ;;  %v15573_v20 = vld [vmem:[%s20450_s13 + $0xf0] sm:$0xff]  }
 0x8bf   : > { %v15574_v5 = vld [vmem:[%s20450_s13 + $0x28] sm:$0xff]  }
 0x8c0   : > { %14599 = vmatpush3.bf16.msra.mxu0 %v15526_v35  ;;  %v15578_v35 = vld [vmem:[%s20450_s13 + $0x30] sm:$0xff]  }
 0x8c1   : > { %14600 = vmatprep.subr.bf16.mxu0 %v15528_v59  ;;  %14643 = vmatpush3.bf16.msra.mxu1 %v15531_v45 }
 0x8c2   : > { %10260 = vmatmul.mubr.bf16.gmra.mrb[4].mxu1 %v19786_v51  ;;  %14644 = vmatprep.subr.bf16.mxu1 %v15533_v49 }
 0x8c3   : > { %10192 = vmatmul.mubr.bf16.gmra.mrb[0].mxu0 %v19726_v10  ;;  %10360 = vmatprep.mubr.bf16.mxu1 %v19790_v50  ;;  %v15543_v50 = vld [vmem:[%s20448_s11 + $0x208] sm:$0xff]  }
 0x8c4   : > { %10198 = vmatprep.mubr.bf16.mxu0 %v12565_v44  ;;  %14601 = vmatpush3.bf16.msra.mxu0 %v15530_v63 }
 0x8c5   : > { %14602 = vmatprep.subr.bf16.mxu0 %v15532_v0  ;;  %14645 = vmatpush3.bf16.msra.mxu1 %v15535_v53 }
 0x8c6   : > { %14646 = vmatprep.subr.bf16.mxu1 %v15537_v26 }
 0x8c8   : > { %14603 = vmatpush3.bf16.msra.mxu0 %v15534_v36 }
 0x8c9   : > { %14604 = vmatprep.subr.bf16.mxu0 %v15536_v13  ;;  %14647 = vmatpush3.bf16.msra.mxu1 %v15539_v41  ;;  %v15579_v13 = vld [vmem:[%s20450_s13 + $0xb8] sm:$0xff]  }
 0x8ca   : > { %v15582_v41 = vld [vmem:[%s20450_s13 + $0x38] sm:$0xff]  }
 0x8cb   : > { %10199 = vmatmul.mubr.bf16.gmra.mrb[4].mxu0 %v19769_v14 }
 0x8cc   : > { %14605 = vmatpush3.bf16.msra.mxu0 %v15538_v27  ;;  %10299 = vmatprep.mubr.bf16.mxu0 %v19807_v46  ;;  %v15561_v46 = vld [vmem:[%s20450_s13 + $0xd8] sm:$0xff]  }
 0x8cd   : > { %14606 = vmatprep.subr.bf16.mxu0 %v15540_v60  ;;  %10361 = vmatmul.mubr.bf16.vlgmr.msra.gmra.mrb[8].mxu1 %v19680_v23  ;;  %v15544_v23 = vld [vmem:[%s20448_s11 + $0x210] sm:$0xff]  }
 0x8ce   : > { %10367 = vmatprep.mubr.bf16.mxu1 %v12559_v28  ;;  %v15567_v28 = vld [vmem:[%s20450_s13 + $0xa0] sm:$0xff]  }
 0x8d0   : > { %14607 = vmatpush3.bf16.msra.mxu0 %v15541_v38  ;;  %v15581_v38 = vld [vmem:[%s20450_s13 + $0x1c0] sm:$0xff]  }
 0x8d1   : > { %14991 = vmatprep.subr.bf16.mxu0 %v15542_v25 }
 0x8d3   : > { %10300 = vmatmul.mubr.bf16.vlgmr.msra.gmra.mrb[8].mxu0 %v12550_v2  ;;  %v12570_v2 = vcombine.low %v19751_v31, %v18672_v30  ;;  %v12572_v30 = vcombine.low %v9628_v58, %v19042_v47  ;;  %v15554_v47 = vld [vmem:[%s20450_s13] sm:$0xff]   ;;  %v15556_v31 = vld [vmem:[%s20450_s13 + $0x48] sm:$0xff]  }
 0x8d4   : > { %10306 = vmatprep.mubr.bf16.mxu0 %v19815_v1  ;;  %14992 = vmatpush3.bf16.msra.mxu0 %v15542_v25  ;;  %v15566_v1 = vld [vmem:[%s20450_s13 + $0x18] sm:$0xff]   ;;  %v15584_v25 = vld [vmem:[%s20450_s13 + $0x140] sm:$0xff]  }
 0x8d5   : > { %10368 = vmatmul.mubr.bf16.gmra.mrb[12].mxu1 %v19726_v10  ;;  %14993 = vmatprep.subr.bf16.mxu0 %v15543_v50  ;;  %v12571_v10 = vcombine.low %v19857_v32, %v18703_v34  ;;  %v15548_v34 = vld [vmem:[%s20448_s11 + $0x230] sm:$0xff]   ;;  %v15580_v32 = vld [vmem:[%s20450_s13 + $0x78] sm:$0xff]  }
 0x8d6   : > { %10374 = vmatprep.mubr.bf16.mxu1 %v12565_v44  ;;  %v15577_v44 = vld [vmem:[%s20450_s13 + $0xf8] sm:$0xff]  }
 0x8d8   : > { %14994 = vmatpush3.bf16.msra.mxu0 %v15543_v50 }
 0x8d9   : > { %14995 = vmatprep.subr.bf16.mxu0 %v15544_v23 }
 0x8db   : > { %10307 = vmatmul.mubr.bf16.gmra.mrb[12].mxu0 %v12556_v29  ;;  %v15568_v29 = vld [vmem:[%s20450_s13 + $0x60] sm:$0xff]  }
 0x8dc   : > { %10313 = vmatprep.mubr.bf16.mxu0 %v19817_v62  ;;  %14996 = vmatpush3.bf16.msra.mxu0 %v15544_v23  ;;  %v15565_v62 = vld [vmem:[%s20450_s13 + $0xe0] sm:$0xff]  }
 0x8dd   : > { %10375 = vmatmul.mubr.bf16.gmra.mrb[16].mxu1 %v19769_v14  ;;  %14997 = vmatprep.subr.bf16.mxu0 %v15545_v24  ;;  %v15549_v14 = vld [vmem:[%s20448_s11 + $0x238] sm:$0xff]  }
 0x8de   : > { %10381 = vmatprep.mubr.bf16.mxu1 %v12571_v10 }
 0x8e0   : > { %14998 = vmatpush3.bf16.msra.mxu0 %v15545_v24 }
 0x8e1   : > { %14999 = vmatprep.subr.bf16.mxu0 %v15546_v4 }
 0x8e3   : > { %10314 = vmatmul.mubr.bf16.gmra.mrb[16].mxu0 %v12562_v40  ;;  %v15576_v40 = vld [vmem:[%s20450_s13 + $0x70] sm:$0xff]  }
 0x8e4   : > { %10320 = vmatprep.mubr.bf16.mxu0 %v19850_v55  ;;  %15000 = vmatpush3.bf16.msra.mxu0 %v15546_v4  ;;  %v15575_v55 = vld [vmem:[%s20450_s13 + $0xb0] sm:$0xff]  }
 0x8e5   : > { %10382 = vmatmul.mubr.bf16.gmra.mrb[20].mxu1 %v12570_v2  ;;  %15001 = vmatprep.subr.bf16.mxu0 %v15547_v12 }
 0x8e8   : > { %15002 = vmatpush3.bf16.msra.mxu0 %v15547_v12 }
 0x8e9   : > { %15003 = vmatprep.subr.bf16.mxu0 %v15548_v34 }
 0x8eb   : > { %10321 = vmatmul.mubr.bf16.gmra.mrb[20].mxu0 %v12568_v43  ;;  %v12545_v43 = vld [vmem:[%s20449_s12] ss:$0 sm:$0xff] }
 0x8ec   : > { %15004 = vmatpush3.bf16.msra.mxu0 %v15548_v34  ;;  %15007 = vmatprep.mubr.bf16.mxu0 %v19686_v56  ;;  %v15552_v56 = vld [vmem:[%s20450_s13 + $0x40] sm:$0xff]  }
 0x8ed   : > { %15005 = vmatprep.subr.bf16.mxu0 %v15549_v14  ;;  %14684 = vmatprep.subr.bf16.mxu1 %v15552_v56 }
 0x8ee   : > { %14685 = vmatpush3.bf16.msra.mxu1 %v15554_v47 }
 0x8ef   : > { %14686 = vmatprep.subr.bf16.mxu1 %v15556_v31 }
 0x8f0   : > { %15006 = vmatpush3.bf16.msra.mxu0 %v15549_v14 }
 0x8f1   : > { %14706 = vmatprep.subr.bf16.mxu0 %v15550_v18 }
 0x8f2   : > { %14687 = vmatpush3.bf16.msra.mxu1 %v15558_v54 }
 0x8f3   : > { %15008 = vmatmul.mubr.bf16.vlgmr.msra.gmra.mrb[24].mxu0 %v19736_v52  ;;  %v15553_v52 = vld [vmem:[%s20450_s13 + $0xc8] sm:$0xff]   ;;  %14688 = vmatprep.subr.bf16.mxu1 %v15560_v42 }
 0x8f4   : > { %15011 = vmatprep.mubr.bf16.mxu0 %v19786_v51  ;;  %14707 = vmatpush3.bf16.msra.mxu0 %v15551_v9  ;;  %v15555_v51 = vld [vmem:[%s20450_s13 + $0x88] sm:$0xff]  }
 0x8f5   : > { %14708 = vmatprep.subr.bf16.mxu0 %v15553_v52 }
 0x8f6   : > { %14689 = vmatpush3.bf16.msra.mxu1 %v15562_v48 }
 0x8f7   : > { %14690 = vmatprep.subr.bf16.mxu1 %v15564_v61 }
 0x8f8   : > { %14709 = vmatpush3.bf16.msra.mxu0 %v15555_v51 }
 0x8f9   : > { %14710 = vmatprep.subr.bf16.mxu0 %v15557_v8 }
 0x8fa   : > { %14691 = vmatpush3.bf16.msra.mxu1 %v15566_v1 }
 0x8fb   : > { %15012 = vmatmul.mubr.bf16.gmra.mrb[28].mxu0 %v12572_v30  ;;  %14692 = vmatprep.subr.bf16.mxu1 %v15568_v29 }
 0x8fc   : > { %14711 = vmatpush3.bf16.msra.mxu0 %v15559_v16 }
 0x8fd   : > { %14712 = vmatprep.subr.bf16.mxu0 %v15561_v46 }
 0x8fe   : > { %14693 = vmatpush3.bf16.msra.mxu1 %v15570_v39 }
 0x8ff   : > { %14694 = vmatprep.subr.bf16.mxu1 %v15572_v3 }
 0x900   : > { %14713 = vmatpush3.bf16.msra.mxu0 %v15563_v15 }
 0x901   : > { %14714 = vmatprep.subr.bf16.mxu0 %v15565_v62 }
 0x902   : > { %14695 = vmatpush3.bf16.msra.mxu1 %v15574_v5 }
 0x903   : > { %14696 = vmatprep.subr.bf16.mxu1 %v15576_v40 }
 0x904   : > { %14715 = vmatpush3.bf16.msra.mxu0 %v15567_v28 }
 0x905   : > { %14716 = vmatprep.subr.bf16.mxu0 %v15569_v22 }
 0x906   : > { %14697 = vmatpush3.bf16.msra.mxu1 %v15578_v35 }
 0x907   : > { %14698 = vmatprep.subr.bf16.mxu1 %v15580_v32 }
 0x908   : > { %14717 = vmatpush3.bf16.msra.mxu0 %v15571_v7 }
 0x909   : > { %14718 = vmatprep.subr.bf16.mxu0 %v15573_v20 }
 0x90a   : > { %14699 = vmatpush3.bf16.msra.mxu1 %v15582_v41 }
 0x90b   : > { %14728 = vmatprep.subr.bf16.mxu1 %v15584_v25 }
 0x90c   : > { %14719 = vmatpush3.bf16.msra.mxu0 %v15575_v55 }
 0x90d   : > { %14720 = vmatprep.subr.bf16.mxu0 %v15577_v44 }
 0x910   : > { %14721 = vmatpush3.bf16.msra.mxu0 %v15579_v13 }
 0x911   : > { %14750 = vmatprep.subr.bf16.mxu0 %v15581_v38 }
 0x97d   : > { %v14568_v6 = vpop.f32.mrb[248].mxu1 }
 0x97e   : > { %v14569_v37 = vpop.f32.mrb[249].mxu1 }
 0x97f   : > { %v14570_v58 = vadd.f32 %v14569_v37, %v14568_v6  ;;  %v14571_v11 = vpop.f32.mrb[250].mxu1 }
 0x980   : > { %v14572_v21 = vpop.f32.mrb[251].mxu1 }
 0x985   : > { %v14574_v45 = vpop.f32.mrb[252].mxu1 }
 0x986   : > { %v14528_v59 = vpop.f32.mrb[248].mxu0  ;;  %v14575_v0 = vpop.f32.mrb[253].mxu1 }
 0x987   : > { %v14529_v63 = vpop.f32.mrb[249].mxu0  ;;  %v14576_v26 = vadd.f32 %v14575_v0, %v14574_v45  ;;  %v14577_v36 = vpop.f32.mrb[254].mxu1 }
 0x988   : > { %v14530_v49 = vadd.f32 %v14529_v63, %v14528_v59  ;;  %v14531_v53 = vpop.f32.mrb[250].mxu0  ;;  %v14578_v60 = vpop.f32.mrb[255].mxu1 }
 0x989   : > { %v14532_v27 = vpop.f32.mrb[251].mxu0 }
 0x98a   : > { %v10180_v50 = vadd.f32 %v14530_v49, %v12545_v43 }
 0x98c   : > { %v10241_v23 = vadd.f32 %v14570_v58, %v10180_v50 }
 0x98d   : > { %v14580_v10 = vpop.f32.mrb[0].mxu1 }
 0x98e   : > { %v14534_v24 = vpop.f32.mrb[252].mxu0  ;;  %v14581_v12 = vpop.f32.mrb[1].mxu1 }
 0x98f   : > { %v14535_v4 = vpop.f32.mrb[253].mxu0  ;;  %v14582_v14 = vadd.f32 %v14581_v12, %v14580_v10  ;;  %v14583_v30 = vpop.f32.mrb[2].mxu1 }
 0x990   : > { %v14536_v2 = vadd.f32 %v14535_v4, %v14534_v24  ;;  %v14537_v34 = vpop.f32.mrb[254].mxu0  ;;  %v14584_v9 = vpop.f32.mrb[3].mxu1 }
 0x991   : > { %v14538_v18 = vpop.f32.mrb[255].mxu0 }
 0x992   : > { %v10187_v56 = vadd.f32 %v14536_v2, %v12545_v43 }
 0x994   : > { %v10248_v52 = vadd.f32 %v14576_v26, %v10187_v56 }
 0x995   : > { %v14586_v31 = vpop.f32.mrb[4].mxu1 }
 0x996   : > { %v14540_v47 = vpop.f32.mrb[0].mxu0  ;;  %v14587_v54 = vpop.f32.mrb[5].mxu1 }
 0x997   : > { %v14541_v51 = vpop.f32.mrb[1].mxu0  ;;  %v14588_v16 = vadd.f32 %v14587_v54, %v14586_v31  ;;  %v14589_v48 = vpop.f32.mrb[6].mxu1 }
 0x998   : > { %v14542_v8 = vadd.f32 %v14541_v51, %v14540_v47  ;;  %v14543_v42 = vpop.f32.mrb[2].mxu0  ;;  %v14590_v61 = vpop.f32.mrb[7].mxu1 }
 0x999   : > { %v14544_v46 = vpop.f32.mrb[3].mxu0 }
 0x99a   : > { %v10194_v15 = vadd.f32 %v14542_v8, %v12545_v43 }
 0x99c   : > { %v10255_v1 = vadd.f32 %v14582_v14, %v10194_v15 }
 0x99e   : > { %v14546_v62 = vpop.f32.mrb[4].mxu0 }
 0x99f   : > { %v14547_v29 = vpop.f32.mrb[5].mxu0 }
 0x9a0   : > { %v14548_v28 = vadd.f32 %v14547_v29, %v14546_v62  ;;  %v14549_v39 = vpop.f32.mrb[6].mxu0  ;;  %v14648_v22 = vpop.f32.mrb[8].mxu1 }
 0x9a1   : > { %v14550_v3 = vpop.f32.mrb[7].mxu0  ;;  %v14649_v6 = vpop.f32.mrb[9].mxu1 }
 0x9a2   : > { %v10201_v37 = vadd.f32 %v14548_v28, %v12545_v43  ;;  %v14650_v58 = vadd.f32 %v14649_v6, %v14648_v22  ;;  %v14651_v11 = vpop.f32.mrb[10].mxu1  ;;  %v20069_v22 = vsel %vm20062_vm3, %v20521_v17, 0 }
 0x9a3   : > { %v14652_v7 = vpop.f32.mrb[11].mxu1  ;;  %v10810_v17 = vshll.u32 %v20069_v22, 16 }
 0x9a4   : > { %v10262_v5 = vadd.f32 %v14588_v16, %v10201_v37 }
 0x9a6   : > { %v14608_v21 = vpop.f32.mrb[8].mxu0 }
 0x9a7   : > { %v14609_v20 = vpop.f32.mrb[9].mxu0 }
 0x9a8   : > { %v14610_v40 = vadd.f32 %v14609_v20, %v14608_v21  ;;  %v14611_v55 = vpop.f32.mrb[10].mxu0  ;;  %v14654_v35 = vpop.f32.mrb[12].mxu1  ;;  %v10839_v21 = vrot.slane %v20069_v22, 1 }
 0x9a9   : > { %v14612_v44 = vpop.f32.mrb[11].mxu0  ;;  %v14655_v32 = vpop.f32.mrb[13].mxu1 }
 0x9aa   : > { %v10302_v59 = vadd.f32 %v14610_v40, %v10241_v23  ;;  %v14656_v45 = vadd.f32 %v14655_v32, %v14654_v35  ;;  %v14657_v63 = vpop.f32.mrb[14].mxu1 }
 0x9ab   : > { %v14658_v0 = vpop.f32.mrb[15].mxu1 }
 0x9ac   : > { %v10363_v49 = vadd.f32 %v14650_v58, %v10302_v59 }
 0x9ae   : > { %v14614_v53 = vpop.f32.mrb[12].mxu0 }
 0x9af   : > { %v14615_v26 = vpop.f32.mrb[13].mxu0 }
 0x9b0   : > { %v14616_v36 = vadd.f32 %v14615_v26, %v14614_v53  ;;  %v14617_v43 = vpop.f32.mrb[14].mxu0  ;;  %v14660_v13 = vpop.f32.mrb[16].mxu1 }
 0x9b1   : > { %v14618_v41 = vpop.f32.mrb[15].mxu0  ;;  %v14661_v27 = vpop.f32.mrb[17].mxu1 }
 0x9b2   : > { %v10309_v60 = vadd.f32 %v14616_v36, %v10248_v52  ;;  %v14662_v38 = vadd.f32 %v14661_v27, %v14660_v13  ;;  %v14663_v25 = vpop.f32.mrb[18].mxu1 }
 0x9b3   : > { %v14664_v50 = vpop.f32.mrb[19].mxu1 }
 0x9b4   : > { %v10370_v24 = vadd.f32 %v14656_v45, %v10309_v60 }
 0x9b6   : > { %v14620_v10 = vpop.f32.mrb[16].mxu0 }
 0x9b7   : > { %v14621_v4 = vpop.f32.mrb[17].mxu0 }
 0x9b8   : > { %v14622_v12 = vadd.f32 %v14621_v4, %v14620_v10  ;;  %v14623_v23 = vpop.f32.mrb[18].mxu0  ;;  %v14666_v2 = vpop.f32.mrb[20].mxu1 }
 0x9b9   : > { %v14624_v34 = vpop.f32.mrb[19].mxu0  ;;  %v14667_v14 = vpop.f32.mrb[21].mxu1 }
 0x9ba   : > { %v10316_v30 = vadd.f32 %v14622_v12, %v10255_v1  ;;  %v14668_v18 = vadd.f32 %v14667_v14, %v14666_v2  ;;  %v14669_v9 = vpop.f32.mrb[22].mxu1 }
 0x9bb   : > { %v14670_v56 = vpop.f32.mrb[23].mxu1 }
 0x9bc   : > { %v10377_v47 = vadd.f32 %v14662_v38, %v10316_v30 }
 0x9be   : > { %v14626_v31 = vpop.f32.mrb[20].mxu0 }
 0x9bf   : > { %v14627_v51 = vpop.f32.mrb[21].mxu0 }
 0x9c0   : > { %v14628_v54 = vadd.f32 %v14627_v51, %v14626_v31  ;;  %v14629_v52 = vpop.f32.mrb[22].mxu0 }
 0x9c1   : > { %v14630_v8 = vpop.f32.mrb[23].mxu0 }
 0x9c2   : > { %v10323_v42 = vadd.f32 %v14628_v54, %v10262_v5 }
 0x9c4   : > { %v10384_v16 = vadd.f32 %v14668_v18, %v10323_v42 }
 0x9c6   : > { %v15009_v48 = vpop.f32.mrb[24].mxu0 }
 0x9c7   : > { %v10431_v46 = vadd.f32 %v15009_v48, %v10370_v24  ;;  %v10423_v61 = vpop.f32.mrb[25].mxu0 }
 0x9c8   : > { %v10424_v1 = vadd.f32 %v10423_v61, %v10363_v49  ;;  %v15010_v62 = vpop.f32.mrb[26].mxu0 }
 0x9c9   : > { %v10451_v29 = vmax.f32 %v10431_v46, 0.0  ;;  %v10426_v28 = vpop.f32.mrb[27].mxu0 }
 0x9ca   : > { %v10450_v39 = vmax.f32 %v10424_v1, 0.0 }
 0x9cb   : > { %v10475_v3 = vcombine.high %v10451_v29, %v10451_v29  ;;  %v10482_v6 = vrot.slane %v10451_v29, %v18667_v57 }
 0x9cc   : > { %v10458_v37 = vcombine.high %v10450_v39, %v10450_v39  ;;  %v10465_v58 = vrot.slane %v10450_v39, %v18667_v57 }
 0x9cd   : > { %v10489_v11 = vrot.slane %v10475_v3, %v18667_v57  ;;  %v10490_v7 = vcombine.high %v10482_v6, %v10482_v6  ;;  %v10546_v5 = vpack.c.bf16 %v10482_v6, %v10482_v6 }
 0x9ce   : > { %v10472_v20 = vrot.slane %v10458_v37, %v18667_v57  ;;  %v10473_v40 = vcombine.high %v10465_v58, %v10465_v58  ;;  %v10542_v55 = vpack.c.bf16 %v10465_v58, %v10465_v58  ;;  %v15013_v35 = vpop.f32.mrb[28].mxu0 }
 0x9cf   : > { %v10491_v44 = vcombine.high %v10489_v11, %v10489_v11  ;;  %v10547_v32 = vpack.c.bf16 %v10490_v7, %v10490_v7  ;;  %v10548_v59 = vpack.c.bf16 %v10489_v11, %v10489_v11  ;;  %v10723_v45 = vunpack.c.l.b16 %v10546_v5  ;;  %v10437_v63 = vpop.f32.mrb[29].mxu0 }
 0x9d0   : > { %v10474_v0 = vcombine.high %v10472_v20, %v10472_v20  ;;  %v10543_v49 = vpack.c.bf16 %v10473_v40, %v10473_v40  ;;  %v10544_v53 = vpack.c.bf16 %v10472_v20, %v10472_v20  ;;  %v10719_v26 = vunpack.c.l.b16 %v10542_v55  ;;  %v15014_v36 = vpop.f32.mrb[30].mxu0 }
 0x9d1   : > { %v10549_v43 = vpack.c.bf16 %v10491_v44, %v10491_v44  ;;  %v10724_v13 = vunpack.c.l.b16 %v10547_v32  ;;  %v10725_v41 = vunpack.c.l.b16 %v10548_v59  ;;  %v10445_v27 = vadd.f32 %v15013_v35, %v10384_v16  ;;  %v10440_v60 = vpop.f32.mrb[31].mxu0 }
 0x9d2   : > { %v10545_v38 = vpack.c.bf16 %v10474_v0, %v10474_v0  ;;  %v10720_v25 = vunpack.c.l.b16 %v10543_v49  ;;  %v10721_v50 = vunpack.c.l.b16 %v10544_v53  ;;  %v10438_v24 = vadd.f32 %v10437_v63, %v10377_v47 }
 0x9d3   : > { %v10726_v10 = vunpack.c.l.b16 %v10549_v43  ;;  %v10741_v4 = vrot.slane %v10724_v13, 7  ;;  %v10743_v12 = vrot.slane %v10725_v41, 6  ;;  %v10453_v23 = vmax.f32 %v10445_v27, 0.0 }
 0x9d4   : > { %v10722_v2 = vunpack.c.l.b16 %v10545_v38  ;;  %v10735_v34 = vrot.slane %v10720_v25, 7  ;;  %v10737_v14 = vrot.slane %v10721_v50, 6  ;;  %v10452_v30 = vmax.f32 %v10438_v24, 0.0 }
 0x9d5   : > { %v10742_v18 = vsel %vm7027_vm9, %v10741_v4, %v10723_v45  ;;  %v10745_v9 = vrot.slane %v10726_v10, 5  ;;  %v10509_v56 = vcombine.high %v10453_v23, %v10453_v23  ;;  %v10516_v31 = vrot.slane %v10453_v23, %v18667_v57 }
 0x9d6   : > { %v10744_v51 = vsel %vm7030_vm10, %v10743_v12, %v10742_v18  ;;  %v10736_v54 = vsel %vm7027_vm9, %v10735_v34, %v10719_v26  ;;  %v10739_v52 = vrot.slane %v10722_v2, 5  ;;  %v10492_v47 = vcombine.high %v10452_v30, %v10452_v30 }
 0x9d7   : > { %v10746_v8 = vsel %vm7033_vm11, %v10745_v9, %v10744_v51  ;;  %v10738_v42 = vsel %vm7030_vm10, %v10737_v14, %v10736_v54  ;;  %v10523_v16 = vrot.slane %v10509_v56, %v18667_v57  ;;  %v10524_v48 = vcombine.high %v10516_v31, %v10516_v31 }
 0x9d8   : > { %v10760_v46 = vpack.c.b16 %v10746_v8, %v10746_v8  ;;  %v10740_v61 = vsel %vm7033_vm11, %v10739_v52, %v10738_v42  ;;  %v10554_v1 = vpack.c.bf16 %v10516_v31, %v10516_v31  ;;  %v10499_v62 = vrot.slane %v10452_v30, %v18667_v57 }
 0x9d9   : > { %v10759_v29 = vpack.c.b16 %v10740_v61, %v10740_v61  ;;  %v10525_v28 = vcombine.high %v10523_v16, %v10523_v16  ;;  %v10555_v39 = vpack.c.bf16 %v10524_v48, %v10524_v48  ;;  %v10556_v3 = vpack.c.bf16 %v10523_v16, %v10523_v16 }
 0x9da   : > { %v10771_v6 = vshrl.u32 %v10760_v46, 16  ;;  %v10774_v37 = vshll.u32 %v10760_v46, 16  ;;  %v10731_v58 = vunpack.c.l.b16 %v10554_v1  ;;  %v10506_v11 = vrot.slane %v10492_v47, %v18667_v57 }
 0x9db   : > { %v10764_v7 = vshrl.u32 %v10759_v29, 16  ;;  %v10767_v5 = vshll.u32 %v10759_v29, 16  ;;  %v10557_v20 = vpack.c.bf16 %v10525_v28, %v10525_v28  ;;  %v10732_v40 = vunpack.c.l.b16 %v10555_v39 }
 0x9dc   : > { %v10773_v55 = vrot.slane %v10771_v6, 7  ;;  %v10733_v35 = vunpack.c.l.b16 %v10556_v3  ;;  %v10507_v44 = vcombine.high %v10499_v62, %v10499_v62  ;;  %v10508_v32 = vcombine.high %v10506_v11, %v10506_v11 }
 0x9dd   : > { %v10766_v59 = vrot.slane %v10764_v7, 7  ;;  %v10734_v45 = vunpack.c.l.b16 %v10557_v20  ;;  %v10753_v63 = vrot.slane %v10732_v40, 7  ;;  %v10550_v0 = vpack.c.bf16 %v10499_v62, %v10499_v62 }
 0x9de   : > { %v10776_v49 = vor.u32 %v10774_v37, %v10773_v55  ;;  %v10755_v53 = vrot.slane %v10733_v35, 6  ;;  %v10551_v26 = vpack.c.bf16 %v10507_v44, %v10507_v44  ;;  %v10552_v36 = vpack.c.bf16 %v10506_v11, %v10506_v11 }
 0x9df   : > { %v10769_v43 = vor.u32 %v10767_v5, %v10766_v59  ;;  %v10754_v13 = vsel %vm7027_vm9, %v10753_v63, %v10731_v58  ;;  %v10757_v41 = vrot.slane %v10734_v45, 5  ;;  %v10553_v27 = vpack.c.bf16 %v10508_v32, %v10508_v32 }
 0x9e0   : > { %v10756_v60 = vsel %vm7030_vm10, %v10755_v53, %v10754_v13  ;;  %v10727_v38 = vunpack.c.l.b16 %v10550_v0  ;;  %v10728_v25 = vunpack.c.l.b16 %v10551_v26  ;;  %v10729_v50 = vunpack.c.l.b16 %v10552_v36 }
 0x9e1   : > { %v10758_v24 = vsel %vm7033_vm11, %v10757_v41, %v10756_v60  ;;  %v10730_v10 = vunpack.c.l.b16 %v10553_v27  ;;  %v10795_v4 = vsel %vm15960_vm2, 0, %v10769_v43  ;;  %v10796_v12 = vsel %vm15960_vm2, 0, %v10776_v49 }
 0x9e2   : > { %v10762_v23 = vpack.c.b16 %v10758_v24, %v10758_v24  ;;  %v10747_v2 = vrot.slane %v10728_v25, 7  ;;  %v10749_v34 = vrot.slane %v10729_v50, 6  ;;  %v20096_v14 = vsel %vm20062_vm3, %v10795_v4, 0 }
 0x9e3   : > { %v10751_v30 = vrot.slane %v10730_v10, 5  ;;  %v10840_v18 = vrot.slane %v20096_v14, 1  ;;  %v10853_v9 = vcombine.low %v10839_v21, %v20096_v14  ;;  %v10808_v56 = vshrl.u32 %v20069_v22, 16 }
 0x9e4   : > { %v10785_v31 = vshrl.u32 %v10762_v23, 16  ;;  %v10748_v51 = vsel %vm7027_vm9, %v10747_v2, %v10727_v38  ;;  %v20106_v54 = vsel %vm20062_vm3, %v10796_v12, 0  ;;  %v10812_v52 = vrot.slane %v10810_v17, 1 }
 0x9e5   : > { %v10750_v47 = vsel %vm7030_vm10, %v10749_v34, %v10748_v51  ;;  %v10894_v8 = vcombine.low %v10840_v18, %v20106_v54  ;;  %v10788_v16 = vshll.u32 %v10762_v23, 16  ;;  %v10817_v46 = vshll.u32 %v20096_v14, 16 }
 0x9e6   : > { %v10787_v42 = vrot.slane %v10785_v31, 7  ;;  %v10752_v48 = vsel %vm7033_vm11, %v10751_v30, %v10750_v47  ;;  %v10867_v1 = vrot.slane %v10853_v9, %v18667_v57  ;;  %v10824_v29 = vshll.u32 %v20106_v54, 16 }
 0x9e7   : > { %v10761_v61 = vpack.c.b16 %v10752_v48, %v10752_v48  ;;  %v10908_v62 = vrot.slane %v10894_v8, %v18667_v57  ;;  %v10813_v39 = vor.u32 %v10812_v52, %v10808_v56  ;;  %v10815_v17 = vshrl.u32 %v20096_v14, 16 }
 0x9e8   : > { %v10790_v28 = vor.u32 %v10788_v16, %v10787_v42  ;;  %v10819_v3 = vrot.slane %v10817_v46, 1  ;;  %v10822_v58 = vshrl.u32 %v20106_v54, 16  ;;  %v10826_v11 = vrot.slane %v10824_v29, 1 }
 0x9e9   : > { %v10778_v6 = vshrl.u32 %v10761_v61, 16  ;;  %v12647_v37 = vcombine.low %v10867_v1, %v10908_v62  ;;  %v10841_v5 = vrot.slane %v20106_v54, 1  ;;  %v10781_v55 = vshll.u32 %v10761_v61, 16 }
 0x9ea   : > { %v10798_v7 = vsel %vm15960_vm2, 0, %v10790_v28  ;;  %v10820_v20 = vor.u32 %v10819_v3, %v10815_v17  ;;  %v10827_v44 = vor.u32 %v10826_v11, %v10822_v58  ;;  %v10852_v32 = vcombine.low %v20069_v22, %v10813_v39 }
 0x9eb   : > { %v10780_v40 = vrot.slane %v10778_v6, 7  ;;  %v10806_v35 = vsel %vm20062_vm3, %v10798_v7, 0  ;;  %v10991_v0 = vrot.slane %v10839_v21, %v18667_v57  ;;  %v10892_v4 = vrot.slane %v10841_v5, %v18667_v57 }
 0x9ec   : > { %v10846_v59 = vshll.u32 %v10806_v35, 16  ;;  %v10851_v45 = vrot.slane %v10806_v35, 1  ;;  %v10869_v49 = vcombine.low %v10820_v20, %v10840_v18  ;;  %v10910_v53 = vcombine.low %v10827_v44, %v10841_v5 }
 0x9ed   : > { %v10783_v63 = vor.u32 %v10781_v55, %v10780_v40  ;;  %v10844_v26 = vshrl.u32 %v10806_v35, 16  ;;  %v10860_v38 = vrot.slane %v10852_v32, %v18667_v57  ;;  %v10893_v22 = vcombine.low %v20096_v14, %v10820_v20 }
 0x9ee   : > { %v10848_v36 = vrot.slane %v10846_v59, 1  ;;  %v10966_v43 = vrot.slane %v10851_v45, %v18667_v57  ;;  %v10877_v41 = vrot.slane %v10869_v49, %v18667_v57  ;;  %v10918_v27 = vrot.slane %v10910_v53, %v18667_v57 }
 0x9ef   : > { %v10797_v13 = vsel %vm15960_vm2, 0, %v10783_v63  ;;  %v10870_v9 = vcombine.low %v20106_v54, %v10827_v44  ;;  %v10901_v14 = vrot.slane %v10893_v22, %v18667_v57  ;;  %v11015_v54 = vrot.slane %v12647_v37, %v18667_v57  ;;  %v15583_v37 = vld [vmem:[%s20450_s13 + $0x180] sm:$0xff]   ;;  %v15596_v22 = vld [vmem:[%s20450_s13 + $0x158] sm:$0xff]  }
 0x9f0   : > { %v10805_v60 = vsel %vm20062_vm3, %v10797_v13, 0  ;;  %v10849_v21 = vor.u32 %v10848_v36, %v10844_v26  ;;  %v11071_v10 = vcombine.low %v10966_v43, %v10991_v0  ;;  %v12650_v23 = vcombine.low %v10877_v41, %v10918_v27  ;;  %v15586_v63 = vld [vmem:[%s20450_s13 + $0x100] sm:$0xff]   ;;  %v15587_v0 = vld [vmem:[%s20450_s13 + $0x188] sm:$0xff]   ;;  %v15589_v36 = vld [vmem:[%s20450_s13 + $0x1d0] sm:$0xff]  }
 0x9f1   : > { %v10842_v25 = vrot.slane %v10805_v60, 1  ;;  %v10934_v50 = vcombine.low %v10841_v5, %v10805_v60  ;;  %v10831_v24 = vshll.u32 %v10805_v60, 16  ;;  %v10829_v30 = vshrl.u32 %v10805_v60, 16  ;;  %v15585_v5 = vld [vmem:[%s20450_s13 + $0x1c8] sm:$0xff]   ;;  %v15591_v13 = vld [vmem:[%s20450_s13 + $0x190] sm:$0xff]   ;;  %v15593_v27 = vld [vmem:[%s20450_s13 + $0x1d8] sm:$0xff]  }
 0x9f2   : > { %v10944_v33 = vcombine.low %v10806_v35, %v10849_v21  ;;  %v10976_v12 = vcombine.low %v10849_v21, %v10851_v45  ;;  %v11085_v47 = vrot.slane %v11071_v10, %v18667_v57  ;;  %v10884_v1 = vrot.slane %v10870_v9, %v18667_v57  ;;  %v15588_v26 = vld [vmem:[%s20450_s13 + $0x148] sm:$0xff]   ;;  %v15592_v41 = vld [vmem:[%s20450_s13 + $0x150] sm:$0xff]   ;;  %v15597_v21 = vld [vmem:[%s20450_s13 + $0x1e0] sm:$0xff]  }
 0x9f3   : > { %v10933_v2 = vrot.slane %v10842_v25, %v18667_v57  ;;  %v10967_v34 = vcombine.low %v10842_v25, %v10806_v35  ;;  %v10833_v15 = vrot.slane %v10831_v24, 1  ;;  %v10941_v18 = vrot.slane %v10934_v50, %v18667_v57  ;;  %v15590_v43 = vld [vmem:[%s20450_s13 + $0x108] sm:$0xff]   ;;  %v15599_v50 = vld [vmem:[%s20450_s13 + $0x1a0] sm:$0xff]   ;;  %v15611_v9 = vld [vmem:[%s20450_s13 + $0x1b8] sm:$0xff]  }
 0x9f4   : > { %v10958_v56 = vrot.slane %v10944_v33, %v18667_v57  ;;  %v10983_v42 = vrot.slane %v10976_v12, %v18667_v57  ;;  %v12646_v62 = vcombine.low %v10860_v38, %v10901_v14  ;;  %v20171_v35 = vrot.slane %v12650_v23, %v18667_v57  ;;  %v15600_v24 = vld [vmem:[%s20450_s13 + $0x160] sm:$0xff]   ;;  %v15601_v10 = vld [vmem:[%s20450_s13 + $0x1e8] sm:$0xff]   ;;  %v15605_v23 = vld [vmem:[%s20450_s13 + $0x1f0] sm:$0xff]  }
 0x9f5   : > { %v10974_v31 = vrot.slane %v10967_v34, %v18667_v57  ;;  %v11070_v51 = vcombine.low %v10892_v4, %v10933_v2  ;;  %v10834_v52 = vor.u32 %v10833_v15, %v10829_v30  ;;  %v15602_v4 = vld [vmem:[%s20450_s13 + $0x120] sm:$0xff]   ;;  %v15603_v33 = vld [vmem:[%s20450_s13 + $0x1a8] sm:$0xff]   ;;  %v15607_v34 = vld [vmem:[%s20450_s13 + $0x1b0] sm:$0xff]   ;;  %vm15710_vm2 = vmmov 0  }
 0x9f6   : > { %v12653_v8 = vcombine.low %v10958_v56, %v10860_v38  ;;  %v11008_v20 = vrot.slane %v12646_v62, %v18667_v57  ;;  %v15595_v38 = vld [vmem:[%s20450_s13 + $0x198] sm:$0xff]   ;;  %v15604_v12 = vld [vmem:[%s20450_s13 + $0x168] sm:$0xff]   ;;  %v15608_v30 = vld [vmem:[%s20450_s13 + $0x170] sm:$0xff]  }
 0x9f7   : > { %v12649_v16 = vcombine.low %v10941_v18, %v10974_v31  ;;  %v10911_v48 = vcombine.low %v10805_v60, %v10834_v52  ;;  %v10943_v46 = vcombine.low %v10834_v52, %v10842_v25  ;;  %v11078_v61 = vrot.slane %v11070_v51, %v18667_v57  ;;  %v15594_v60 = vld [vmem:[%s20450_s13 + $0x110] sm:$0xff]   ;;  %v15598_v25 = vld [vmem:[%s20450_s13 + $0x118] sm:$0xff]   ;;  %v15606_v2 = vld [vmem:[%s20450_s13 + $0x128] sm:$0xff]  }
 0x9f8   : > { %v20155_v3 = vrot.slane %v12653_v8, %v18667_v57  ;;  %v15609_v15 = vld [vmem:[%s20450_s13 + $0x1f8] sm:$0xff]   ;;  %v15610_v18 = vld [vmem:[%s20450_s13 + $0x130] sm:$0xff]   ;;  %v15709_v31 = vmov 0.0   ;;  %v15614_v51 = vld [vmem:[%s20450_s13 + $0x200] sm:$0xff]  }
 0x9f9   : > { %v11029_v29 = vrot.slane %v12649_v16, %v18667_v57  ;;  %v10925_v28 = vrot.slane %v10911_v48, %v18667_v57  ;;  %v10951_v39 = vrot.slane %v10943_v46, %v18667_v57  ;;  %v20152_v17 = vcombine.low %v11078_v61, %v11085_v47  ;;  %v15612_v14 = vld [vmem:[%s20450_s13 + $0x178] sm:$0xff]   ;;  %v15615_v52 = vld [vmem:[%s20450_s13 + $0x208] sm:$0xff]   ;;  %v15616_v47 = vld [vmem:[%s20450_s13 + $0x210] sm:$0xff]  }
 0x9fa   : > { %v15613_v56 = vld [vmem:[%s20450_s13 + $0x138] sm:$0xff]   ;;  %v15619_v16 = vld [vmem:[%s20450_s13 + $0x228] sm:$0xff]   ;;  %v15620_v48 = vld [vmem:[%s20450_s13 + $0x230] sm:$0xff]  }
 0x9fb   : > { %v11032_v6 = vcombine.low %v11015_v54, %v11029_v29  ;;  %v11033_v58 = vcombine.high %v11015_v54, %v11029_v29  ;;  %v12648_v11 = vcombine.low %v10884_v1, %v10925_v28  ;;  %v12652_v7 = vcombine.low %v10951_v39, %v10983_v42  ;;  %v15617_v8 = vld [vmem:[%s20450_s13 + $0x218] sm:$0xff]   ;;  %v15618_v42 = vld [vmem:[%s20450_s13 + $0x220] sm:$0xff]   ;;  %v15623_v54 = vld [vmem:[%s20452_s15 + $0x8] sm:$0xff]  }
 0x9fc   : > { %v15621_v46 = vld [vmem:[%s20450_s13 + $0x238] sm:$0xff]   ;;  %v15622_v61 = vld [vmem:[%s20452_s15] sm:$0xff]   ;;  %v15624_v1 = vld [vmem:[%s20452_s15 + $0x10] sm:$0xff]  }
 0x9fd   : > { %11601 = vmatprep.mubr.bf16.mxu0 %v11033_v58  ;;  %v20165_v40 = vrot.slane %v12648_v11, %v18667_v57  ;;  %v20168_v55 = vrot.slane %v12652_v7, %v18667_v57  ;;  %v15625_v62 = vld [vmem:[%s20452_s15 + $0x18] sm:$0xff]   ;;  %v15626_v29 = vld [vmem:[%s20452_s15 + $0x20] sm:$0xff]   ;;  %v15627_v28 = vld [vmem:[%s20452_s15 + $0x28] sm:$0xff]  }
 0x9fe   : > { %11602 = vmatmul.mubr.bf16.vlgmr.msra.gmra.mrb[32].mxu0 %v11032_v6  ;;  %v15628_v39 = vld [vmem:[%s20452_s15 + $0x30] sm:$0xff]   ;;  %v15629_v6 = vld [vmem:[%s20452_s15 + $0x38] sm:$0xff]  }
 0x9ff   : > { %14751 = vmatpush3.bf16.msra.mxu0 %v15583_v37  ;;  %v11030_v44 = vcombine.low %v11008_v20, %v20165_v40  ;;  %v11031_v32 = vcombine.high %v11008_v20, %v20165_v40  ;;  %v11068_v59 = vcombine.low %v20165_v40, %v20155_v3  ;;  %v11069_v45 = vcombine.high %v20165_v40, %v20155_v3  ;;  %v15631_v3 = vld [vmem:[%s20454_s17 + $0x8] sm:$0xff]   ;;  %v15632_v58 = vld [vmem:[%s20454_s17 + $0x10] sm:$0xff]   ;;  %v15633_v37 = vld [vmem:[%s20454_s17 + $0x18] sm:$0xff]  }
 0xa00   : > { %14752 = vmatprep.subr.bf16.mxu0 %v15585_v5  ;;  %v11066_v49 = vcombine.low %v20171_v35, %v20168_v55  ;;  %v11067_v53 = vcombine.high %v20171_v35, %v20168_v55 }
 0xa01   : > { %11560 = vmatprep.mubr.bf16.mxu1 %v11031_v32  ;;  %11683 = vmatprep.mubr.bf16.mxu0 %v11069_v45 }
 0xa02   : > { %11561 = vmatmul.mubr.bf16.vlgmr.msra.gmra.mrb[24].mxu1 %v11030_v44  ;;  %v12645_v44 = vld [vmem:[%s20451_s14] ss:$0 sm:$0xff] }
 0xa03   : > { %14729 = vmatpush3.bf16.msra.mxu1 %v15586_v63  ;;  %14753 = vmatpush3.bf16.msra.mxu0 %v15587_v0 }
 0xa04   : > { %11642 = vmatprep.mubr.bf16.mxu1 %v11067_v53  ;;  %14730 = vmatprep.subr.bf16.mxu1 %v15588_v26 }
 0xa05   : > { %14754 = vmatprep.subr.bf16.mxu0 %v15589_v36 }
 0xa07   : > { %14731 = vmatpush3.bf16.msra.mxu1 %v15590_v43  ;;  %14755 = vmatpush3.bf16.msra.mxu0 %v15591_v13 }
 0xa08   : > { %14732 = vmatprep.subr.bf16.mxu1 %v15592_v41  ;;  %14756 = vmatprep.subr.bf16.mxu0 %v15593_v27 }
 0xa0b   : > { %14733 = vmatpush3.bf16.msra.mxu1 %v15594_v60  ;;  %14757 = vmatpush3.bf16.msra.mxu0 %v15595_v38 }
 0xa0c   : > { %14734 = vmatprep.subr.bf16.mxu1 %v15596_v22  ;;  %14758 = vmatprep.subr.bf16.mxu0 %v15597_v21 }
 0xa0f   : > { %14735 = vmatpush3.bf16.msra.mxu1 %v15598_v25  ;;  %14759 = vmatpush3.bf16.msra.mxu0 %v15599_v50 }
 0xa10   : > { %14736 = vmatprep.subr.bf16.mxu1 %v15600_v24  ;;  %14760 = vmatprep.subr.bf16.mxu0 %v15601_v10 }
 0xa13   : > { %14737 = vmatpush3.bf16.msra.mxu1 %v15602_v4  ;;  %14761 = vmatpush3.bf16.msra.mxu0 %v15603_v33 }
 0xa14   : > { %14738 = vmatprep.subr.bf16.mxu1 %v15604_v12  ;;  %14762 = vmatprep.subr.bf16.mxu0 %v15605_v23 }
 0xa17   : > { %14739 = vmatpush3.bf16.msra.mxu1 %v15606_v2  ;;  %14763 = vmatpush3.bf16.msra.mxu0 %v15607_v34 }
 0xa18   : > { %14740 = vmatprep.subr.bf16.mxu1 %v15608_v30  ;;  %14764 = vmatprep.subr.bf16.mxu0 %v15609_v15 }
 0xa1b   : > { %14741 = vmatpush3.bf16.msra.mxu1 %v15610_v18  ;;  %14765 = vmatpush3.bf16.msra.mxu0 %v15611_v9 }
 0xa1c   : > { %14742 = vmatprep.subr.bf16.mxu1 %v15612_v14  ;;  %15035 = vmatprep.subr.bf16.mxu0 %v15709_v31 }
 0xa1e   : > { %11684 = vmatmul.mubr.bf16.vlgmr.msra.gmra.mrb[36].mxu0 %v11068_v59 }
 0xa1f   : > { %14743 = vmatpush3.bf16.msra.mxu1 %v15613_v56  ;;  %15051 = vmatprep.mubr.msk.bf16.mxu0 %vm15710_vm2, %v15709_v31 }
 0xa20   : > { %15015 = vmatprep.subr.bf16.mxu1 %v15709_v31  ;;  %15036 = vmatpush3.bf16.msra.mxu0 %v15622_v61  ;;  %v15635_v61 = vld [vmem:[%s20454_s17 + $0x28] sm:$0xff]  }
 0xa21   : > { %15037 = vmatprep.subr.bf16.mxu0 %v15709_v31 }
 0xa22   : > { %11643 = vmatmul.mubr.bf16.vlgmr.msra.gmra.mrb[28].mxu1 %v11066_v49 }
 0xa23   : > { %15016 = vmatpush3.bf16.msra.mxu1 %v15614_v51  ;;  %15031 = vmatprep.mubr.msk.bf16.mxu1 %vm15710_vm2, %v15709_v31 }
 0xa24   : > { %15017 = vmatprep.subr.bf16.mxu1 %v15709_v31  ;;  %15038 = vmatpush3.bf16.msra.mxu0 %v15623_v54  ;;  %v15636_v54 = vld [vmem:[%s20454_s17 + $0x30] sm:$0xff]  }
 0xa25   : > { %15039 = vmatprep.subr.bf16.mxu0 %v15709_v31 }
 0xa27   : > { %15018 = vmatpush3.bf16.msra.mxu1 %v15615_v52 }
 0xa28   : > { %15019 = vmatprep.subr.bf16.mxu1 %v15709_v31  ;;  %15040 = vmatpush3.bf16.msra.mxu0 %v15624_v1  ;;  %v15637_v1 = vld [vmem:[%s20454_s17 + $0x38] sm:$0xff]  }
 0xa29   : > { %15041 = vmatprep.subr.bf16.mxu0 %v15709_v31 }
 0xa2b   : > { %15020 = vmatpush3.bf16.msra.mxu1 %v15616_v47 }
 0xa2c   : > { %15021 = vmatprep.subr.bf16.mxu1 %v15709_v31  ;;  %15042 = vmatpush3.bf16.msra.mxu0 %v15625_v62  ;;  %v12726_v62 = vld [vmem:[%s20453_s16] ss:$0 sm:$0xff] }
 0xa2d   : > { %15043 = vmatprep.subr.bf16.mxu0 %v15709_v31 }
 0xa2f   : > { %15022 = vmatpush3.bf16.msra.mxu1 %v15617_v8 }
 0xa30   : > { %15023 = vmatprep.subr.bf16.mxu1 %v15709_v31  ;;  %15044 = vmatpush3.bf16.msra.mxu0 %v15626_v29 }
 0xa31   : > { %15045 = vmatprep.subr.bf16.mxu0 %v15709_v31 }
 0xa33   : > { %15024 = vmatpush3.bf16.msra.mxu1 %v15618_v42 }
 0xa34   : > { %15025 = vmatprep.subr.bf16.mxu1 %v15709_v31  ;;  %15046 = vmatpush3.bf16.msra.mxu0 %v15627_v28 }
 0xa35   : > { %15047 = vmatprep.subr.bf16.mxu0 %v15709_v31 }
 0xa37   : > { %15026 = vmatpush3.bf16.msra.mxu1 %v15619_v16 }
 0xa38   : > { %15027 = vmatprep.subr.bf16.mxu1 %v15709_v31  ;;  %15048 = vmatpush3.bf16.msra.mxu0 %v15628_v39 }
 0xa39   : > { %15049 = vmatprep.subr.bf16.mxu0 %v15709_v31 }
 0xa3b   : > { %15028 = vmatpush3.bf16.msra.mxu1 %v15620_v48 }
 0xa3c   : > { %15029 = vmatprep.subr.bf16.mxu1 %v15709_v31  ;;  %15050 = vmatpush3.bf16.msra.mxu0 %v15629_v6 }
 0xa3f   : > { %15030 = vmatpush3.bf16.msra.mxu1 %v15621_v46  ;;  %v15634_v46 = vld [vmem:[%s20454_s17 + $0x20] sm:$0xff]  }
 0xa40   : > { %15055 = vmatprep.subr.bf16.mxu1 %v15709_v31 }
 0xa42   : > { %15032 = vmatmul.mubr.bf16.vlgmr.msra.gmra.mrb[32].mxu1 %v20152_v17  ;;  %v15630_v17 = vld [vmem:[%s20454_s17] sm:$0xff]  }
 0xa43   : > { %15071 = vmatprep.mubr.msk.bf16.mxu1 %vm15710_vm2, %v15709_v31  ;;  %15056 = vmatpush3.bf16.msra.mxu1 %v15630_v17 }
 0xa44   : > { %15057 = vmatprep.subr.bf16.mxu1 %v15709_v31 }
 0xa47   : > { %15058 = vmatpush3.bf16.msra.mxu1 %v15631_v3 }
 0xa48   : > { %15059 = vmatprep.subr.bf16.mxu1 %v15709_v31 }
 0xa4b   : > { %15060 = vmatpush3.bf16.msra.mxu1 %v15632_v58 }
 0xa4c   : > { %15061 = vmatprep.subr.bf16.mxu1 %v15709_v31 }
 0xa4f   : > { %15062 = vmatpush3.bf16.msra.mxu1 %v15633_v37 }
 0xa50   : > { %15063 = vmatprep.subr.bf16.mxu1 %v15709_v31 }
 0xa53   : > { %15064 = vmatpush3.bf16.msra.mxu1 %v15634_v46 }
 0xa54   : > { %15065 = vmatprep.subr.bf16.mxu1 %v15709_v31 }
 0xa57   : > { %15066 = vmatpush3.bf16.msra.mxu1 %v15635_v61 }
 0xa58   : > { %15067 = vmatprep.subr.bf16.mxu1 %v15709_v31 }
 0xa5b   : > { %15068 = vmatpush3.bf16.msra.mxu1 %v15636_v54 }
 0xa5c   : > { %15069 = vmatprep.subr.bf16.mxu1 %v15709_v31 }
 0xa5f   : > { %15070 = vmatpush3.bf16.msra.mxu1 %v15637_v1 }
 0xad1   : > { %v14722_v11 = vpop.f32.mrb[32].mxu0 }
 0xad2   : > { %v14723_v7 = vpop.f32.mrb[33].mxu0 }
 0xad3   : > { %v14724_v5 = vadd.f32 %v14723_v7, %v14722_v11  ;;  %v14725_v20 = vpop.f32.mrb[34].mxu0 }
 0xad4   : > { %v14726_v40 = vpop.f32.mrb[35].mxu0 }
 0xad5   : > { %v14727_v55 = vadd.f32 %v14726_v40, %v14725_v20  ;;  %v14700_v35 = vpop.f32.mrb[24].mxu1 }
 0xad6   : > { %v14701_v32 = vpop.f32.mrb[25].mxu1 }
 0xad7   : > { %v14702_v59 = vadd.f32 %v14701_v32, %v14700_v35  ;;  %v14703_v45 = vpop.f32.mrb[26].mxu1  ;;  %v12737_v35 = vld [vmem:[%s20455_s18] ss:$0 sm:$0xff] }
 0xad8   : > { %v14704_v63 = vpop.f32.mrb[27].mxu1 }
 0xad9   : > { %v11563_v0 = vadd.f32 %v14702_v59, %v12645_v44  ;;  %v14705_v49 = vadd.f32 %v14704_v63, %v14703_v45 }
 0xadb   : > { %v11566_v53 = vadd.f32 %v14705_v49, %v12645_v44  ;;  %v11604_v26 = vadd.f32 %v14724_v5, %v11563_v0 }
 0xadd   : > { %v11607_v36 = vadd.f32 %v14727_v55, %v11566_v53 }
 0xaf1   : > { %v14766_v43 = vpop.f32.mrb[36].mxu0 }
 0xaf2   : > { %v14767_v13 = vpop.f32.mrb[37].mxu0 }
 0xaf3   : > { %v14768_v41 = vadd.f32 %v14767_v13, %v14766_v43  ;;  %v14769_v27 = vpop.f32.mrb[38].mxu0 }
 0xaf4   : > { %v14770_v60 = vpop.f32.mrb[39].mxu0 }
 0xaf5   : > { %v14771_v38 = vadd.f32 %v14770_v60, %v14769_v27  ;;  %v14744_v22 = vpop.f32.mrb[28].mxu1 }
 0xaf6   : > { %v14745_v21 = vpop.f32.mrb[29].mxu1 }
 0xaf7   : > { %v14746_v25 = vadd.f32 %v14745_v21, %v14744_v22  ;;  %v14747_v50 = vpop.f32.mrb[30].mxu1 }
 0xaf8   : > { %v14748_v24 = vpop.f32.mrb[31].mxu1 }
 0xaf9   : > { %v11645_v10 = vadd.f32 %v14746_v25, %v11604_v26  ;;  %v14749_v4 = vadd.f32 %v14748_v24, %v14747_v50 }
 0xafb   : > { %v11648_v33 = vadd.f32 %v14749_v4, %v11607_v36  ;;  %v11686_v12 = vadd.f32 %v14768_v41, %v11645_v10 }
 0xafd   : > { %v11689_v23 = vadd.f32 %v14771_v38, %v11648_v33 }
 0xb15   : > { %v11726_v2 = vpop.f32.mrb[32].mxu1 }
 0xb16   : > { %v11727_v34 = vadd.f32 %v11726_v2, %v11686_v12  ;;  %v15033_v30 = vpop.f32.mrb[33].mxu1 }
 0xb17   : > { %v11729_v15 = vpop.f32.mrb[34].mxu1 }
 0xb18   : > { %v11733_v18 = vmax.f32 %v11727_v34, 0.0  ;;  %v11730_v9 = vadd.f32 %v11729_v15, %v11689_v23  ;;  %v15034_v14 = vpop.f32.mrb[35].mxu1 }
 0xb1a   : > { %v11737_v56 = vcombine.high %v11733_v18, %v11733_v18  ;;  %v11734_v51 = vmax.f32 %v11730_v9, 0.0 }
 0xb1c   : > { %v12727_v52 = vpack.c.bf16 %v11737_v56, %v11733_v18  ;;  %v11738_v47 = vcombine.high %v11734_v51, %v11734_v51 }
 0xb1e   : > { %v12728_v8 = vpack.c.bf16 %v11738_v47, %v11734_v51  ;;  %v11780_v42 = vrot.slane %v12727_v52, %v18667_v57 }
 0xb20   : > { %v11787_v16 = vrot.slane %v12728_v8, %v18667_v57 }
 0xb22   : > { %v11788_v48 = vcombine.low %v11780_v42, %v11787_v16 }
 0xb24   : > { %15052 = vmatmul.mubr.bf16.vlgmr.msra.gmra.mrb[40].mxu0 %v11788_v48 }
 0xbf7   : > { %v11872_v29 = vpop.f32.mrb[40].mxu0 }
 0xbf8   : > { %v11873_v28 = vadd.f32 %v12726_v62, %v11872_v29  ;;  %v15053_v39 = vpop.f32.mrb[41].mxu0 }
 0xbf9   : > { %v11875_v17 = vpop.f32.mrb[42].mxu0 }
 0xbfa   : > { %v11879_v3 = vmax.f32 %v11873_v28, 0.0  ;;  %v11876_v6 = vadd.f32 %v12726_v62, %v11875_v17  ;;  %v15054_v58 = vpop.f32.mrb[43].mxu0 }
 0xbfc   : > { %v11883_v37 = vcombine.high %v11879_v3, %v11879_v3  ;;  %v11880_v11 = vmax.f32 %v11876_v6, 0.0 }
 0xbfe   : > { %v12738_v7 = vpack.c.bf16 %v11883_v37, %v11879_v3  ;;  %v11884_v5 = vcombine.high %v11880_v11, %v11880_v11 }
 0xc00   : > { %v12739_v20 = vpack.c.bf16 %v11884_v5, %v11880_v11  ;;  %v11926_v40 = vrot.slane %v12738_v7, %v18667_v57 }
 0xc02   : > { %v11933_v31 = vrot.slane %v12739_v20, %v18667_v57  ;;  %v12036_v57 = vand.u32 127, %v6357_v19 }
 0xc04   : > { %v11934_v55 = vcombine.low %v11926_v40, %v11933_v31  ;;  %vm12037_vm4 = vcmp.lt.s32.totalorder %v12036_v57, 10 }
 0xc06   : > { %15072 = vmatmul.mubr.bf16.vlgmr.msra.gmra.mrb[36].mxu1 %v11934_v55 }
 0xcd9   : > { %v12018_v44 = vpop.f32.mrb[36].mxu1 }
 0xcda   : > { %v12019_v32 = vadd.f32 %v12737_v35, %v12018_v44  ;;  %v15073_v59 = vpop.f32.mrb[37].mxu1 }
 0xcdb   : > { %v12021_v45 = vpop.f32.mrb[38].mxu1 }
 0xcdc   : > { %v12022_v63 = vadd.f32 %v12737_v35, %v12021_v45  ;;  %v15074_v0 = vpop.f32.mrb[39].mxu1  ;;  %v12025_v49 = vmax.f32 %v12019_v32, 0.0 }
 0xcde   : > { %v12026_v53 = vmax.f32 %v12022_v63, 0.0 }
 0xce0   : > { %v12027_v26 = vadd.f32 %v12026_v53, %v12025_v49 }
 0xce2   : > { %v12028_v36 = vrot.slane %v12027_v26, 4 }
 0xce4   : > { %v12029_v43 = vadd.f32 %v12028_v36, %v12027_v26 }
 0xce6   : > { %v12030_v13 = vrot.slane %v12029_v43, 2 }
 0xce8   : > { %v12031_v41 = vadd.f32 %v12030_v13, %v12029_v43 }
 0xcea   : > { %v12032_v27 = vrot.slane %v12031_v41, 1 }
 0xcec   : > { %v12033_v60 = vadd.f32 %v12032_v27, %v12031_v41 }
 0xcee   : > { %v12034_v38 = vmul.f32 0.0625, %v12033_v60 }
 0xcf0   : > { %v12038_v22 = vsel %vm12037_vm4, %v12034_v38, -inf }
 0xcf1   : > { %12039 = vmax.xlane.f32.xlu0 %v12038_v22 }
 0xd7e   : > { %v12040_v21 = vpop.xlane.xlu0 %12039 }
 0xd7f   : > { %v12041_v25 = vsub.f32 %v12034_v38, %v12040_v21 }
 0xd81   : > { %v12042_v50 = vmul.f32 1.442695, %v12041_v25 }
 0xd83   : > { %15638 = vpow2.f32 %v12042_v50 }
 0xd8d   : > { %v15639_v24 = vpop.eup %15638 }
 0xd8e   : > { %v12044_v10 = vsel %vm12037_vm4, %v15639_v24, 0.0 }
 0xd8f   : > { %12045 = vadd.xlane.f32.xlu0 %v12044_v10 }
 0xe1c   : > { %v12046_v4 = vpop.xlane.xlu0 %12045 }
 0xe1d   : > { %15640 = vlog2.f32 %v12046_v4 }
 0xe27   : > { %v15641_v19 = vpop.eup %15640 }
 0xe28   : > { %v12048_v33 = vmul.f32 0.6931472, %v15641_v19 }
 0xe2a   : > { %v12049_v12 = vsub.f32 %v12041_v25, %v12048_v33 }
 0xe2c   : > { %12051 = vst.msk [vmem:[%s594_s0] sm:$0x1] %vm12050_vm5, %v12049_v12 }
 0xe2d   : > { %15656 = shalt.err (!%p15653_p3)
}
 0xe2e   : > { %s15657_s19 = scalar_lea.hbm %s20395_s20, 16  ;;  %s15661_s24 = scalar_lea.hbm %s20529_s23, 32 }
 0xe2f   : > { %p15658_p4 = scmp.ne.s32.totalorder %s20395_s20, %s15657_s19  ;;  %p15662_p9 = scmp.lt.u32.totalorder %s20395_s20, %s20529_s23 }
 0xe30   : > { %p15663_p10 = scmp.lt.u32.totalorder %s15661_s24, %s15657_s19  ;;  %p15665_p12 = scmp.lt.u32.totalorder %s15657_s19, %s20395_s20 }
 0xe31   : > { %p15659_p7 = pnand %p15658_p4, %p15850_p5 }
 0xe32   : > { %p15664_p11 = por %p15663_p10, %p15662_p9 }
 0xe33   : > { %p15660_p8 = pneg %p15659_p7 }
 0xe34   : > { %p15666_p13 = por %p15665_p12, %p15664_p11 }
 0xe36   : > { %p15667_p0 = pnand %p15666_p13, %p15660_p8 }
 0xe38   : > { %15670 = shalt.err (!%p15667_p0)
}
 0xe39   : > { %15075 = dma.vmem_to_hbm [thread:$0]  (%p15850_p5), %s20397_s26, 16, %s20395_s20, %s12053_s4  }
 0xe3a PF: > { %s20530_s5 = sld [smem:[#allocation7_spill]]  ;;  %s20531_s27 = sld [smem:[#allocation5_spill]] }
 0xe40   : > { %p15081_p1 = scmp.ge.s32.totalorder %s20530_s5, 2  ;;  %s12077_s21 = sand.u32 1, %s20531_s27  }
 0xe41   : > { %s12078_s0 = scalar_lea.sflag [#allocation3], %s12077_s21 }
 0xe42   : > { %p15078_p2 = pnand %p15081_p1, %p15854_p6 }
 0xe44   : > { %15688 = dma.done.wait (!%p15078_p2), %s12078_s0, 16  }
 0xe45   : > { %15690 = vsyncadd (!%p15078_p2), %s12078_s0, 4294967280  ;;  %s20533_s21 = sld [smem:[#allocation8_spill]]  ;;  %s20534_s19 = sld [smem:[#allocation6_spill]] }
 0xe46   : > { %s20535_s20 = sld [smem:[#allocation9_spill]]  ;;  %s20536_s0 = smov %s15697_s30 }
 0xe4b   : > { %p29_p3 = scmp.ge.s32.totalorder %s20533_s21, 4   ;;  %s20537_s30 = smov %s20534_s19 }
 0xe4d   :  { %31 = sbr.rel (!%p29_p3) target bundleno = 11 (0xb), region = 131 }
 0xe54   :  { %12082 = vsyncpa [#allocation3], 1 }
 0xe55   :  { %12084 = vsyncpa [#allocation3 + $0x1], 1 }

</bundles_post_ra>
